<compile_context>
chip_gen: v7x
topology: tpu7x:2x2x1
jax: 0.10.0
libtpu: 0.0.40
codegen_flags: <defaults>
</compile_context>

<pallas_src>
import jax
import jax.numpy as jnp
from jax import lax
from jax.experimental import pallas as pl
from jax.experimental.pallas import tpu as pltpu

# ---- fixed hyper-parameters hard-coded by PhysicalAttention() defaults ----
ATTN_L = 196          # 14 * 14 vgg spatial locations
ATTN_D = 512
ATTN_D_DOWN = 16
BOTTLENECK = 3
EMB_DIM = 10
MLP_HID = 512
LN_EPS = 1e-5


def _full_spec(arr):
    """Full-array BlockSpec (block == whole array, constant index map)."""
    nd = arr.ndim
    return pl.BlockSpec(arr.shape, lambda *_, n=nd: (0,) * n)


# ---------------------------------------------------------------------------
# Fused kernel: PhysicalAttention + ConvTemporalGraphical + tcn + residual +
# final PReLU.  grid = (1,): the whole problem fits comfortably in VMEM.
# ---------------------------------------------------------------------------
def _fused_kernel(
        # data
        x_ref, epT_ref, vggT_ref, atbd_ref, tile_ref, shift_ref,
        # PhysicalAttention params (transposed: features on sublanes, L on lanes)
        wseT_ref, bseT_ref, wprojT_ref, bprojT_ref,
        w1fT_ref, w1eT_ref, b1T_ref, w2T_ref, b2T_ref,
        wattn_ref, battn_ref,
        # gcn 1x1 conv + tcn params
        wgx_ref, wgs_ref, bg_ref,
        ln1g_ref, ln1b_ref, a1_ref,
        wt_ref, bt_ref,
        ln2g_ref, ln2b_ref,
        ecin_ref, a2_ref,
        # output
        out_ref,
        # scratch: per-bottleneck-channel h2 rows, (V, 196) each
        h2c0_ref, h2c1_ref, h2c2_ref):
    f32 = jnp.float32
    TV = x_ref.shape[0]
    V = epT_ref.shape[1]
    COUT = out_ref.shape[1]
    KT = wt_ref.shape[0]

    # ---------------- PhysicalAttention ----------------
    # Everything is (feature, L): the 196 vgg locations live on the lane axis.
    # Pedestrian-invariant projection, computed ONCE (hoisted out of per-V work):
    fprojT = (jnp.dot(wprojT_ref[...], vggT_ref[...],
                      preferred_element_type=f32) + bprojT_ref[...])          # (16, 196)
    h1sT = (jnp.dot(w1fT_ref[...], fprojT,
                    preferred_element_type=f32) + b1T_ref[...])               # (512, 196)
    # per-pedestrian spatial embedding contribution (tiny)
    embT = (jnp.dot(wseT_ref[...], epT_ref[...],
                    preferred_element_type=f32) + bseT_ref[...])              # (10, V)
    etermT = jnp.dot(w1eT_ref[...], embT, preferred_element_type=f32)         # (512, V)

    w2T = w2T_ref[...]
    b2T = b2T_ref[...]
    h2c_refs = (h2c0_ref, h2c1_ref, h2c2_ref)
    for v in range(V):                                    # V is small & static
        # mlp_pre_attn layer 1 (ReLU of shared part + per-ped column bias)
        h1T = jnp.maximum(h1sT + etermT[:, v:v + 1], 0.0)                     # (512, 196)
        # mlp_pre_attn layer 2 + ReLU, lane-dense output (3, 196)
        h2T = jnp.maximum(
            jnp.dot(w2T, h1T, preferred_element_type=f32) + b2T, 0.0)         # (3, 196)
        for c in range(BOTTLENECK):
            h2c_refs[c][pl.ds(v, 1), :] = h2T[c:c + 1, :]

    h2c = [h2c_refs[c][...] for c in range(BOTTLENECK)]                       # 3 x (V, 196)

    # attn: Linear(196*3, 196) as 3 lane-dense (V,196)@(196,196) matmuls,
    # logits kept lane-major so the softmax reduces across lanes.
    logits = battn_ref[...]                                                   # (1, 196)
    for c in range(BOTTLENECK):
        logits = logits + jnp.dot(h2c[c], wattn_ref[c],
                                  preferred_element_type=f32)                 # (V, 196)
    m = jnp.max(logits, axis=1, keepdims=True)
    p = jnp.exp(logits - m)
    attn_w = p / jnp.sum(p, axis=1, keepdims=True)                            # (V, 196)

    # ssa_term = (sum_l attn_w * h2) @ wg_scene : per-pedestrian rows (V, COUT)
    wgs = wgs_ref[...]                                                        # (3, COUT)
    ssa_term = jnp.zeros((V, COUT), f32)
    for c in range(BOTTLENECK):
        ssa_term = ssa_term + (
            jnp.sum(attn_w * h2c[c], axis=1, keepdims=True) * wgs[c:c + 1, :])

    # ---------------- gcn: 1x1 conv + per-t graph matmul ----------------
    x_flat = x_ref[...]                                                       # (TV, CIN)
    g = (jnp.dot(x_flat, wgx_ref[...], preferred_element_type=f32)
         + jnp.dot(tile_ref[...], ssa_term, preferred_element_type=f32)       # tile ssa over T
         + bg_ref[...])                                                       # (TV, COUT)
    # einsum('nctv,tvw->nctw') == block-diagonal(A[t].T) @ g  (one matmul)
    h = jnp.dot(atbd_ref[...], g, preferred_element_type=f32)                 # (TV, COUT)

    # ---------------- tcn: LN -> PReLU -> temporal conv -> LN -> Dropout(0) --
    mu = jnp.mean(h, axis=-1, keepdims=True)
    var = jnp.mean((h - mu) ** 2, axis=-1, keepdims=True)
    hn = (h - mu) * lax.rsqrt(var + LN_EPS) * ln1g_ref[...] + ln1b_ref[...]
    z = jnp.where(hn >= 0, hn, a1_ref[...] * hn)                              # PReLU

    # temporal conv (KT,1), 'same' zero padding, via whole-slab shift matmuls
    y = bt_ref[...]                                                           # (1, COUT) broadcast
    for dt in range(KT):
        zw = jnp.dot(z, wt_ref[dt], preferred_element_type=f32)               # (TV, COUT)
        y = y + jnp.dot(shift_ref[dt], zw, preferred_element_type=f32)        # shifted + zero-padded

    mu2 = jnp.mean(y, axis=-1, keepdims=True)
    var2 = jnp.mean((y - mu2) ** 2, axis=-1, keepdims=True)
    yn = (y - mu2) * lax.rsqrt(var2 + LN_EPS) * ln2g_ref[...] + ln2b_ref[...]
    # TODO(synk): nn.Dropout(p=0) is the identity; stochastic dropout not implemented.

    # residual: x embedded into the first CIN output channels, then final PReLU
    yr = yn + jnp.dot(x_flat, ecin_ref[...], preferred_element_type=f32)
    out_ref[...] = jnp.where(yr >= 0, yr, a2_ref[...] * yr)


# ---------------------------------------------------------------------------
# Full SceneAttentionShare forward (wrapper glue around the fused kernel).
# ---------------------------------------------------------------------------
def scene_attention_share_forward(x, A, vgg, params):
    # x: (1, CIN, T, V), A: (T, V, V)  (A.shape[0] == gcn graph kernel size == T)
    N, CIN, T, V = x.shape
    assert N == 1, "module semantics require batch size 1"
    assert CIN == 2, "PhysicalAttention end positions require 2 input channels"
    assert A.shape[0] == T

    COUT = params["bg"].shape[-1]
    KT = params["wt"].shape[0]
    pad = (KT - 1) // 2
    TV = T * V

    # channels-last flattened inputs for the kernel
    end_posT = x[0, :, -1, :]                                   # (2, V)
    vggT = jnp.transpose(vgg.reshape(-1, ATTN_D))               # (512, 196)
    x_flat = jnp.transpose(x[0], (1, 2, 0)).reshape(TV, CIN)    # (T,V,CIN)->(TV,CIN)

    # block-diagonal transposed adjacency: at_bd[t*V+w, t*V+v] = A[t, v, w]
    at_t = jnp.transpose(A, (0, 2, 1)).astype(jnp.float32)      # (T, V, V)
    at_bd = (jnp.eye(T, dtype=jnp.float32)[:, None, :, None]
             * at_t[:, :, None, :]).reshape(TV, TV)
    # selection matrix tiling the per-pedestrian scene rows over T
    tile_sel = jnp.tile(jnp.eye(V, dtype=jnp.float32), (T, 1))  # (TV, V)
    # temporal-conv 0/1 shift matrices ('same' zero padding)
    r = jnp.arange(TV)
    shift = jnp.stack(
        [(r[:, None] + (dt - pad) * V == r[None, :]).astype(jnp.float32)
         for dt in range(KT)])                                  # (KT, TV, TV)

    args = (x_flat, end_posT, vggT, at_bd, tile_sel, shift,
            params["w_seT"], params["b_seT"], params["w_projT"], params["b_projT"],
            params["w1fT"], params["w1eT"], params["b1T"], params["w2T"], params["b2T"],
            params["w_attn_r"], params["b_attn"],
            params["wg_x"], params["wg_s"], params["bg"],
            params["ln1_g"], params["ln1_b"], params["alpha1"],
            params["wt"], params["bt"],
            params["ln2_g"], params["ln2_b"],
            params["ecin"], params["alpha2"])

    grid_spec = pltpu.PrefetchScalarGridSpec(
        num_scalar_prefetch=0,
        grid=(1,),
        in_specs=[_full_spec(a) for a in args],
        out_specs=pl.BlockSpec((TV, COUT), lambda i: (0, 0)),
        scratch_shapes=[pltpu.VMEM((V, ATTN_L), jnp.float32)
                        for _ in range(BOTTLENECK)],
    )
    out_flat = pl.pallas_call(
        _fused_kernel,
        out_shape=jax.ShapeDtypeStruct((TV, COUT), jnp.float32),
        grid_spec=grid_spec,
        compiler_params=pltpu.CompilerParams(dimension_semantics=("arbitrary",)),
    )(*args)

    out = jnp.transpose(out_flat.reshape(T, V, COUT), (2, 0, 1))[None]  # (1, COUT, T, V)
    return out, A


# ---------------------------------------------------------------------------
# Deterministic synthetic parameter initialization (shapes match the module).
# Attention weights are stored pre-transposed for the (feature, L) kernel layout.
# ---------------------------------------------------------------------------
def init_params(key, in_channels=2, out_channels=5, kt=3):
    ks = jax.random.split(key, 16)

    def rn(k, shape, scale=0.1):
        return (scale * jax.random.normal(k, shape)).astype(jnp.float32)

    # PhysicalAttention.  PyTorch Linear weights are (out, in); that is exactly
    # the orientation the transposed kernel wants (y_col = W @ x_col + b_col).
    w_seT = rn(ks[0], (EMB_DIM, 2))                     # spatial_embedding.weight
    b_seT = rn(ks[1], (EMB_DIM, 1))
    w_projT = rn(ks[2], (ATTN_D_DOWN, ATTN_D))          # pre_att_proj.weight
    b_projT = rn(ks[3], (ATTN_D_DOWN, 1))
    w1_pt = rn(ks[4], (MLP_HID, ATTN_D_DOWN + EMB_DIM))  # Linear(26, 512).weight
    b1T = rn(ks[5], (MLP_HID, 1))
    w2T = rn(ks[6], (BOTTLENECK, MLP_HID))              # Linear(512, 3).weight
    b2T = rn(ks[7], (BOTTLENECK, 1))
    w_attn_pt = rn(ks[8], (ATTN_L, ATTN_L * BOTTLENECK))  # Linear(588, 196).weight
    b_attn = rn(ks[9], (1, ATTN_L))
    # w_attn_r[c, l, o] = w_attn_pt[o, 3*l + c]  (lane-major logits matmul layout)
    w_attn_r = jnp.transpose(
        w_attn_pt.reshape(ATTN_L, ATTN_L, BOTTLENECK), (2, 1, 0))

    # gcn 1x1 conv: Conv2d(5 = CIN + 3, out_channels, (1,1)) -> split weight (in, out)
    wg = rn(ks[10], (in_channels + BOTTLENECK, out_channels))
    bg = rn(ks[11], (1, out_channels))

    # tcn temporal conv: Conv2d(out, out, (kt, 1)); wt[dt, cin, cout]
    wt = rn(ks[12], (kt, out_channels, out_channels))
    bt = rn(ks[13], (1, out_channels))

    # LayerNorm affine params (PyTorch init: weight=1, bias=0)
    ln1_g = jnp.ones((1, out_channels), jnp.float32)
    ln1_b = jnp.zeros((1, out_channels), jnp.float32)
    ln2_g = jnp.ones((1, out_channels), jnp.float32)
    ln2_b = jnp.zeros((1, out_channels), jnp.float32)

    # PReLU (default single parameter init = 0.25)
    alpha1 = jnp.full((1, 1), 0.25, jnp.float32)
    alpha2 = jnp.full((1, 1), 0.25, jnp.float32)

    # residual selection matrix: embeds CIN channels into first CIN of COUT
    ecin = jnp.eye(in_channels, out_channels, dtype=jnp.float32)

    return dict(
        w_seT=w_seT, b_seT=b_seT, w_projT=w_projT, b_projT=b_projT,
        w1fT=w1_pt[:, :ATTN_D_DOWN], w1eT=w1_pt[:, ATTN_D_DOWN:], b1T=b1T,
        w2T=w2T, b2T=b2T, w_attn_r=w_attn_r, b_attn=b_attn,
        wg_x=wg[:in_channels, :], wg_s=wg[in_channels:, :], bg=bg,
        ln1_g=ln1_g, ln1_b=ln1_b, alpha1=alpha1,
        wt=wt, bt=bt, ln2_g=ln2_g, ln2_b=ln2_b,
        ecin=ecin, alpha2=alpha2,
    )


if __name__ == "__main__":
    key = jax.random.PRNGKey(0)
    k_x, k_a, k_vgg, k_p = jax.random.split(key, 4)

    # small shapes consistent with the module:
    # x: (1, in_channels=2, T=8, V=5), A: (T=kernel_size[1]=8, V, V), vgg: (1,14,14,512)
    N, CIN, T, V = 1, 2, 8, 5
    COUT, KT = 5, 3

    x = jax.random.normal(k_x, (N, CIN, T, V), dtype=jnp.float32)
    A = 0.3 * jax.random.normal(k_a, (T, V, V), dtype=jnp.float32)
    vgg = jax.random.normal(k_vgg, (1, 14, 14, ATTN_D), dtype=jnp.float32)

    params = init_params(k_p, in_channels=CIN, out_channels=COUT, kt=KT)

    out, A_out = scene_attention_share_forward(x, A, vgg, params)
    out = jax.block_until_ready(out)
    assert out.shape == (N, COUT, T, V)
    assert A_out.shape == (T, V, V)
    print("KERNEL_OK")
</pallas_src>

<mosaic_0001>
module attributes {stable_mosaic.version = 11 : i64} {
  func.func @_fused_kernel(%arg0: i32, %arg1: memref<40x2xf32, #tpu.memory_space<vmem>>, %arg2: memref<2x5xf32, #tpu.memory_space<vmem>>, %arg3: memref<512x196xf32, #tpu.memory_space<vmem>>, %arg4: memref<40x40xf32, #tpu.memory_space<vmem>>, %arg5: memref<40x5xf32, #tpu.memory_space<vmem>>, %arg6: memref<3x40x40xf32, #tpu.memory_space<vmem>>, %arg7: memref<10x2xf32, #tpu.memory_space<vmem>>, %arg8: memref<10x1xf32, #tpu.memory_space<vmem>>, %arg9: memref<16x512xf32, #tpu.memory_space<vmem>>, %arg10: memref<16x1xf32, #tpu.memory_space<vmem>>, %arg11: memref<512x16xf32, #tpu.memory_space<vmem>>, %arg12: memref<512x10xf32, #tpu.memory_space<vmem>>, %arg13: memref<512x1xf32, #tpu.memory_space<vmem>>, %arg14: memref<3x512xf32, #tpu.memory_space<vmem>>, %arg15: memref<3x1xf32, #tpu.memory_space<vmem>>, %arg16: memref<3x196x196xf32, #tpu.memory_space<vmem>>, %arg17: memref<1x196xf32, #tpu.memory_space<vmem>>, %arg18: memref<2x5xf32, #tpu.memory_space<vmem>>, %arg19: memref<3x5xf32, #tpu.memory_space<vmem>>, %arg20: memref<1x5xf32, #tpu.memory_space<vmem>>, %arg21: memref<1x5xf32, #tpu.memory_space<vmem>>, %arg22: memref<1x5xf32, #tpu.memory_space<vmem>>, %arg23: memref<1x1xf32, #tpu.memory_space<vmem>>, %arg24: memref<3x5x5xf32, #tpu.memory_space<vmem>>, %arg25: memref<1x5xf32, #tpu.memory_space<vmem>>, %arg26: memref<1x5xf32, #tpu.memory_space<vmem>>, %arg27: memref<1x5xf32, #tpu.memory_space<vmem>>, %arg28: memref<2x5xf32, #tpu.memory_space<vmem>>, %arg29: memref<1x1xf32, #tpu.memory_space<vmem>>, %arg30: memref<40x5xf32, #tpu.memory_space<vmem>>, %arg31: memref<5x196xf32, #tpu.memory_space<vmem>>, %arg32: memref<5x196xf32, #tpu.memory_space<vmem>>, %arg33: memref<5x196xf32, #tpu.memory_space<vmem>>) attributes {dimension_semantics = [#tpu.dimension_semantics<arbitrary>], iteration_bounds = array<i64: 1>, scalar_prefetch = 0 : i64, scratch_operands = 3 : i64, tpu.core_type = #tpu.core_type<tc>, window_params = [{pipeline_mode = #tpu.pipeline_mode<synchronous>, transform_indices = @transform_0, window_bounds = array<i64: 40, 2>}, {pipeline_mode = #tpu.pipeline_mode<synchronous>, transform_indices = @transform_1, window_bounds = array<i64: 2, 5>}, {pipeline_mode = #tpu.pipeline_mode<synchronous>, transform_indices = @transform_2, window_bounds = array<i64: 512, 196>}, {pipeline_mode = #tpu.pipeline_mode<synchronous>, transform_indices = @transform_3, window_bounds = array<i64: 40, 40>}, {pipeline_mode = #tpu.pipeline_mode<synchronous>, transform_indices = @transform_4, window_bounds = array<i64: 40, 5>}, {pipeline_mode = #tpu.pipeline_mode<synchronous>, transform_indices = @transform_5, window_bounds = array<i64: 3, 40, 40>}, {pipeline_mode = #tpu.pipeline_mode<synchronous>, transform_indices = @transform_6, window_bounds = array<i64: 10, 2>}, {pipeline_mode = #tpu.pipeline_mode<synchronous>, transform_indices = @transform_7, window_bounds = array<i64: 10, 1>}, {pipeline_mode = #tpu.pipeline_mode<synchronous>, transform_indices = @transform_8, window_bounds = array<i64: 16, 512>}, {pipeline_mode = #tpu.pipeline_mode<synchronous>, transform_indices = @transform_9, window_bounds = array<i64: 16, 1>}, {pipeline_mode = #tpu.pipeline_mode<synchronous>, transform_indices = @transform_10, window_bounds = array<i64: 512, 16>}, {pipeline_mode = #tpu.pipeline_mode<synchronous>, transform_indices = @transform_11, window_bounds = array<i64: 512, 10>}, {pipeline_mode = #tpu.pipeline_mode<synchronous>, transform_indices = @transform_12, window_bounds = array<i64: 512, 1>}, {pipeline_mode = #tpu.pipeline_mode<synchronous>, transform_indices = @transform_13, window_bounds = array<i64: 3, 512>}, {pipeline_mode = #tpu.pipeline_mode<synchronous>, transform_indices = @transform_14, window_bounds = array<i64: 3, 1>}, {pipeline_mode = #tpu.pipeline_mode<synchronous>, transform_indices = @transform_15, window_bounds = array<i64: 3, 196, 196>}, {pipeline_mode = #tpu.pipeline_mode<synchronous>, transform_indices = @transform_16, window_bounds = array<i64: 1, 196>}, {pipeline_mode = #tpu.pipeline_mode<synchronous>, transform_indices = @transform_17, window_bounds = array<i64: 2, 5>}, {pipeline_mode = #tpu.pipeline_mode<synchronous>, transform_indices = @transform_18, window_bounds = array<i64: 3, 5>}, {pipeline_mode = #tpu.pipeline_mode<synchronous>, transform_indices = @transform_19, window_bounds = array<i64: 1, 5>}, {pipeline_mode = #tpu.pipeline_mode<synchronous>, transform_indices = @transform_20, window_bounds = array<i64: 1, 5>}, {pipeline_mode = #tpu.pipeline_mode<synchronous>, transform_indices = @transform_21, window_bounds = array<i64: 1, 5>}, {pipeline_mode = #tpu.pipeline_mode<synchronous>, transform_indices = @transform_22, window_bounds = array<i64: 1, 1>}, {pipeline_mode = #tpu.pipeline_mode<synchronous>, transform_indices = @transform_23, window_bounds = array<i64: 3, 5, 5>}, {pipeline_mode = #tpu.pipeline_mode<synchronous>, transform_indices = @transform_24, window_bounds = array<i64: 1, 5>}, {pipeline_mode = #tpu.pipeline_mode<synchronous>, transform_indices = @transform_25, window_bounds = array<i64: 1, 5>}, {pipeline_mode = #tpu.pipeline_mode<synchronous>, transform_indices = @transform_26, window_bounds = array<i64: 1, 5>}, {pipeline_mode = #tpu.pipeline_mode<synchronous>, transform_indices = @transform_27, window_bounds = array<i64: 2, 5>}, {pipeline_mode = #tpu.pipeline_mode<synchronous>, transform_indices = @transform_28, window_bounds = array<i64: 1, 1>}, {pipeline_mode = #tpu.pipeline_mode<synchronous>, transform_indices = @transform_29, window_bounds = array<i64: 40, 5>}]} {
    %c0 = arith.constant 0 : index
    %c0_0 = arith.constant 0 : index
    %0 = vector.load %arg9[%c0, %c0_0] : memref<16x512xf32, #tpu.memory_space<vmem>>, vector<16x512xf32>
    %c0_1 = arith.constant 0 : index
    %c0_2 = arith.constant 0 : index
    %1 = vector.load %arg3[%c0_1, %c0_2] : memref<512x196xf32, #tpu.memory_space<vmem>>, vector<512x196xf32>
    %cst = arith.constant dense<0.000000e+00> : vector<16x196xf32>
    %2 = tpu.matmul %0, %1, %cst {dimension_numbers = #tpu.dot_dimension_numbers<[1], [0], [0], [1], [0, 0, 1, 1], [], []>} : vector<16x512xf32>, vector<512x196xf32>, vector<16x196xf32> -> vector<16x196xf32>
    %c0_3 = arith.constant 0 : index
    %c0_4 = arith.constant 0 : index
    %3 = vector.load %arg10[%c0_3, %c0_4] : memref<16x1xf32, #tpu.memory_space<vmem>>, vector<16x1xf32>
    %4 = vector.broadcast %3 : vector<16x1xf32> to vector<16x196xf32>
    %5 = arith.addf %2, %4 : vector<16x196xf32>
    %c0_5 = arith.constant 0 : index
    %c0_6 = arith.constant 0 : index
    %6 = vector.load %arg11[%c0_5, %c0_6] : memref<512x16xf32, #tpu.memory_space<vmem>>, vector<512x16xf32>
    %cst_7 = arith.constant dense<0.000000e+00> : vector<512x196xf32>
    %7 = tpu.matmul %6, %5, %cst_7 {dimension_numbers = #tpu.dot_dimension_numbers<[1], [0], [0], [1], [0, 0, 1, 1], [], []>} : vector<512x16xf32>, vector<16x196xf32>, vector<512x196xf32> -> vector<512x196xf32>
    %c0_8 = arith.constant 0 : index
    %c0_9 = arith.constant 0 : index
    %8 = vector.load %arg13[%c0_8, %c0_9] : memref<512x1xf32, #tpu.memory_space<vmem>>, vector<512x1xf32>
    %9 = vector.broadcast %8 : vector<512x1xf32> to vector<512x196xf32>
    %10 = arith.addf %7, %9 : vector<512x196xf32>
    %c0_10 = arith.constant 0 : index
    %c0_11 = arith.constant 0 : index
    %11 = vector.load %arg7[%c0_10, %c0_11] : memref<10x2xf32, #tpu.memory_space<vmem>>, vector<10x2xf32>
    %c0_12 = arith.constant 0 : index
    %c0_13 = arith.constant 0 : index
    %12 = vector.load %arg2[%c0_12, %c0_13] : memref<2x5xf32, #tpu.memory_space<vmem>>, vector<2x5xf32>
    %cst_14 = arith.constant dense<0.000000e+00> : vector<10x5xf32>
    %13 = tpu.matmul %11, %12, %cst_14 {dimension_numbers = #tpu.dot_dimension_numbers<[1], [0], [0], [1], [0, 0, 1, 1], [], []>} : vector<10x2xf32>, vector<2x5xf32>, vector<10x5xf32> -> vector<10x5xf32>
    %c0_15 = arith.constant 0 : index
    %c0_16 = arith.constant 0 : index
    %14 = vector.load %arg8[%c0_15, %c0_16] : memref<10x1xf32, #tpu.memory_space<vmem>>, vector<10x1xf32>
    %15 = vector.broadcast %14 : vector<10x1xf32> to vector<10x5xf32>
    %16 = arith.addf %13, %15 : vector<10x5xf32>
    %c0_17 = arith.constant 0 : index
    %c0_18 = arith.constant 0 : index
    %17 = vector.load %arg12[%c0_17, %c0_18] : memref<512x10xf32, #tpu.memory_space<vmem>>, vector<512x10xf32>
    %cst_19 = arith.constant dense<0.000000e+00> : vector<512x5xf32>
    %18 = tpu.matmul %17, %16, %cst_19 {dimension_numbers = #tpu.dot_dimension_numbers<[1], [0], [0], [1], [0, 0, 1, 1], [], []>} : vector<512x10xf32>, vector<10x5xf32>, vector<512x5xf32> -> vector<512x5xf32>
    %c0_20 = arith.constant 0 : index
    %c0_21 = arith.constant 0 : index
    %19 = vector.load %arg14[%c0_20, %c0_21] : memref<3x512xf32, #tpu.memory_space<vmem>>, vector<3x512xf32>
    %c0_22 = arith.constant 0 : index
    %c0_23 = arith.constant 0 : index
    %20 = vector.load %arg15[%c0_22, %c0_23] : memref<3x1xf32, #tpu.memory_space<vmem>>, vector<3x1xf32>
    %21 = vector.extract_strided_slice %18 {offsets = [0, 0], sizes = [512, 1], strides = [1, 1]} : vector<512x5xf32> to vector<512x1xf32>
    %22 = vector.broadcast %21 : vector<512x1xf32> to vector<512x196xf32>
    %23 = arith.addf %10, %22 : vector<512x196xf32>
    %cst_24 = arith.constant 0.000000e+00 : f32
    %24 = vector.broadcast %cst_24 : f32 to vector<512x196xf32>
    %25 = arith.maximumf %23, %24 : vector<512x196xf32>
    %cst_25 = arith.constant dense<0.000000e+00> : vector<3x196xf32>
    %26 = tpu.matmul %19, %25, %cst_25 {dimension_numbers = #tpu.dot_dimension_numbers<[1], [0], [0], [1], [0, 0, 1, 1], [], []>} : vector<3x512xf32>, vector<512x196xf32>, vector<3x196xf32> -> vector<3x196xf32>
    %27 = vector.broadcast %20 : vector<3x1xf32> to vector<3x196xf32>
    %28 = arith.addf %26, %27 : vector<3x196xf32>
    %cst_26 = arith.constant 0.000000e+00 : f32
    %29 = vector.broadcast %cst_26 : f32 to vector<3x196xf32>
    %30 = arith.maximumf %28, %29 : vector<3x196xf32>
    %31 = vector.extract_strided_slice %30 {offsets = [0, 0], sizes = [1, 196], strides = [1, 1]} : vector<3x196xf32> to vector<1x196xf32>
    %c0_27 = arith.constant 0 : index
    %c0_28 = arith.constant 0 : index
    %32 = vector.load %arg31[%c0_27, %c0_28] : memref<5x196xf32, #tpu.memory_space<vmem>>, vector<1x196xf32>
    tpu.vector_store %arg31[%c0_27, %c0_28], %31 {strides = array<i32>} : memref<5x196xf32, #tpu.memory_space<vmem>>, vector<1x196xf32>,
    %33 = vector.extract_strided_slice %30 {offsets = [1, 0], sizes = [1, 196], strides = [1, 1]} : vector<3x196xf32> to vector<1x196xf32>
    %c0_29 = arith.constant 0 : index
    %c0_30 = arith.constant 0 : index
    %34 = vector.load %arg32[%c0_29, %c0_30] : memref<5x196xf32, #tpu.memory_space<vmem>>, vector<1x196xf32>
    tpu.vector_store %arg32[%c0_29, %c0_30], %33 {strides = array<i32>} : memref<5x196xf32, #tpu.memory_space<vmem>>, vector<1x196xf32>,
    %35 = vector.extract_strided_slice %30 {offsets = [2, 0], sizes = [1, 196], strides = [1, 1]} : vector<3x196xf32> to vector<1x196xf32>
    %c0_31 = arith.constant 0 : index
    %c0_32 = arith.constant 0 : index
    %36 = vector.load %arg33[%c0_31, %c0_32] : memref<5x196xf32, #tpu.memory_space<vmem>>, vector<1x196xf32>
    tpu.vector_store %arg33[%c0_31, %c0_32], %35 {strides = array<i32>} : memref<5x196xf32, #tpu.memory_space<vmem>>, vector<1x196xf32>,
    %37 = vector.extract_strided_slice %18 {offsets = [0, 1], sizes = [512, 1], strides = [1, 1]} : vector<512x5xf32> to vector<512x1xf32>
    %38 = vector.broadcast %37 : vector<512x1xf32> to vector<512x196xf32>
    %39 = arith.addf %10, %38 : vector<512x196xf32>
    %cst_33 = arith.constant 0.000000e+00 : f32
    %40 = vector.broadcast %cst_33 : f32 to vector<512x196xf32>
    %41 = arith.maximumf %39, %40 : vector<512x196xf32>
    %cst_34 = arith.constant dense<0.000000e+00> : vector<3x196xf32>
    %42 = tpu.matmul %19, %41, %cst_34 {dimension_numbers = #tpu.dot_dimension_numbers<[1], [0], [0], [1], [0, 0, 1, 1], [], []>} : vector<3x512xf32>, vector<512x196xf32>, vector<3x196xf32> -> vector<3x196xf32>
    %43 = vector.broadcast %20 : vector<3x1xf32> to vector<3x196xf32>
    %44 = arith.addf %42, %43 : vector<3x196xf32>
    %cst_35 = arith.constant 0.000000e+00 : f32
    %45 = vector.broadcast %cst_35 : f32 to vector<3x196xf32>
    %46 = arith.maximumf %44, %45 : vector<3x196xf32>
    %47 = vector.extract_strided_slice %46 {offsets = [0, 0], sizes = [1, 196], strides = [1, 1]} : vector<3x196xf32> to vector<1x196xf32>
    %c1 = arith.constant 1 : index
    %c0_36 = arith.constant 0 : index
    %48 = vector.load %arg31[%c1, %c0_36] : memref<5x196xf32, #tpu.memory_space<vmem>>, vector<1x196xf32>
    tpu.vector_store %arg31[%c1, %c0_36], %47 {strides = array<i32>} : memref<5x196xf32, #tpu.memory_space<vmem>>, vector<1x196xf32>,
    %49 = vector.extract_strided_slice %46 {offsets = [1, 0], sizes = [1, 196], strides = [1, 1]} : vector<3x196xf32> to vector<1x196xf32>
    %c1_37 = arith.constant 1 : index
    %c0_38 = arith.constant 0 : index
    %50 = vector.load %arg32[%c1_37, %c0_38] : memref<5x196xf32, #tpu.memory_space<vmem>>, vector<1x196xf32>
    tpu.vector_store %arg32[%c1_37, %c0_38], %49 {strides = array<i32>} : memref<5x196xf32, #tpu.memory_space<vmem>>, vector<1x196xf32>,
    %51 = vector.extract_strided_slice %46 {offsets = [2, 0], sizes = [1, 196], strides = [1, 1]} : vector<3x196xf32> to vector<1x196xf32>
    %c1_39 = arith.constant 1 : index
    %c0_40 = arith.constant 0 : index
    %52 = vector.load %arg33[%c1_39, %c0_40] : memref<5x196xf32, #tpu.memory_space<vmem>>, vector<1x196xf32>
    tpu.vector_store %arg33[%c1_39, %c0_40], %51 {strides = array<i32>} : memref<5x196xf32, #tpu.memory_space<vmem>>, vector<1x196xf32>,
    %53 = vector.extract_strided_slice %18 {offsets = [0, 2], sizes = [512, 1], strides = [1, 1]} : vector<512x5xf32> to vector<512x1xf32>
    %54 = vector.broadcast %53 : vector<512x1xf32> to vector<512x196xf32>
    %55 = arith.addf %10, %54 : vector<512x196xf32>
    %cst_41 = arith.constant 0.000000e+00 : f32
    %56 = vector.broadcast %cst_41 : f32 to vector<512x196xf32>
    %57 = arith.maximumf %55, %56 : vector<512x196xf32>
    %cst_42 = arith.constant dense<0.000000e+00> : vector<3x196xf32>
    %58 = tpu.matmul %19, %57, %cst_42 {dimension_numbers = #tpu.dot_dimension_numbers<[1], [0], [0], [1], [0, 0, 1, 1], [], []>} : vector<3x512xf32>, vector<512x196xf32>, vector<3x196xf32> -> vector<3x196xf32>
    %59 = vector.broadcast %20 : vector<3x1xf32> to vector<3x196xf32>
    %60 = arith.addf %58, %59 : vector<3x196xf32>
    %cst_43 = arith.constant 0.000000e+00 : f32
    %61 = vector.broadcast %cst_43 : f32 to vector<3x196xf32>
    %62 = arith.maximumf %60, %61 : vector<3x196xf32>
    %63 = vector.extract_strided_slice %62 {offsets = [0, 0], sizes = [1, 196], strides = [1, 1]} : vector<3x196xf32> to vector<1x196xf32>
    %c2 = arith.constant 2 : index
    %c0_44 = arith.constant 0 : index
    %64 = vector.load %arg31[%c2, %c0_44] : memref<5x196xf32, #tpu.memory_space<vmem>>, vector<1x196xf32>
    tpu.vector_store %arg31[%c2, %c0_44], %63 {strides = array<i32>} : memref<5x196xf32, #tpu.memory_space<vmem>>, vector<1x196xf32>,
    %65 = vector.extract_strided_slice %62 {offsets = [1, 0], sizes = [1, 196], strides = [1, 1]} : vector<3x196xf32> to vector<1x196xf32>
    %c2_45 = arith.constant 2 : index
    %c0_46 = arith.constant 0 : index
    %66 = vector.load %arg32[%c2_45, %c0_46] : memref<5x196xf32, #tpu.memory_space<vmem>>, vector<1x196xf32>
    tpu.vector_store %arg32[%c2_45, %c0_46], %65 {strides = array<i32>} : memref<5x196xf32, #tpu.memory_space<vmem>>, vector<1x196xf32>,
    %67 = vector.extract_strided_slice %62 {offsets = [2, 0], sizes = [1, 196], strides = [1, 1]} : vector<3x196xf32> to vector<1x196xf32>
    %c2_47 = arith.constant 2 : index
    %c0_48 = arith.constant 0 : index
    %68 = vector.load %arg33[%c2_47, %c0_48] : memref<5x196xf32, #tpu.memory_space<vmem>>, vector<1x196xf32>
    tpu.vector_store %arg33[%c2_47, %c0_48], %67 {strides = array<i32>} : memref<5x196xf32, #tpu.memory_space<vmem>>, vector<1x196xf32>,
    %69 = vector.extract_strided_slice %18 {offsets = [0, 3], sizes = [512, 1], strides = [1, 1]} : vector<512x5xf32> to vector<512x1xf32>
    %70 = vector.broadcast %69 : vector<512x1xf32> to vector<512x196xf32>
    %71 = arith.addf %10, %70 : vector<512x196xf32>
    %cst_49 = arith.constant 0.000000e+00 : f32
    %72 = vector.broadcast %cst_49 : f32 to vector<512x196xf32>
    %73 = arith.maximumf %71, %72 : vector<512x196xf32>
    %cst_50 = arith.constant dense<0.000000e+00> : vector<3x196xf32>
    %74 = tpu.matmul %19, %73, %cst_50 {dimension_numbers = #tpu.dot_dimension_numbers<[1], [0], [0], [1], [0, 0, 1, 1], [], []>} : vector<3x512xf32>, vector<512x196xf32>, vector<3x196xf32> -> vector<3x196xf32>
    %75 = vector.broadcast %20 : vector<3x1xf32> to vector<3x196xf32>
    %76 = arith.addf %74, %75 : vector<3x196xf32>
    %cst_51 = arith.constant 0.000000e+00 : f32
    %77 = vector.broadcast %cst_51 : f32 to vector<3x196xf32>
    %78 = arith.maximumf %76, %77 : vector<3x196xf32>
    %79 = vector.extract_strided_slice %78 {offsets = [0, 0], sizes = [1, 196], strides = [1, 1]} : vector<3x196xf32> to vector<1x196xf32>
    %c3 = arith.constant 3 : index
    %c0_52 = arith.constant 0 : index
    %80 = vector.load %arg31[%c3, %c0_52] : memref<5x196xf32, #tpu.memory_space<vmem>>, vector<1x196xf32>
    tpu.vector_store %arg31[%c3, %c0_52], %79 {strides = array<i32>} : memref<5x196xf32, #tpu.memory_space<vmem>>, vector<1x196xf32>,
    %81 = vector.extract_strided_slice %78 {offsets = [1, 0], sizes = [1, 196], strides = [1, 1]} : vector<3x196xf32> to vector<1x196xf32>
    %c3_53 = arith.constant 3 : index
    %c0_54 = arith.constant 0 : index
    %82 = vector.load %arg32[%c3_53, %c0_54] : memref<5x196xf32, #tpu.memory_space<vmem>>, vector<1x196xf32>
    tpu.vector_store %arg32[%c3_53, %c0_54], %81 {strides = array<i32>} : memref<5x196xf32, #tpu.memory_space<vmem>>, vector<1x196xf32>,
    %83 = vector.extract_strided_slice %78 {offsets = [2, 0], sizes = [1, 196], strides = [1, 1]} : vector<3x196xf32> to vector<1x196xf32>
    %c3_55 = arith.constant 3 : index
    %c0_56 = arith.constant 0 : index
    %84 = vector.load %arg33[%c3_55, %c0_56] : memref<5x196xf32, #tpu.memory_space<vmem>>, vector<1x196xf32>
    tpu.vector_store %arg33[%c3_55, %c0_56], %83 {strides = array<i32>} : memref<5x196xf32, #tpu.memory_space<vmem>>, vector<1x196xf32>,
    %85 = vector.extract_strided_slice %18 {offsets = [0, 4], sizes = [512, 1], strides = [1, 1]} : vector<512x5xf32> to vector<512x1xf32>
    %86 = vector.broadcast %85 : vector<512x1xf32> to vector<512x196xf32>
    %87 = arith.addf %10, %86 : vector<512x196xf32>
    %cst_57 = arith.constant 0.000000e+00 : f32
    %88 = vector.broadcast %cst_57 : f32 to vector<512x196xf32>
    %89 = arith.maximumf %87, %88 : vector<512x196xf32>
    %cst_58 = arith.constant dense<0.000000e+00> : vector<3x196xf32>
    %90 = tpu.matmul %19, %89, %cst_58 {dimension_numbers = #tpu.dot_dimension_numbers<[1], [0], [0], [1], [0, 0, 1, 1], [], []>} : vector<3x512xf32>, vector<512x196xf32>, vector<3x196xf32> -> vector<3x196xf32>
    %91 = vector.broadcast %20 : vector<3x1xf32> to vector<3x196xf32>
    %92 = arith.addf %90, %91 : vector<3x196xf32>
    %cst_59 = arith.constant 0.000000e+00 : f32
    %93 = vector.broadcast %cst_59 : f32 to vector<3x196xf32>
    %94 = arith.maximumf %92, %93 : vector<3x196xf32>
    %95 = vector.extract_strided_slice %94 {offsets = [0, 0], sizes = [1, 196], strides = [1, 1]} : vector<3x196xf32> to vector<1x196xf32>
    %c4 = arith.constant 4 : index
    %c0_60 = arith.constant 0 : index
    %96 = vector.load %arg31[%c4, %c0_60] : memref<5x196xf32, #tpu.memory_space<vmem>>, vector<1x196xf32>
    tpu.vector_store %arg31[%c4, %c0_60], %95 {strides = array<i32>} : memref<5x196xf32, #tpu.memory_space<vmem>>, vector<1x196xf32>,
    %97 = vector.extract_strided_slice %94 {offsets = [1, 0], sizes = [1, 196], strides = [1, 1]} : vector<3x196xf32> to vector<1x196xf32>
    %c4_61 = arith.constant 4 : index
    %c0_62 = arith.constant 0 : index
    %98 = vector.load %arg32[%c4_61, %c0_62] : memref<5x196xf32, #tpu.memory_space<vmem>>, vector<1x196xf32>
    tpu.vector_store %arg32[%c4_61, %c0_62], %97 {strides = array<i32>} : memref<5x196xf32, #tpu.memory_space<vmem>>, vector<1x196xf32>,
    %99 = vector.extract_strided_slice %94 {offsets = [2, 0], sizes = [1, 196], strides = [1, 1]} : vector<3x196xf32> to vector<1x196xf32>
    %c4_63 = arith.constant 4 : index
    %c0_64 = arith.constant 0 : index
    %100 = vector.load %arg33[%c4_63, %c0_64] : memref<5x196xf32, #tpu.memory_space<vmem>>, vector<1x196xf32>
    tpu.vector_store %arg33[%c4_63, %c0_64], %99 {strides = array<i32>} : memref<5x196xf32, #tpu.memory_space<vmem>>, vector<1x196xf32>,
    %c0_65 = arith.constant 0 : index
    %c0_66 = arith.constant 0 : index
    %101 = vector.load %arg31[%c0_65, %c0_66] : memref<5x196xf32, #tpu.memory_space<vmem>>, vector<5x196xf32>
    %c0_67 = arith.constant 0 : index
    %c0_68 = arith.constant 0 : index
    %102 = vector.load %arg32[%c0_67, %c0_68] : memref<5x196xf32, #tpu.memory_space<vmem>>, vector<5x196xf32>
    %c0_69 = arith.constant 0 : index
    %c0_70 = arith.constant 0 : index
    %103 = vector.load %arg33[%c0_69, %c0_70] : memref<5x196xf32, #tpu.memory_space<vmem>>, vector<5x196xf32>
    %c0_71 = arith.constant 0 : index
    %c0_72 = arith.constant 0 : index
    %104 = vector.load %arg17[%c0_71, %c0_72] : memref<1x196xf32, #tpu.memory_space<vmem>>, vector<1x196xf32>
    %c0_73 = arith.constant 0 : index
    %c0_74 = arith.constant 0 : index
    %c0_75 = arith.constant 0 : index
    %105 = vector.load %arg16[%c0_73, %c0_74, %c0_75] : memref<3x196x196xf32, #tpu.memory_space<vmem>>, vector<1x196x196xf32>
    %106 = vector.shape_cast %105 : vector<1x196x196xf32> to vector<196x196xf32>
    %cst_76 = arith.constant dense<0.000000e+00> : vector<5x196xf32>
    %107 = tpu.matmul %101, %106, %cst_76 {dimension_numbers = #tpu.dot_dimension_numbers<[1], [0], [0], [1], [0, 0, 1, 1], [], []>} : vector<5x196xf32>, vector<196x196xf32>, vector<5x196xf32> -> vector<5x196xf32>
    %108 = vector.broadcast %104 : vector<1x196xf32> to vector<5x196xf32>
    %109 = arith.addf %108, %107 : vector<5x196xf32>
    %c1_77 = arith.constant 1 : index
    %c0_78 = arith.constant 0 : index
    %c0_79 = arith.constant 0 : index
    %110 = vector.load %arg16[%c1_77, %c0_78, %c0_79] : memref<3x196x196xf32, #tpu.memory_space<vmem>>, vector<1x196x196xf32>
    %111 = vector.shape_cast %110 : vector<1x196x196xf32> to vector<196x196xf32>
    %cst_80 = arith.constant dense<0.000000e+00> : vector<5x196xf32>
    %112 = tpu.matmul %102, %111, %cst_80 {dimension_numbers = #tpu.dot_dimension_numbers<[1], [0], [0], [1], [0, 0, 1, 1], [], []>} : vector<5x196xf32>, vector<196x196xf32>, vector<5x196xf32> -> vector<5x196xf32>
    %113 = arith.addf %109, %112 : vector<5x196xf32>
    %c2_81 = arith.constant 2 : index
    %c0_82 = arith.constant 0 : index
    %c0_83 = arith.constant 0 : index
    %114 = vector.load %arg16[%c2_81, %c0_82, %c0_83] : memref<3x196x196xf32, #tpu.memory_space<vmem>>, vector<1x196x196xf32>
    %115 = vector.shape_cast %114 : vector<1x196x196xf32> to vector<196x196xf32>
    %cst_84 = arith.constant dense<0.000000e+00> : vector<5x196xf32>
    %116 = tpu.matmul %103, %115, %cst_84 {dimension_numbers = #tpu.dot_dimension_numbers<[1], [0], [0], [1], [0, 0, 1, 1], [], []>} : vector<5x196xf32>, vector<196x196xf32>, vector<5x196xf32> -> vector<5x196xf32>
    %117 = arith.addf %113, %116 : vector<5x196xf32>
    %cst_85 = arith.constant dense<0xFF800000> : vector<5xf32>
    %118 = vector.multi_reduction <maximumf>, %117, %cst_85 [1] : vector<5x196xf32> to vector<5xf32>
    %119 = vector.shape_cast %118 : vector<5xf32> to vector<5x1xf32>
    %120 = vector.broadcast %119 : vector<5x1xf32> to vector<5x196xf32>
    %121 = arith.subf %117, %120 : vector<5x196xf32>
    %122 = math.exp %121 : vector<5x196xf32>
    %cst_86 = arith.constant dense<0.000000e+00> : vector<5xf32>
    %123 = vector.multi_reduction <add>, %122, %cst_86 [1] : vector<5x196xf32> to vector<5xf32>
    %124 = vector.shape_cast %123 : vector<5xf32> to vector<5x1xf32>
    %125 = vector.broadcast %124 : vector<5x1xf32> to vector<5x196xf32>
    %126 = arith.divf %122, %125 : vector<5x196xf32>
    %c0_87 = arith.constant 0 : index
    %c0_88 = arith.constant 0 : index
    %127 = vector.load %arg19[%c0_87, %c0_88] : memref<3x5xf32, #tpu.memory_space<vmem>>, vector<3x5xf32>
    %cst_89 = arith.constant 0.000000e+00 : f32
    %128 = vector.broadcast %cst_89 : f32 to vector<5x5xf32>
    %129 = arith.mulf %126, %101 : vector<5x196xf32>
    %cst_90 = arith.constant dense<0.000000e+00> : vector<5xf32>
    %130 = vector.multi_reduction <add>, %129, %cst_90 [1] : vector<5x196xf32> to vector<5xf32>
    %131 = vector.shape_cast %130 : vector<5xf32> to vector<5x1xf32>
    %132 = vector.extract_strided_slice %127 {offsets = [0, 0], sizes = [1, 5], strides = [1, 1]} : vector<3x5xf32> to vector<1x5xf32>
    %133 = vector.broadcast %131 : vector<5x1xf32> to vector<5x5xf32>
    %134 = vector.broadcast %132 : vector<1x5xf32> to vector<5x5xf32>
    %135 = arith.mulf %133, %134 : vector<5x5xf32>
    %136 = arith.addf %128, %135 : vector<5x5xf32>
    %137 = arith.mulf %126, %102 : vector<5x196xf32>
    %cst_91 = arith.constant dense<0.000000e+00> : vector<5xf32>
    %138 = vector.multi_reduction <add>, %137, %cst_91 [1] : vector<5x196xf32> to vector<5xf32>
    %139 = vector.shape_cast %138 : vector<5xf32> to vector<5x1xf32>
    %140 = vector.extract_strided_slice %127 {offsets = [1, 0], sizes = [1, 5], strides = [1, 1]} : vector<3x5xf32> to vector<1x5xf32>
    %141 = vector.broadcast %139 : vector<5x1xf32> to vector<5x5xf32>
    %142 = vector.broadcast %140 : vector<1x5xf32> to vector<5x5xf32>
    %143 = arith.mulf %141, %142 : vector<5x5xf32>
    %144 = arith.addf %136, %143 : vector<5x5xf32>
    %145 = arith.mulf %126, %103 : vector<5x196xf32>
    %cst_92 = arith.constant dense<0.000000e+00> : vector<5xf32>
    %146 = vector.multi_reduction <add>, %145, %cst_92 [1] : vector<5x196xf32> to vector<5xf32>
    %147 = vector.shape_cast %146 : vector<5xf32> to vector<5x1xf32>
    %148 = vector.extract_strided_slice %127 {offsets = [2, 0], sizes = [1, 5], strides = [1, 1]} : vector<3x5xf32> to vector<1x5xf32>
    %149 = vector.broadcast %147 : vector<5x1xf32> to vector<5x5xf32>
    %150 = vector.broadcast %148 : vector<1x5xf32> to vector<5x5xf32>
    %151 = arith.mulf %149, %150 : vector<5x5xf32>
    %152 = arith.addf %144, %151 : vector<5x5xf32>
    %c0_93 = arith.constant 0 : index
    %c0_94 = arith.constant 0 : index
    %153 = vector.load %arg1[%c0_93, %c0_94] : memref<40x2xf32, #tpu.memory_space<vmem>>, vector<40x2xf32>
    %c0_95 = arith.constant 0 : index
    %c0_96 = arith.constant 0 : index
    %154 = vector.load %arg18[%c0_95, %c0_96] : memref<2x5xf32, #tpu.memory_space<vmem>>, vector<2x5xf32>
    %cst_97 = arith.constant dense<0.000000e+00> : vector<40x5xf32>
    %155 = tpu.matmul %153, %154, %cst_97 {dimension_numbers = #tpu.dot_dimension_numbers<[1], [0], [0], [1], [0, 0, 1, 1], [], []>} : vector<40x2xf32>, vector<2x5xf32>, vector<40x5xf32> -> vector<40x5xf32>
    %c0_98 = arith.constant 0 : index
    %c0_99 = arith.constant 0 : index
    %156 = vector.load %arg5[%c0_98, %c0_99] : memref<40x5xf32, #tpu.memory_space<vmem>>, vector<40x5xf32>
    %cst_100 = arith.constant dense<0.000000e+00> : vector<40x5xf32>
    %157 = tpu.matmul %156, %152, %cst_100 {dimension_numbers = #tpu.dot_dimension_numbers<[1], [0], [0], [1], [0, 0, 1, 1], [], []>} : vector<40x5xf32>, vector<5x5xf32>, vector<40x5xf32> -> vector<40x5xf32>
    %158 = arith.addf %155, %157 : vector<40x5xf32>
    %c0_101 = arith.constant 0 : index
    %c0_102 = arith.constant 0 : index
    %159 = vector.load %arg20[%c0_101, %c0_102] : memref<1x5xf32, #tpu.memory_space<vmem>>, vector<1x5xf32>
    %160 = vector.broadcast %159 : vector<1x5xf32> to vector<40x5xf32>
    %161 = arith.addf %158, %160 : vector<40x5xf32>
    %c0_103 = arith.constant 0 : index
    %c0_104 = arith.constant 0 : index
    %162 = vector.load %arg4[%c0_103, %c0_104] : memref<40x40xf32, #tpu.memory_space<vmem>>, vector<40x40xf32>
    %cst_105 = arith.constant dense<0.000000e+00> : vector<40x5xf32>
    %163 = tpu.matmul %162, %161, %cst_105 {dimension_numbers = #tpu.dot_dimension_numbers<[1], [0], [0], [1], [0, 0, 1, 1], [], []>} : vector<40x40xf32>, vector<40x5xf32>, vector<40x5xf32> -> vector<40x5xf32>
    %cst_106 = arith.constant dense<0.000000e+00> : vector<40xf32>
    %164 = vector.multi_reduction <add>, %163, %cst_106 [1] : vector<40x5xf32> to vector<40xf32>
    %165 = vector.shape_cast %164 : vector<40xf32> to vector<40x1xf32>
    %cst_107 = arith.constant 5.000000e+00 : f32
    %166 = vector.broadcast %cst_107 : f32 to vector<40x1xf32>
    %167 = arith.divf %165, %166 : vector<40x1xf32>
    %168 = vector.broadcast %167 : vector<40x1xf32> to vector<40x5xf32>
    %169 = arith.subf %163, %168 : vector<40x5xf32>
    %170 = arith.mulf %169, %169 : vector<40x5xf32>
    %cst_108 = arith.constant dense<0.000000e+00> : vector<40xf32>
    %171 = vector.multi_reduction <add>, %170, %cst_108 [1] : vector<40x5xf32> to vector<40xf32>
    %172 = vector.shape_cast %171 : vector<40xf32> to vector<40x1xf32>
    %cst_109 = arith.constant 5.000000e+00 : f32
    %173 = vector.broadcast %cst_109 : f32 to vector<40x1xf32>
    %174 = arith.divf %172, %173 : vector<40x1xf32>
    %175 = vector.broadcast %167 : vector<40x1xf32> to vector<40x5xf32>
    %176 = arith.subf %163, %175 : vector<40x5xf32>
    %cst_110 = arith.constant 9.99999974E-6 : f32
    %177 = vector.broadcast %cst_110 : f32 to vector<40x1xf32>
    %178 = arith.addf %174, %177 : vector<40x1xf32>
    %179 = math.rsqrt %178 : vector<40x1xf32>
    %180 = vector.broadcast %179 : vector<40x1xf32> to vector<40x5xf32>
    %181 = arith.mulf %176, %180 : vector<40x5xf32>
    %c0_111 = arith.constant 0 : index
    %c0_112 = arith.constant 0 : index
    %182 = vector.load %arg21[%c0_111, %c0_112] : memref<1x5xf32, #tpu.memory_space<vmem>>, vector<1x5xf32>
    %183 = vector.broadcast %182 : vector<1x5xf32> to vector<40x5xf32>
    %184 = arith.mulf %181, %183 : vector<40x5xf32>
    %c0_113 = arith.constant 0 : index
    %c0_114 = arith.constant 0 : index
    %185 = vector.load %arg22[%c0_113, %c0_114] : memref<1x5xf32, #tpu.memory_space<vmem>>, vector<1x5xf32>
    %186 = vector.broadcast %185 : vector<1x5xf32> to vector<40x5xf32>
    %187 = arith.addf %184, %186 : vector<40x5xf32>
    %cst_115 = arith.constant 0.000000e+00 : f32
    %188 = vector.broadcast %cst_115 : f32 to vector<40x5xf32>
    %189 = arith.cmpf oge, %187, %188 : vector<40x5xf32>
    %c0_116 = arith.constant 0 : index
    %c0_117 = arith.constant 0 : index
    %190 = vector.load %arg23[%c0_116, %c0_117] : memref<1x1xf32, #tpu.memory_space<vmem>>, vector<1x1xf32>
    %191 = vector.broadcast %190 : vector<1x1xf32> to vector<40x5xf32>
    %192 = arith.mulf %191, %187 : vector<40x5xf32>
    %193 = arith.select %189, %187, %192 : vector<40x5xi1>, vector<40x5xf32>
    %c0_118 = arith.constant 0 : index
    %c0_119 = arith.constant 0 : index
    %194 = vector.load %arg25[%c0_118, %c0_119] : memref<1x5xf32, #tpu.memory_space<vmem>>, vector<1x5xf32>
    %c0_120 = arith.constant 0 : index
    %c0_121 = arith.constant 0 : index
    %c0_122 = arith.constant 0 : index
    %195 = vector.load %arg24[%c0_120, %c0_121, %c0_122] : memref<3x5x5xf32, #tpu.memory_space<vmem>>, vector<1x5x5xf32>
    %196 = vector.shape_cast %195 : vector<1x5x5xf32> to vector<5x5xf32>
    %cst_123 = arith.constant dense<0.000000e+00> : vector<40x5xf32>
    %197 = tpu.matmul %193, %196, %cst_123 {dimension_numbers = #tpu.dot_dimension_numbers<[1], [0], [0], [1], [0, 0, 1, 1], [], []>} : vector<40x5xf32>, vector<5x5xf32>, vector<40x5xf32> -> vector<40x5xf32>
    %c0_124 = arith.constant 0 : index
    %c0_125 = arith.constant 0 : index
    %c0_126 = arith.constant 0 : index
    %198 = vector.load %arg6[%c0_124, %c0_125, %c0_126] : memref<3x40x40xf32, #tpu.memory_space<vmem>>, vector<1x40x40xf32>
    %199 = vector.shape_cast %198 : vector<1x40x40xf32> to vector<40x40xf32>
    %cst_127 = arith.constant dense<0.000000e+00> : vector<40x5xf32>
    %200 = tpu.matmul %199, %197, %cst_127 {dimension_numbers = #tpu.dot_dimension_numbers<[1], [0], [0], [1], [0, 0, 1, 1], [], []>} : vector<40x40xf32>, vector<40x5xf32>, vector<40x5xf32> -> vector<40x5xf32>
    %201 = vector.broadcast %194 : vector<1x5xf32> to vector<40x5xf32>
    %202 = arith.addf %201, %200 : vector<40x5xf32>
    %c1_128 = arith.constant 1 : index
    %c0_129 = arith.constant 0 : index
    %c0_130 = arith.constant 0 : index
    %203 = vector.load %arg24[%c1_128, %c0_129, %c0_130] : memref<3x5x5xf32, #tpu.memory_space<vmem>>, vector<1x5x5xf32>
    %204 = vector.shape_cast %203 : vector<1x5x5xf32> to vector<5x5xf32>
    %cst_131 = arith.constant dense<0.000000e+00> : vector<40x5xf32>
    %205 = tpu.matmul %193, %204, %cst_131 {dimension_numbers = #tpu.dot_dimension_numbers<[1], [0], [0], [1], [0, 0, 1, 1], [], []>} : vector<40x5xf32>, vector<5x5xf32>, vector<40x5xf32> -> vector<40x5xf32>
    %c1_132 = arith.constant 1 : index
    %c0_133 = arith.constant 0 : index
    %c0_134 = arith.constant 0 : index
    %206 = vector.load %arg6[%c1_132, %c0_133, %c0_134] : memref<3x40x40xf32, #tpu.memory_space<vmem>>, vector<1x40x40xf32>
    %207 = vector.shape_cast %206 : vector<1x40x40xf32> to vector<40x40xf32>
    %cst_135 = arith.constant dense<0.000000e+00> : vector<40x5xf32>
    %208 = tpu.matmul %207, %205, %cst_135 {dimension_numbers = #tpu.dot_dimension_numbers<[1], [0], [0], [1], [0, 0, 1, 1], [], []>} : vector<40x40xf32>, vector<40x5xf32>, vector<40x5xf32> -> vector<40x5xf32>
    %209 = arith.addf %202, %208 : vector<40x5xf32>
    %c2_136 = arith.constant 2 : index
    %c0_137 = arith.constant 0 : index
    %c0_138 = arith.constant 0 : index
    %210 = vector.load %arg24[%c2_136, %c0_137, %c0_138] : memref<3x5x5xf32, #tpu.memory_space<vmem>>, vector<1x5x5xf32>
    %211 = vector.shape_cast %210 : vector<1x5x5xf32> to vector<5x5xf32>
    %cst_139 = arith.constant dense<0.000000e+00> : vector<40x5xf32>
    %212 = tpu.matmul %193, %211, %cst_139 {dimension_numbers = #tpu.dot_dimension_numbers<[1], [0], [0], [1], [0, 0, 1, 1], [], []>} : vector<40x5xf32>, vector<5x5xf32>, vector<40x5xf32> -> vector<40x5xf32>
    %c2_140 = arith.constant 2 : index
    %c0_141 = arith.constant 0 : index
    %c0_142 = arith.constant 0 : index
    %213 = vector.load %arg6[%c2_140, %c0_141, %c0_142] : memref<3x40x40xf32, #tpu.memory_space<vmem>>, vector<1x40x40xf32>
    %214 = vector.shape_cast %213 : vector<1x40x40xf32> to vector<40x40xf32>
    %cst_143 = arith.constant dense<0.000000e+00> : vector<40x5xf32>
    %215 = tpu.matmul %214, %212, %cst_143 {dimension_numbers = #tpu.dot_dimension_numbers<[1], [0], [0], [1], [0, 0, 1, 1], [], []>} : vector<40x40xf32>, vector<40x5xf32>, vector<40x5xf32> -> vector<40x5xf32>
    %216 = arith.addf %209, %215 : vector<40x5xf32>
    %cst_144 = arith.constant dense<0.000000e+00> : vector<40xf32>
    %217 = vector.multi_reduction <add>, %216, %cst_144 [1] : vector<40x5xf32> to vector<40xf32>
    %218 = vector.shape_cast %217 : vector<40xf32> to vector<40x1xf32>
    %cst_145 = arith.constant 5.000000e+00 : f32
    %219 = vector.broadcast %cst_145 : f32 to vector<40x1xf32>
    %220 = arith.divf %218, %219 : vector<40x1xf32>
    %221 = vector.broadcast %220 : vector<40x1xf32> to vector<40x5xf32>
    %222 = arith.subf %216, %221 : vector<40x5xf32>
    %223 = arith.mulf %222, %222 : vector<40x5xf32>
    %cst_146 = arith.constant dense<0.000000e+00> : vector<40xf32>
    %224 = vector.multi_reduction <add>, %223, %cst_146 [1] : vector<40x5xf32> to vector<40xf32>
    %225 = vector.shape_cast %224 : vector<40xf32> to vector<40x1xf32>
    %cst_147 = arith.constant 5.000000e+00 : f32
    %226 = vector.broadcast %cst_147 : f32 to vector<40x1xf32>
    %227 = arith.divf %225, %226 : vector<40x1xf32>
    %228 = vector.broadcast %220 : vector<40x1xf32> to vector<40x5xf32>
    %229 = arith.subf %216, %228 : vector<40x5xf32>
    %cst_148 = arith.constant 9.99999974E-6 : f32
    %230 = vector.broadcast %cst_148 : f32 to vector<40x1xf32>
    %231 = arith.addf %227, %230 : vector<40x1xf32>
    %232 = math.rsqrt %231 : vector<40x1xf32>
    %233 = vector.broadcast %232 : vector<40x1xf32> to vector<40x5xf32>
    %234 = arith.mulf %229, %233 : vector<40x5xf32>
    %c0_149 = arith.constant 0 : index
    %c0_150 = arith.constant 0 : index
    %235 = vector.load %arg26[%c0_149, %c0_150] : memref<1x5xf32, #tpu.memory_space<vmem>>, vector<1x5xf32>
    %236 = vector.broadcast %235 : vector<1x5xf32> to vector<40x5xf32>
    %237 = arith.mulf %234, %236 : vector<40x5xf32>
    %c0_151 = arith.constant 0 : index
    %c0_152 = arith.constant 0 : index
    %238 = vector.load %arg27[%c0_151, %c0_152] : memref<1x5xf32, #tpu.memory_space<vmem>>, vector<1x5xf32>
    %239 = vector.broadcast %238 : vector<1x5xf32> to vector<40x5xf32>
    %240 = arith.addf %237, %239 : vector<40x5xf32>
    %c0_153 = arith.constant 0 : index
    %c0_154 = arith.constant 0 : index
    %241 = vector.load %arg28[%c0_153, %c0_154] : memref<2x5xf32, #tpu.memory_space<vmem>>, vector<2x5xf32>
    %cst_155 = arith.constant dense<0.000000e+00> : vector<40x5xf32>
    %242 = tpu.matmul %153, %241, %cst_155 {dimension_numbers = #tpu.dot_dimension_numbers<[1], [0], [0], [1], [0, 0, 1, 1], [], []>} : vector<40x2xf32>, vector<2x5xf32>, vector<40x5xf32> -> vector<40x5xf32>
    %243 = arith.addf %240, %242 : vector<40x5xf32>
    %cst_156 = arith.constant 0.000000e+00 : f32
    %244 = vector.broadcast %cst_156 : f32 to vector<40x5xf32>
    %245 = arith.cmpf oge, %243, %244 : vector<40x5xf32>
    %c0_157 = arith.constant 0 : index
    %c0_158 = arith.constant 0 : index
    %246 = vector.load %arg29[%c0_157, %c0_158] : memref<1x1xf32, #tpu.memory_space<vmem>>, vector<1x1xf32>
    %247 = vector.broadcast %246 : vector<1x1xf32> to vector<40x5xf32>
    %248 = arith.mulf %247, %243 : vector<40x5xf32>
    %249 = arith.select %245, %243, %248 : vector<40x5xi1>, vector<40x5xf32>
    %c0_159 = arith.constant 0 : index
    %c0_160 = arith.constant 0 : index
    %250 = vector.load %arg30[%c0_159, %c0_160] : memref<40x5xf32, #tpu.memory_space<vmem>>, vector<40x5xf32>
    tpu.vector_store %arg30[%c0_159, %c0_160], %249 {strides = array<i32>} : memref<40x5xf32, #tpu.memory_space<vmem>>, vector<40x5xf32>,
    return
  }
  func.func @transform_0(%arg0: i32) -> (i32, i32) {
    %c0_i32 = arith.constant 0 : i32
    %c0_i32_0 = arith.constant 0 : i32
    %c0_i32_1 = arith.constant 0 : i32
    return %c0_i32, %c0_i32_0 : i32, i32
  }
  func.func @transform_1(%arg0: i32) -> (i32, i32) {
    %c0_i32 = arith.constant 0 : i32
    %c0_i32_0 = arith.constant 0 : i32
    %c0_i32_1 = arith.constant 0 : i32
    return %c0_i32, %c0_i32_0 : i32, i32
  }
  func.func @transform_2(%arg0: i32) -> (i32, i32) {
    %c0_i32 = arith.constant 0 : i32
    %c0_i32_0 = arith.constant 0 : i32
    %c0_i32_1 = arith.constant 0 : i32
    return %c0_i32, %c0_i32_0 : i32, i32
  }
  func.func @transform_3(%arg0: i32) -> (i32, i32) {
    %c0_i32 = arith.constant 0 : i32
    %c0_i32_0 = arith.constant 0 : i32
    %c0_i32_1 = arith.constant 0 : i32
    return %c0_i32, %c0_i32_0 : i32, i32
  }
  func.func @transform_4(%arg0: i32) -> (i32, i32) {
    %c0_i32 = arith.constant 0 : i32
    %c0_i32_0 = arith.constant 0 : i32
    %c0_i32_1 = arith.constant 0 : i32
    return %c0_i32, %c0_i32_0 : i32, i32
  }
  func.func @transform_5(%arg0: i32) -> (i32, i32, i32) {
    %c0_i32 = arith.constant 0 : i32
    %c0_i32_0 = arith.constant 0 : i32
    %c0_i32_1 = arith.constant 0 : i32
    %c0_i32_2 = arith.constant 0 : i32
    return %c0_i32, %c0_i32_0, %c0_i32_1 : i32, i32, i32
  }
  func.func @transform_6(%arg0: i32) -> (i32, i32) {
    %c0_i32 = arith.constant 0 : i32
    %c0_i32_0 = arith.constant 0 : i32
    %c0_i32_1 = arith.constant 0 : i32
    return %c0_i32, %c0_i32_0 : i32, i32
  }
  func.func @transform_7(%arg0: i32) -> (i32, i32) {
    %c0_i32 = arith.constant 0 : i32
    %c0_i32_0 = arith.constant 0 : i32
    %c0_i32_1 = arith.constant 0 : i32
    return %c0_i32, %c0_i32_0 : i32, i32
  }
  func.func @transform_8(%arg0: i32) -> (i32, i32) {
    %c0_i32 = arith.constant 0 : i32
    %c0_i32_0 = arith.constant 0 : i32
    %c0_i32_1 = arith.constant 0 : i32
    return %c0_i32, %c0_i32_0 : i32, i32
  }
  func.func @transform_9(%arg0: i32) -> (i32, i32) {
    %c0_i32 = arith.constant 0 : i32
    %c0_i32_0 = arith.constant 0 : i32
    %c0_i32_1 = arith.constant 0 : i32
    return %c0_i32, %c0_i32_0 : i32, i32
  }
  func.func @transform_10(%arg0: i32) -> (i32, i32) {
    %c0_i32 = arith.constant 0 : i32
    %c0_i32_0 = arith.constant 0 : i32
    %c0_i32_1 = arith.constant 0 : i32
    return %c0_i32, %c0_i32_0 : i32, i32
  }
  func.func @transform_11(%arg0: i32) -> (i32, i32) {
    %c0_i32 = arith.constant 0 : i32
    %c0_i32_0 = arith.constant 0 : i32
    %c0_i32_1 = arith.constant 0 : i32
    return %c0_i32, %c0_i32_0 : i32, i32
  }
  func.func @transform_12(%arg0: i32) -> (i32, i32) {
    %c0_i32 = arith.constant 0 : i32
    %c0_i32_0 = arith.constant 0 : i32
    %c0_i32_1 = arith.constant 0 : i32
    return %c0_i32, %c0_i32_0 : i32, i32
  }
  func.func @transform_13(%arg0: i32) -> (i32, i32) {
    %c0_i32 = arith.constant 0 : i32
    %c0_i32_0 = arith.constant 0 : i32
    %c0_i32_1 = arith.constant 0 : i32
    return %c0_i32, %c0_i32_0 : i32, i32
  }
  func.func @transform_14(%arg0: i32) -> (i32, i32) {
    %c0_i32 = arith.constant 0 : i32
    %c0_i32_0 = arith.constant 0 : i32
    %c0_i32_1 = arith.constant 0 : i32
    return %c0_i32, %c0_i32_0 : i32, i32
  }
  func.func @transform_15(%arg0: i32) -> (i32, i32, i32) {
    %c0_i32 = arith.constant 0 : i32
    %c0_i32_0 = arith.constant 0 : i32
    %c0_i32_1 = arith.constant 0 : i32
    %c0_i32_2 = arith.constant 0 : i32
    return %c0_i32, %c0_i32_0, %c0_i32_1 : i32, i32, i32
  }
  func.func @transform_16(%arg0: i32) -> (i32, i32) {
    %c0_i32 = arith.constant 0 : i32
    %c0_i32_0 = arith.constant 0 : i32
    %c0_i32_1 = arith.constant 0 : i32
    return %c0_i32, %c0_i32_0 : i32, i32
  }
  func.func @transform_17(%arg0: i32) -> (i32, i32) {
    %c0_i32 = arith.constant 0 : i32
    %c0_i32_0 = arith.constant 0 : i32
    %c0_i32_1 = arith.constant 0 : i32
    return %c0_i32, %c0_i32_0 : i32, i32
  }
  func.func @transform_18(%arg0: i32) -> (i32, i32) {
    %c0_i32 = arith.constant 0 : i32
    %c0_i32_0 = arith.constant 0 : i32
    %c0_i32_1 = arith.constant 0 : i32
    return %c0_i32, %c0_i32_0 : i32, i32
  }
  func.func @transform_19(%arg0: i32) -> (i32, i32) {
    %c0_i32 = arith.constant 0 : i32
    %c0_i32_0 = arith.constant 0 : i32
    %c0_i32_1 = arith.constant 0 : i32
    return %c0_i32, %c0_i32_0 : i32, i32
  }
  func.func @transform_20(%arg0: i32) -> (i32, i32) {
    %c0_i32 = arith.constant 0 : i32
    %c0_i32_0 = arith.constant 0 : i32
    %c0_i32_1 = arith.constant 0 : i32
    return %c0_i32, %c0_i32_0 : i32, i32
  }
  func.func @transform_21(%arg0: i32) -> (i32, i32) {
    %c0_i32 = arith.constant 0 : i32
    %c0_i32_0 = arith.constant 0 : i32
    %c0_i32_1 = arith.constant 0 : i32
    return %c0_i32, %c0_i32_0 : i32, i32
  }
  func.func @transform_22(%arg0: i32) -> (i32, i32) {
    %c0_i32 = arith.constant 0 : i32
    %c0_i32_0 = arith.constant 0 : i32
    %c0_i32_1 = arith.constant 0 : i32
    return %c0_i32, %c0_i32_0 : i32, i32
  }
  func.func @transform_23(%arg0: i32) -> (i32, i32, i32) {
    %c0_i32 = arith.constant 0 : i32
    %c0_i32_0 = arith.constant 0 : i32
    %c0_i32_1 = arith.constant 0 : i32
    %c0_i32_2 = arith.constant 0 : i32
    return %c0_i32, %c0_i32_0, %c0_i32_1 : i32, i32, i32
  }
  func.func @transform_24(%arg0: i32) -> (i32, i32) {
    %c0_i32 = arith.constant 0 : i32
    %c0_i32_0 = arith.constant 0 : i32
    %c0_i32_1 = arith.constant 0 : i32
    return %c0_i32, %c0_i32_0 : i32, i32
  }
  func.func @transform_25(%arg0: i32) -> (i32, i32) {
    %c0_i32 = arith.constant 0 : i32
    %c0_i32_0 = arith.constant 0 : i32
    %c0_i32_1 = arith.constant 0 : i32
    return %c0_i32, %c0_i32_0 : i32, i32
  }
  func.func @transform_26(%arg0: i32) -> (i32, i32) {
    %c0_i32 = arith.constant 0 : i32
    %c0_i32_0 = arith.constant 0 : i32
    %c0_i32_1 = arith.constant 0 : i32
    return %c0_i32, %c0_i32_0 : i32, i32
  }
  func.func @transform_27(%arg0: i32) -> (i32, i32) {
    %c0_i32 = arith.constant 0 : i32
    %c0_i32_0 = arith.constant 0 : i32
    %c0_i32_1 = arith.constant 0 : i32
    return %c0_i32, %c0_i32_0 : i32, i32
  }
  func.func @transform_28(%arg0: i32) -> (i32, i32) {
    %c0_i32 = arith.constant 0 : i32
    %c0_i32_0 = arith.constant 0 : i32
    %c0_i32_1 = arith.constant 0 : i32
    return %c0_i32, %c0_i32_0 : i32, i32
  }
  func.func @transform_29(%arg0: i32) -> (i32, i32) {
    %c0_i32 = arith.constant 0 : i32
    %c0_i32_0 = arith.constant 0 : i32
    %c0_i32_1 = arith.constant 0 : i32
    return %c0_i32, %c0_i32_0 : i32, i32
  }
}

</mosaic_0001>

<bundles_post_ra>
// kernel: tpu_custom_call.1
= control target key start
LH: loop header
LB: loop body
LE: loop exit
PB: predicated region body
PF: predicated region fallthrough
CT: control target
= control target key end

     0   :  { %s9705_s3 = smov 2   ;;  %v14207_v0 = vmov 0   ;;  %s9707_s7 = smov 8   ;;  %vm1540_vm0 = vcmask 1041408   ;;  %vm1533_vm1 = vcmask 15360   ;;  %vm1683_vm2 = vcmask 80896   ;;  %s14206_s0 = inlined_call_operand.smem [shape: u32[30], index: -1, kind: input, shape index: {}] }
   0x1   :  { %s9752_s6 = sld [smem:[%s14206_s0 + %s9705_s3]]   ;;  %9476 = vset.pattern.permute.xlu1 %v14207_v0  ;;  %9475 = vset.pattern.permute.xlu0 %v14207_v0  ;;  %s9708_s11 = smov 7   ;;  %vm876_vm3 = vcmask 130048   ;;  %vm9716_vm4 = vmmov 1   ;;  %vm5874_vm7 = vcmask 1043456   ;;  %vm5870_vm8 = vcmask 556032  }
   0x2   :  { %s9779_s10 = sld [smem:[%s14206_s0 + %s9707_s7]]   ;;  %s9709_s15 = smov 12   ;;  %vm8564_vm5 = vmpackc.low %vm1540_vm0, %vm9716_vm4  ;;  %vm6231_vm9 = vcmask 1044480   ;;  %vm6233_vm10 = vcmask 552960   ;;  %vm9726_vm11 = vmmov 0   ;;  %vm6303_vm12 = vcmask 39936  }
   0x3   :  { %s7639_s14 = sld [smem:[%s14206_s0 + %s9708_s11]]   ;;  %s9710_s19 = smov 9   ;;  %vm6537_vm13 = vcmask 326656  }
   0x4   :  { %s9802_s18 = sld [smem:[%s14206_s0 + %s9709_s15]]   ;;  %s9711_s23 = smov 1  }
   0x5   :  { %s7641_s22 = sld [smem:[%s14206_s0 + %s9710_s19]]   ;;  %s9712_s27 = smov 6  }
   0x6   :  { %s7633_s26 = sld [smem:[%s14206_s0 + %s9711_s23]]   ;;  %s9713_s1 = smov 11  }
   0x7   :  { %v135_v1 = vld [vmem:[%s9752_s6 + $0x8] sm:$0xff]  ;;  %v137_v2 = vld [vmem:[%s9752_s6 + $0x18] sm:$0xff]  ;;  %v134_v3 = vld [vmem:[%s9752_s6] sm:$0xff]  ;;  %s7638_s30 = sld [smem:[%s14206_s0 + %s9712_s27]]   ;;  %s9715_s5 = smov 10  }
   0x8   :  { %v8431_v4 = vpack.c.bf16 %v137_v2, %v135_v1  ;;  %v136_v5 = vld [vmem:[%s9752_s6 + $0x10] sm:$0xff]  ;;  %v139_v6 = vld [vmem:[%s9752_s6 + $0x28] sm:$0xff]  ;;  %v141_v7 = vld [vmem:[%s9752_s6 + $0x38] sm:$0xff]  ;;  %s9953_s4 = sld [smem:[%s14206_s0 + %s9713_s1]]   ;;  %s9721_s9 = smov 13  }
   0x9   :  { %v8433_v8 = vpack.c.bf16 %v136_v5, %v134_v3  ;;  %v8435_v9 = vpack.c.bf16 %v141_v7, %v139_v6  ;;  %v138_v10 = vld [vmem:[%s9752_s6 + $0x20] sm:$0xff]  ;;  %v140_v11 = vld [vmem:[%s9752_s6 + $0x30] sm:$0xff]  ;;  %v143_v12 = vld [vmem:[%s9752_s6 + $0x48] sm:$0xff]  ;;  %s9961_s8 = sld [smem:[%s14206_s0 + %s9715_s5]]   ;;  %s9722_s13 = smov 14  }
   0xa   :  { %8432 = vmatprep.subr.bf16.mxu0 %v8431_v4  ;;  %v145_v13 = vld [vmem:[%s9752_s6 + $0x58] sm:$0xff]  ;;  %v8437_v14 = vpack.c.bf16 %v140_v11, %v138_v10  ;;  %v142_v16 = vld [vmem:[%s9752_s6 + $0x40] sm:$0xff]  ;;  %v144_v17 = vld [vmem:[%s9752_s6 + $0x50] sm:$0xff]  ;;  %s11372_s12 = sld [smem:[%s14206_s0 + %s9721_s9]]   ;;  %s9724_s17 = smov 15  }
   0xb   :  { %8434 = vmatpush1.bf16.msra.mxu0 %v8433_v8  ;;  %v8439_v15 = vpack.c.bf16 %v145_v13, %v143_v12  ;;  %v147_v18 = vld [vmem:[%s9752_s6 + $0x68] sm:$0xff]  ;;  %v149_v19 = vld [vmem:[%s9752_s6 + $0x78] sm:$0xff]  ;;  %v8441_v20 = vpack.c.bf16 %v144_v17, %v142_v16  ;;  %v146_v22 = vld [vmem:[%s9752_s6 + $0x60] sm:$0xff]  ;;  %s7646_s16 = sld [smem:[%s14206_s0 + %s9722_s13]]   ;;  %s9725_s21 = smov 16  }
   0xc   :  { %8436 = vmatprep.subr.bf16.mxu0 %v8435_v9  ;;  %v8443_v21 = vpack.c.bf16 %v149_v19, %v147_v18  ;;  %v148_v23 = vld [vmem:[%s9752_s6 + $0x70] sm:$0xff]  ;;  %v151_v24 = vld [vmem:[%s9752_s6 + $0x88] sm:$0xff]  ;;  %v153_v25 = vld [vmem:[%s9752_s6 + $0x98] sm:$0xff]  ;;  %s13609_s20 = sld [smem:[%s14206_s0 + %s9724_s17]]   ;;  %s9727_s25 = smov 18  }
   0xd   :  { %v8445_v26 = vpack.c.bf16 %v148_v23, %v146_v22  ;;  %v8447_v27 = vpack.c.bf16 %v153_v25, %v151_v24  ;;  %v150_v28 = vld [vmem:[%s9752_s6 + $0x80] sm:$0xff]  ;;  %v152_v29 = vld [vmem:[%s9752_s6 + $0x90] sm:$0xff]  ;;  %v155_v30 = vld [vmem:[%s9752_s6 + $0xa8] sm:$0xff]  ;;  %s7648_s24 = sld [smem:[%s14206_s0 + %s9725_s21]]   ;;  %s9728_s29 = smov 4  }
   0xe   :  { %v157_v31 = vld [vmem:[%s9752_s6 + $0xb8] sm:$0xff]  ;;  %v8449_v32 = vpack.c.bf16 %v152_v29, %v150_v28  ;;  %v154_v34 = vld [vmem:[%s9752_s6 + $0xa0] sm:$0xff]  ;;  %v156_v35 = vld [vmem:[%s9752_s6 + $0xb0] sm:$0xff]  ;;  %s7650_s28 = sld [smem:[%s14206_s0 + %s9727_s25]]   ;;  %s9729_s3 = smov 17  }
   0xf   :  { %8438 = vmatpush1.bf16.msra.mxu0 %v8437_v14  ;;  %v8451_v33 = vpack.c.bf16 %v157_v31, %v155_v30  ;;  %v159_v36 = vld [vmem:[%s9752_s6 + $0xc8] sm:$0xff]  ;;  %v161_v37 = vld [vmem:[%s9752_s6 + $0xd8] sm:$0xff]  ;;  %v8453_v38 = vpack.c.bf16 %v156_v35, %v154_v34  ;;  %v158_v40 = vld [vmem:[%s9752_s6 + $0xc0] sm:$0xff]  ;;  %s13870_s2 = sld [smem:[%s14206_s0 + %s9728_s29]]  }
  0x10   :  { %8440 = vmatprep.subr.bf16.mxu0 %v8439_v15  ;;  %v8455_v39 = vpack.c.bf16 %v161_v37, %v159_v36  ;;  %v160_v41 = vld [vmem:[%s9752_s6 + $0xd0] sm:$0xff]  ;;  %v127_v42 = vld [vmem:[%s9779_s10 + $0x8] sm:$0xff]  ;;  %v165_v44 = vld [vmem:[%s9752_s6 + $0xf8] sm:$0xff]  ;;  %s1_s9 = sld [smem:[%s14206_s0]]  }
  0x11   :  { %v163_v43 = vld [vmem:[%s9752_s6 + $0xe8] sm:$0xff]  ;;  %338 = vmatprep.mubr.f32.mxu0 %v127_v42  ;;  %v8457_v45 = vpack.c.bf16 %v160_v41, %v158_v40  ;;  %v162_v47 = vld [vmem:[%s9752_s6 + $0xe0] sm:$0xff]  ;;  %v164_v48 = vld [vmem:[%s9752_s6 + $0xf0] sm:$0xff] }
  0x12   :  { %v8459_v46 = vpack.c.bf16 %v165_v44, %v163_v43  ;;  %v167_v49 = vld [vmem:[%s9752_s6 + $0x108] sm:$0xff]  ;;  %v169_v50 = vld [vmem:[%s9752_s6 + $0x118] sm:$0xff]  ;;  %v8461_v51 = vpack.c.bf16 %v164_v48, %v162_v47  ;;  %v166_v53 = vld [vmem:[%s9752_s6 + $0x100] sm:$0xff] }
  0x13   :  { %8442 = vmatpush1.bf16.msra.mxu0 %v8441_v20  ;;  %v8463_v52 = vpack.c.bf16 %v169_v50, %v167_v49  ;;  %v168_v54 = vld [vmem:[%s9752_s6 + $0x110] sm:$0xff]  ;;  %v1521_v55 = vld [vmem:[%s7639_s14] sm:$0xff]  ;;  %v171_v56 = vld [vmem:[%s9752_s6 + $0x128] sm:$0xff] }
  0x14   :  { %8444 = vmatprep.subr.bf16.mxu0 %v8443_v21  ;;  %v173_v57 = vld [vmem:[%s9752_s6 + $0x138] sm:$0xff]  ;;  %1525 = vperm.xlu1 %9476, %v1521_v55   ;;  %v1522_v58 = vld [vmem:[%s7639_s14 + $0x8] sm:$0x3]  ;;  %v8465_v59 = vpack.c.bf16 %v168_v54, %v166_v53  ;;  %v170_v61 = vld [vmem:[%s9752_s6 + $0x120] sm:$0xff]  ;;  %s9732_s14 = smov 3  }
  0x15   :  { %v8467_v60 = vpack.c.bf16 %v173_v57, %v171_v56  ;;  %v172_v62 = vld [vmem:[%s9752_s6 + $0x130] sm:$0xff]  ;;  %v175_v63 = vld [vmem:[%s9752_s6 + $0x148] sm:$0xff]  ;;  %v177_v1 = vld [vmem:[%s9752_s6 + $0x158] sm:$0xff]  ;;  %s7635_s17 = sld [smem:[%s14206_s0 + %s9732_s14]]  }
  0x16   :  { %v493_v2 = vld [vmem:[%s9802_s18 + $0x8] sm:$0xff]  ;;  %v8469_v3 = vpack.c.bf16 %v172_v62, %v170_v61  ;;  %v8471_v4 = vpack.c.bf16 %v177_v1, %v175_v63  ;;  %v174_v5 = vld [vmem:[%s9752_s6 + $0x140] sm:$0xff]  ;;  %v176_v6 = vld [vmem:[%s9752_s6 + $0x150] sm:$0xff] }
  0x17   :  { %8446 = vmatpush1.bf16.msra.mxu0 %v8445_v26  ;;  %v179_v7 = vld [vmem:[%s9752_s6 + $0x168] sm:$0xff]  ;;  %v181_v8 = vld [vmem:[%s9752_s6 + $0x178] sm:$0xff]  ;;  %v8473_v10 = vpack.c.bf16 %v176_v6, %v174_v5  ;;  %v178_v12 = vld [vmem:[%s9752_s6 + $0x160] sm:$0xff] }
  0x18   :  { %8448 = vmatprep.subr.bf16.mxu0 %v8447_v27  ;;  %1530 = vperm.xlu1 %9476, %v1522_v58   ;;  %v495_v9 = vld [vmem:[%s9802_s18 + $0x18] sm:$0xff]  ;;  %v8475_v11 = vpack.c.bf16 %v181_v8, %v179_v7  ;;  %v180_v13 = vld [vmem:[%s9752_s6 + $0x170] sm:$0xff]  ;;  %v183_v14 = vld [vmem:[%s9752_s6 + $0x188] sm:$0xff] }
  0x19   :  { %v185_v15 = vld [vmem:[%s9752_s6 + $0x198] sm:$0xff]  ;;  %v497_v16 = vld [vmem:[%s9802_s18 + $0x28] sm:$0xff]  ;;  %v8477_v17 = vpack.c.bf16 %v180_v13, %v178_v12  ;;  %v182_v19 = vld [vmem:[%s9752_s6 + $0x180] sm:$0xff] }
  0x1a   :  { %v8479_v18 = vpack.c.bf16 %v185_v15, %v183_v14  ;;  %v184_v20 = vld [vmem:[%s9752_s6 + $0x190] sm:$0xff]  ;;  %v187_v21 = vld [vmem:[%s9752_s6 + $0x1a8] sm:$0xff]  ;;  %v189_v22 = vld [vmem:[%s9752_s6 + $0x1b8] sm:$0xff] }
  0x1b   :  { %8450 = vmatpush1.bf16.msra.mxu0 %v8449_v32  ;;  %v499_v23 = vld [vmem:[%s9802_s18 + $0x38] sm:$0xff]  ;;  %v8481_v24 = vpack.c.bf16 %v184_v20, %v182_v19  ;;  %v8483_v25 = vpack.c.bf16 %v189_v22, %v187_v21  ;;  %v186_v26 = vld [vmem:[%s9752_s6 + $0x1a0] sm:$0xff]  ;;  %v188_v27 = vld [vmem:[%s9752_s6 + $0x1b0] sm:$0xff] }
  0x1c   :  { %8452 = vmatprep.subr.bf16.mxu0 %v8451_v33  ;;  %563 = vperm.xlu1 %9476, %v493_v2   ;;  %v191_v28 = vld [vmem:[%s9752_s6 + $0x1c8] sm:$0xff]  ;;  %v193_v29 = vld [vmem:[%s9752_s6 + $0x1d8] sm:$0xff]  ;;  %v8485_v31 = vpack.c.bf16 %v188_v27, %v186_v26  ;;  %v190_v33 = vld [vmem:[%s9752_s6 + $0x1c0] sm:$0xff] }
  0x1d   :  { %v501_v30 = vld [vmem:[%s9802_s18 + $0x48] sm:$0xff]  ;;  %v8487_v32 = vpack.c.bf16 %v193_v29, %v191_v28  ;;  %v192_v34 = vld [vmem:[%s9752_s6 + $0x1d0] sm:$0xff]  ;;  %v197_v36 = vld [vmem:[%s9752_s6 + $0x1f8] sm:$0xff] }
  0x1e   :  { %v195_v35 = vld [vmem:[%s9752_s6 + $0x1e8] sm:$0xff]  ;;  %v503_v37 = vld [vmem:[%s9802_s18 + $0x58] sm:$0xff]  ;;  %v194_v40 = vld [vmem:[%s9752_s6 + $0x1e0] sm:$0xff] }
  0x1f   :  { %8454 = vmatpush1.bf16.msra.mxu0 %v8453_v38  ;;  %v8489_v38 = vpack.c.bf16 %v192_v34, %v190_v33  ;;  %v196_v41 = vld [vmem:[%s9752_s6 + $0x1f0] sm:$0xff]  ;;  %v262_v42 = vld [vmem:[%s7641_s22] sm:$0xff]  ;;  %v199_v43 = vld [vmem:[%s9752_s6 + $0x208] sm:$0xff] }
  0x20   :  { %8456 = vmatprep.subr.bf16.mxu0 %v8455_v39  ;;  %573 = vperm.xlu1 %9476, %v495_v9   ;;  %v8491_v39 = vpack.c.bf16 %v197_v36, %v195_v35  ;;  %v201_v44 = vld [vmem:[%s9752_s6 + $0x218] sm:$0xff]  ;;  %v8493_v47 = vpack.c.bf16 %v196_v41, %v194_v40  ;;  %v198_v49 = vld [vmem:[%s9752_s6 + $0x200] sm:$0xff]  ;;  %v200_v50 = vld [vmem:[%s9752_s6 + $0x210] sm:$0xff] }
  0x21   :  { %266 = vperm.xlu0 %9475, %v262_v42   ;;  %v8495_v48 = vpack.c.bf16 %v201_v44, %v199_v43  ;;  %v507_v53 = vld [vmem:[%s9802_s18 + $0x78] sm:$0xff]  ;;  %v126_v54 = vld [vmem:[%s9779_s10] sm:$0xff]  ;;  %v8497_v55 = vpack.c.bf16 %v200_v50, %v198_v49  ;;  %v204_v58 = vld [vmem:[%s9752_s6 + $0x230] sm:$0xff] }
  0x22   :  { %v202_v57 = vld [vmem:[%s9752_s6 + $0x220] sm:$0xff]  ;;  %v209_v61 = vld [vmem:[%s9752_s6 + $0x258] sm:$0xff]  ;;  %v509_v62 = vld [vmem:[%s9802_s18 + $0x88] sm:$0xff] }
  0x23   :  { %8458 = vmatpush1.bf16.msra.mxu0 %v8457_v45  ;;  %v505_v45 = vld [vmem:[%s9802_s18 + $0x68] sm:$0xff]  ;;  %v8501_v63 = vpack.c.bf16 %v204_v58, %v202_v57  ;;  %v130_v1 = vld [vmem:[%s9779_s10 + $0x20] sm:$0xff]  ;;  %v129_v5 = vld [vmem:[%s9779_s10 + $0x18] sm:$0xff] }
  0x24   :  { %8460 = vmatprep.subr.bf16.mxu0 %v8459_v46  ;;  %583 = vperm.xlu1 %9476, %v497_v16   ;;  %v263_v46 = vld [vmem:[%s7641_s22 + $0x8] sm:$0xff]  ;;  %v213_v7 = vld [vmem:[%s9752_s6 + $0x278] sm:$0xff]  ;;  %v212_v12 = vld [vmem:[%s9752_s6 + $0x270] sm:$0xff]  ;;  %s9734_s22 = smov 23  }
  0x25   :  { %271 = vperm.xlu0 %9475, %v263_v46   ;;  %v211_v6 = vld [vmem:[%s9752_s6 + $0x268] sm:$0xff]  ;;  %v511_v8 = vld [vmem:[%s9802_s18 + $0x98] sm:$0xff]  ;;  %v216_v19 = vld [vmem:[%s9752_s6 + $0x290] sm:$0xff]  ;;  %s13985_s25 = sld [smem:[%s14206_s0 + %s9734_s22]]  }
  0x26   :  { %v215_v13 = vld [vmem:[%s9752_s6 + $0x288] sm:$0xff]  ;;  %v217_v14 = vld [vmem:[%s9752_s6 + $0x298] sm:$0xff]  ;;  %v220_v26 = vld [vmem:[%s9752_s6 + $0x2b0] sm:$0xff] }
  0x27   :  { %8462 = vmatpush1.bf16.msra.mxu0 %v8461_v51  ;;  %v203_v51 = vld [vmem:[%s9752_s6 + $0x228] sm:$0xff]  ;;  %v221_v21 = vld [vmem:[%s9752_s6 + $0x2b8] sm:$0xff]  ;;  %v224_v33 = vld [vmem:[%s9752_s6 + $0x2d0] sm:$0xff] }
  0x28   :  { %8464 = vmatprep.subr.bf16.mxu0 %v8463_v52  ;;  %593 = vperm.xlu1 %9476, %v499_v23   ;;  %v205_v52 = vld [vmem:[%s9752_s6 + $0x238] sm:$0xff]  ;;  %v513_v15 = vld [vmem:[%s9802_s18 + $0xa8] sm:$0xff]  ;;  %v228_v40 = vld [vmem:[%s9752_s6 + $0x2f0] sm:$0xff] }
  0x29   :  { %v8499_v56 = vpack.c.bf16 %v205_v52, %v203_v51  ;;  %v219_v20 = vld [vmem:[%s9752_s6 + $0x2a8] sm:$0xff]  ;;  %v515_v22 = vld [vmem:[%s9802_s18 + $0xb8] sm:$0xff]  ;;  %v230_v46 = vld [vmem:[%s9752_s6 + $0x300] sm:$0xff] }
  0x2a   :  { %v223_v27 = vld [vmem:[%s9752_s6 + $0x2c8] sm:$0xff]  ;;  %v225_v28 = vld [vmem:[%s9752_s6 + $0x2d8] sm:$0xff] }
  0x2b   :  { %8466 = vmatpush1.bf16.msra.mxu0 %v8465_v59  ;;  %v131_v59 = vld [vmem:[%s9779_s10 + $0x28] sm:$0xff]  ;;  %v229_v35 = vld [vmem:[%s9752_s6 + $0x2f8] sm:$0xff] }
  0x2c   :  { %8468 = vmatprep.subr.bf16.mxu0 %v8467_v60  ;;  %603 = vperm.xlu1 %9476, %v501_v30   ;;  %v207_v60 = vld [vmem:[%s9752_s6 + $0x248] sm:$0xff]  ;;  %v519_v36 = vld [vmem:[%s9802_s18 + $0xd8] sm:$0xff] }
  0x2d   :  { %v8503_v2 = vpack.c.bf16 %v209_v61, %v207_v60  ;;  %v517_v29 = vld [vmem:[%s9802_s18 + $0xc8] sm:$0xff]  ;;  %v233_v42 = vld [vmem:[%s9752_s6 + $0x318] sm:$0xff]  ;;  %v238_v60 = vld [vmem:[%s9752_s6 + $0x340] sm:$0xff] }
  0x2e   :  { %v227_v34 = vld [vmem:[%s9752_s6 + $0x2e8] sm:$0xff]  ;;  %v237_v49 = vld [vmem:[%s9752_s6 + $0x338] sm:$0xff]  ;;  %v240_v61 = vld [vmem:[%s9752_s6 + $0x350] sm:$0xff] }
  0x2f   :  { %8470 = vmatpush1.bf16.msra.mxu0 %v8469_v3  ;;  %v206_v3 = vld [vmem:[%s9752_s6 + $0x240] sm:$0xff]  ;;  %v231_v41 = vld [vmem:[%s9752_s6 + $0x308] sm:$0xff]  ;;  %v523_v50 = vld [vmem:[%s9802_s18 + $0xf8] sm:$0xff] }
  0x30   :  { %8472 = vmatprep.subr.bf16.mxu0 %v8471_v4  ;;  %613 = vperm.xlu1 %9476, %v503_v37   ;;  %v208_v4 = vld [vmem:[%s9752_s6 + $0x250] sm:$0xff]  ;;  %v521_v43 = vld [vmem:[%s9802_s18 + $0xe8] sm:$0xff] }
  0x31   :  { %v8505_v9 = vpack.c.bf16 %v208_v4, %v206_v3  ;;  %v525_v57 = vld [vmem:[%s9802_s18 + $0x108] sm:$0xff]  ;;  %v242_v4 = vld [vmem:[%s9752_s6 + $0x360] sm:$0xff] }
  0x33   :  { %8474 = vmatpush1.bf16.msra.mxu0 %v8473_v10  ;;  %v8507_v10 = vpack.c.bf16 %v213_v7, %v211_v6  ;;  %v247_v6 = vld [vmem:[%s9752_s6 + $0x388] sm:$0xff]  ;;  %v249_v7 = vld [vmem:[%s9752_s6 + $0x398] sm:$0xff] }
  0x34   :  { %8476 = vmatprep.subr.bf16.mxu0 %v8475_v11  ;;  %623 = vperm.xlu1 %9476, %v505_v45   ;;  %v210_v11 = vld [vmem:[%s9752_s6 + $0x260] sm:$0xff]  ;;  %v8527_v45 = vpack.c.bf16 %v233_v42, %v231_v41  ;;  %v132_v41 = vld [vmem:[%s9779_s10 + $0x30] sm:$0xff] }
  0x35   :  { %v8509_v16 = vpack.c.bf16 %v212_v12, %v210_v11  ;;  %v246_v11 = vld [vmem:[%s9752_s6 + $0x380] sm:$0xff]  ;;  %v248_v12 = vld [vmem:[%s9752_s6 + $0x390] sm:$0xff] }
  0x36   :  { %v1518_v42 = vld [vmem:[%s7638_s30] sm:$0xff] }
  0x37   :  { %8478 = vmatpush1.bf16.msra.mxu0 %v8477_v17  ;;  %v8511_v17 = vpack.c.bf16 %v217_v14, %v215_v13  ;;  %v251_v13 = vld [vmem:[%s9752_s6 + $0x3a8] sm:$0xff]  ;;  %v253_v14 = vld [vmem:[%s9752_s6 + $0x3b8] sm:$0xff] }
  0x38   :  { %8480 = vmatprep.subr.bf16.mxu0 %v8479_v18  ;;  %633 = vperm.xlu1 %9476, %v507_v53   ;;  %v214_v18 = vld [vmem:[%s9752_s6 + $0x280] sm:$0xff] }
  0x39   :  { %v8513_v23 = vpack.c.bf16 %v216_v19, %v214_v18  ;;  %v234_v53 = vld [vmem:[%s9752_s6 + $0x320] sm:$0xff]  ;;  %v252_v19 = vld [vmem:[%s9752_s6 + $0x3b0] sm:$0xff] }
  0x3a   :  { %v250_v18 = vld [vmem:[%s9752_s6 + $0x3a0] sm:$0xff] }
  0x3b   :  { %8482 = vmatpush1.bf16.msra.mxu0 %v8481_v24  ;;  %v8515_v24 = vpack.c.bf16 %v221_v21, %v219_v20  ;;  %v255_v20 = vld [vmem:[%s9752_s6 + $0x3c8] sm:$0xff]  ;;  %v257_v21 = vld [vmem:[%s9752_s6 + $0x3d8] sm:$0xff] }
  0x3c   :  { %8484 = vmatprep.subr.bf16.mxu0 %v8483_v25  ;;  %643 = vperm.xlu1 %9476, %v509_v62   ;;  %v218_v25 = vld [vmem:[%s9752_s6 + $0x2a0] sm:$0xff]  ;;  %v243_v62 = vld [vmem:[%s9752_s6 + $0x368] sm:$0xff] }
  0x3d   :  { %v8517_v30 = vpack.c.bf16 %v220_v26, %v218_v25  ;;  %v254_v25 = vld [vmem:[%s9752_s6 + $0x3c0] sm:$0xff]  ;;  %v256_v26 = vld [vmem:[%s9752_s6 + $0x3d0] sm:$0xff] }
  0x3f   :  { %8486 = vmatpush1.bf16.msra.mxu0 %v8485_v31  ;;  %v8519_v31 = vpack.c.bf16 %v225_v28, %v223_v27  ;;  %v259_v27 = vld [vmem:[%s9752_s6 + $0x3e8] sm:$0xff]  ;;  %v261_v28 = vld [vmem:[%s9752_s6 + $0x3f8] sm:$0xff] }
  0x40   :  { %8488 = vmatprep.subr.bf16.mxu0 %v8487_v32  ;;  %653 = vperm.xlu1 %9476, %v511_v8   ;;  %v222_v32 = vld [vmem:[%s9752_s6 + $0x2c0] sm:$0xff]  ;;  %v529_v8 = vld [vmem:[%s9802_s18 + $0x128] sm:$0xff] }
  0x41   :  { %v8521_v37 = vpack.c.bf16 %v224_v33, %v222_v32  ;;  %v258_v32 = vld [vmem:[%s9752_s6 + $0x3e0] sm:$0xff]  ;;  %v260_v33 = vld [vmem:[%s9752_s6 + $0x3f0] sm:$0xff] }
  0x43   :  { %8490 = vmatpush1.bf16.msra.mxu0 %v8489_v38  ;;  %v8523_v38 = vpack.c.bf16 %v229_v35, %v227_v34  ;;  %v537_v34 = vld [vmem:[%s9802_s18 + $0x168] sm:$0xff]  ;;  %v8557_v35 = vpack.c.bf16 %v260_v33, %v258_v32  ;;  %v1634_v32 = vld [vmem:[%s9953_s4 + $0x78] sm:$0xff]  ;;  %v1635_v33 = vld [vmem:[%s9953_s4 + $0x80] sm:$0xff] }
  0x44   :  { %8492 = vmatprep.subr.bf16.mxu0 %v8491_v39  ;;  %663 = vperm.xlu1 %9476, %v513_v15   ;;  %v226_v39 = vld [vmem:[%s9752_s6 + $0x2e0] sm:$0xff]  ;;  %v531_v15 = vld [vmem:[%s9802_s18 + $0x138] sm:$0xff] }
  0x45   :  { %v8525_v44 = vpack.c.bf16 %v228_v40, %v226_v39  ;;  %v133_v39 = vld [vmem:[%s9779_s10 + $0x38] sm:$0xff]  ;;  %v541_v40 = vld [vmem:[%s9802_s18 + $0x188] sm:$0xff] }
  0x47   :  { %8494 = vmatpush1.bf16.msra.mxu0 %v8493_v47  ;;  %v232_v47 = vld [vmem:[%s9752_s6 + $0x310] sm:$0xff] }
  0x48   :  { %8496 = vmatprep.subr.bf16.mxu0 %v8495_v48  ;;  %673 = vperm.xlu1 %9476, %v515_v22   ;;  %v235_v48 = vld [vmem:[%s9752_s6 + $0x328] sm:$0xff]  ;;  %v8529_v51 = vpack.c.bf16 %v232_v47, %v230_v46  ;;  %v547_v46 = vld [vmem:[%s9802_s18 + $0x1b8] sm:$0xff] }
  0x49   :  { %v8531_v52 = vpack.c.bf16 %v237_v49, %v235_v48  ;;  %v533_v22 = vld [vmem:[%s9802_s18 + $0x148] sm:$0xff]  ;;  %v551_v48 = vld [vmem:[%s9802_s18 + $0x1d8] sm:$0xff] }
  0x4a   :  { %339 = vmatmul.mubr.f32.vlgmr.msra.gmra.mrb[0].mxu0 %v126_v54  ;;  %v236_v54 = vld [vmem:[%s9752_s6 + $0x330] sm:$0xff]  ;;  %v549_v47 = vld [vmem:[%s9802_s18 + $0x1c8] sm:$0xff] }
  0x4b   :  { %8498 = vmatpush1.bf16.msra.mxu0 %v8497_v55  ;;  %344 = vmatprep.mubr.f32.mxu0 %v131_v59  ;;  %v239_v55 = vld [vmem:[%s9752_s6 + $0x348] sm:$0xff]  ;;  %v8533_v58 = vpack.c.bf16 %v236_v54, %v234_v53 }
  0x4c   :  { %8500 = vmatprep.subr.bf16.mxu0 %v8499_v56  ;;  %683 = vperm.xlu1 %9476, %v517_v29   ;;  %v241_v56 = vld [vmem:[%s9752_s6 + $0x358] sm:$0xff]  ;;  %v553_v49 = vld [vmem:[%s9802_s18 + $0x1e8] sm:$0xff] }
  0x4d   :  { %v8535_v59 = vpack.c.bf16 %v241_v56, %v239_v55  ;;  %v535_v29 = vld [vmem:[%s9802_s18 + $0x158] sm:$0xff] }
  0x4e   :  { %345 = vmatmul.mubr.f32.gmra.mrb[2].mxu0 %v130_v1  ;;  %v527_v1 = vld [vmem:[%s9802_s18 + $0x118] sm:$0xff] }
  0x4f   :  { %8502 = vmatpush1.bf16.msra.mxu0 %v8501_v63  ;;  %415 = vmatprep.mubr.f32.mxu0 %v129_v5  ;;  %v245_v63 = vld [vmem:[%s9752_s6 + $0x378] sm:$0xff]  ;;  %v244_v5 = vld [vmem:[%s9752_s6 + $0x370] sm:$0xff]  ;;  %s7649_s6 = sld [smem:[%s14206_s0 + %s9729_s3]]  }
  0x50   :  { %8504 = vmatprep.subr.bf16.mxu0 %v8503_v2  ;;  %693 = vperm.xlu1 %9476, %v519_v36   ;;  %v8537_v2 = vpack.c.bf16 %v240_v61, %v238_v60  ;;  %v8539_v3 = vpack.c.bf16 %v245_v63, %v243_v62  ;;  %v1520_v36 = vld [vmem:[%s7633_s26] sm:$0x3]  ;;  %s9735_s26 = smov 20  }
  0x51   :  { %s7652_s29 = sld [smem:[%s14206_s0 + %s9735_s26]]  }
  0x53   :  { %8506 = vmatpush1.bf16.msra.mxu0 %v8505_v9  ;;  %v8541_v9 = vpack.c.bf16 %v244_v5, %v242_v4 }
  0x54   :  { %8508 = vmatprep.subr.bf16.mxu0 %v8507_v10  ;;  %703 = vperm.xlu1 %9476, %v521_v43   ;;  %v8543_v10 = vpack.c.bf16 %v249_v7, %v247_v6  ;;  %v543_v43 = vld [vmem:[%s9802_s18 + $0x198] sm:$0xff] }
  0x57   :  { %8510 = vmatpush1.bf16.msra.mxu0 %v8509_v16  ;;  %v8545_v16 = vpack.c.bf16 %v248_v12, %v246_v11  ;;  %v1620_v11 = vld [vmem:[%s9953_s4 + $0x8] sm:$0xff]  ;;  %v1621_v12 = vld [vmem:[%s9953_s4 + $0x10] sm:$0xff] }
  0x58   :  { %8512 = vmatprep.subr.bf16.mxu0 %v8511_v17  ;;  %713 = vperm.xlu1 %9476, %v523_v50   ;;  %v8547_v17 = vpack.c.bf16 %v253_v14, %v251_v13  ;;  %v555_v50 = vld [vmem:[%s9802_s18 + $0x1f8] sm:$0xff]  ;;  %v430_v13 = vld [vmem:[%s9961_s8 + $0x10] sm:$0xff] }
  0x59   :  { %v1622_v14 = vld [vmem:[%s9953_s4 + $0x18] sm:$0xff] }
  0x5b   :  { %8514 = vmatpush1.bf16.msra.mxu0 %v8513_v23  ;;  %v8549_v23 = vpack.c.bf16 %v252_v19, %v250_v18  ;;  %v1625_v18 = vld [vmem:[%s9953_s4 + $0x30] sm:$0xff]  ;;  %v432_v19 = vld [vmem:[%s9961_s8 + $0x20] sm:$0xff] }
  0x5c   :  { %8516 = vmatprep.subr.bf16.mxu0 %v8515_v24  ;;  %723 = vperm.xlu1 %9476, %v525_v57   ;;  %v8551_v24 = vpack.c.bf16 %v257_v21, %v255_v20  ;;  %v1626_v20 = vld [vmem:[%s9953_s4 + $0x38] sm:$0xff]  ;;  %v1627_v21 = vld [vmem:[%s9953_s4 + $0x40] sm:$0xff] }
  0x5f   :  { %8518 = vmatpush1.bf16.msra.mxu0 %v8517_v30  ;;  %v8553_v30 = vpack.c.bf16 %v256_v26, %v254_v25  ;;  %v434_v25 = vld [vmem:[%s9961_s8 + $0x30] sm:$0xff]  ;;  %v1630_v26 = vld [vmem:[%s9953_s4 + $0x58] sm:$0xff] }
  0x60   :  { %8520 = vmatprep.subr.bf16.mxu0 %v8519_v31  ;;  %733 = vperm.xlu1 %9476, %v527_v1   ;;  %v8555_v31 = vpack.c.bf16 %v261_v28, %v259_v27  ;;  %v1631_v27 = vld [vmem:[%s9953_s4 + $0x60] sm:$0xff]  ;;  %v435_v28 = vld [vmem:[%s9961_s8 + $0x38] sm:$0xff] }
  0x63   :  { %8522 = vmatpush1.bf16.msra.mxu0 %v8521_v37  ;;  %v539_v37 = vld [vmem:[%s9802_s18 + $0x178] sm:$0xff] }
  0x64   :  { %8524 = vmatprep.subr.bf16.mxu0 %v8523_v38  ;;  %743 = vperm.xlu1 %9476, %v529_v8   ;;  %v128_v38 = vld [vmem:[%s9779_s10 + $0x10] sm:$0xff]  ;;  %v428_v8 = vld [vmem:[%s9961_s8] sm:$0xff]  ;;  %s9731_s10 = smov 19  }
  0x65   :  { %s7651_s13 = sld [smem:[%s14206_s0 + %s9731_s10]]  }
  0x67   :  { %8526 = vmatpush1.bf16.msra.mxu0 %v8525_v44  ;;  %v1519_v44 = vld [vmem:[%s7638_s30 + $0x8] sm:$0x3]  ;;  %s9736_s30 = smov 21  }
  0x68   :  { %8528 = vmatprep.subr.bf16.mxu0 %v8527_v45  ;;  %753 = vperm.xlu1 %9476, %v531_v15   ;;  %v545_v45 = vld [vmem:[%s9802_s18 + $0x1a8] sm:$0xff]  ;;  %v1623_v15 = vld [vmem:[%s9953_s4 + $0x20] sm:$0xff]  ;;  %s7653_s3 = sld [smem:[%s14206_s0 + %s9736_s30]]  }
  0x6b   :  { %8530 = vmatpush1.bf16.msra.mxu0 %v8529_v51  ;;  %v14217_v51 = vmov 0.0  }
  0x6c   :  { %8532 = vmatprep.subr.bf16.mxu0 %v8531_v52  ;;  %763 = vperm.xlu1 %9476, %v533_v22   ;;  %v1619_v52 = vld [vmem:[%s9953_s4] sm:$0xff]  ;;  %v433_v22 = vld [vmem:[%s9961_s8 + $0x28] sm:$0xff] }
  0x6d   :  { %1133 = vmatprep.mubr.f32.mxu1 %v14217_v51 }
  0x6f   :  { %8534 = vmatpush1.bf16.msra.mxu0 %v8533_v58 }
  0x70   :  { %8536 = vmatprep.subr.bf16.mxu0 %v8535_v59  ;;  %773 = vperm.xlu1 %9476, %v535_v29   ;;  %v1632_v29 = vld [vmem:[%s9953_s4 + $0x68] sm:$0xff] }
  0x73   :  { %8538 = vmatpush1.bf16.msra.mxu0 %v8537_v2 }
  0x74   :  { %8540 = vmatprep.subr.bf16.mxu0 %v8539_v3  ;;  %783 = vperm.xlu1 %9476, %v537_v34   ;;  %v437_v34 = vld [vmem:[%s9961_s8 + $0x48] sm:$0xff] }
  0x77   :  { %8542 = vmatpush1.bf16.msra.mxu0 %v8541_v9 }
  0x78   :  { %8544 = vmatprep.subr.bf16.mxu0 %v8543_v10  ;;  %793 = vperm.xlu1 %9476, %v539_v37   ;;  %v429_v10 = vld [vmem:[%s9961_s8 + $0x8] sm:$0xff]  ;;  %v438_v37 = vld [vmem:[%s9961_s8 + $0x50] sm:$0xff] }
  0x7b   :  { %8546 = vmatpush1.bf16.msra.mxu0 %v8545_v16  ;;  %v431_v16 = vld [vmem:[%s9961_s8 + $0x18] sm:$0xff] }
  0x7c   :  { %8548 = vmatprep.subr.bf16.mxu0 %v8547_v17  ;;  %803 = vperm.xlu1 %9476, %v541_v40   ;;  %v1624_v17 = vld [vmem:[%s9953_s4 + $0x28] sm:$0xff]  ;;  %v439_v40 = vld [vmem:[%s9961_s8 + $0x58] sm:$0xff] }
  0x7f   :  { %8550 = vmatpush1.bf16.msra.mxu0 %v8549_v23  ;;  %v1628_v23 = vld [vmem:[%s9953_s4 + $0x48] sm:$0xff] }
  0x80   :  { %8552 = vmatprep.subr.bf16.mxu0 %v8551_v24  ;;  %813 = vperm.xlu1 %9476, %v543_v43   ;;  %v1629_v24 = vld [vmem:[%s9953_s4 + $0x50] sm:$0xff]  ;;  %v440_v43 = vld [vmem:[%s9961_s8 + $0x60] sm:$0xff] }
  0x83   :  { %8554 = vmatpush1.bf16.msra.mxu0 %v8553_v30  ;;  %v1633_v30 = vld [vmem:[%s9953_s4 + $0x70] sm:$0xff] }
  0x84   :  { %8556 = vmatprep.subr.bf16.mxu0 %v8555_v31  ;;  %823 = vperm.xlu1 %9476, %v545_v45   ;;  %v436_v31 = vld [vmem:[%s9961_s8 + $0x40] sm:$0xff] }
  0x85   :  { %v1643_v45 = vld [vmem:[%s9953_s4 + $0xc0] sm:$0xff] }
  0x87   :  { %8558 = vmatpush1.bf16.msra.mxu0 %v8557_v35  ;;  %v1636_v35 = vld [vmem:[%s9953_s4 + $0x88] sm:$0xff] }
  0x88   :  { %8124 = vmatprep.subr.msk.mxu0 %vm1540_vm0, %v1520_v36  ;;  %833 = vperm.xlu1 %9476, %v547_v46   ;;  %v441_v46 = vld [vmem:[%s9961_s8 + $0x68] sm:$0xff] }
  0x8a   :  { %416 = vmatmul.mubr.f32.vlgmr.msra.gmra.mrb[0].mxu0 %v128_v38  ;;  %v1638_v38 = vld [vmem:[%s9953_s4 + $0x98] sm:$0xff] }
  0x8b   :  { %421 = vmatprep.mubr.f32.mxu0 %v133_v39  ;;  %8125 = vmatpush3.msk.msra.mxu0 %vm1540_vm0, %v1520_v36  ;;  %v1637_v36 = vld [vmem:[%s9953_s4 + $0x90] sm:$0xff]  ;;  %v1639_v39 = vld [vmem:[%s9953_s4 + $0xa0] sm:$0xff] }
  0x8c   :  { %843 = vperm.xlu1 %9476, %v549_v47   ;;  %v1644_v47 = vld [vmem:[%s9953_s4 + $0xc8] sm:$0xff] }
  0x8e   :  { %422 = vmatmul.mubr.f32.gmra.mrb[2].mxu0 %v132_v41  ;;  %v1640_v41 = vld [vmem:[%s9953_s4 + $0xa8] sm:$0xff] }
  0x8f   :  { %8126 = vmatprep.mubr.msk.f32.mxu0 %vm1533_vm1, %v1518_v42  ;;  %v1641_v42 = vld [vmem:[%s9953_s4 + $0xb0] sm:$0xff] }
  0x90   :  { %853 = vperm.xlu1 %9476, %v551_v48   ;;  %v1645_v48 = vld [vmem:[%s9953_s4 + $0xd0] sm:$0xff] }
  0x92   :  { %8127 = vmatmul.mubr.msk.f32.vlgmr.msra.gmra.mrb[4].mxu0 %vm1533_vm1, %v1519_v44  ;;  %v1642_v44 = vld [vmem:[%s9953_s4 + $0xb8] sm:$0xff] }
  0x93   :  { %8133 = vmatprep.mubr.msk.f32.mxu0 %vm1683_vm2, %v1619_v52  ;;  %v1526_v56 = vpop.permute.xlu1 %1525  ;;  %v1647_v52 = vld [vmem:[%s9953_s4 + $0xe0] sm:$0xff] }
  0x94   :  { %863 = vperm.xlu1 %9476, %v553_v49   ;;  %v442_v49 = vld [vmem:[%s9961_s8 + $0x70] sm:$0xff] }
  0x97   :  { %v1531_v2 = vpop.permute.xlu1 %1530 }
  0x98   :  { %873 = vperm.xlu1 %9476, %v555_v50   ;;  %v1646_v50 = vld [vmem:[%s9953_s4 + $0xd8] sm:$0xff] }
  0xa0   :  { %v267_v53 = vpop.permute.xlu0 %266 }
  0xa4   :  { %v272_v57 = vpop.permute.xlu0 %271 }
 0x15d   :  { %v417_v54 = vpop.f32.mrb[0].mxu0 }
 0x15e   :  { %v419_v55 = vpop.f32.mrb[1].mxu0  ;;  %v9377_v59 = vadd.f32 %v417_v54, %v267_v53  ;;  %v1648_v54 = vld [vmem:[%s9953_s4 + $0xe8] sm:$0xff] }
 0x15f   :  { %v9378_v62 = vadd.f32 %v419_v55, %v267_v53  ;;  %v443_v53 = vld [vmem:[%s9961_s8 + $0x78] sm:$0xff]  ;;  %v1649_v55 = vld [vmem:[%s9953_s4 + $0xf0] sm:$0xff] }
 0x161   :  { %v423_v58 = vpop.f32.mrb[2].mxu0 }
 0x162   :  { %v9379_v60 = vadd.f32 %v423_v58, %v272_v57  ;;  %v425_v61 = vpop.f32.mrb[3].mxu0  ;;  %v1651_v58 = vld [vmem:[%s9953_s4 + $0x100] sm:$0xff] }
 0x163   :  { %v9380_v63 = vadd.f32 %v425_v61, %v272_v57  ;;  %v1650_v57 = vld [vmem:[%s9953_s4 + $0xf8] sm:$0xff]  ;;  %v1653_v61 = vld [vmem:[%s9953_s4 + $0x110] sm:$0xff] }
 0x164   :  { %v8561_v1 = vpack.c.bf16 %v9379_v60, %v9377_v59  ;;  %v445_v59 = vld [vmem:[%s9961_s8 + $0x88] sm:$0xff] }
 0x165   :  { %v8128_v3 = vpop.f32.mrb[4].mxu0  ;;  %v8559_v4 = vpack.c.bf16 %v9380_v63, %v9378_v62  ;;  %v1652_v60 = vld [vmem:[%s9953_s4 + $0x108] sm:$0xff]  ;;  %v446_v62 = vld [vmem:[%s9961_s8 + $0x90] sm:$0xff]  ;;  %v1654_v63 = vld [vmem:[%s9953_s4 + $0x118] sm:$0xff] }
 0x166   :  { %v1616_v5 = vadd.f32 %v8128_v3, %v1531_v2  ;;  %v1610_v6 = vpop.f32.mrb[5].mxu0  ;;  %v447_v2 = vld [vmem:[%s9961_s8 + $0x98] sm:$0xff]  ;;  %v1656_v3 = vld [vmem:[%s9953_s4 + $0x128] sm:$0xff] }
 0x167   :  { %v1611_v7 = vadd.f32 %v1610_v6, %v1526_v56  ;;  %8560 = vmatprep.subr.bf16.mxu1 %v8559_v4  ;;  %v444_v56 = vld [vmem:[%s9961_s8 + $0x80] sm:$0xff]  ;;  %v1657_v4 = vld [vmem:[%s9953_s4 + $0x130] sm:$0xff]  ;;  %v1658_v6 = vld [vmem:[%s9953_s4 + $0x138] sm:$0xff] }
 0x168   :  { %8562 = vmatpush1.bf16.msra.mxu1 %v8561_v1  ;;  %v1655_v1 = vld [vmem:[%s9953_s4 + $0x120] sm:$0xff] }
 0x169   :  { %v8563_v9 = vpack.c.bf16 %v1616_v5, %v1611_v7  ;;  %v448_v5 = vld [vmem:[%s9961_s8 + $0xa0] sm:$0xff] }
 0x16a   :  { %v1659_v7 = vld [vmem:[%s9953_s4 + $0x140] sm:$0xff] }
 0x16b   :  { %7662 = vmatmul.mubr.msk.f32.vlgmr.msra.gmra.mrb[0].mxu1 %vm876_vm3, %v428_v8  ;;  %8565 = vmatprep.subr.msk.bf16.mxu0 %vm8564_vm5, %v8563_v9  ;;  %v449_v8 = vld [vmem:[%s9961_s8 + $0xa8] sm:$0xff] }
 0x16c   :  { %8568 = vmatpush3.bf16.msk.msra.mxu0 %vm8564_vm5, %v8563_v9  ;;  %1139 = vmatprep.mubr.f32.mxu1 %v14217_v51  ;;  %v1660_v9 = vld [vmem:[%s9953_s4 + $0x148] sm:$0xff] }
 0x16f   :  { %7663 = vmatmul.mubr.msk.f32.gmra.mrb[2].mxu1 %vm876_vm3, %v429_v10  ;;  %8134 = vmatmul.mubr.msk.f32.vlgmr.msra.gmra.mrb[6].mxu0 %vm1683_vm2, %v1620_v11  ;;  %v1661_v10 = vld [vmem:[%s9953_s4 + $0x150] sm:$0xff] }
 0x170   :  { %1145 = vmatprep.mubr.f32.mxu1 %v14217_v51  ;;  %8136 = vmatprep.mubr.msk.f32.mxu0 %vm1683_vm2, %v1621_v12  ;;  %v450_v11 = vld [vmem:[%s9961_s8 + $0xb0] sm:$0xff]  ;;  %v1662_v12 = vld [vmem:[%s9953_s4 + $0x158] sm:$0xff] }
 0x173   :  { %7664 = vmatmul.mubr.msk.f32.gmra.mrb[4].mxu1 %vm876_vm3, %v430_v13  ;;  %8137 = vmatmul.mubr.msk.f32.gmra.mrb[8].mxu0 %vm1683_vm2, %v1622_v14  ;;  %v1663_v13 = vld [vmem:[%s9953_s4 + $0x160] sm:$0xff]  ;;  %v451_v14 = vld [vmem:[%s9961_s8 + $0xb8] sm:$0xff] }
 0x174   :  { %1151 = vmatprep.mubr.f32.mxu1 %v14217_v51  ;;  %8139 = vmatprep.mubr.msk.f32.mxu0 %vm1683_vm2, %v1623_v15  ;;  %v1664_v15 = vld [vmem:[%s9953_s4 + $0x168] sm:$0xff] }
 0x177   :  { %7665 = vmatmul.mubr.msk.f32.gmra.mrb[6].mxu1 %vm876_vm3, %v431_v16  ;;  %8140 = vmatmul.mubr.msk.f32.gmra.mrb[10].mxu0 %vm1683_vm2, %v1624_v17  ;;  %v1665_v16 = vld [vmem:[%s9953_s4 + $0x170] sm:$0xff]  ;;  %v14213_v17 = vmov 1  }
 0x178   :  { %1157 = vmatprep.mubr.f32.mxu1 %v14217_v51  ;;  %8142 = vmatprep.mubr.msk.f32.mxu0 %vm1683_vm2, %v1625_v18  ;;  %v452_v18 = vld [vmem:[%s9961_s8 + $0xc0] sm:$0xff] }
 0x179   :  { %9479 = vset.pattern.permute.xlu0 %v14213_v17 }
 0x17b   :  { %7666 = vmatmul.mubr.msk.f32.gmra.mrb[8].mxu1 %vm876_vm3, %v432_v19  ;;  %8143 = vmatmul.mubr.msk.f32.gmra.mrb[12].mxu0 %vm1683_vm2, %v1626_v20  ;;  %v1666_v19 = vld [vmem:[%s9953_s4 + $0x178] sm:$0xff]  ;;  %v1667_v20 = vld [vmem:[%s9953_s4 + $0x180] sm:$0xff] }
 0x17c   :  { %1163 = vmatprep.mubr.f32.mxu1 %v14217_v51  ;;  %8145 = vmatprep.mubr.msk.f32.mxu0 %vm1683_vm2, %v1627_v21  ;;  %v453_v21 = vld [vmem:[%s9961_s8 + $0xc8] sm:$0xff] }
 0x17f   :  { %7667 = vmatmul.mubr.msk.f32.gmra.mrb[10].mxu1 %vm876_vm3, %v433_v22  ;;  %8146 = vmatmul.mubr.msk.f32.gmra.mrb[14].mxu0 %vm1683_vm2, %v1628_v23  ;;  %v1668_v22 = vld [vmem:[%s9953_s4 + $0x188] sm:$0xff]  ;;  %v1669_v23 = vld [vmem:[%s9953_s4 + $0x190] sm:$0xff] }
 0x180   :  { %1169 = vmatprep.mubr.f32.mxu1 %v14217_v51  ;;  %8148 = vmatprep.mubr.msk.f32.mxu0 %vm1683_vm2, %v1629_v24  ;;  %v454_v24 = vld [vmem:[%s9961_s8 + $0xd0] sm:$0xff] }
 0x183   :  { %7668 = vmatmul.mubr.msk.f32.gmra.mrb[12].mxu1 %vm876_vm3, %v434_v25  ;;  %8149 = vmatmul.mubr.msk.f32.gmra.mrb[16].mxu0 %vm1683_vm2, %v1630_v26  ;;  %v1670_v25 = vld [vmem:[%s9953_s4 + $0x198] sm:$0xff]  ;;  %v1671_v26 = vld [vmem:[%s9953_s4 + $0x1a0] sm:$0xff] }
 0x184   :  { %1175 = vmatprep.mubr.f32.mxu1 %v14217_v51  ;;  %8151 = vmatprep.mubr.msk.f32.mxu0 %vm1683_vm2, %v1631_v27  ;;  %v455_v27 = vld [vmem:[%s9961_s8 + $0xd8] sm:$0xff] }
 0x187   :  { %7669 = vmatmul.mubr.msk.f32.gmra.mrb[14].mxu1 %vm876_vm3, %v435_v28  ;;  %8152 = vmatmul.mubr.msk.f32.gmra.mrb[18].mxu0 %vm1683_vm2, %v1632_v29  ;;  %v1672_v28 = vld [vmem:[%s9953_s4 + $0x1a8] sm:$0xff]  ;;  %v1673_v29 = vld [vmem:[%s9953_s4 + $0x1b0] sm:$0xff] }
 0x188   :  { %1181 = vmatprep.mubr.f32.mxu1 %v14217_v51  ;;  %8154 = vmatprep.mubr.msk.f32.mxu0 %vm1683_vm2, %v1633_v30  ;;  %v456_v30 = vld [vmem:[%s9961_s8 + $0xe0] sm:$0xff] }
 0x18b   :  { %7670 = vmatmul.mubr.msk.f32.gmra.mrb[16].mxu1 %vm876_vm3, %v436_v31  ;;  %8155 = vmatmul.mubr.msk.f32.gmra.mrb[20].mxu0 %vm1683_vm2, %v1634_v32  ;;  %v1674_v31 = vld [vmem:[%s9953_s4 + $0x1b8] sm:$0xff]  ;;  %v1675_v32 = vld [vmem:[%s9953_s4 + $0x1c0] sm:$0xff] }
 0x18c   :  { %1187 = vmatprep.mubr.f32.mxu1 %v14217_v51  ;;  %8157 = vmatprep.mubr.msk.f32.mxu0 %vm1683_vm2, %v1635_v33  ;;  %v457_v33 = vld [vmem:[%s9961_s8 + $0xe8] sm:$0xff] }
 0x18f   :  { %7671 = vmatmul.mubr.msk.f32.gmra.mrb[18].mxu1 %vm876_vm3, %v437_v34  ;;  %8158 = vmatmul.mubr.msk.f32.gmra.mrb[22].mxu0 %vm1683_vm2, %v1636_v35  ;;  %v1676_v34 = vld [vmem:[%s9953_s4 + $0x1c8] sm:$0xff]  ;;  %v1677_v35 = vld [vmem:[%s9953_s4 + $0x1d0] sm:$0xff] }
 0x190   :  { %1193 = vmatprep.mubr.f32.mxu1 %v14217_v51  ;;  %8160 = vmatprep.mubr.msk.f32.mxu0 %vm1683_vm2, %v1637_v36  ;;  %v458_v36 = vld [vmem:[%s9961_s8 + $0xf0] sm:$0xff] }
 0x193   :  { %7672 = vmatmul.mubr.msk.f32.gmra.mrb[20].mxu1 %vm876_vm3, %v438_v37  ;;  %8161 = vmatmul.mubr.msk.f32.gmra.mrb[24].mxu0 %vm1683_vm2, %v1638_v38  ;;  %v1678_v37 = vld [vmem:[%s9953_s4 + $0x1d8] sm:$0xff]  ;;  %v1679_v38 = vld [vmem:[%s9953_s4 + $0x1e0] sm:$0xff] }
 0x194   :  { %1199 = vmatprep.mubr.f32.mxu1 %v14217_v51  ;;  %8163 = vmatprep.mubr.msk.f32.mxu0 %vm1683_vm2, %v1639_v39  ;;  %v459_v39 = vld [vmem:[%s9961_s8 + $0xf8] sm:$0xff] }
 0x197   :  { %7673 = vmatmul.mubr.msk.f32.gmra.mrb[22].mxu1 %vm876_vm3, %v439_v40  ;;  %8164 = vmatmul.mubr.msk.f32.gmra.mrb[26].mxu0 %vm1683_vm2, %v1640_v41  ;;  %v1680_v40 = vld [vmem:[%s9953_s4 + $0x1e8] sm:$0xff]  ;;  %v10180_v41 = vpop.permute.xlu1 %563 }
 0x198   :  { %1205 = vmatprep.mubr.f32.mxu1 %v14217_v51  ;;  %8166 = vmatprep.mubr.msk.f32.mxu0 %vm1683_vm2, %v1641_v42  ;;  %v460_v42 = vld [vmem:[%s9961_s8 + $0x100] sm:$0xff] }
 0x19b   :  { %7674 = vmatmul.mubr.msk.f32.gmra.mrb[24].mxu1 %vm876_vm3, %v440_v43  ;;  %8167 = vmatmul.mubr.msk.f32.gmra.mrb[28].mxu0 %vm1683_vm2, %v1642_v44  ;;  %v461_v43 = vld [vmem:[%s9961_s8 + $0x108] sm:$0xff]  ;;  %v10189_v44 = vpop.permute.xlu1 %573 }
 0x19c   :  { %1211 = vmatprep.mubr.f32.mxu1 %v14217_v51  ;;  %8169 = vmatprep.mubr.msk.f32.mxu0 %vm1683_vm2, %v1643_v45  ;;  %v462_v45 = vld [vmem:[%s9961_s8 + $0x110] sm:$0xff] }
 0x19f   :  { %7675 = vmatmul.mubr.msk.f32.gmra.mrb[26].mxu1 %vm876_vm3, %v441_v46  ;;  %8170 = vmatmul.mubr.msk.f32.gmra.mrb[30].mxu0 %vm1683_vm2, %v1644_v47  ;;  %v10194_v46 = vpop.permute.xlu1 %583  ;;  %v463_v47 = vld [vmem:[%s9961_s8 + $0x118] sm:$0xff] }
 0x1a0   :  { %1217 = vmatprep.mubr.f32.mxu1 %v14217_v51  ;;  %8172 = vmatprep.mubr.msk.f32.mxu0 %vm1683_vm2, %v1645_v48  ;;  %v464_v48 = vld [vmem:[%s9961_s8 + $0x120] sm:$0xff] }
 0x1a3   :  { %7676 = vmatmul.mubr.msk.f32.gmra.mrb[28].mxu1 %vm876_vm3, %v442_v49  ;;  %8173 = vmatmul.mubr.msk.f32.gmra.mrb[32].mxu0 %vm1683_vm2, %v1646_v50  ;;  %v10202_v49 = vpop.permute.xlu1 %593  ;;  %v465_v50 = vld [vmem:[%s9961_s8 + $0x128] sm:$0xff] }
 0x1a4   :  { %1223 = vmatprep.mubr.f32.mxu1 %v14217_v51  ;;  %8175 = vmatprep.mubr.msk.f32.mxu0 %vm1683_vm2, %v1647_v52 }
 0x1a7   :  { %7677 = vmatmul.mubr.msk.f32.gmra.mrb[30].mxu1 %vm876_vm3, %v443_v53  ;;  %8176 = vmatmul.mubr.msk.f32.gmra.mrb[34].mxu0 %vm1683_vm2, %v1648_v54  ;;  %v10207_v52 = vpop.permute.xlu1 %603  ;;  %v466_v53 = vld [vmem:[%s9961_s8 + $0x130] sm:$0xff]  ;;  %v467_v54 = vld [vmem:[%s9961_s8 + $0x138] sm:$0xff] }
 0x1a8   :  { %1229 = vmatprep.mubr.f32.mxu1 %v14217_v51  ;;  %8178 = vmatprep.mubr.msk.f32.mxu0 %vm1683_vm2, %v1649_v55 }
 0x1ab   :  { %7678 = vmatmul.mubr.msk.f32.gmra.mrb[32].mxu1 %vm876_vm3, %v444_v56  ;;  %8179 = vmatmul.mubr.msk.f32.gmra.mrb[36].mxu0 %vm1683_vm2, %v1650_v57  ;;  %v10215_v55 = vpop.permute.xlu1 %613  ;;  %v468_v56 = vld [vmem:[%s9961_s8 + $0x140] sm:$0xff] }
 0x1ac   :  { %1235 = vmatprep.mubr.f32.mxu1 %v14217_v51  ;;  %8181 = vmatprep.mubr.msk.f32.mxu0 %vm1683_vm2, %v1651_v58  ;;  %14784 = vst [vmem:[#allocation7_spill] sm:$0xff] %v10215_v55  ;;  %v469_v58 = vld [vmem:[%s9961_s8 + $0x148] sm:$0xff] }
 0x1af   :  { %7679 = vmatmul.mubr.msk.f32.gmra.mrb[34].mxu1 %vm876_vm3, %v445_v59  ;;  %8182 = vmatmul.mubr.msk.f32.gmra.mrb[38].mxu0 %vm1683_vm2, %v1652_v60  ;;  %v10220_v57 = vpop.permute.xlu1 %623  ;;  %v470_v59 = vld [vmem:[%s9961_s8 + $0x150] sm:$0xff] }
 0x1b0   :  { %1241 = vmatprep.mubr.f32.mxu1 %v14217_v51  ;;  %8184 = vmatprep.mubr.msk.f32.mxu0 %vm1683_vm2, %v1653_v61  ;;  %14785 = vst [vmem:[#allocation8_spill] sm:$0xff] %v10220_v57  ;;  %v471_v61 = vld [vmem:[%s9961_s8 + $0x158] sm:$0xff] }
 0x1b3   :  { %7680 = vmatmul.mubr.msk.f32.gmra.mrb[36].mxu1 %vm876_vm3, %v446_v62  ;;  %8185 = vmatmul.mubr.msk.f32.gmra.mrb[40].mxu0 %vm1683_vm2, %v1654_v63  ;;  %v10228_v60 = vpop.permute.xlu1 %633  ;;  %v472_v63 = vld [vmem:[%s9961_s8 + $0x160] sm:$0xff] }
 0x1b4   :  { %1247 = vmatprep.mubr.f32.mxu1 %v14217_v51  ;;  %8187 = vmatprep.mubr.msk.f32.mxu0 %vm1683_vm2, %v1655_v1  ;;  %14786 = vst [vmem:[#allocation9_spill] sm:$0xff] %v10228_v60  ;;  %v473_v1 = vld [vmem:[%s9961_s8 + $0x168] sm:$0xff] }
 0x1b7   :  { %7681 = vmatmul.mubr.msk.f32.gmra.mrb[38].mxu1 %vm876_vm3, %v447_v2  ;;  %8188 = vmatmul.mubr.msk.f32.gmra.mrb[42].mxu0 %vm1683_vm2, %v1656_v3  ;;  %v10233_v62 = vpop.permute.xlu1 %643  ;;  %v474_v3 = vld [vmem:[%s9961_s8 + $0x170] sm:$0xff] }
 0x1b8   :  { %1253 = vmatprep.mubr.f32.mxu1 %v14217_v51  ;;  %8190 = vmatprep.mubr.msk.f32.mxu0 %vm1683_vm2, %v1657_v4  ;;  %14787 = vst [vmem:[#allocation10_spill] sm:$0xff] %v10233_v62 }
 0x1bb   :  { %7682 = vmatmul.mubr.msk.f32.gmra.mrb[40].mxu1 %vm876_vm3, %v448_v5  ;;  %8191 = vmatmul.mubr.msk.f32.gmra.mrb[44].mxu0 %vm1683_vm2, %v1658_v6  ;;  %v10241_v2 = vpop.permute.xlu1 %653  ;;  %v475_v5 = vld [vmem:[%s9961_s8 + $0x178] sm:$0xff]  ;;  %v476_v6 = vld [vmem:[%s9961_s8 + $0x180] sm:$0xff] }
 0x1bc   :  { %1259 = vmatprep.mubr.f32.mxu1 %v14217_v51  ;;  %8193 = vmatprep.mubr.msk.f32.mxu0 %vm1683_vm2, %v1659_v7  ;;  %14788 = vst [vmem:[#allocation11_spill] sm:$0xff] %v10241_v2 }
 0x1bf   :  { %7683 = vmatmul.mubr.msk.f32.gmra.mrb[42].mxu1 %vm876_vm3, %v449_v8  ;;  %8194 = vmatmul.mubr.msk.f32.gmra.mrb[46].mxu0 %vm1683_vm2, %v1660_v9  ;;  %v10246_v4 = vpop.permute.xlu1 %663  ;;  %v477_v8 = vld [vmem:[%s9961_s8 + $0x188] sm:$0xff] }
 0x1c0   :  { %1265 = vmatprep.mubr.f32.mxu1 %v14217_v51  ;;  %8196 = vmatprep.mubr.msk.f32.mxu0 %vm1683_vm2, %v1661_v10  ;;  %14789 = vst [vmem:[#allocation12_spill] sm:$0xff] %v10246_v4  ;;  %v478_v10 = vld [vmem:[%s9961_s8 + $0x190] sm:$0xff] }
 0x1c3   :  { %7684 = vmatmul.mubr.msk.f32.gmra.mrb[44].mxu1 %vm876_vm3, %v450_v11  ;;  %8197 = vmatmul.mubr.msk.f32.gmra.mrb[48].mxu0 %vm1683_vm2, %v1662_v12  ;;  %v10254_v7 = vpop.permute.xlu1 %673  ;;  %v479_v11 = vld [vmem:[%s9961_s8 + $0x198] sm:$0xff] }
 0x1c4   :  { %1271 = vmatprep.mubr.f32.mxu1 %v14217_v51  ;;  %8199 = vmatprep.mubr.msk.f32.mxu0 %vm1683_vm2, %v1663_v13  ;;  %14790 = vst [vmem:[#allocation13_spill] sm:$0xff] %v10254_v7  ;;  %v480_v13 = vld [vmem:[%s9961_s8 + $0x1a0] sm:$0xff] }
 0x1c7   :  { %7685 = vmatmul.mubr.msk.f32.gmra.mrb[46].mxu1 %vm876_vm3, %v451_v14  ;;  %8200 = vmatmul.mubr.msk.f32.gmra.mrb[50].mxu0 %vm1683_vm2, %v1664_v15  ;;  %v10259_v9 = vpop.permute.xlu1 %683  ;;  %v481_v15 = vld [vmem:[%s9961_s8 + $0x1a8] sm:$0xff] }
 0x1c8   :  { %1277 = vmatprep.mubr.f32.mxu1 %v14217_v51  ;;  %8202 = vmatprep.mubr.msk.f32.mxu0 %vm1683_vm2, %v1665_v16  ;;  %14791 = vst [vmem:[#allocation14_spill] sm:$0xff] %v10259_v9 }
 0x1cb   :  { %7686 = vmatmul.mubr.msk.f32.gmra.mrb[48].mxu1 %vm876_vm3, %v452_v18  ;;  %8203 = vmatmul.mubr.msk.f32.gmra.mrb[52].mxu0 %vm1683_vm2, %v1666_v19  ;;  %v10267_v12 = vpop.permute.xlu1 %693  ;;  %v482_v19 = vld [vmem:[%s9961_s8 + $0x1b0] sm:$0xff] }
 0x1cc   :  { %1283 = vmatprep.mubr.f32.mxu1 %v14217_v51  ;;  %8205 = vmatprep.mubr.msk.f32.mxu0 %vm1683_vm2, %v1667_v20  ;;  %14792 = vst [vmem:[#allocation15_spill] sm:$0xff] %v10267_v12  ;;  %v14825_v12 = vmov 4  }
 0x1cf   :  { %7687 = vmatmul.mubr.msk.f32.gmra.mrb[50].mxu1 %vm876_vm3, %v453_v21  ;;  %8206 = vmatmul.mubr.msk.f32.gmra.mrb[54].mxu0 %vm1683_vm2, %v1668_v22  ;;  %v10272_v14 = vpop.permute.xlu1 %703 }
 0x1d0   :  { %1289 = vmatprep.mubr.f32.mxu1 %v14217_v51  ;;  %8208 = vmatprep.mubr.msk.f32.mxu0 %vm1683_vm2, %v1669_v23  ;;  %14793 = vst [vmem:[#allocation16_spill] sm:$0xff] %v10272_v14 }
 0x1d3   :  { %7688 = vmatmul.mubr.msk.f32.gmra.mrb[52].mxu1 %vm876_vm3, %v454_v24  ;;  %8209 = vmatmul.mubr.msk.f32.gmra.mrb[56].mxu0 %vm1683_vm2, %v1670_v25  ;;  %v10284_v20 = vpop.permute.xlu1 %713  ;;  %v483_v25 = vld [vmem:[%s9961_s8 + $0x1b8] sm:$0xff] }
 0x1d4   :  { %1295 = vmatprep.mubr.f32.mxu1 %v14217_v51  ;;  %8211 = vmatprep.mubr.msk.f32.mxu0 %vm1683_vm2, %v1671_v26  ;;  %14794 = vst [vmem:[#allocation17_spill] sm:$0xff] %v10284_v20  ;;  %v14822_v20 = vmov 1  }
 0x1d7   :  { %7689 = vmatmul.mubr.msk.f32.gmra.mrb[54].mxu1 %vm876_vm3, %v455_v27  ;;  %8212 = vmatmul.mubr.msk.f32.gmra.mrb[58].mxu0 %vm1683_vm2, %v1672_v28 }
 0x1d8   :  { %1301 = vmatprep.mubr.f32.mxu1 %v14217_v51  ;;  %8214 = vmatprep.mubr.msk.f32.mxu0 %vm1683_vm2, %v1673_v29 }
 0x1db   :  { %7690 = vmatmul.mubr.msk.f32.gmra.mrb[56].mxu1 %vm876_vm3, %v456_v30  ;;  %8215 = vmatmul.mubr.msk.f32.gmra.mrb[60].mxu0 %vm1683_vm2, %v1674_v31  ;;  %v14211_v30 = vmov 3   ;;  %v484_v31 = vld [vmem:[%s9961_s8 + $0x1c0] sm:$0xff] }
 0x1dc   :  { %1307 = vmatprep.mubr.f32.mxu1 %v14217_v51  ;;  %8217 = vmatprep.mubr.msk.f32.mxu0 %vm1683_vm2, %v1675_v32  ;;  %v10312_v32 = vpop.permute.xlu1 %723 }
 0x1dd   :  { %14797 = vst [vmem:[#allocation20_spill] sm:$0xff] %v10312_v32 }
 0x1df   :  { %7691 = vmatmul.mubr.msk.f32.gmra.mrb[58].mxu1 %vm876_vm3, %v457_v33  ;;  %8218 = vmatmul.mubr.msk.f32.gmra.mrb[62].mxu0 %vm1683_vm2, %v1676_v34 }
 0x1e0   :  { %1313 = vmatprep.mubr.f32.mxu1 %v14217_v51  ;;  %8220 = vmatprep.mubr.msk.f32.mxu0 %vm1683_vm2, %v1677_v35 }
 0x1e3   :  { %7692 = vmatmul.mubr.msk.f32.gmra.mrb[60].mxu1 %vm876_vm3, %v458_v36  ;;  %8221 = vmatmul.mubr.msk.f32.gmra.mrb[64].mxu0 %vm1683_vm2, %v1678_v37  ;;  %v485_v37 = vld [vmem:[%s9961_s8 + $0x1c8] sm:$0xff] }
 0x1e4   :  { %1319 = vmatprep.mubr.f32.mxu1 %v14217_v51  ;;  %8223 = vmatprep.mubr.msk.f32.mxu0 %vm1683_vm2, %v1679_v38 }
 0x1e7   :  { %7693 = vmatmul.mubr.msk.f32.gmra.mrb[62].mxu1 %vm876_vm3, %v459_v39  ;;  %8224 = vmatmul.mubr.msk.f32.gmra.mrb[66].mxu0 %vm1683_vm2, %v1680_v40 }
 0x1e8   :  { %1325 = vmatprep.mubr.f32.mxu1 %v14217_v51 }
 0x1eb   :  { %7694 = vmatmul.mubr.msk.f32.gmra.mrb[64].mxu1 %vm876_vm3, %v460_v42 }
 0x1ec   :  { %1331 = vmatprep.mubr.f32.mxu1 %v14217_v51 }
 0x1ef   :  { %7695 = vmatmul.mubr.msk.f32.gmra.mrb[66].mxu1 %vm876_vm3, %v461_v43  ;;  %v486_v43 = vld [vmem:[%s9961_s8 + $0x1d0] sm:$0xff] }
 0x1f0   :  { %1337 = vmatprep.mubr.f32.mxu1 %v14217_v51 }
 0x1f3   :  { %7696 = vmatmul.mubr.msk.f32.gmra.mrb[68].mxu1 %vm876_vm3, %v462_v45  ;;  %v10342_v45 = vpop.permute.xlu1 %733 }
 0x1f4   :  { %1343 = vmatprep.mubr.f32.mxu1 %v14217_v51  ;;  %14800 = vst [vmem:[#allocation23_spill] sm:$0xff] %v10342_v45 }
 0x1f7   :  { %7697 = vmatmul.mubr.msk.f32.gmra.mrb[70].mxu1 %vm876_vm3, %v463_v47  ;;  %v14220_v47 = vmov 2  }
 0x1f8   :  { %1349 = vmatprep.mubr.f32.mxu1 %v14217_v51 }
 0x1fb   :  { %7698 = vmatmul.mubr.msk.f32.gmra.mrb[72].mxu1 %vm876_vm3, %v464_v48 }
 0x1fc   :  { %1355 = vmatprep.mubr.f32.mxu1 %v14217_v51 }
 0x1ff   :  { %7699 = vmatmul.mubr.msk.f32.gmra.mrb[74].mxu1 %vm876_vm3, %v465_v50 }
 0x200   :  { %1361 = vmatprep.mubr.f32.mxu1 %v14217_v51 }
 0x203   :  { %7700 = vmatmul.mubr.msk.f32.gmra.mrb[76].mxu1 %vm876_vm3, %v466_v53 }
 0x204   :  { %1367 = vmatprep.mubr.f32.mxu1 %v14217_v51 }
 0x207   :  { %7701 = vmatmul.mubr.msk.f32.gmra.mrb[78].mxu1 %vm876_vm3, %v467_v54 }
 0x208   :  { %1373 = vmatprep.mubr.f32.mxu1 %v14217_v51 }
 0x20b   :  { %7702 = vmatmul.mubr.msk.f32.gmra.mrb[80].mxu1 %vm876_vm3, %v468_v56  ;;  %v487_v56 = vld [vmem:[%s9961_s8 + $0x1d8] sm:$0xff] }
 0x20c   :  { %1379 = vmatprep.mubr.f32.mxu1 %v14217_v51 }
 0x20f   :  { %7703 = vmatmul.mubr.msk.f32.gmra.mrb[82].mxu1 %vm876_vm3, %v469_v58  ;;  %v14209_v58 = vmov 4  }
 0x210   :  { %1385 = vmatprep.mubr.f32.mxu1 %v14217_v51 }
 0x213   :  { %7704 = vmatmul.mubr.msk.f32.gmra.mrb[84].mxu1 %vm876_vm3, %v470_v59 }
 0x214   :  { %1391 = vmatprep.mubr.f32.mxu1 %v14217_v51 }
 0x217   :  { %7705 = vmatmul.mubr.msk.f32.gmra.mrb[86].mxu1 %vm876_vm3, %v471_v61 }
 0x218   :  { %1397 = vmatprep.mubr.f32.mxu1 %v14217_v51 }
 0x21b   :  { %7706 = vmatmul.mubr.msk.f32.gmra.mrb[88].mxu1 %vm876_vm3, %v472_v63 }
 0x21c   :  { %1403 = vmatprep.mubr.f32.mxu1 %v14217_v51 }
 0x21f   :  { %7707 = vmatmul.mubr.msk.f32.gmra.mrb[90].mxu1 %vm876_vm3, %v473_v1 }
 0x220   :  { %1409 = vmatprep.mubr.f32.mxu1 %v14217_v51 }
 0x223   :  { %7708 = vmatmul.mubr.msk.f32.gmra.mrb[92].mxu1 %vm876_vm3, %v474_v3  ;;  %v488_v3 = vld [vmem:[%s9961_s8 + $0x1e0] sm:$0xff] }
 0x224   :  { %1415 = vmatprep.mubr.f32.mxu1 %v14217_v51 }
 0x227   :  { %7709 = vmatmul.mubr.msk.f32.gmra.mrb[94].mxu1 %vm876_vm3, %v475_v5  ;;  %v10373_v5 = vpop.permute.xlu1 %743 }
 0x228   :  { %1421 = vmatprep.mubr.f32.mxu1 %v14217_v51  ;;  %14803 = vst [vmem:[#allocation26_spill] sm:$0xff] %v10373_v5 }
 0x22b   :  { %7710 = vmatmul.mubr.msk.f32.gmra.mrb[96].mxu1 %vm876_vm3, %v476_v6 }
 0x22c   :  { %1427 = vmatprep.mubr.f32.mxu1 %v14217_v51 }
 0x22f   :  { %7711 = vmatmul.mubr.msk.f32.gmra.mrb[98].mxu1 %vm876_vm3, %v477_v8 }
 0x230   :  { %1433 = vmatprep.mubr.f32.mxu1 %v14217_v51 }
 0x233   :  { %7712 = vmatmul.mubr.msk.f32.gmra.mrb[100].mxu1 %vm876_vm3, %v478_v10 }
 0x234   :  { %1439 = vmatprep.mubr.f32.mxu1 %v14217_v51 }
 0x237   :  { %7713 = vmatmul.mubr.msk.f32.gmra.mrb[102].mxu1 %vm876_vm3, %v479_v11 }
 0x238   :  { %1445 = vmatprep.mubr.f32.mxu1 %v14217_v51 }
 0x23b   :  { %7714 = vmatmul.mubr.msk.f32.gmra.mrb[104].mxu1 %vm876_vm3, %v480_v13  ;;  %v489_v13 = vld [vmem:[%s9961_s8 + $0x1e8] sm:$0xff] }
 0x23c   :  { %1451 = vmatprep.mubr.f32.mxu1 %v14217_v51 }
 0x23e   :  { %v10277_v16 = vpop.f32.mrb[0].mxu1 }
 0x23f   :  { %7715 = vmatmul.mubr.msk.f32.gmra.mrb[106].mxu1 %vm876_vm3, %v481_v15  ;;  %v10280_v18 = vpop.f32.mrb[1].mxu1 }
 0x240   :  { %1457 = vmatprep.mubr.f32.mxu1 %v14217_v51 }
 0x242   :  { %v10286_v21 = vpop.f32.mrb[2].mxu1  ;;  %v10288_v22 = vpop.f32.mrb[6].mxu0 }
 0x243   :  { %14795 = vst [vmem:[#allocation18_spill] sm:$0xff] %v10288_v22  ;;  %v10290_v23 = vpop.f32.mrb[3].mxu1  ;;  %7716 = vmatmul.mubr.msk.f32.gmra.mrb[108].mxu1 %vm876_vm3, %v482_v19  ;;  %2274 = vperm.xlu1 %9476, %v10288_v22   ;;  %v10294_v24 = vpop.f32.mrb[7].mxu0 }
 0x244   :  { %3038 = vperm.xlu0 %9479, %v10294_v24   ;;  %1463 = vmatprep.mubr.f32.mxu1 %v14217_v51 }
 0x246   :  { %v10299_v26 = vpop.f32.mrb[4].mxu1  ;;  %v10301_v27 = vpop.f32.mrb[8].mxu0 }
 0x247   :  { %7717 = vmatmul.mubr.msk.f32.gmra.mrb[110].mxu1 %vm876_vm3, %v483_v25  ;;  %9477 = vset.pattern.permute.xlu1 %v14213_v17  ;;  %v10305_v28 = vpop.f32.mrb[5].mxu1  ;;  %v10307_v29 = vpop.f32.mrb[9].mxu0 }
 0x248   :  { %14796 = vst [vmem:[#allocation19_spill] sm:$0xff] %v10307_v29  ;;  %3042 = vperm.xlu1 %9477, %v10288_v22   ;;  %9481 = vset.pattern.permute.xlu0 %v14211_v30 }
 0x249   :  { %4426 = vperm.xlu0 %9481, %v10294_v24   ;;  %1469 = vmatprep.mubr.f32.mxu1 %v14217_v51 }
 0x24a   :  { %v10316_v33 = vpop.f32.mrb[6].mxu1  ;;  %v10318_v34 = vpop.f32.mrb[10].mxu0 }
 0x24b   :  { %14798 = vst [vmem:[#allocation21_spill] sm:$0xff] %v10318_v34  ;;  %v10320_v35 = vpop.f32.mrb[7].mxu1  ;;  %7718 = vmatmul.mubr.msk.f32.gmra.mrb[112].mxu1 %vm876_vm3, %v484_v31  ;;  %v10323_v36 = vpop.f32.mrb[11].mxu0 }
 0x24c   :  { %9478 = vset.pattern.permute.xlu1 %v14211_v30  ;;  %1475 = vmatprep.mubr.f32.mxu1 %v14217_v51 }
 0x24d   :  { %4430 = vperm.xlu1 %9478, %v10288_v22   ;;  %9493 = vset.pattern.permute.xlu0 %v14213_v17 }
 0x24e   :  { %v10330_v38 = vpop.f32.mrb[8].mxu1  ;;  %3054 = vperm.xlu0 %9493, %v10323_v36   ;;  %v10333_v39 = vpop.f32.mrb[12].mxu0 }
 0x24f   :  { %7719 = vmatmul.mubr.msk.f32.gmra.mrb[114].mxu1 %vm876_vm3, %v485_v37  ;;  %v10336_v40 = vpop.f32.mrb[9].mxu1  ;;  %v10338_v42 = vpop.f32.mrb[13].mxu0  ;;  %v490_v37 = vld [vmem:[%s9961_s8 + $0x1f0] sm:$0xff] }
 0x250   :  { %14799 = vst [vmem:[#allocation22_spill] sm:$0xff] %v10338_v42  ;;  %1481 = vmatprep.mubr.f32.mxu1 %v14217_v51 }
 0x251   :  { %9480 = vset.pattern.permute.xlu1 %v14220_v47 }
 0x252   :  { %v10345_v48 = vpop.f32.mrb[10].mxu1  ;;  %3732 = vperm.xlu1 %9480, %v10294_v24   ;;  %9495 = vset.pattern.permute.xlu0 %v14211_v30  ;;  %v10349_v50 = vpop.f32.mrb[14].mxu0 }
 0x253   :  { %14801 = vst [vmem:[#allocation24_spill] sm:$0xff] %v10349_v50  ;;  %v10351_v53 = vpop.f32.mrb[11].mxu1  ;;  %7720 = vmatmul.mubr.msk.f32.gmra.mrb[116].mxu1 %vm876_vm3, %v486_v43  ;;  %4442 = vperm.xlu0 %9495, %v10323_v36   ;;  %v10355_v54 = vpop.f32.mrb[15].mxu0 }
 0x254   :  { %1487 = vmatprep.mubr.f32.mxu1 %v14217_v51  ;;  %v10403_v43 = vpop.permute.xlu1 %753 }
 0x255   :  { %14809 = vst [vmem:[#allocation32_spill] sm:$0xff] %v10403_v43 }
 0x256   :  { %9482 = vset.pattern.permute.xlu1 %v14209_v58  ;;  %v10360_v59 = vpop.f32.mrb[12].mxu1  ;;  %v10362_v61 = vpop.f32.mrb[16].mxu0  ;;  %v491_v58 = vld [vmem:[%s9961_s8 + $0x1f8] sm:$0xff]  ;;  %s9738_s8 = smov 27  }
 0x257   :  { %7721 = vmatmul.mubr.msk.f32.gmra.mrb[118].mxu1 %vm876_vm3, %v487_v56  ;;  %5120 = vperm.xlu1 %9482, %v10294_v24   ;;  %v10366_v63 = vpop.f32.mrb[13].mxu1  ;;  %v10368_v1 = vpop.f32.mrb[17].mxu0  ;;  %s7659_s11 = sld [smem:[%s14206_s0 + %s9738_s8]]  }
 0x258   :  { %14802 = vst [vmem:[#allocation25_spill] sm:$0xff] %v10368_v1  ;;  %1493 = vmatprep.mubr.f32.mxu1 %v14217_v51  ;;  %9507 = vset.pattern.permute.xlu0 %v14213_v17 }
 0x259   :  { %3070 = vperm.xlu0 %9507, %v10355_v54  }
 0x25a   :  { %v10376_v6 = vpop.f32.mrb[14].mxu1  ;;  %v10378_v8 = vpop.f32.mrb[18].mxu0 }
 0x25b   :  { %14804 = vst [vmem:[#allocation27_spill] sm:$0xff] %v10378_v8  ;;  %v10380_v10 = vpop.f32.mrb[15].mxu1  ;;  %7722 = vmatmul.mubr.msk.f32.gmra.mrb[120].mxu1 %vm876_vm3, %v488_v3  ;;  %9483 = vset.pattern.permute.xlu1 %v14207_v0  ;;  %v10384_v11 = vpop.f32.mrb[19].mxu0 }
 0x25c   :  { %2284 = vperm.xlu1 %9483, %v10301_v27   ;;  %1499 = vmatprep.mubr.f32.mxu1 %v14217_v51 }
 0x25d   :  { %9509 = vset.pattern.permute.xlu0 %v14211_v30 }
 0x25e   :  { %v10390_v15 = vpop.f32.mrb[16].mxu1  ;;  %4458 = vperm.xlu0 %9509, %v10355_v54   ;;  %v10393_v19 = vpop.f32.mrb[20].mxu0 }
 0x25f   :  { %14805 = vst [vmem:[#allocation28_spill] sm:$0xff] %v10390_v15  ;;  %14806 = vst [vmem:[#allocation29_spill] sm:$0xff] %v10393_v19  ;;  %7723 = vmatmul.mubr.msk.f32.gmra.mrb[122].mxu1 %vm876_vm3, %v489_v13  ;;  %v10396_v25 = vpop.f32.mrb[17].mxu1  ;;  %v10398_v31 = vpop.f32.mrb[21].mxu0 }
 0x260   :  { %14807 = vst [vmem:[#allocation30_spill] sm:$0xff] %v10396_v25  ;;  %14808 = vst [vmem:[#allocation31_spill] sm:$0xff] %v10398_v31  ;;  %9484 = vset.pattern.permute.xlu1 %v14213_v17  ;;  %1505 = vmatprep.mubr.f32.mxu1 %v14217_v51 }
 0x261   :  { %3050 = vperm.xlu1 %9484, %v10301_v27  }
 0x262   :  { %v10406_v56 = vpop.f32.mrb[18].mxu1  ;;  %9521 = vset.pattern.permute.xlu0 %v14213_v17  ;;  %v10409_v3 = vpop.f32.mrb[22].mxu0 }
 0x263   :  { %14810 = vst [vmem:[#allocation33_spill] sm:$0xff] %v10409_v3  ;;  %v10411_v13 = vpop.f32.mrb[19].mxu1  ;;  %7724 = vmatmul.mubr.msk.f32.gmra.mrb[124].mxu1 %vm876_vm3, %v490_v37  ;;  %3086 = vperm.xlu0 %9521, %v10384_v11   ;;  %v10415_v0 = vpop.f32.mrb[23].mxu0  ;;  %v14816_v37 = vmov 3  }
 0x264   :  { %14811 = vst [vmem:[#allocation34_spill] sm:$0xff] %v10411_v13  ;;  %14812 = vst [vmem:[#allocation35_spill] sm:$0xff] %v10415_v0  ;;  %1511 = vmatprep.mubr.f32.mxu1 %v14217_v51  ;;  %v10432_v51 = vpop.permute.xlu1 %763 }
 0x265   :  { %9485 = vset.pattern.permute.xlu1 %v14220_v47  ;;  %14818 = vst [vmem:[#allocation40_spill] sm:$0xff] %v10432_v51 }
 0x266   :  { %3744 = vperm.xlu1 %9485, %v10301_v27   ;;  %v10421_v30 = vpop.f32.mrb[20].mxu1  ;;  %v10423_v17 = vpop.f32.mrb[24].mxu0 }
 0x267   :  { %14813 = vst [vmem:[#allocation36_spill] sm:$0xff] %v10421_v30  ;;  %14814 = vst [vmem:[#allocation37_spill] sm:$0xff] %v10423_v17  ;;  %7725 = vmatmul.mubr.msk.f32.gmra.mrb[126].mxu1 %vm876_vm3, %v491_v58  ;;  %v10426_v43 = vpop.f32.mrb[21].mxu1  ;;  %9523 = vset.pattern.permute.xlu0 %v14816_v37  ;;  %v10429_v5 = vpop.f32.mrb[25].mxu0 }
 0x268   :  { %14815 = vst [vmem:[#allocation38_spill] sm:$0xff] %v10426_v43  ;;  %14817 = vst [vmem:[#allocation39_spill] sm:$0xff] %v10429_v5  ;;  %4474 = vperm.xlu0 %9523, %v10384_v11   ;;  %v10456_v7 = vpop.permute.xlu1 %773 }
 0x269   :  { %14827 = vst [vmem:[#allocation47_spill] sm:$0xff] %v10456_v7 }
 0x26a   :  { %v10434_v45 = vpop.f32.mrb[22].mxu1  ;;  %9486 = vset.pattern.permute.xlu1 %v14816_v37  ;;  %v10437_v47 = vpop.f32.mrb[26].mxu0 }
 0x26b   :  { %14819 = vst [vmem:[#allocation41_spill] sm:$0xff] %v10434_v45  ;;  %v10439_v32 = vpop.f32.mrb[23].mxu1  ;;  %4438 = vperm.xlu1 %9486, %v10301_v27   ;;  %v10442_v58 = vpop.f32.mrb[27].mxu0 }
 0x26c   :  { %14820 = vst [vmem:[#allocation42_spill] sm:$0xff] %v10439_v32  ;;  %14821 = vst [vmem:[#allocation43_spill] sm:$0xff] %v10442_v58  ;;  %9533 = vset.pattern.permute.xlu0 %v14822_v20  ;;  %v10482_v57 = vpop.permute.xlu1 %783 }
 0x26d   :  { %3102 = vperm.xlu0 %9533, %v10415_v0   ;;  %14835 = vst [vmem:[#allocation55_spill] sm:$0xff] %v10482_v57 }
 0x26e   :  { %v10446_v14 = vpop.f32.mrb[24].mxu1  ;;  %v10448_v51 = vpop.f32.mrb[28].mxu0 }
 0x26f   :  { %14823 = vst [vmem:[#allocation44_spill] sm:$0xff] %v10446_v14  ;;  %14824 = vst [vmem:[#allocation45_spill] sm:$0xff] %v10448_v51  ;;  %9487 = vset.pattern.permute.xlu1 %v14825_v12  ;;  %v10451_v9 = vpop.f32.mrb[25].mxu1  ;;  %v10453_v22 = vpop.f32.mrb[29].mxu0  ;;  %v1681_v14 = vld [vmem:[%s9953_s4 + $0x1f0] sm:$0xff] }
 0x270   :  { %14826 = vst [vmem:[#allocation46_spill] sm:$0xff] %v10451_v9  ;;  %5132 = vperm.xlu1 %9487, %v10301_v27   ;;  %8226 = vmatprep.mubr.msk.f32.mxu0 %vm1683_vm2, %v1681_v14  ;;  %v1682_v9 = vld [vmem:[%s9953_s4 + $0x1f8] sm:$0xff]  ;;  %s9737_s4 = smov 5  }
 0x271   :  { %3118 = vperm.xlu0 %9533, %v10442_v58   ;;  %8227 = vmatmul.mubr.msk.f32.gmra.mrb[68].mxu0 %vm1683_vm2, %v1682_v9  ;;  %v14840_v9 = vmov 0   ;;  %s14054_s7 = sld [smem:[%s14206_s0 + %s9737_s4]]  }
 0x272   :  { %v10459_v4 = vpop.f32.mrb[26].mxu1  ;;  %v10461_v2 = vpop.f32.mrb[30].mxu0 }
 0x273   :  { %14828 = vst [vmem:[#allocation48_spill] sm:$0xff] %v10459_v4  ;;  %14829 = vst [vmem:[#allocation49_spill] sm:$0xff] %v10461_v2  ;;  %v10463_v62 = vpop.f32.mrb[27].mxu1  ;;  %v10465_v60 = vpop.f32.mrb[31].mxu0 }
 0x274   :  { %14830 = vst [vmem:[#allocation50_spill] sm:$0xff] %v10463_v62  ;;  %14831 = vst [vmem:[#allocation51_spill] sm:$0xff] %v10465_v60  ;;  %9488 = vset.pattern.permute.xlu1 %v14822_v20  ;;  %v10505_v2 = vpop.permute.xlu1 %793 }
 0x275   :  { %3046 = vperm.xlu1 %9488, %v10307_v29   ;;  %3134 = vperm.xlu0 %9533, %v10465_v60   ;;  %14845 = vst [vmem:[#allocation64_spill] sm:$0xff] %v10505_v2 }
 0x276   :  { %v10473_v27 = vpop.f32.mrb[28].mxu1  ;;  %v10475_v7 = vpop.f32.mrb[32].mxu0 }
 0x277   :  { %14832 = vst [vmem:[#allocation52_spill] sm:$0xff] %v10473_v27  ;;  %14833 = vst [vmem:[#allocation53_spill] sm:$0xff] %v10475_v7  ;;  %v10478_v4 = vpop.f32.mrb[29].mxu1  ;;  %v10480_v62 = vpop.f32.mrb[33].mxu0 }
 0x278   :  { %14834 = vst [vmem:[#allocation54_spill] sm:$0xff] %v10478_v4 }
 0x279   :  { %9489 = vset.pattern.permute.xlu1 %v14816_v37 }
 0x27a   :  { %v10485_v14 = vpop.f32.mrb[30].mxu1  ;;  %4434 = vperm.xlu1 %9489, %v10307_v29   ;;  %v10488_v43 = vpop.f32.mrb[34].mxu0 }
 0x27b   :  { %14836 = vst [vmem:[#allocation56_spill] sm:$0xff] %v10485_v14  ;;  %14837 = vst [vmem:[#allocation57_spill] sm:$0xff] %v10488_v43  ;;  %v10490_v30 = vpop.f32.mrb[31].mxu1  ;;  %v10492_v27 = vpop.f32.mrb[35].mxu0 }
 0x27c   :  { %14838 = vst [vmem:[#allocation58_spill] sm:$0xff] %v10490_v30  ;;  %14839 = vst [vmem:[#allocation59_spill] sm:$0xff] %v10492_v27  ;;  %3150 = vperm.xlu0 %9533, %v10492_v27  }
 0x27e   :  { %9490 = vset.pattern.permute.xlu1 %v14840_v9  ;;  %v10496_v4 = vpop.f32.mrb[32].mxu1  ;;  %v10498_v7 = vpop.f32.mrb[36].mxu0 }
 0x27f   :  { %14841 = vst [vmem:[#allocation60_spill] sm:$0xff] %v10496_v4  ;;  %14842 = vst [vmem:[#allocation61_spill] sm:$0xff] %v10498_v7  ;;  %2294 = vperm.xlu1 %9490, %v10318_v34   ;;  %v10501_v57 = vpop.f32.mrb[33].mxu1  ;;  %v10503_v14 = vpop.f32.mrb[37].mxu0 }
 0x280   :  { %14843 = vst [vmem:[#allocation62_spill] sm:$0xff] %v10501_v57  ;;  %14844 = vst [vmem:[#allocation63_spill] sm:$0xff] %v10503_v14 }
 0x282   :  { %v10507_v43 = vpop.f32.mrb[34].mxu1  ;;  %v10509_v30 = vpop.f32.mrb[38].mxu0 }
 0x283   :  { %14846 = vst [vmem:[#allocation65_spill] sm:$0xff] %v10507_v43  ;;  %14847 = vst [vmem:[#allocation66_spill] sm:$0xff] %v10509_v30  ;;  %v10511_v32 = vpop.f32.mrb[35].mxu1  ;;  %9491 = vset.pattern.permute.xlu1 %v14822_v20  ;;  %v10514_v45 = vpop.f32.mrb[39].mxu0 }
 0x284   :  { %14848 = vst [vmem:[#allocation67_spill] sm:$0xff] %v10511_v32  ;;  %14849 = vst [vmem:[#allocation68_spill] sm:$0xff] %v10514_v45  ;;  %3058 = vperm.xlu1 %9491, %v10318_v34   ;;  %3166 = vperm.xlu0 %9533, %v10514_v45   ;;  %v10527_v30 = vpop.permute.xlu1 %803 }
 0x285   :  { %14853 = vst [vmem:[#allocation72_spill] sm:$0xff] %v10527_v30 }
 0x286   :  { %v10518_v7 = vpop.f32.mrb[36].mxu1  ;;  %v10520_v57 = vpop.f32.mrb[40].mxu0 }
 0x287   :  { %14850 = vst [vmem:[#allocation69_spill] sm:$0xff] %v10518_v7  ;;  %14851 = vst [vmem:[#allocation70_spill] sm:$0xff] %v10520_v57  ;;  %v10522_v4 = vpop.f32.mrb[37].mxu1  ;;  %v10524_v2 = vpop.f32.mrb[41].mxu0  ;;  %v14858_v57 = vmov 2  }
 0x288   :  { %14852 = vst [vmem:[#allocation71_spill] sm:$0xff] %v10522_v4  ;;  %9492 = vset.pattern.permute.xlu1 %v14816_v37 }
 0x289   :  { %4446 = vperm.xlu1 %9492, %v10318_v34  }
 0x28a   :  { %v10530_v32 = vpop.f32.mrb[38].mxu1  ;;  %v10532_v43 = vpop.f32.mrb[42].mxu0 }
 0x28b   :  { %14854 = vst [vmem:[#allocation73_spill] sm:$0xff] %v10530_v32  ;;  %14855 = vst [vmem:[#allocation74_spill] sm:$0xff] %v10532_v43  ;;  %v10534_v55 = vpop.f32.mrb[39].mxu1  ;;  %v10536_v25 = vpop.f32.mrb[43].mxu0 }
 0x28c   :  { %14856 = vst [vmem:[#allocation75_spill] sm:$0xff] %v10534_v55  ;;  %14857 = vst [vmem:[#allocation76_spill] sm:$0xff] %v10536_v25  ;;  %3182 = vperm.xlu0 %9533, %v10536_v25   ;;  %v10549_v32 = vpop.permute.xlu1 %813 }
 0x28d   :  { %9494 = vset.pattern.permute.xlu1 %v14858_v57  ;;  %14863 = vst [vmem:[#allocation81_spill] sm:$0xff] %v10549_v32 }
 0x28e   :  { %3748 = vperm.xlu1 %9494, %v10323_v36   ;;  %v10541_v4 = vpop.f32.mrb[40].mxu1  ;;  %v10543_v7 = vpop.f32.mrb[44].mxu0 }
 0x28f   :  { %14859 = vst [vmem:[#allocation77_spill] sm:$0xff] %v10541_v4  ;;  %14860 = vst [vmem:[#allocation78_spill] sm:$0xff] %v10543_v7  ;;  %v10545_v30 = vpop.f32.mrb[41].mxu1  ;;  %v10547_v34 = vpop.f32.mrb[45].mxu0 }
 0x290   :  { %14861 = vst [vmem:[#allocation79_spill] sm:$0xff] %v10545_v30  ;;  %14862 = vst [vmem:[#allocation80_spill] sm:$0xff] %v10547_v34 }
 0x292   :  { %v10551_v43 = vpop.f32.mrb[42].mxu1  ;;  %9496 = vset.pattern.permute.xlu1 %v14825_v12  ;;  %v10554_v55 = vpop.f32.mrb[46].mxu0 }
 0x293   :  { %14864 = vst [vmem:[#allocation82_spill] sm:$0xff] %v10551_v43  ;;  %14865 = vst [vmem:[#allocation83_spill] sm:$0xff] %v10554_v55  ;;  %v10556_v15 = vpop.f32.mrb[43].mxu1  ;;  %5136 = vperm.xlu1 %9496, %v10323_v36   ;;  %v10559_v13 = vpop.f32.mrb[47].mxu0 }
 0x294   :  { %14866 = vst [vmem:[#allocation84_spill] sm:$0xff] %v10556_v15  ;;  %14867 = vst [vmem:[#allocation85_spill] sm:$0xff] %v10559_v13  ;;  %3198 = vperm.xlu0 %9533, %v10559_v13   ;;  %v10572_v55 = vpop.permute.xlu1 %823 }
 0x295   :  { %14872 = vst [vmem:[#allocation90_spill] sm:$0xff] %v10572_v55 }
 0x296   :  { %v10562_v7 = vpop.f32.mrb[44].mxu1  ;;  %v10564_v30 = vpop.f32.mrb[48].mxu0 }
 0x297   :  { %14868 = vst [vmem:[#allocation86_spill] sm:$0xff] %v10562_v7  ;;  %14869 = vst [vmem:[#allocation87_spill] sm:$0xff] %v10564_v30  ;;  %9497 = vset.pattern.permute.xlu1 %v14840_v9  ;;  %v10567_v32 = vpop.f32.mrb[45].mxu1  ;;  %v10569_v43 = vpop.f32.mrb[49].mxu0 }
 0x298   :  { %14870 = vst [vmem:[#allocation88_spill] sm:$0xff] %v10567_v32  ;;  %14871 = vst [vmem:[#allocation89_spill] sm:$0xff] %v10569_v43  ;;  %2304 = vperm.xlu1 %9497, %v10333_v39  }
 0x29a   :  { %v10574_v15 = vpop.f32.mrb[46].mxu1  ;;  %v10576_v4 = vpop.f32.mrb[50].mxu0 }
 0x29b   :  { %14873 = vst [vmem:[#allocation91_spill] sm:$0xff] %v10574_v15  ;;  %14874 = vst [vmem:[#allocation92_spill] sm:$0xff] %v10576_v4  ;;  %v10578_v34 = vpop.f32.mrb[47].mxu1  ;;  %v10580_v13 = vpop.f32.mrb[51].mxu0 }
 0x29c   :  { %14875 = vst [vmem:[#allocation93_spill] sm:$0xff] %v10578_v34  ;;  %14876 = vst [vmem:[#allocation94_spill] sm:$0xff] %v10580_v13  ;;  %9498 = vset.pattern.permute.xlu1 %v14822_v20  ;;  %3214 = vperm.xlu0 %9533, %v10580_v13   ;;  %v10593_v15 = vpop.permute.xlu1 %833 }
 0x29d   :  { %3066 = vperm.xlu1 %9498, %v10333_v39   ;;  %14881 = vst [vmem:[#allocation99_spill] sm:$0xff] %v10593_v15 }
 0x29e   :  { %v10585_v30 = vpop.f32.mrb[48].mxu1  ;;  %v10587_v32 = vpop.f32.mrb[52].mxu0 }
 0x29f   :  { %14877 = vst [vmem:[#allocation95_spill] sm:$0xff] %v10585_v30  ;;  %14878 = vst [vmem:[#allocation96_spill] sm:$0xff] %v10587_v32  ;;  %v10589_v7 = vpop.f32.mrb[49].mxu1  ;;  %v10591_v55 = vpop.f32.mrb[53].mxu0 }
 0x2a0   :  { %14879 = vst [vmem:[#allocation97_spill] sm:$0xff] %v10589_v7  ;;  %14880 = vst [vmem:[#allocation98_spill] sm:$0xff] %v10591_v55  ;;  %v10616_v30 = vpop.permute.xlu1 %843 }
 0x2a1   :  { %9499 = vset.pattern.permute.xlu1 %v14858_v57  ;;  %14890 = vst [vmem:[#allocation108_spill] sm:$0xff] %v10616_v30 }
 0x2a2   :  { %v10596_v4 = vpop.f32.mrb[50].mxu1  ;;  %3760 = vperm.xlu1 %9499, %v10333_v39   ;;  %v10599_v34 = vpop.f32.mrb[54].mxu0 }
 0x2a3   :  { %14882 = vst [vmem:[#allocation100_spill] sm:$0xff] %v10596_v4  ;;  %14883 = vst [vmem:[#allocation101_spill] sm:$0xff] %v10599_v34  ;;  %v10601_v13 = vpop.f32.mrb[51].mxu1  ;;  %v10603_v43 = vpop.f32.mrb[55].mxu0 }
 0x2a4   :  { %14884 = vst [vmem:[#allocation102_spill] sm:$0xff] %v10601_v13  ;;  %14885 = vst [vmem:[#allocation103_spill] sm:$0xff] %v10603_v43  ;;  %3230 = vperm.xlu0 %9533, %v10603_v43  }
 0x2a6   :  { %9500 = vset.pattern.permute.xlu1 %v14816_v37  ;;  %v10607_v32 = vpop.f32.mrb[52].mxu1  ;;  %v10609_v7 = vpop.f32.mrb[56].mxu0 }
 0x2a7   :  { %14886 = vst [vmem:[#allocation104_spill] sm:$0xff] %v10607_v32  ;;  %14887 = vst [vmem:[#allocation105_spill] sm:$0xff] %v10609_v7  ;;  %4454 = vperm.xlu1 %9500, %v10333_v39   ;;  %v10612_v15 = vpop.f32.mrb[53].mxu1  ;;  %v10614_v4 = vpop.f32.mrb[57].mxu0 }
 0x2a8   :  { %14888 = vst [vmem:[#allocation106_spill] sm:$0xff] %v10612_v15  ;;  %14889 = vst [vmem:[#allocation107_spill] sm:$0xff] %v10614_v4 }
 0x2aa   :  { %v10618_v34 = vpop.f32.mrb[54].mxu1  ;;  %v10620_v13 = vpop.f32.mrb[58].mxu0 }
 0x2ab   :  { %14891 = vst [vmem:[#allocation109_spill] sm:$0xff] %v10618_v34  ;;  %14892 = vst [vmem:[#allocation110_spill] sm:$0xff] %v10620_v13  ;;  %v10622_v55 = vpop.f32.mrb[55].mxu1  ;;  %9501 = vset.pattern.permute.xlu1 %v14825_v12  ;;  %v10625_v43 = vpop.f32.mrb[59].mxu0 }
 0x2ac   :  { %14893 = vst [vmem:[#allocation111_spill] sm:$0xff] %v10622_v55  ;;  %14894 = vst [vmem:[#allocation112_spill] sm:$0xff] %v10625_v43  ;;  %5148 = vperm.xlu1 %9501, %v10333_v39   ;;  %3246 = vperm.xlu0 %9533, %v10625_v43   ;;  %v10638_v13 = vpop.permute.xlu1 %853 }
 0x2ad   :  { %14899 = vst [vmem:[#allocation117_spill] sm:$0xff] %v10638_v13 }
 0x2ae   :  { %v10629_v7 = vpop.f32.mrb[56].mxu1  ;;  %v10631_v15 = vpop.f32.mrb[60].mxu0 }
 0x2af   :  { %14895 = vst [vmem:[#allocation113_spill] sm:$0xff] %v10629_v7  ;;  %14896 = vst [vmem:[#allocation114_spill] sm:$0xff] %v10631_v15  ;;  %v10633_v32 = vpop.f32.mrb[57].mxu1  ;;  %v10635_v30 = vpop.f32.mrb[61].mxu0 }
 0x2b0   :  { %14897 = vst [vmem:[#allocation115_spill] sm:$0xff] %v10633_v32  ;;  %14898 = vst [vmem:[#allocation116_spill] sm:$0xff] %v10635_v30  ;;  %9502 = vset.pattern.permute.xlu1 %v14822_v20 }
 0x2b1   :  { %3062 = vperm.xlu1 %9502, %v10338_v42  }
 0x2b2   :  { %v10641_v55 = vpop.f32.mrb[58].mxu1  ;;  %v10643_v34 = vpop.f32.mrb[62].mxu0 }
 0x2b3   :  { %14900 = vst [vmem:[#allocation118_spill] sm:$0xff] %v10641_v55  ;;  %14901 = vst [vmem:[#allocation119_spill] sm:$0xff] %v10643_v34  ;;  %v10645_v39 = vpop.f32.mrb[59].mxu1  ;;  %v10647_v43 = vpop.f32.mrb[63].mxu0 }
 0x2b4   :  { %14902 = vst [vmem:[#allocation120_spill] sm:$0xff] %v10645_v39  ;;  %14903 = vst [vmem:[#allocation121_spill] sm:$0xff] %v10647_v43  ;;  %3262 = vperm.xlu0 %9533, %v10647_v43   ;;  %v10660_v55 = vpop.permute.xlu1 %863 }
 0x2b5   :  { %9503 = vset.pattern.permute.xlu1 %v14816_v37  ;;  %14908 = vst [vmem:[#allocation126_spill] sm:$0xff] %v10660_v55 }
 0x2b6   :  { %4450 = vperm.xlu1 %9503, %v10338_v42   ;;  %v10652_v15 = vpop.f32.mrb[60].mxu1  ;;  %v10654_v32 = vpop.f32.mrb[64].mxu0 }
 0x2b7   :  { %14904 = vst [vmem:[#allocation122_spill] sm:$0xff] %v10652_v15  ;;  %14905 = vst [vmem:[#allocation123_spill] sm:$0xff] %v10654_v32  ;;  %v10656_v13 = vpop.f32.mrb[61].mxu1  ;;  %v10658_v7 = vpop.f32.mrb[65].mxu0 }
 0x2b8   :  { %14906 = vst [vmem:[#allocation124_spill] sm:$0xff] %v10656_v13  ;;  %14907 = vst [vmem:[#allocation125_spill] sm:$0xff] %v10658_v7  ;;  %v10673_v32 = vpop.permute.xlu1 %873 }
 0x2b9   :  { %14913 = vst [vmem:[#allocation131_spill] sm:$0xff] %v10673_v32 }
 0x2ba   :  { %v10662_v34 = vpop.f32.mrb[62].mxu1  ;;  %9504 = vset.pattern.permute.xlu1 %v14840_v9  ;;  %v10665_v39 = vpop.f32.mrb[66].mxu0 }
 0x2bb   :  { %14909 = vst [vmem:[#allocation127_spill] sm:$0xff] %v10662_v34  ;;  %14910 = vst [vmem:[#allocation128_spill] sm:$0xff] %v10665_v39  ;;  %v10667_v43 = vpop.f32.mrb[63].mxu1  ;;  %2314 = vperm.xlu1 %9504, %v10349_v50   ;;  %v10670_v30 = vpop.f32.mrb[67].mxu0 }
 0x2bc   :  { %14911 = vst [vmem:[#allocation129_spill] sm:$0xff] %v10667_v43  ;;  %14912 = vst [vmem:[#allocation130_spill] sm:$0xff] %v10670_v30  ;;  %3278 = vperm.xlu0 %9533, %v10670_v30  }
 0x2be   :  { %v10675_v13 = vpop.f32.mrb[64].mxu1 }
 0x2bf   :  { %14914 = vst [vmem:[#allocation132_spill] sm:$0xff] %v10675_v13  ;;  %9505 = vset.pattern.permute.xlu1 %v14822_v20  ;;  %v10678_v55 = vpop.f32.mrb[65].mxu1 }
 0x2c0   :  { %14915 = vst [vmem:[#allocation133_spill] sm:$0xff] %v10678_v55  ;;  %3074 = vperm.xlu1 %9505, %v10349_v50   ;;  %9614 = vset.pattern.permute.xlu0 %v14816_v37 }
 0x2c1   :  { %4490 = vperm.xlu0 %9614, %v10415_v0  }
 0x2c2   :  { %v10683_v39 = vpop.f32.mrb[66].mxu1  ;;  %v10685_v43 = vpop.permute.xlu1 %2274 }
 0x2c3   :  { %14916 = vst [vmem:[#allocation134_spill] sm:$0xff] %v10683_v39  ;;  %v10687_v34 = vpop.f32.mrb[67].mxu1  ;;  %v10698_v15 = vpop.permute.xlu0 %3038 }
 0x2c4   :  { %14917 = vst [vmem:[#allocation135_spill] sm:$0xff] %v10687_v34  ;;  %9506 = vset.pattern.permute.xlu1 %v14816_v37 }
 0x2c5   :  { %4462 = vperm.xlu1 %9506, %v10349_v50   ;;  %4506 = vperm.xlu0 %9614, %v10442_v58   ;;  %v492_v50 = vld [vmem:[%s9802_s18] sm:$0xff] }
 0x2c6   :  { %v10692_v32 = vpop.f32.mrb[68].mxu1 }
 0x2c7   :  { %14918 = vst [vmem:[#allocation136_spill] sm:$0xff] %v10692_v32  ;;  %v10694_v55 = vpop.permute.xlu1 %3042  ;;  %v10696_v13 = vpop.f32.mrb[69].mxu1 }
 0x2c8   :  { %14919 = vst [vmem:[#allocation137_spill] sm:$0xff] %v10696_v13  ;;  %v10714_v32 = vpop.permute.xlu0 %4426 }
 0x2c9   :  { %9508 = vset.pattern.permute.xlu1 %v14858_v57  ;;  %4522 = vperm.xlu0 %9614, %v10465_v60   ;;  %14924 = vst [vmem:[#allocation142_spill] sm:$0xff] %v10714_v32 }
 0x2ca   :  { %v10702_v39 = vpop.f32.mrb[70].mxu1  ;;  %3764 = vperm.xlu1 %9508, %v10355_v54  }
 0x2cb   :  { %14920 = vst [vmem:[#allocation138_spill] sm:$0xff] %v10702_v39  ;;  %v10705_v34 = vpop.f32.mrb[71].mxu1 }
 0x2cc   :  { %14921 = vst [vmem:[#allocation139_spill] sm:$0xff] %v10705_v34  ;;  %v10708_v30 = vpop.permute.xlu1 %4430 }
 0x2cd   :  { %14922 = vst [vmem:[#allocation140_spill] sm:$0xff] %v10708_v30  ;;  %9623 = vset.pattern.permute.xlu0 %v14840_v9  ;;  %v10728_v34 = vpop.permute.xlu0 %3054 }
 0x2ce   :  { %9510 = vset.pattern.permute.xlu1 %v14825_v12  ;;  %558 = vperm.xlu0 %9623, %v492_v50   ;;  %v10712_v13 = vpop.f32.mrb[72].mxu1  ;;  %v494_v50 = vld [vmem:[%s9802_s18 + $0x10] sm:$0xff] }
 0x2cf   :  { %14923 = vst [vmem:[#allocation141_spill] sm:$0xff] %v10712_v13  ;;  %5152 = vperm.xlu1 %9510, %v10355_v54   ;;  %v10717_v39 = vpop.f32.mrb[73].mxu1 }
 0x2d0   :  { %14925 = vst [vmem:[#allocation143_spill] sm:$0xff] %v10717_v39 }
 0x2d1   :  { %v10719_v7 = vpop.permute.xlu1 %3732 }
 0x2d2   :  { %14926 = vst [vmem:[#allocation144_spill] sm:$0xff] %v10719_v7  ;;  %v10721_v4 = vpop.f32.mrb[74].mxu1  ;;  %2269 = vperm.xlu0 %9623, %v10294_v24   ;;  %v10739_v24 = vpop.permute.xlu0 %4442 }
 0x2d3   :  { %14927 = vst [vmem:[#allocation145_spill] sm:$0xff] %v10721_v4  ;;  %v10724_v30 = vpop.f32.mrb[75].mxu1  ;;  %9511 = vset.pattern.permute.xlu1 %v14840_v9  ;;  %14932 = vst [vmem:[#allocation150_spill] sm:$0xff] %v10739_v24 }
 0x2d4   :  { %14928 = vst [vmem:[#allocation146_spill] sm:$0xff] %v10724_v30  ;;  %2324 = vperm.xlu1 %9511, %v10362_v61  }
 0x2d6   :  { %v10731_v32 = vpop.permute.xlu1 %5120  ;;  %568 = vperm.xlu0 %9623, %v494_v50   ;;  %v10733_v39 = vpop.f32.mrb[76].mxu1  ;;  %v496_v50 = vld [vmem:[%s9802_s18 + $0x20] sm:$0xff] }
 0x2d7   :  { %14929 = vst [vmem:[#allocation147_spill] sm:$0xff] %v10731_v32  ;;  %14930 = vst [vmem:[#allocation148_spill] sm:$0xff] %v10733_v39  ;;  %v10735_v7 = vpop.f32.mrb[77].mxu1 }
 0x2d8   :  { %14931 = vst [vmem:[#allocation149_spill] sm:$0xff] %v10735_v7  ;;  %9512 = vset.pattern.permute.xlu1 %v14822_v20  ;;  %v10755_v24 = vpop.permute.xlu0 %3070 }
 0x2d9   :  { %3082 = vperm.xlu1 %9512, %v10362_v61   ;;  %14937 = vst [vmem:[#allocation155_spill] sm:$0xff] %v10755_v24 }
 0x2da   :  { %v10741_v30 = vpop.f32.mrb[78].mxu1  ;;  %2279 = vperm.xlu0 %9623, %v10307_v29  }
 0x2db   :  { %14933 = vst [vmem:[#allocation151_spill] sm:$0xff] %v10741_v30  ;;  %v10744_v4 = vpop.f32.mrb[79].mxu1  ;;  %v10746_v13 = vpop.permute.xlu1 %2284 }
 0x2dc   :  { %14934 = vst [vmem:[#allocation152_spill] sm:$0xff] %v10744_v4 }
 0x2dd   :  { %9513 = vset.pattern.permute.xlu1 %v14858_v57 }
 0x2de   :  { %3776 = vperm.xlu1 %9513, %v10362_v61   ;;  %578 = vperm.xlu0 %9623, %v496_v50   ;;  %v10751_v32 = vpop.f32.mrb[80].mxu1  ;;  %v498_v50 = vld [vmem:[%s9802_s18 + $0x30] sm:$0xff] }
 0x2df   :  { %14935 = vst [vmem:[#allocation153_spill] sm:$0xff] %v10751_v32  ;;  %v10753_v7 = vpop.f32.mrb[81].mxu1  ;;  %v10769_v32 = vpop.permute.xlu0 %4458 }
 0x2e0   :  { %14936 = vst [vmem:[#allocation154_spill] sm:$0xff] %v10753_v7  ;;  %v10757_v30 = vpop.permute.xlu1 %3050  ;;  %14941 = vst [vmem:[#allocation159_spill] sm:$0xff] %v10769_v32 }
 0x2e2   :  { %v10759_v39 = vpop.f32.mrb[82].mxu1  ;;  %9514 = vset.pattern.permute.xlu1 %v14816_v37  ;;  %2289 = vperm.xlu0 %9623, %v10323_v36  }
 0x2e3   :  { %14938 = vst [vmem:[#allocation156_spill] sm:$0xff] %v10759_v39  ;;  %v10763_v4 = vpop.f32.mrb[83].mxu1  ;;  %4470 = vperm.xlu1 %9514, %v10362_v61   ;;  %v10785_v32 = vpop.permute.xlu0 %3086 }
 0x2e4   :  { %14939 = vst [vmem:[#allocation157_spill] sm:$0xff] %v10763_v4 }
 0x2e5   :  { %v10767_v29 = vpop.permute.xlu1 %3744 }
 0x2e6   :  { %14940 = vst [vmem:[#allocation158_spill] sm:$0xff] %v10767_v29  ;;  %588 = vperm.xlu0 %9623, %v498_v50   ;;  %v10771_v7 = vpop.f32.mrb[84].mxu1  ;;  %v500_v29 = vld [vmem:[%s9802_s18 + $0x40] sm:$0xff] }
 0x2e7   :  { %14942 = vst [vmem:[#allocation160_spill] sm:$0xff] %v10771_v7  ;;  %9515 = vset.pattern.permute.xlu1 %v14825_v12  ;;  %v10774_v39 = vpop.f32.mrb[85].mxu1 }
 0x2e8   :  { %14943 = vst [vmem:[#allocation161_spill] sm:$0xff] %v10774_v39  ;;  %5164 = vperm.xlu1 %9515, %v10362_v61  }
 0x2ea   :  { %v10777_v24 = vpop.f32.mrb[86].mxu1  ;;  %v10779_v36 = vpop.permute.xlu1 %4438  ;;  %2299 = vperm.xlu0 %9623, %v10338_v42   ;;  %v506_v42 = vld [vmem:[%s9802_s18 + $0x70] sm:$0xff] }
 0x2eb   :  { %14944 = vst [vmem:[#allocation162_spill] sm:$0xff] %v10777_v24  ;;  %14945 = vst [vmem:[#allocation163_spill] sm:$0xff] %v10779_v36  ;;  %v10782_v4 = vpop.f32.mrb[87].mxu1  ;;  %v10796_v36 = vpop.permute.xlu0 %4474 }
 0x2ec   :  { %14946 = vst [vmem:[#allocation164_spill] sm:$0xff] %v10782_v4  ;;  %9516 = vset.pattern.permute.xlu1 %v14822_v20  ;;  %14950 = vst [vmem:[#allocation168_spill] sm:$0xff] %v10796_v36 }
 0x2ed   :  { %3078 = vperm.xlu1 %9516, %v10368_v1  }
 0x2ee   :  { %598 = vperm.xlu0 %9623, %v500_v29   ;;  %v10789_v50 = vpop.f32.mrb[88].mxu1  ;;  %v502_v29 = vld [vmem:[%s9802_s18 + $0x50] sm:$0xff] }
 0x2ef   :  { %14947 = vst [vmem:[#allocation165_spill] sm:$0xff] %v10789_v50  ;;  %v10791_v61 = vpop.permute.xlu1 %5132  ;;  %v10793_v24 = vpop.f32.mrb[89].mxu1 }
 0x2f0   :  { %14948 = vst [vmem:[#allocation166_spill] sm:$0xff] %v10791_v61  ;;  %14949 = vst [vmem:[#allocation167_spill] sm:$0xff] %v10793_v24 }
 0x2f1   :  { %9517 = vset.pattern.permute.xlu1 %v14816_v37 }
 0x2f2   :  { %v10798_v39 = vpop.f32.mrb[90].mxu1  ;;  %4466 = vperm.xlu1 %9517, %v10368_v1   ;;  %2309 = vperm.xlu0 %9623, %v10355_v54  }
 0x2f3   :  { %14951 = vst [vmem:[#allocation169_spill] sm:$0xff] %v10798_v39  ;;  %v10802_v4 = vpop.f32.mrb[91].mxu1  ;;  %v10813_v39 = vpop.permute.xlu0 %3102 }
 0x2f4   :  { %14952 = vst [vmem:[#allocation170_spill] sm:$0xff] %v10802_v4  ;;  %v10805_v7 = vpop.permute.xlu1 %3046 }
 0x2f6   :  { %9518 = vset.pattern.permute.xlu1 %v14840_v9  ;;  %608 = vperm.xlu0 %9623, %v502_v29   ;;  %v10808_v61 = vpop.f32.mrb[92].mxu1  ;;  %v504_v29 = vld [vmem:[%s9802_s18 + $0x60] sm:$0xff] }
 0x2f7   :  { %14953 = vst [vmem:[#allocation171_spill] sm:$0xff] %v10808_v61  ;;  %2334 = vperm.xlu1 %9518, %v10378_v8   ;;  %v10811_v36 = vpop.f32.mrb[93].mxu1  ;;  %v10825_v61 = vpop.permute.xlu0 %3118 }
 0x2f8   :  { %14954 = vst [vmem:[#allocation172_spill] sm:$0xff] %v10811_v36  ;;  %14958 = vst [vmem:[#allocation176_spill] sm:$0xff] %v10825_v61 }
 0x2f9   :  { %v10815_v24 = vpop.permute.xlu1 %4434 }
 0x2fa   :  { %14955 = vst [vmem:[#allocation173_spill] sm:$0xff] %v10815_v24  ;;  %v10817_v50 = vpop.f32.mrb[94].mxu1  ;;  %2319 = vperm.xlu0 %9623, %v10368_v1  }
 0x2fb   :  { %14956 = vst [vmem:[#allocation174_spill] sm:$0xff] %v10817_v50  ;;  %v10820_v54 = vpop.f32.mrb[95].mxu1  ;;  %9519 = vset.pattern.permute.xlu1 %v14822_v20  ;;  %v10843_v61 = vpop.permute.xlu0 %3134 }
 0x2fc   :  { %14957 = vst [vmem:[#allocation175_spill] sm:$0xff] %v10820_v54  ;;  %3090 = vperm.xlu1 %9519, %v10378_v8   ;;  %14963 = vst [vmem:[#allocation181_spill] sm:$0xff] %v10843_v61 }
 0x2fe   :  { %v10827_v4 = vpop.permute.xlu1 %2294  ;;  %618 = vperm.xlu0 %9623, %v504_v29   ;;  %v10829_v36 = vpop.f32.mrb[96].mxu1 }
 0x2ff   :  { %14959 = vst [vmem:[#allocation177_spill] sm:$0xff] %v10829_v36  ;;  %v10831_v24 = vpop.f32.mrb[97].mxu1 }
 0x300   :  { %14960 = vst [vmem:[#allocation178_spill] sm:$0xff] %v10831_v24  ;;  %9520 = vset.pattern.permute.xlu1 %v14816_v37 }
 0x301   :  { %4478 = vperm.xlu1 %9520, %v10378_v8  }
 0x302   :  { %v10835_v50 = vpop.f32.mrb[98].mxu1  ;;  %2329 = vperm.xlu0 %9623, %v10384_v11  }
 0x303   :  { %14961 = vst [vmem:[#allocation179_spill] sm:$0xff] %v10835_v50  ;;  %v10838_v54 = vpop.f32.mrb[99].mxu1  ;;  %v10840_v1 = vpop.permute.xlu1 %3058 }
 0x304   :  { %14962 = vst [vmem:[#allocation180_spill] sm:$0xff] %v10838_v54  ;;  %v10857_v54 = vpop.permute.xlu0 %3150 }
 0x305   :  { %9522 = vset.pattern.permute.xlu1 %v14858_v57  ;;  %14968 = vst [vmem:[#allocation186_spill] sm:$0xff] %v10857_v54 }
 0x306   :  { %3780 = vperm.xlu1 %9522, %v10384_v11   ;;  %628 = vperm.xlu0 %9623, %v506_v42   ;;  %v10847_v29 = vpop.f32.mrb[100].mxu1  ;;  %v508_v42 = vld [vmem:[%s9802_s18 + $0x80] sm:$0xff] }
 0x307   :  { %14964 = vst [vmem:[#allocation182_spill] sm:$0xff] %v10847_v29  ;;  %v10849_v24 = vpop.f32.mrb[101].mxu1 }
 0x308   :  { %14965 = vst [vmem:[#allocation183_spill] sm:$0xff] %v10849_v24  ;;  %v10851_v50 = vpop.permute.xlu1 %4446 }
 0x309   :  { %14966 = vst [vmem:[#allocation184_spill] sm:$0xff] %v10851_v50 }
 0x30a   :  { %v10853_v36 = vpop.f32.mrb[102].mxu1  ;;  %9524 = vset.pattern.permute.xlu1 %v14825_v12  ;;  %2339 = vperm.xlu0 %9623, %v10398_v31  }
 0x30b   :  { %14967 = vst [vmem:[#allocation185_spill] sm:$0xff] %v10853_v36  ;;  %v10859_v8 = vpop.f32.mrb[103].mxu1  ;;  %5168 = vperm.xlu1 %9524, %v10384_v11   ;;  %v10871_v36 = vpop.permute.xlu0 %3166 }
 0x30c   :  { %14969 = vst [vmem:[#allocation187_spill] sm:$0xff] %v10859_v8  ;;  %14973 = vst [vmem:[#allocation191_spill] sm:$0xff] %v10871_v36 }
 0x30d   :  { %v10863_v61 = vpop.permute.xlu1 %3748 }
 0x30e   :  { %14970 = vst [vmem:[#allocation188_spill] sm:$0xff] %v10863_v61  ;;  %638 = vperm.xlu0 %9623, %v508_v42   ;;  %v10865_v24 = vpop.f32.mrb[104].mxu1  ;;  %v510_v42 = vld [vmem:[%s9802_s18 + $0x90] sm:$0xff] }
 0x30f   :  { %14971 = vst [vmem:[#allocation189_spill] sm:$0xff] %v10865_v24  ;;  %9525 = vset.pattern.permute.xlu1 %v14840_v9  ;;  %v10868_v50 = vpop.f32.mrb[105].mxu1 }
 0x310   :  { %14972 = vst [vmem:[#allocation190_spill] sm:$0xff] %v10868_v50  ;;  %2344 = vperm.xlu1 %9525, %v10393_v19   ;;  %v10885_v50 = vpop.permute.xlu0 %3182 }
 0x311   :  { %14978 = vst [vmem:[#allocation196_spill] sm:$0xff] %v10885_v50 }
 0x312   :  { %v10873_v29 = vpop.f32.mrb[106].mxu1  ;;  %v10875_v12 = vpop.permute.xlu1 %5136  ;;  %2349 = vperm.xlu0 %9623, %v10415_v0  }
 0x313   :  { %14974 = vst [vmem:[#allocation192_spill] sm:$0xff] %v10873_v29  ;;  %14975 = vst [vmem:[#allocation193_spill] sm:$0xff] %v10875_v12  ;;  %v10878_v11 = vpop.f32.mrb[107].mxu1 }
 0x314   :  { %14976 = vst [vmem:[#allocation194_spill] sm:$0xff] %v10878_v11  ;;  %9526 = vset.pattern.permute.xlu1 %v14822_v20 }
 0x315   :  { %3098 = vperm.xlu1 %9526, %v10393_v19  }
 0x316   :  { %648 = vperm.xlu0 %9623, %v510_v42   ;;  %v10883_v61 = vpop.f32.mrb[108].mxu1  ;;  %v512_v42 = vld [vmem:[%s9802_s18 + $0xa0] sm:$0xff] }
 0x317   :  { %14977 = vst [vmem:[#allocation195_spill] sm:$0xff] %v10883_v61  ;;  %v10887_v24 = vpop.permute.xlu1 %2304  ;;  %v10889_v29 = vpop.f32.mrb[109].mxu1 }
 0x318   :  { %14979 = vst [vmem:[#allocation197_spill] sm:$0xff] %v10889_v29  ;;  %v10901_v61 = vpop.permute.xlu0 %3198 }
 0x319   :  { %9527 = vset.pattern.permute.xlu1 %v14858_v57  ;;  %14982 = vst [vmem:[#allocation200_spill] sm:$0xff] %v10901_v61  ;;  %v514_v61 = vld [vmem:[%s9802_s18 + $0xb0] sm:$0xff] }
 0x31a   :  { %v10892_v12 = vpop.f32.mrb[110].mxu1  ;;  %3792 = vperm.xlu1 %9527, %v10393_v19   ;;  %2359 = vperm.xlu0 %9623, %v10429_v5  }
 0x31b   :  { %14980 = vst [vmem:[#allocation198_spill] sm:$0xff] %v10892_v12  ;;  %v10896_v11 = vpop.f32.mrb[111].mxu1 }
 0x31c   :  { %14981 = vst [vmem:[#allocation199_spill] sm:$0xff] %v10896_v11  ;;  %v10899_v8 = vpop.permute.xlu1 %3066  ;;  %v10918_v54 = vpop.permute.xlu0 %3214 }
 0x31d   :  { %14988 = vst [vmem:[#allocation206_spill] sm:$0xff] %v10918_v54 }
 0x31e   :  { %9528 = vset.pattern.permute.xlu1 %v14816_v37  ;;  %658 = vperm.xlu0 %9623, %v512_v42   ;;  %v10904_v29 = vpop.f32.mrb[112].mxu1 }
 0x31f   :  { %14983 = vst [vmem:[#allocation201_spill] sm:$0xff] %v10904_v29  ;;  %4486 = vperm.xlu1 %9528, %v10393_v19   ;;  %v10907_v12 = vpop.f32.mrb[113].mxu1 }
 0x320   :  { %14984 = vst [vmem:[#allocation202_spill] sm:$0xff] %v10907_v12 }
 0x321   :  { %v10909_v50 = vpop.permute.xlu1 %3760 }
 0x322   :  { %14985 = vst [vmem:[#allocation203_spill] sm:$0xff] %v10909_v50  ;;  %v10911_v36 = vpop.f32.mrb[114].mxu1  ;;  %2369 = vperm.xlu0 %9623, %v10442_v58  }
 0x323   :  { %14986 = vst [vmem:[#allocation204_spill] sm:$0xff] %v10911_v36  ;;  %v10914_v11 = vpop.f32.mrb[115].mxu1  ;;  %9529 = vset.pattern.permute.xlu1 %v14822_v20 }
 0x324   :  { %14987 = vst [vmem:[#allocation205_spill] sm:$0xff] %v10914_v11  ;;  %3094 = vperm.xlu1 %9529, %v10398_v31   ;;  %v10929_v11 = vpop.permute.xlu0 %3230 }
 0x325   :  { %14992 = vst [vmem:[#allocation210_spill] sm:$0xff] %v10929_v11 }
 0x326   :  { %v10921_v42 = vpop.permute.xlu1 %4454  ;;  %668 = vperm.xlu0 %9623, %v514_v61   ;;  %v10923_v12 = vpop.f32.mrb[116].mxu1  ;;  %v516_v61 = vld [vmem:[%s9802_s18 + $0xc0] sm:$0xff] }
 0x327   :  { %14989 = vst [vmem:[#allocation207_spill] sm:$0xff] %v10921_v42  ;;  %14990 = vst [vmem:[#allocation208_spill] sm:$0xff] %v10923_v12  ;;  %v10925_v50 = vpop.f32.mrb[117].mxu1 }
 0x328   :  { %14991 = vst [vmem:[#allocation209_spill] sm:$0xff] %v10925_v50  ;;  %9530 = vset.pattern.permute.xlu1 %v14816_v37 }
 0x329   :  { %4482 = vperm.xlu1 %9530, %v10398_v31  }
 0x32a   :  { %v10931_v36 = vpop.f32.mrb[118].mxu1  ;;  %2379 = vperm.xlu0 %9623, %v10453_v22  }
 0x32b   :  { %14993 = vst [vmem:[#allocation211_spill] sm:$0xff] %v10931_v36  ;;  %v10934_v29 = vpop.f32.mrb[119].mxu1  ;;  %v10936_v19 = vpop.permute.xlu1 %5148 }
 0x32c   :  { %14994 = vst [vmem:[#allocation212_spill] sm:$0xff] %v10934_v29  ;;  %14995 = vst [vmem:[#allocation213_spill] sm:$0xff] %v10936_v19  ;;  %v10945_v12 = vpop.permute.xlu0 %3246 }
 0x32d   :  { %9531 = vset.pattern.permute.xlu1 %v14840_v9  ;;  %14998 = vst [vmem:[#allocation216_spill] sm:$0xff] %v10945_v12 }
 0x32e   :  { %2354 = vperm.xlu1 %9531, %v10409_v3   ;;  %678 = vperm.xlu0 %9623, %v516_v61   ;;  %v10941_v42 = vpop.f32.mrb[120].mxu1  ;;  %v518_v61 = vld [vmem:[%s9802_s18 + $0xd0] sm:$0xff] }
 0x32f   :  { %14996 = vst [vmem:[#allocation214_spill] sm:$0xff] %v10941_v42  ;;  %v10943_v50 = vpop.f32.mrb[121].mxu1 }
 0x330   :  { %14997 = vst [vmem:[#allocation215_spill] sm:$0xff] %v10943_v50  ;;  %v10947_v36 = vpop.permute.xlu1 %3062 }
 0x332   :  { %v10949_v11 = vpop.f32.mrb[122].mxu1  ;;  %9532 = vset.pattern.permute.xlu1 %v14822_v20  ;;  %2389 = vperm.xlu0 %9623, %v10465_v60  }
 0x333   :  { %14999 = vst [vmem:[#allocation217_spill] sm:$0xff] %v10949_v11  ;;  %v10953_v19 = vpop.f32.mrb[123].mxu1  ;;  %3106 = vperm.xlu1 %9532, %v10409_v3   ;;  %v10959_v42 = vpop.permute.xlu0 %3262 }
 0x334   :  { %15000 = vst [vmem:[#allocation218_spill] sm:$0xff] %v10953_v19  ;;  %15002 = vst [vmem:[#allocation220_spill] sm:$0xff] %v10959_v42 }
 0x335   :  { %v10957_v29 = vpop.permute.xlu1 %4450 }
 0x336   :  { %15001 = vst [vmem:[#allocation219_spill] sm:$0xff] %v10957_v29  ;;  %688 = vperm.xlu0 %9623, %v518_v61   ;;  %v10961_v50 = vpop.f32.mrb[124].mxu1  ;;  %v520_v61 = vld [vmem:[%s9802_s18 + $0xe0] sm:$0xff] }
 0x337   :  { %15003 = vst [vmem:[#allocation221_spill] sm:$0xff] %v10961_v50  ;;  %9534 = vset.pattern.permute.xlu1 %v14858_v57  ;;  %v10964_v11 = vpop.f32.mrb[125].mxu1 }
 0x338   :  { %15004 = vst [vmem:[#allocation222_spill] sm:$0xff] %v10964_v11  ;;  %3796 = vperm.xlu1 %9534, %v10415_v0   ;;  %v524_v0 = vld [vmem:[%s9802_s18 + $0x100] sm:$0xff] }
 0x33a   :  { %v10967_v12 = vpop.f32.mrb[126].mxu1  ;;  %v10969_v19 = vpop.permute.xlu1 %2314  ;;  %2399 = vperm.xlu0 %9623, %v10480_v62  }
 0x33b   :  { %15005 = vst [vmem:[#allocation223_spill] sm:$0xff] %v10967_v12  ;;  %v10972_v54 = vpop.f32.mrb[127].mxu1  ;;  %v10974_v29 = vpop.permute.xlu0 %3278 }
 0x33c   :  { %15006 = vst [vmem:[#allocation224_spill] sm:$0xff] %v10972_v54  ;;  %15007 = vst [vmem:[#allocation225_spill] sm:$0xff] %v10974_v29  ;;  %9535 = vset.pattern.permute.xlu1 %v14840_v9  ;;  %v522_v54 = vld [vmem:[%s9802_s18 + $0xf0] sm:$0xff] }
 0x33d   :  { %2364 = vperm.xlu1 %9535, %v10423_v17  }
 0x33e   :  { %698 = vperm.xlu0 %9623, %v520_v61  }
 0x33f   :  { %v10979_v11 = vpop.permute.xlu1 %3074 }
 0x340   :  { %v10981_v50 = vpop.permute.xlu0 %4490 }
 0x341   :  { %15008 = vst [vmem:[#allocation226_spill] sm:$0xff] %v10981_v50  ;;  %9536 = vset.pattern.permute.xlu1 %v14822_v20 }
 0x342   :  { %3114 = vperm.xlu1 %9536, %v10423_v17   ;;  %2409 = vperm.xlu0 %9623, %v10492_v27  }
 0x344   :  { %v10987_v12 = vpop.permute.xlu1 %4462  ;;  %v10989_v29 = vpop.permute.xlu0 %4506 }
 0x345   :  { %15009 = vst [vmem:[#allocation227_spill] sm:$0xff] %v10987_v12  ;;  %15010 = vst [vmem:[#allocation228_spill] sm:$0xff] %v10989_v29  ;;  %v10997_v50 = vpop.f32.mrb[68].mxu0 }
 0x346   :  { %9537 = vset.pattern.permute.xlu1 %v14858_v57  ;;  %708 = vperm.xlu0 %9623, %v522_v54   ;;  %15013 = vst [vmem:[#allocation231_spill] sm:$0xff] %v10997_v50  ;;  %v11002_v3 = vpop.f32.mrb[69].mxu0  ;;  %v11007_v54 = vadd.f32 %v10286_v21, %v10180_v41 }
 0x347   :  { %3808 = vperm.xlu1 %9537, %v10423_v17   ;;  %15014 = vst [vmem:[#allocation232_spill] sm:$0xff] %v11002_v3  ;;  %v526_v3 = vld [vmem:[%s9802_s18 + $0x110] sm:$0xff] }
 0x348   :  { %v10993_v61 = vpop.permute.xlu0 %4522  ;;  %15015 = vst [vmem:[#allocation233_spill] sm:$0xff] %v11007_v54  ;;  %v3295_v50 = vadd.f32 %v10694_v55, %v11007_v54 }
 0x349   :  { %15011 = vst [vmem:[#allocation229_spill] sm:$0xff] %v10993_v61  ;;  %v10995_v42 = vpop.permute.xlu1 %3764  ;;  %v11011_v61 = vadd.f32 %v10290_v23, %v10180_v41  ;;  %v2589_v41 = vadd.f32 %v10685_v43, %v11007_v54 }
 0x34a   :  { %15012 = vst [vmem:[#allocation230_spill] sm:$0xff] %v10995_v42  ;;  %2419 = vperm.xlu0 %9623, %v10503_v14  }
 0x34b   :  { %9538 = vset.pattern.permute.xlu1 %v14822_v20  ;;  %15016 = vst [vmem:[#allocation234_spill] sm:$0xff] %v11011_v61  ;;  %v3296_v21 = vadd.f32 %v10694_v55, %v11011_v61 }
 0x34c   :  { %3110 = vperm.xlu1 %9538, %v10429_v5   ;;  %v3423_v5 = vmax.f32 %v3295_v50, 0.0 }
 0x34d   :  { %v559_v29 = vpop.permute.xlu0 %558  ;;  %v3424_v31 = vmax.f32 %v3296_v21, 0.0 }
 0x34e   :  { %v11014_v12 = vadd.f32 %v10277_v16, %v559_v29  ;;  %v11017_v42 = vadd.f32 %v10280_v18, %v559_v29  ;;  %v11019_v17 = vpop.permute.xlu1 %5152  ;;  %718 = vperm.xlu0 %9623, %v524_v0   ;;  %v2590_v0 = vadd.f32 %v10685_v43, %v11011_v61  ;;  %v2717_v43 = vmax.f32 %v2589_v41, 0.0 }
 0x34f   :  { %15019 = vst [vmem:[#allocation237_spill] sm:$0xff] %v11019_v17 }
 0x350   :  { %15017 = vst [vmem:[#allocation235_spill] sm:$0xff] %v11014_v12  ;;  %15018 = vst [vmem:[#allocation236_spill] sm:$0xff] %v11017_v42  ;;  %9539 = vset.pattern.permute.xlu1 %v14840_v9  ;;  %v3294_v16 = vadd.f32 %v10698_v15, %v11017_v42  ;;  %v3293_v18 = vadd.f32 %v10698_v15, %v11014_v12  ;;  %v11043_v15 = vadd.f32 %v10316_v33, %v10189_v44 }
 0x351   :  { %2374 = vperm.xlu1 %9539, %v10437_v47   ;;  %v2270_v23 = vpop.permute.xlu0 %2269 }
 0x352   :  { %v2587_v55 = vadd.f32 %v2270_v23, %v11014_v12  ;;  %v2588_v29 = vadd.f32 %v2270_v23, %v11017_v42  ;;  %2429 = vperm.xlu0 %9623, %v10514_v45   ;;  %v3422_v17 = vmax.f32 %v3294_v16, 0.0  ;;  %v3421_v54 = vmax.f32 %v3293_v18, 0.0  ;;  %15020 = vst [vmem:[#allocation238_spill] sm:$0xff] %v11043_v15 }
 0x353   :  { %v11038_v37 = vpop.permute.xlu1 %2324  ;;  %v11047_v12 = vadd.f32 %v10320_v35, %v10189_v44  ;;  %v2718_v23 = vmax.f32 %v2590_v0, 0.0  ;;  %v3299_v18 = vadd.f32 %v10757_v30, %v11043_v15  ;;  %v11076_v0 = vadd.f32 %v10345_v48, %v10194_v46 }
 0x354   :  { %v2715_v61 = vmax.f32 %v2587_v55, 0.0  ;;  %v2716_v14 = vmax.f32 %v2588_v29, 0.0  ;;  %v8697_v50 = vpack.c.bf16 %v3424_v31, %v3422_v17  ;;  %v8699_v21 = vpack.c.bf16 %v3423_v5, %v3421_v54 }
 0x355   :  { %15021 = vst [vmem:[#allocation239_spill] sm:$0xff] %v11047_v12  ;;  %9540 = vset.pattern.permute.xlu1 %v14822_v20  ;;  %v569_v16 = vpop.permute.xlu0 %568  ;;  %v3300_v44 = vadd.f32 %v10757_v30, %v11047_v12  ;;  %v2593_v17 = vadd.f32 %v10746_v13, %v11043_v15  ;;  %v2594_v31 = vadd.f32 %v10746_v13, %v11047_v12  ;;  %v3427_v30 = vmax.f32 %v3299_v18, 0.0  ;;  %v15123_v12 = vld [vmem:[#allocation82_spill] sm:$0xff] }
 0x356   :  { %v8571_v42 = vpack.c.bf16 %v2717_v43, %v2715_v61  ;;  %v11053_v33 = vadd.f32 %v10299_v26, %v569_v16  ;;  %3122 = vperm.xlu1 %9540, %v10437_v47   ;;  %728 = vperm.xlu0 %9623, %v526_v3   ;;  %v11059_v35 = vadd.f32 %v10305_v28, %v569_v16  ;;  %v528_v43 = vld [vmem:[%s9802_s18 + $0x120] sm:$0xff] }
 0x357   :  { %8698 = vmatprep.subr.bf16.mxu0 %v8697_v50  ;;  %v8569_v41 = vpack.c.bf16 %v2718_v23, %v2716_v14  ;;  %15024 = vst [vmem:[#allocation242_spill] sm:$0xff] %v11076_v0  ;;  %v3428_v13 = vmax.f32 %v3300_v44, 0.0  ;;  %v11083_v16 = vadd.f32 %v10351_v53, %v10194_v46  ;;  %v2722_v50 = vmax.f32 %v2594_v31, 0.0 }
 0x358   :  { %15022 = vst [vmem:[#allocation240_spill] sm:$0xff] %v11053_v33  ;;  %15023 = vst [vmem:[#allocation241_spill] sm:$0xff] %v11059_v35  ;;  %8700 = vmatpush1.bf16.msra.mxu0 %v8699_v21  ;;  %v11063_v5 = vpop.permute.xlu1 %3082  ;;  %v3297_v26 = vadd.f32 %v10805_v7, %v11053_v33  ;;  %v3298_v28 = vadd.f32 %v10805_v7, %v11059_v35  ;;  %v2721_v7 = vmax.f32 %v2593_v17, 0.0 }
 0x359   :  { %8570 = vmatprep.subr.bf16.mxu1 %v8569_v41  ;;  %v2280_v3 = vpop.permute.xlu0 %2279  ;;  %15025 = vst [vmem:[#allocation243_spill] sm:$0xff] %v11083_v16  ;;  %v2597_v44 = vadd.f32 %v10827_v4, %v11076_v0  ;;  %v3303_v41 = vadd.f32 %v10840_v1, %v11076_v0  ;;  %v2598_v31 = vadd.f32 %v10827_v4, %v11083_v16 }
 0x35a   :  { %8572 = vmatpush1.bf16.msra.mxu1 %v8571_v42  ;;  %v2591_v14 = vadd.f32 %v2280_v3, %v11053_v33  ;;  %v2592_v61 = vadd.f32 %v2280_v3, %v11059_v35  ;;  %9541 = vset.pattern.permute.xlu1 %v14858_v57  ;;  %v3425_v54 = vmax.f32 %v3297_v26, 0.0  ;;  %v3426_v55 = vmax.f32 %v3298_v28, 0.0  ;;  %v15122_v33 = vld [vmem:[#allocation12_spill] sm:$0xff] }
 0x35b   :  { %2439 = vperm.xlu0 %9623, %v10524_v2   ;;  %3812 = vperm.xlu1 %9541, %v10442_v58   ;;  %v3304_v3 = vadd.f32 %v10840_v1, %v11083_v16  ;;  %v3431_v1 = vmax.f32 %v3303_v41, 0.0  ;;  %v11437_v35 = vadd.f32 %v15123_v12, %v15122_v33 }
 0x35c   :  { %v2719_v29 = vmax.f32 %v2591_v14, 0.0  ;;  %v2720_v42 = vmax.f32 %v2592_v61, 0.0  ;;  %v8703_v23 = vpack.c.bf16 %v3427_v30, %v3425_v54  ;;  %v8701_v18 = vpack.c.bf16 %v3428_v13, %v3426_v55 }
 0x35d   :  { %v11085_v21 = vpop.permute.xlu1 %3776  ;;  %v579_v48 = vpop.permute.xlu0 %578  ;;  %v2725_v54 = vmax.f32 %v2597_v44, 0.0  ;;  %v3432_v13 = vmax.f32 %v3304_v3, 0.0 }
 0x35e   :  { %15026 = vst [vmem:[#allocation244_spill] sm:$0xff] %v11085_v21  ;;  %v8575_v17 = vpack.c.bf16 %v2721_v7, %v2719_v29  ;;  %v11092_v26 = vadd.f32 %v10330_v38, %v579_v48  ;;  %v11097_v46 = vadd.f32 %v10336_v40, %v579_v48  ;;  %8702 = vmatprep.subr.bf16.mxu0 %v8701_v18  ;;  %v2726_v7 = vmax.f32 %v2598_v31, 0.0 }
 0x35f   :  { %738 = vperm.xlu0 %9623, %v528_v43   ;;  %v8573_v53 = vpack.c.bf16 %v2722_v50, %v2720_v42  ;;  %9542 = vset.pattern.permute.xlu1 %v14840_v9  ;;  %v530_v43 = vld [vmem:[%s9802_s18 + $0x130] sm:$0xff]  ;;  %v11119_v50 = vadd.f32 %v10380_v10, %v10202_v49 }
 0x360   :  { %15027 = vst [vmem:[#allocation245_spill] sm:$0xff] %v11092_v26  ;;  %15028 = vst [vmem:[#allocation246_spill] sm:$0xff] %v11097_v46  ;;  %8704 = vmatpush1.bf16.msra.mxu0 %v8703_v23  ;;  %v3301_v28 = vadd.f32 %v10728_v34, %v11092_v26  ;;  %2384 = vperm.xlu1 %9542, %v10448_v51   ;;  %v3302_v40 = vadd.f32 %v10728_v34, %v11097_v46 }
 0x361   :  { %8574 = vmatprep.subr.bf16.mxu1 %v8573_v53  ;;  %v2290_v38 = vpop.permute.xlu0 %2289  ;;  %v11115_v34 = vadd.f32 %v10376_v6, %v10202_v49  ;;  %15031 = vst [vmem:[#allocation249_spill] sm:$0xff] %v11119_v50  ;;  %v3308_v49 = vadd.f32 %v10899_v8, %v11119_v50 }
 0x362   :  { %8576 = vmatpush1.bf16.msra.mxu1 %v8575_v17  ;;  %v2595_v30 = vadd.f32 %v2290_v38, %v11092_v26  ;;  %v2596_v4 = vadd.f32 %v2290_v38, %v11097_v46  ;;  %v11109_v14 = vpop.permute.xlu1 %4470  ;;  %v3429_v61 = vmax.f32 %v3301_v28, 0.0  ;;  %v3430_v55 = vmax.f32 %v3302_v40, 0.0  ;;  %v15036_v38 = vld [vmem:[#allocation34_spill] sm:$0xff] }
 0x363   :  { %15029 = vst [vmem:[#allocation247_spill] sm:$0xff] %v11109_v14  ;;  %2449 = vperm.xlu0 %9623, %v10536_v25   ;;  %15030 = vst [vmem:[#allocation248_spill] sm:$0xff] %v11115_v34  ;;  %v3307_v6 = vadd.f32 %v10899_v8, %v11115_v34  ;;  %v2601_v53 = vadd.f32 %v10887_v24, %v11115_v34  ;;  %v11145_v28 = vadd.f32 %v10406_v56, %v10207_v52 }
 0x364   :  { %v2723_v29 = vmax.f32 %v2595_v30, 0.0  ;;  %v2724_v42 = vmax.f32 %v2596_v4, 0.0  ;;  %v8707_v23 = vpack.c.bf16 %v3431_v1, %v3429_v61  ;;  %9543 = vset.pattern.permute.xlu1 %v14822_v20  ;;  %v8705_v18 = vpack.c.bf16 %v3432_v13, %v3430_v55 }
 0x365   :  { %v589_v48 = vpop.permute.xlu0 %588  ;;  %3130 = vperm.xlu1 %9543, %v10448_v51   ;;  %15035 = vst [vmem:[#allocation253_spill] sm:$0xff] %v11145_v28  ;;  %v11149_v40 = vadd.f32 %v15036_v38, %v10207_v52  ;;  %v3435_v30 = vmax.f32 %v3307_v6, 0.0  ;;  %v3436_v4 = vmax.f32 %v3308_v49, 0.0  ;;  %v15041_v49 = vld [vmem:[#allocation30_spill] sm:$0xff] }
 0x366   :  { %v8579_v44 = vpack.c.bf16 %v2725_v54, %v2723_v29  ;;  %v11124_v41 = vadd.f32 %v10360_v59, %v589_v48  ;;  %v11127_v17 = vadd.f32 %v10366_v63, %v589_v48  ;;  %v8577_v3 = vpack.c.bf16 %v2726_v7, %v2724_v42  ;;  %8706 = vmatprep.subr.bf16.mxu0 %v8705_v18  ;;  %v532_v29 = vld [vmem:[%s9802_s18 + $0x140] sm:$0xff] }
 0x367   :  { %748 = vperm.xlu0 %9623, %v530_v43   ;;  %v11133_v10 = vpop.permute.xlu1 %5164  ;;  %v2602_v59 = vadd.f32 %v10887_v24, %v11119_v50  ;;  %8708 = vmatpush1.bf16.msra.mxu0 %v8707_v23  ;;  %15037 = vst [vmem:[#allocation34_spill] sm:$0xff] %v11149_v40  ;;  %v2729_v54 = vmax.f32 %v2601_v53, 0.0  ;;  %v3311_v42 = vadd.f32 %v10979_v11, %v11145_v28 }
 0x368   :  { %15032 = vst [vmem:[#allocation250_spill] sm:$0xff] %v11124_v41  ;;  %15033 = vst [vmem:[#allocation251_spill] sm:$0xff] %v11127_v17  ;;  %8578 = vmatprep.subr.bf16.mxu1 %v8577_v3  ;;  %v3306_v63 = vadd.f32 %v10947_v36, %v11127_v17  ;;  %v3305_v8 = vadd.f32 %v10947_v36, %v11124_v41  ;;  %v15038_v36 = vld [vmem:[#allocation80_spill] sm:$0xff]  ;;  %v3312_v43 = vadd.f32 %v10979_v11, %v11149_v40  ;;  %v15043_v11 = vld [vmem:[#allocation155_spill] sm:$0xff] }
 0x369   :  { %15034 = vst [vmem:[#allocation252_spill] sm:$0xff] %v11133_v10  ;;  %8580 = vmatpush1.bf16.msra.mxu1 %v8579_v44  ;;  %v2300_v31 = vpop.permute.xlu0 %2299  ;;  %9544 = vset.pattern.permute.xlu1 %v14858_v57  ;;  %v2730_v13 = vmax.f32 %v2602_v59, 0.0  ;;  %v15039_v3 = vld [vmem:[#allocation28_spill] sm:$0xff]  ;;  %v15060_v10 = vld [vmem:[#allocation50_spill] sm:$0xff] }
 0x36a   :  { %v2599_v24 = vadd.f32 %v2300_v31, %v11124_v41  ;;  %v2600_v1 = vadd.f32 %v2300_v31, %v11127_v17  ;;  %3824 = vperm.xlu1 %9544, %v10448_v51   ;;  %v3434_v61 = vmax.f32 %v3306_v63, 0.0  ;;  %v3433_v56 = vmax.f32 %v3305_v8, 0.0  ;;  %v15100_v41 = vld [vmem:[#allocation69_spill] sm:$0xff] }
 0x36b   :  { %2459 = vperm.xlu0 %9623, %v15038_v36   ;;  %v2605_v63 = vadd.f32 %v10969_v19, %v11145_v28  ;;  %v2606_v31 = vadd.f32 %v10969_v19, %v11149_v40  ;;  %v550_v40 = vld [vmem:[%s9802_s18 + $0x1d0] sm:$0xff] }
 0x36c   :  { %v2727_v55 = vmax.f32 %v2599_v24, 0.0  ;;  %v2728_v7 = vmax.f32 %v2600_v1, 0.0  ;;  %v3079_v52 = vpop.permute.xlu1 %3078  ;;  %v8709_v48 = vpack.c.bf16 %v3436_v4, %v3434_v61  ;;  %v8711_v18 = vpack.c.bf16 %v3435_v30, %v3433_v56 }
 0x36d   :  { %v599_v23 = vpop.permute.xlu0 %598  ;;  %v3439_v24 = vmax.f32 %v3311_v42, 0.0  ;;  %v3440_v1 = vmax.f32 %v3312_v43, 0.0  ;;  %v534_v43 = vld [vmem:[%s9802_s18 + $0x150] sm:$0xff] }
 0x36e   :  { %v8583_v44 = vpack.c.bf16 %v2729_v54, %v2727_v55  ;;  %v11162_v6 = vadd.f32 %v15039_v3, %v599_v23  ;;  %v11165_v53 = vadd.f32 %v15041_v49, %v599_v23  ;;  %v8581_v59 = vpack.c.bf16 %v2730_v13, %v2728_v7  ;;  %9545 = vset.pattern.permute.xlu1 %v14822_v20  ;;  %v15045_v7 = vld [vmem:[#allocation85_spill] sm:$0xff]  ;;  %v15049_v49 = vld [vmem:[#allocation42_spill] sm:$0xff] }
 0x36f   :  { %758 = vperm.xlu0 %9623, %v532_v29   ;;  %8710 = vmatprep.subr.bf16.mxu0 %v8709_v48  ;;  %v2733_v13 = vmax.f32 %v2605_v63, 0.0  ;;  %v2734_v55 = vmax.f32 %v2606_v31, 0.0  ;;  %v15047_v3 = vld [vmem:[#allocation41_spill] sm:$0xff] }
 0x370   :  { %15040 = vst [vmem:[#allocation80_spill] sm:$0xff] %v11162_v6  ;;  %15042 = vst [vmem:[#allocation28_spill] sm:$0xff] %v11165_v53  ;;  %3126 = vperm.xlu1 %9545, %v10453_v22   ;;  %v3310_v8 = vadd.f32 %v15043_v11, %v11165_v53  ;;  %v3309_v38 = vadd.f32 %v15043_v11, %v11162_v6  ;;  %8712 = vmatpush1.bf16.msra.mxu0 %v8711_v18  ;;  %v15046_v18 = vld [vmem:[#allocation7_spill] sm:$0xff]  ;;  %v15051_v11 = vld [vmem:[#allocation49_spill] sm:$0xff] }
 0x371   :  { %8582 = vmatprep.subr.bf16.mxu1 %v8581_v59  ;;  %v11177_v30 = vpop.permute.xlu1 %4466  ;;  %v2310_v19 = vpop.permute.xlu0 %2309  ;;  %v11190_v59 = vadd.f32 %v15049_v49, %v15046_v18  ;;  %v15056_v49 = vld [vmem:[#allocation89_spill] sm:$0xff] }
 0x372   :  { %15044 = vst [vmem:[#allocation30_spill] sm:$0xff] %v11177_v30  ;;  %8584 = vmatpush1.bf16.msra.mxu1 %v8583_v44  ;;  %v2603_v4 = vadd.f32 %v2310_v19, %v11162_v6  ;;  %v2604_v61 = vadd.f32 %v2310_v19, %v11165_v53  ;;  %v3438_v56 = vmax.f32 %v3310_v8, 0.0  ;;  %v3437_v54 = vmax.f32 %v3309_v38, 0.0  ;;  %v15052_v8 = vld [vmem:[#allocation36_spill] sm:$0xff]  ;;  %v15054_v19 = vld [vmem:[#allocation38_spill] sm:$0xff] }
 0x373   :  { %2469 = vperm.xlu0 %9623, %v15045_v7   ;;  %v11186_v44 = vadd.f32 %v15047_v3, %v15046_v18  ;;  %15050 = vst [vmem:[#allocation7_spill] sm:$0xff] %v11190_v59  ;;  %v536_v30 = vld [vmem:[%s9802_s18 + $0x160] sm:$0xff] }
 0x374   :  { %v2731_v29 = vmax.f32 %v2603_v4, 0.0  ;;  %v2732_v42 = vmax.f32 %v2604_v61, 0.0  ;;  %9546 = vset.pattern.permute.xlu1 %v14840_v9  ;;  %v8713_v23 = vpack.c.bf16 %v3440_v1, %v3438_v56  ;;  %v8715_v48 = vpack.c.bf16 %v3439_v24, %v3437_v54 }
 0x375   :  { %15048 = vst [vmem:[#allocation155_spill] sm:$0xff] %v11186_v44  ;;  %2394 = vperm.xlu1 %9546, %v15051_v11   ;;  %v609_v63 = vpop.permute.xlu0 %608  ;;  %v3315_v61 = vadd.f32 %v11063_v5, %v11186_v44  ;;  %v3316_v56 = vadd.f32 %v11063_v5, %v11190_v59  ;;  %v2609_v54 = vadd.f32 %v11038_v37, %v11186_v44 }
 0x376   :  { %v8587_v31 = vpack.c.bf16 %v2733_v13, %v2731_v29  ;;  %v11194_v38 = vadd.f32 %v15052_v8, %v609_v63  ;;  %v11197_v4 = vadd.f32 %v15054_v19, %v609_v63  ;;  %v2335_v1 = vpop.permute.xlu1 %2334  ;;  %8714 = vmatprep.subr.bf16.mxu0 %v8713_v23  ;;  %v8585_v24 = vpack.c.bf16 %v2734_v55, %v2732_v42  ;;  %v15057_v63 = vld [vmem:[#allocation8_spill] sm:$0xff] }
 0x377   :  { %768 = vperm.xlu0 %9623, %v534_v43   ;;  %8716 = vmatpush1.bf16.msra.mxu0 %v8715_v48  ;;  %v2610_v23 = vadd.f32 %v11038_v37, %v11190_v59  ;;  %v3443_v18 = vmax.f32 %v3315_v61, 0.0  ;;  %v3444_v3 = vmax.f32 %v3316_v56, 0.0  ;;  %v15058_v37 = vld [vmem:[#allocation48_spill] sm:$0xff]  ;;  %v2737_v19 = vmax.f32 %v2609_v54, 0.0 }
 0x378   :  { %15053 = vst [vmem:[#allocation41_spill] sm:$0xff] %v11194_v38  ;;  %15055 = vst [vmem:[#allocation42_spill] sm:$0xff] %v11197_v4  ;;  %8586 = vmatprep.subr.bf16.mxu1 %v8585_v24  ;;  %v3314_v13 = vadd.f32 %v3079_v52, %v11197_v4  ;;  %v3313_v29 = vadd.f32 %v3079_v52, %v11194_v38  ;;  %v11216_v8 = vadd.f32 %v15058_v37, %v15057_v63 }
 0x379   :  { %9547 = vset.pattern.permute.xlu1 %v14822_v20  ;;  %8588 = vmatpush1.bf16.msra.mxu1 %v8587_v31  ;;  %v2320_v55 = vpop.permute.xlu0 %2319  ;;  %v11221_v14 = vadd.f32 %v15060_v10, %v15057_v63 }
 0x37a   :  { %3138 = vperm.xlu1 %9547, %v15051_v11   ;;  %v2607_v5 = vadd.f32 %v2320_v55, %v11194_v38  ;;  %v2608_v42 = vadd.f32 %v2320_v55, %v11197_v4  ;;  %v3442_v43 = vmax.f32 %v3314_v13, 0.0  ;;  %v3441_v48 = vmax.f32 %v3313_v29, 0.0  ;;  %15059 = vst [vmem:[#allocation49_spill] sm:$0xff] %v11216_v8  ;;  %v15062_v38 = vld [vmem:[#allocation44_spill] sm:$0xff]  ;;  %v15091_v4 = vld [vmem:[#allocation61_spill] sm:$0xff] }
 0x37b   :  { %2479 = vperm.xlu0 %9623, %v15056_v49   ;;  %v3091_v52 = vpop.permute.xlu1 %3090  ;;  %15061 = vst [vmem:[#allocation36_spill] sm:$0xff] %v11221_v14  ;;  %v2738_v55 = vmax.f32 %v2610_v23, 0.0  ;;  %v2613_v23 = vadd.f32 %v2335_v1, %v11216_v8 }
 0x37c   :  { %v2735_v31 = vmax.f32 %v2607_v5, 0.0  ;;  %v2736_v24 = vmax.f32 %v2608_v42, 0.0  ;;  %v8717_v29 = vpack.c.bf16 %v3444_v3, %v3442_v43  ;;  %v8719_v61 = vpack.c.bf16 %v3443_v18, %v3441_v48  ;;  %v15064_v5 = vld [vmem:[#allocation46_spill] sm:$0xff] }
 0x37d   :  { %v619_v13 = vpop.permute.xlu0 %618  ;;  %v3319_v44 = vadd.f32 %v3091_v52, %v11216_v8  ;;  %v3320_v54 = vadd.f32 %v3091_v52, %v11221_v14 }
 0x37e   :  { %v8591_v56 = vpack.c.bf16 %v2737_v19, %v2735_v31  ;;  %9548 = vset.pattern.permute.xlu1 %v14858_v57  ;;  %v11226_v37 = vadd.f32 %v15062_v38, %v619_v13  ;;  %v11230_v42 = vadd.f32 %v15064_v5, %v619_v13  ;;  %v8589_v10 = vpack.c.bf16 %v2738_v55, %v2736_v24  ;;  %v15067_v24 = vld [vmem:[#allocation94_spill] sm:$0xff] }
 0x37f   :  { %3828 = vperm.xlu1 %9548, %v10465_v60   ;;  %778 = vperm.xlu0 %9623, %v536_v30   ;;  %v2614_v38 = vadd.f32 %v2335_v1, %v11221_v14  ;;  %v3447_v52 = vmax.f32 %v3319_v44, 0.0  ;;  %v3448_v31 = vmax.f32 %v3320_v54, 0.0  ;;  %v2741_v55 = vmax.f32 %v2613_v23, 0.0  ;;  %v538_v5 = vld [vmem:[%s9802_s18 + $0x170] sm:$0xff] }
 0x380   :  { %15063 = vst [vmem:[#allocation38_spill] sm:$0xff] %v11226_v37  ;;  %15065 = vst [vmem:[#allocation89_spill] sm:$0xff] %v11230_v42  ;;  %8718 = vmatprep.subr.bf16.mxu0 %v8717_v29  ;;  %v11234_v43 = vpop.permute.xlu1 %4478  ;;  %v3317_v48 = vadd.f32 %v10785_v32, %v11226_v37  ;;  %8590 = vmatprep.subr.bf16.mxu1 %v8589_v10  ;;  %v3318_v3 = vadd.f32 %v10785_v32, %v11230_v42  ;;  %v15072_v23 = vld [vmem:[#allocation54_spill] sm:$0xff] }
 0x381   :  { %15066 = vst [vmem:[#allocation8_spill] sm:$0xff] %v11234_v43  ;;  %8720 = vmatpush1.bf16.msra.mxu0 %v8719_v61  ;;  %v2330_v18 = vpop.permute.xlu0 %2329  ;;  %8592 = vmatpush1.bf16.msra.mxu1 %v8591_v56  ;;  %v15068_v61 = vld [vmem:[#allocation53_spill] sm:$0xff]  ;;  %v2742_v44 = vmax.f32 %v2614_v38, 0.0  ;;  %v15089_v14 = vld [vmem:[#allocation62_spill] sm:$0xff] }
 0x382   :  { %v2611_v30 = vadd.f32 %v2330_v18, %v11226_v37  ;;  %v2612_v63 = vadd.f32 %v2330_v18, %v11230_v42  ;;  %v3445_v19 = vmax.f32 %v3317_v48, 0.0  ;;  %v3446_v1 = vmax.f32 %v3318_v3, 0.0  ;;  %v15070_v48 = vld [vmem:[#allocation52_spill] sm:$0xff]  ;;  %v546_v42 = vld [vmem:[%s9802_s18 + $0x1b0] sm:$0xff] }
 0x383   :  { %9549 = vset.pattern.permute.xlu1 %v14840_v9  ;;  %2489 = vperm.xlu0 %9623, %v15067_v24  }
 0x384   :  { %v2739_v13 = vmax.f32 %v2611_v30, 0.0  ;;  %v2740_v29 = vmax.f32 %v2612_v63, 0.0  ;;  %2404 = vperm.xlu1 %9549, %v15068_v61   ;;  %v8723_v32 = vpack.c.bf16 %v3447_v52, %v3445_v19  ;;  %v8721_v43 = vpack.c.bf16 %v3448_v31, %v3446_v1  ;;  %v15075_v30 = vld [vmem:[#allocation98_spill] sm:$0xff]  ;;  %v540_v19 = vld [vmem:[%s9802_s18 + $0x180] sm:$0xff] }
 0x385   :  { %v11247_v56 = vpop.permute.xlu1 %3780  ;;  %v629_v10 = vpop.permute.xlu0 %628  ;;  %v15076_v1 = vld [vmem:[#allocation9_spill] sm:$0xff] }
 0x386   :  { %15069 = vst [vmem:[#allocation48_spill] sm:$0xff] %v11247_v56  ;;  %v8595_v18 = vpack.c.bf16 %v2741_v55, %v2739_v13  ;;  %8722 = vmatprep.subr.bf16.mxu0 %v8721_v43  ;;  %v8593_v54 = vpack.c.bf16 %v2742_v44, %v2740_v29  ;;  %v11250_v37 = vadd.f32 %v15070_v48, %v629_v10  ;;  %v15077_v55 = vld [vmem:[#allocation56_spill] sm:$0xff]  ;;  %v15079_v29 = vld [vmem:[#allocation58_spill] sm:$0xff] }
 0x387   :  { %788 = vperm.xlu0 %9623, %v538_v5   ;;  %v11253_v3 = vadd.f32 %v15072_v23, %v629_v10  ;;  %8724 = vmatpush1.bf16.msra.mxu0 %v8723_v32  ;;  %v11266_v13 = vadd.f32 %v15077_v55, %v15076_v1  ;;  %v11270_v5 = vadd.f32 %v15079_v29, %v15076_v1  ;;  %v15081_v1 = vld [vmem:[#allocation103_spill] sm:$0xff] }
 0x388   :  { %15071 = vst [vmem:[#allocation50_spill] sm:$0xff] %v11250_v37  ;;  %9550 = vset.pattern.permute.xlu1 %v14822_v20  ;;  %8594 = vmatprep.subr.bf16.mxu1 %v8593_v54 }
 0x389   :  { %15073 = vst [vmem:[#allocation44_spill] sm:$0xff] %v11253_v3  ;;  %3146 = vperm.xlu1 %9550, %v15068_v61   ;;  %v2340_v38 = vpop.permute.xlu0 %2339  ;;  %8596 = vmatpush1.bf16.msra.mxu1 %v8595_v18  ;;  %15078 = vst [vmem:[#allocation52_spill] sm:$0xff] %v11266_v13 }
 0x38a   :  { %v11257_v52 = vpop.permute.xlu1 %5168  ;;  %v2615_v43 = vadd.f32 %v2340_v38, %v11250_v37  ;;  %v2616_v63 = vadd.f32 %v2340_v38, %v11253_v3  ;;  %15080 = vst [vmem:[#allocation54_spill] sm:$0xff] %v11270_v5 }
 0x38b   :  { %15074 = vst [vmem:[#allocation46_spill] sm:$0xff] %v11257_v52  ;;  %2499 = vperm.xlu0 %9623, %v15075_v30  }
 0x38c   :  { %v2743_v44 = vmax.f32 %v2615_v43, 0.0  ;;  %v2744_v10 = vmax.f32 %v2616_v63, 0.0  ;;  %v15082_v63 = vld [vmem:[#allocation57_spill] sm:$0xff] }
 0x38d   :  { %9551 = vset.pattern.permute.xlu1 %v14858_v57  ;;  %v639_v31 = vpop.permute.xlu0 %638 }
 0x38e   :  { %3840 = vperm.xlu1 %9551, %v15068_v61   ;;  %v11309_v21 = vadd.f32 %v15089_v14, %v639_v31 }
 0x38f   :  { %798 = vperm.xlu0 %9623, %v540_v19   ;;  %v2345_v32 = vpop.permute.xlu1 %2344  ;;  %v542_v19 = vld [vmem:[%s9802_s18 + $0x190] sm:$0xff] }
 0x390   :  { %v2617_v18 = vadd.f32 %v2345_v32, %v11266_v13  ;;  %v2618_v54 = vadd.f32 %v2345_v32, %v11270_v5  ;;  %15090 = vst [vmem:[#allocation57_spill] sm:$0xff] %v11309_v21 }
 0x391   :  { %v2350_v48 = vpop.permute.xlu0 %2349 }
 0x392   :  { %v2745_v23 = vmax.f32 %v2617_v18, 0.0  ;;  %v2746_v38 = vmax.f32 %v2618_v54, 0.0  ;;  %9552 = vset.pattern.permute.xlu1 %v14822_v20  ;;  %v15084_v54 = vld [vmem:[#allocation107_spill] sm:$0xff] }
 0x393   :  { %3142 = vperm.xlu1 %9552, %v10480_v62   ;;  %2509 = vperm.xlu0 %9623, %v15081_v1  }
 0x394   :  { %v8599_v55 = vpack.c.bf16 %v2745_v23, %v2743_v44  ;;  %v3099_v29 = vpop.permute.xlu1 %3098  ;;  %v8597_v52 = vpack.c.bf16 %v2746_v38, %v2744_v10  ;;  %v544_v44 = vld [vmem:[%s9802_s18 + $0x1a0] sm:$0xff] }
 0x395   :  { %v11279_v43 = vpop.permute.xlu0 %648  ;;  %v3323_v38 = vadd.f32 %v3099_v29, %v11266_v13 }
 0x396   :  { %8598 = vmatprep.subr.bf16.mxu1 %v8597_v52 }
 0x397   :  { %9553 = vset.pattern.permute.xlu1 %v14840_v9  ;;  %808 = vperm.xlu0 %9623, %v542_v19   ;;  %v15086_v19 = vld [vmem:[#allocation112_spill] sm:$0xff]  ;;  %v3451_v13 = vmax.f32 %v3323_v38, 0.0  ;;  %v15095_v38 = vld [vmem:[#allocation65_spill] sm:$0xff] }
 0x398   :  { %2414 = vperm.xlu1 %9553, %v15082_v63   ;;  %8600 = vmatpush1.bf16.msra.mxu1 %v8599_v55  ;;  %v3324_v55 = vadd.f32 %v3099_v29, %v11270_v5 }
 0x399   :  { %v11283_v32 = vpop.permute.xlu1 %3792  ;;  %v11285_v18 = vpop.permute.xlu0 %2359 }
 0x39a   :  { %15083 = vst [vmem:[#allocation9_spill] sm:$0xff] %v11283_v32  ;;  %v3452_v29 = vmax.f32 %v3324_v55, 0.0 }
 0x39b   :  { %2519 = vperm.xlu0 %9623, %v15084_v54  }
 0x39c   :  { %9554 = vset.pattern.permute.xlu1 %v14822_v20 }
 0x39d   :  { %3154 = vperm.xlu1 %9554, %v15082_v63   ;;  %v11291_v10 = vpop.permute.xlu0 %658 }
 0x39e   :  { %v11293_v52 = vpop.permute.xlu1 %4486 }
 0x39f   :  { %15085 = vst [vmem:[#allocation56_spill] sm:$0xff] %v11293_v52  ;;  %818 = vperm.xlu0 %9623, %v544_v44   ;;  %v15087_v52 = vld [vmem:[#allocation60_spill] sm:$0xff] }
 0x3a0   :  { %v11306_v44 = vadd.f32 %v15087_v52, %v639_v31  ;;  %v2620_v31 = vadd.f32 %v2350_v48, %v11309_v21 }
 0x3a1   :  { %9555 = vset.pattern.permute.xlu1 %v14858_v57  ;;  %v11296_v23 = vpop.permute.xlu0 %2369 }
 0x3a2   :  { %3844 = vperm.xlu1 %9555, %v10492_v27   ;;  %15088 = vst [vmem:[#allocation58_spill] sm:$0xff] %v11306_v44  ;;  %v2619_v14 = vadd.f32 %v2350_v48, %v11306_v44 }
 0x3a3   :  { %2529 = vperm.xlu0 %9623, %v15086_v19   ;;  %v3095_v32 = vpop.permute.xlu1 %3094 }
 0x3a4   :  { %v3321_v8 = vadd.f32 %v3095_v32, %v11250_v37  ;;  %v3322_v56 = vadd.f32 %v3095_v32, %v11253_v3  ;;  %v2747_v48 = vmax.f32 %v2619_v14, 0.0 }
 0x3a5   :  { %v11311_v59 = vpop.permute.xlu0 %668 }
 0x3a6   :  { %v3449_v5 = vmax.f32 %v3321_v8, 0.0  ;;  %v3450_v6 = vmax.f32 %v3322_v56, 0.0  ;;  %9556 = vset.pattern.permute.xlu1 %v14840_v9  ;;  %v15093_v8 = vld [vmem:[#allocation116_spill] sm:$0xff]  ;;  %v15094_v56 = vld [vmem:[#allocation10_spill] sm:$0xff] }
 0x3a7   :  { %2424 = vperm.xlu1 %9556, %v15091_v4   ;;  %828 = vperm.xlu0 %9623, %v546_v42   ;;  %v11325_v55 = vadd.f32 %v15095_v38, %v15094_v56  ;;  %v15097_v42 = vld [vmem:[#allocation67_spill] sm:$0xff] }
 0x3a8   :  { %v8727_v32 = vpack.c.bf16 %v3451_v13, %v3449_v5  ;;  %v11315_v37 = vpop.permute.xlu1 %4482  ;;  %v8725_v52 = vpack.c.bf16 %v3452_v29, %v3450_v6  ;;  %v11329_v13 = vadd.f32 %v15097_v42, %v15094_v56  ;;  %v548_v6 = vld [vmem:[%s9802_s18 + $0x1c0] sm:$0xff]  ;;  %v3325_v56 = vadd.f32 %v10813_v39, %v11306_v44 }
 0x3a9   :  { %15092 = vst [vmem:[#allocation60_spill] sm:$0xff] %v11315_v37  ;;  %v11317_v3 = vpop.permute.xlu0 %2379  ;;  %15096 = vst [vmem:[#allocation62_spill] sm:$0xff] %v11325_v55 }
 0x3aa   :  { %8726 = vmatprep.subr.bf16.mxu0 %v8725_v52  ;;  %15098 = vst [vmem:[#allocation10_spill] sm:$0xff] %v11329_v13  ;;  %v2748_v52 = vmax.f32 %v2620_v31, 0.0 }
 0x3ab   :  { %9557 = vset.pattern.permute.xlu1 %v14822_v20  ;;  %2539 = vperm.xlu0 %9623, %v15093_v8  }
 0x3ac   :  { %3162 = vperm.xlu1 %9557, %v15091_v4   ;;  %8728 = vmatpush1.bf16.msra.mxu0 %v8727_v32  ;;  %v3326_v32 = vadd.f32 %v10813_v39, %v11309_v21  ;;  %v11351_v39 = vadd.f32 %v15100_v41, %v11279_v43  ;;  %v15102_v21 = vld [vmem:[#allocation71_spill] sm:$0xff] }
 0x3ad   :  { %v2355_v5 = vpop.permute.xlu1 %2354  ;;  %v11333_v29 = vpop.permute.xlu0 %678  ;;  %v11355_v50 = vadd.f32 %v15102_v21, %v11279_v43 }
 0x3ae   :  { %v2621_v37 = vadd.f32 %v2355_v5, %v11325_v55  ;;  %v2622_v28 = vadd.f32 %v2355_v5, %v11329_v13  ;;  %v3453_v5 = vmax.f32 %v3325_v56, 0.0  ;;  %v3454_v44 = vmax.f32 %v3326_v32, 0.0  ;;  %15101 = vst [vmem:[#allocation65_spill] sm:$0xff] %v11351_v39 }
 0x3af   :  { %838 = vperm.xlu0 %9623, %v548_v6   ;;  %15103 = vst [vmem:[#allocation67_spill] sm:$0xff] %v11355_v50  ;;  %v2623_v32 = vadd.f32 %v11285_v18, %v11351_v39  ;;  %v2624_v21 = vadd.f32 %v11285_v18, %v11355_v50 }
 0x3b0   :  { %v2749_v38 = vmax.f32 %v2621_v37, 0.0  ;;  %v2750_v53 = vmax.f32 %v2622_v28, 0.0  ;;  %9558 = vset.pattern.permute.xlu1 %v14858_v57  ;;  %v15099_v28 = vld [vmem:[#allocation121_spill] sm:$0xff] }
 0x3b1   :  { %3856 = vperm.xlu1 %9558, %v15091_v4   ;;  %v11343_v14 = vpop.permute.xlu0 %2389 }
 0x3b2   :  { %v8603_v31 = vpack.c.bf16 %v2749_v38, %v2747_v48  ;;  %v3107_v42 = vpop.permute.xlu1 %3106  ;;  %v8601_v34 = vpack.c.bf16 %v2750_v53, %v2748_v52  ;;  %v15104_v38 = vld [vmem:[#allocation63_spill] sm:$0xff] }
 0x3b3   :  { %v3327_v6 = vadd.f32 %v3107_v42, %v11325_v55  ;;  %v3328_v37 = vadd.f32 %v3107_v42, %v11329_v13  ;;  %2549 = vperm.xlu0 %9623, %v15099_v28   ;;  %v15109_v42 = vld [vmem:[#allocation75_spill] sm:$0xff] }
 0x3b4   :  { %8602 = vmatprep.subr.bf16.mxu1 %v8601_v34 }
 0x3b5   :  { %v3455_v48 = vmax.f32 %v3327_v6, 0.0  ;;  %v3456_v53 = vmax.f32 %v3328_v37, 0.0  ;;  %9559 = vset.pattern.permute.xlu1 %v14822_v20  ;;  %8604 = vmatpush1.bf16.msra.mxu1 %v8603_v31  ;;  %v11358_v52 = vpop.permute.xlu0 %688  ;;  %v15111_v6 = vld [vmem:[#allocation66_spill] sm:$0xff]  ;;  %v15112_v37 = vld [vmem:[#allocation125_spill] sm:$0xff] }
 0x3b6   :  { %3158 = vperm.xlu1 %9559, %v15104_v38  }
 0x3b7   :  { %v8731_v34 = vpack.c.bf16 %v3455_v48, %v3453_v5  ;;  %848 = vperm.xlu0 %9623, %v550_v40   ;;  %v11361_v56 = vpop.permute.xlu1 %3796  ;;  %v8729_v41 = vpack.c.bf16 %v3456_v53, %v3454_v44  ;;  %v15106_v40 = vld [vmem:[#allocation11_spill] sm:$0xff]  ;;  %v15107_v44 = vld [vmem:[#allocation73_spill] sm:$0xff]  ;;  %v2751_v53 = vmax.f32 %v2623_v32, 0.0 }
 0x3b8   :  { %15105 = vst [vmem:[#allocation69_spill] sm:$0xff] %v11361_v56  ;;  %v11377_v31 = vadd.f32 %v15107_v44, %v15106_v40  ;;  %v11381_v18 = vadd.f32 %v15109_v42, %v15106_v40  ;;  %v552_v48 = vld [vmem:[%s9802_s18 + $0x1e0] sm:$0xff] }
 0x3b9   :  { %8730 = vmatprep.subr.bf16.mxu0 %v8729_v41  ;;  %v11367_v43 = vpop.permute.xlu0 %2399  ;;  %v2752_v41 = vmax.f32 %v2624_v21, 0.0  ;;  %v11392_v40 = vld [vmem:[%s11372_s12] sm:$0x77] }
 0x3ba   :  { %9560 = vset.pattern.permute.xlu1 %v14840_v9  ;;  %8732 = vmatpush1.bf16.msra.mxu0 %v8731_v34  ;;  %15108 = vst [vmem:[#allocation71_spill] sm:$0xff] %v11377_v31  ;;  %15110 = vst [vmem:[#allocation63_spill] sm:$0xff] %v11381_v18  ;;  %v11397_v32 = vcombine.high %v11392_v40, %v11392_v40 }
 0x3bb   :  { %2434 = vperm.xlu1 %9560, %v15111_v6   ;;  %2559 = vperm.xlu0 %9623, %v15112_v37  }
 0x3bc   :  { %v2365_v5 = vpop.permute.xlu1 %2364  ;;  %15113 = vst [vmem:[#allocation11_spill] sm:$0xff] %v11397_v32  ;;  %2918 = vmatprep.mubr.f32.mxu1 %v11397_v32  ;;  %3613 = vmatprep.mubr.f32.mxu0 %v11397_v32  ;;  %v15120_v32 = vld [vmem:[#allocation70_spill] sm:$0xff] }
 0x3bd   :  { %v2625_v55 = vadd.f32 %v2365_v5, %v11377_v31  ;;  %v2626_v34 = vadd.f32 %v2365_v5, %v11381_v18  ;;  %v11388_v56 = vpop.permute.xlu0 %698 }
 0x3bf   :  { %v2753_v44 = vmax.f32 %v2625_v55, 0.0  ;;  %v2754_v13 = vmax.f32 %v2626_v34, 0.0  ;;  %9561 = vset.pattern.permute.xlu1 %v14822_v20  ;;  %858 = vperm.xlu0 %9623, %v552_v48   ;;  %v15114_v55 = vld [vmem:[#allocation130_spill] sm:$0xff] }
 0x3c0   :  { %3170 = vperm.xlu1 %9561, %v15111_v6   ;;  %v554_v48 = vld [vmem:[%s9802_s18 + $0x1f0] sm:$0xff]  ;;  %s9733_s18 = smov 22  }
 0x3c1   :  { %v8607_v21 = vpack.c.bf16 %v2753_v44, %v2751_v53  ;;  %v3115_v42 = vpop.permute.xlu1 %3114  ;;  %v11399_v26 = vpop.permute.xlu0 %2409  ;;  %v8605_v5 = vpack.c.bf16 %v2754_v13, %v2752_v41  ;;  %v15116_v13 = vld [vmem:[#allocation77_spill] sm:$0xff]  ;;  %v15118_v44 = vld [vmem:[#allocation79_spill] sm:$0xff]  ;;  %s7654_s21 = sld [smem:[%s14206_s0 + %s9733_s18]]  }
 0x3c2   :  { %v11413_v41 = vadd.f32 %v15116_v13, %v11291_v10  ;;  %v3331_v17 = vadd.f32 %v3115_v42, %v11377_v31  ;;  %v3332_v0 = vadd.f32 %v3115_v42, %v11381_v18  ;;  %15124 = vst [vmem:[#allocation77_spill] sm:$0xff] %v11437_v35 }
 0x3c3   :  { %2569 = vperm.xlu0 %9623, %v15114_v55   ;;  %8606 = vmatprep.subr.bf16.mxu1 %v8605_v5  ;;  %v11417_v5 = vadd.f32 %v15118_v44, %v11291_v10 }
 0x3c4   :  { %9562 = vset.pattern.permute.xlu1 %v14858_v57  ;;  %8608 = vmatpush1.bf16.msra.mxu1 %v8607_v21  ;;  %15117 = vst [vmem:[#allocation75_spill] sm:$0xff] %v11413_v41  ;;  %v2627_v10 = vadd.f32 %v11296_v23, %v11413_v41  ;;  %v3459_v31 = vmax.f32 %v3331_v17, 0.0  ;;  %v3460_v16 = vmax.f32 %v3332_v0, 0.0 }
 0x3c5   :  { %3860 = vperm.xlu1 %9562, %v10514_v45   ;;  %v11406_v34 = vpop.permute.xlu0 %708  ;;  %15119 = vst [vmem:[#allocation66_spill] sm:$0xff] %v11417_v5  ;;  %v2628_v44 = vadd.f32 %v11296_v23, %v11417_v5 }
 0x3c6   :  { %v11409_v53 = vpop.permute.xlu1 %3808 }
 0x3c7   :  { %15115 = vst [vmem:[#allocation73_spill] sm:$0xff] %v11409_v53  ;;  %868 = vperm.xlu0 %9623, %v554_v48   ;;  %v15121_v53 = vld [vmem:[#allocation232_spill] sm:$0xff] }
 0x3c9   :  { %9563 = vset.pattern.permute.xlu1 %v14840_v9  ;;  %v11420_v21 = vpop.permute.xlu0 %2419 }
 0x3ca   :  { %2444 = vperm.xlu1 %9563, %v15120_v32  }
 0x3cb   :  { %2579 = vperm.xlu0 %9623, %v15121_v53   ;;  %v3111_v48 = vpop.permute.xlu1 %3110 }
 0x3cc   :  { %v3329_v13 = vadd.f32 %v3111_v48, %v11351_v39  ;;  %v3330_v46 = vadd.f32 %v3111_v48, %v11355_v50  ;;  %v15125_v48 = vld [vmem:[#allocation84_spill] sm:$0xff]  ;;  %v15127_v50 = vmov 3  }
 0x3cd   :  { %v11432_v15 = vpop.permute.xlu0 %718  ;;  %v11441_v39 = vadd.f32 %v15125_v48, %v15122_v33 }
 0x3ce   :  { %v3457_v42 = vmax.f32 %v3329_v13, 0.0  ;;  %v3458_v18 = vmax.f32 %v3330_v46, 0.0  ;;  %9564 = vset.pattern.permute.xlu1 %v14822_v20  ;;  %v2755_v46 = vmax.f32 %v2627_v10, 0.0  ;;  %v2756_v13 = vmax.f32 %v2628_v44, 0.0 }
 0x3cf   :  { %15126 = vst [vmem:[#allocation79_spill] sm:$0xff] %v11441_v39  ;;  %3178 = vperm.xlu1 %9564, %v15120_v32   ;;  %9631 = vset.pattern.permute.xlu0 %v15127_v50 }
 0x3d0   :  { %v8735_v23 = vpack.c.bf16 %v3459_v31, %v3457_v42  ;;  %4538 = vperm.xlu0 %9631, %v10492_v27   ;;  %v2375_v0 = vpop.permute.xlu1 %2374  ;;  %v8733_v17 = vpack.c.bf16 %v3460_v16, %v3458_v18  ;;  %v15128_v16 = vld [vmem:[#allocation176_spill] sm:$0xff] }
 0x3d1   :  { %v2629_v4 = vadd.f32 %v2375_v0, %v11437_v35  ;;  %v2630_v12 = vadd.f32 %v2375_v0, %v11441_v39  ;;  %v11448_v61 = vpop.permute.xlu0 %2429  ;;  %v3333_v31 = vadd.f32 %v15128_v16, %v11413_v41  ;;  %v3334_v18 = vadd.f32 %v15128_v16, %v11417_v5  ;;  %v15129_v16 = vld [vmem:[#allocation86_spill] sm:$0xff] }
 0x3d2   :  { %8734 = vmatprep.subr.bf16.mxu0 %v8733_v17 }
 0x3d3   :  { %v2757_v33 = vmax.f32 %v2629_v4, 0.0  ;;  %v2758_v48 = vmax.f32 %v2630_v12, 0.0  ;;  %9565 = vset.pattern.permute.xlu1 %v14858_v57  ;;  %8736 = vmatpush1.bf16.msra.mxu0 %v8735_v23  ;;  %v3461_v23 = vmax.f32 %v3333_v31, 0.0  ;;  %v3462_v41 = vmax.f32 %v3334_v18, 0.0 }
 0x3d4   :  { %3872 = vperm.xlu1 %9565, %v15120_v32   ;;  %4554 = vperm.xlu0 %9631, %v10514_v45   ;;  %v15147_v45 = vld [vmem:[#allocation18_spill] sm:$0xff] }
 0x3d5   :  { %v8611_v10 = vpack.c.bf16 %v2757_v33, %v2755_v46  ;;  %v3123_v44 = vpop.permute.xlu1 %3122  ;;  %v11457_v42 = vpop.permute.xlu0 %728  ;;  %v8609_v0 = vpack.c.bf16 %v2758_v48, %v2756_v13  ;;  %v11465_v46 = vadd.f32 %v15129_v16, %v11311_v59  ;;  %v15131_v33 = vld [vmem:[#allocation88_spill] sm:$0xff] }
 0x3d6   :  { %v3335_v4 = vadd.f32 %v3123_v44, %v11437_v35  ;;  %v3336_v17 = vadd.f32 %v3123_v44, %v11441_v39  ;;  %v11469_v13 = vadd.f32 %v15131_v33, %v11311_v59  ;;  %v15134_v59 = vld [vmem:[#allocation74_spill] sm:$0xff] }
 0x3d7   :  { %8610 = vmatprep.subr.bf16.mxu1 %v8609_v0  ;;  %15130 = vst [vmem:[#allocation12_spill] sm:$0xff] %v11465_v46  ;;  %v2631_v18 = vadd.f32 %v11317_v3, %v11465_v46 }
 0x3d8   :  { %v3463_v12 = vmax.f32 %v3335_v4, 0.0  ;;  %v3464_v32 = vmax.f32 %v3336_v17, 0.0  ;;  %9566 = vset.pattern.permute.xlu1 %v14822_v20  ;;  %4570 = vperm.xlu0 %9631, %v10536_v25   ;;  %15132 = vst [vmem:[#allocation82_spill] sm:$0xff] %v11469_v13  ;;  %v2632_v4 = vadd.f32 %v11317_v3, %v11469_v13  ;;  %v15135_v17 = vld [vmem:[#allocation13_spill] sm:$0xff] }
 0x3d9   :  { %3174 = vperm.xlu1 %9566, %v10524_v2   ;;  %8612 = vmatpush1.bf16.msra.mxu1 %v8611_v10  ;;  %v2759_v33 = vmax.f32 %v2631_v18, 0.0 }
 0x3da   :  { %v8739_v48 = vpack.c.bf16 %v3463_v12, %v3461_v23  ;;  %v11472_v31 = vpop.permute.xlu0 %2439  ;;  %v11474_v44 = vpop.permute.xlu1 %3812  ;;  %v8737_v0 = vpack.c.bf16 %v3464_v32, %v3462_v41  ;;  %v15136_v23 = vld [vmem:[#allocation91_spill] sm:$0xff]  ;;  %v15138_v32 = vld [vmem:[#allocation93_spill] sm:$0xff]  ;;  %v2760_v3 = vmax.f32 %v2632_v4, 0.0 }
 0x3db   :  { %15133 = vst [vmem:[#allocation84_spill] sm:$0xff] %v11474_v44  ;;  %v11487_v12 = vadd.f32 %v15136_v23, %v15135_v17  ;;  %v11491_v41 = vadd.f32 %v15138_v32, %v15135_v17 }
 0x3dc   :  { %4586 = vperm.xlu0 %9631, %v15045_v7   ;;  %8738 = vmatprep.subr.bf16.mxu0 %v8737_v0 }
 0x3dd   :  { %9567 = vset.pattern.permute.xlu1 %v14840_v9  ;;  %8740 = vmatpush1.bf16.msra.mxu0 %v8739_v48  ;;  %15137 = vst [vmem:[#allocation176_spill] sm:$0xff] %v11487_v12  ;;  %15139 = vst [vmem:[#allocation86_spill] sm:$0xff] %v11491_v41 }
 0x3de   :  { %2454 = vperm.xlu1 %9567, %v15134_v59   ;;  %v11483_v10 = vpop.permute.xlu0 %738 }
 0x3df   :  { %v2385_v16 = vpop.permute.xlu1 %2384 }
 0x3e0   :  { %4602 = vperm.xlu0 %9631, %v15067_v24   ;;  %v2633_v0 = vadd.f32 %v2385_v16, %v11487_v12  ;;  %v2634_v48 = vadd.f32 %v2385_v16, %v11491_v41 }
 0x3e2   :  { %9568 = vset.pattern.permute.xlu1 %v14822_v20  ;;  %v11497_v35 = vpop.permute.xlu0 %2449  ;;  %v2761_v44 = vmax.f32 %v2633_v0, 0.0  ;;  %v2762_v23 = vmax.f32 %v2634_v48, 0.0 }
 0x3e3   :  { %3186 = vperm.xlu1 %9568, %v15134_v59  }
 0x3e4   :  { %4618 = vperm.xlu0 %9631, %v15081_v1   ;;  %v8615_v17 = vpack.c.bf16 %v2761_v44, %v2759_v33  ;;  %v3131_v32 = vpop.permute.xlu1 %3130  ;;  %v8613_v5 = vpack.c.bf16 %v2762_v23, %v2760_v3  ;;  %v15141_v44 = vld [vmem:[#allocation95_spill] sm:$0xff]  ;;  %v15143_v33 = vld [vmem:[#allocation97_spill] sm:$0xff] }
 0x3e5   :  { %v11513_v16 = vadd.f32 %v15141_v44, %v11333_v29  ;;  %v11517_v3 = vadd.f32 %v15143_v33, %v11333_v29  ;;  %v3339_v0 = vadd.f32 %v3131_v32, %v11487_v12  ;;  %v3340_v48 = vadd.f32 %v3131_v32, %v11491_v41 }
 0x3e6   :  { %v11501_v39 = vpop.permute.xlu0 %748  ;;  %8614 = vmatprep.subr.bf16.mxu1 %v8613_v5  ;;  %v15145_v5 = vld [vmem:[#allocation78_spill] sm:$0xff] }
 0x3e7   :  { %9569 = vset.pattern.permute.xlu1 %v14858_v57  ;;  %8616 = vmatpush1.bf16.msra.mxu1 %v8615_v17  ;;  %15142 = vst [vmem:[#allocation13_spill] sm:$0xff] %v11513_v16  ;;  %15144 = vst [vmem:[#allocation91_spill] sm:$0xff] %v11517_v3  ;;  %v2636_v29 = vadd.f32 %v11343_v14, %v11517_v3  ;;  %v3467_v33 = vmax.f32 %v3339_v0, 0.0  ;;  %v3468_v12 = vmax.f32 %v3340_v48, 0.0 }
 0x3e8   :  { %3876 = vperm.xlu1 %9569, %v10536_v25   ;;  %4634 = vperm.xlu0 %9631, %v15086_v19   ;;  %v2635_v25 = vadd.f32 %v11343_v14, %v11513_v16  ;;  %v15152_v14 = vld [vmem:[#allocation102_spill] sm:$0xff] }
 0x3e9   :  { %v11506_v18 = vpop.permute.xlu1 %3824 }
 0x3ea   :  { %15140 = vst [vmem:[#allocation88_spill] sm:$0xff] %v11506_v18  ;;  %v11508_v4 = vpop.permute.xlu0 %2459  ;;  %v2763_v48 = vmax.f32 %v2635_v25, 0.0 }
 0x3ec   :  { %9570 = vset.pattern.permute.xlu1 %v14840_v9  ;;  %4650 = vperm.xlu0 %9631, %v15099_v28  }
 0x3ed   :  { %2464 = vperm.xlu1 %9570, %v15145_v5  }
 0x3ee   :  { %v11523_v23 = vpop.permute.xlu0 %758 }
 0x3ef   :  { %15146 = vst [vmem:[#allocation93_spill] sm:$0xff] %v11523_v23  ;;  %v3127_v17 = vpop.permute.xlu1 %3126  ;;  %v15154_v23 = vld [vmem:[#allocation19_spill] sm:$0xff] }
 0x3f0   :  { %v3337_v18 = vadd.f32 %v3127_v17, %v11465_v46  ;;  %v3338_v44 = vadd.f32 %v3127_v17, %v11469_v13  ;;  %9660 = vset.pattern.permute.xlu0 %v14858_v57  ;;  %v15149_v17 = vld [vmem:[#allocation14_spill] sm:$0xff]  ;;  %v15150_v13 = vld [vmem:[#allocation100_spill] sm:$0xff] }
 0x3f1   :  { %9571 = vset.pattern.permute.xlu1 %v14822_v20  ;;  %3736 = vperm.xlu0 %9660, %v15147_v45   ;;  %v11539_v27 = vadd.f32 %v15150_v13, %v15149_v17  ;;  %v11543_v60 = vadd.f32 %v15152_v14, %v15149_v17  ;;  %v15156_v14 = vld [vmem:[#allocation21_spill] sm:$0xff] }
 0x3f2   :  { %v3465_v32 = vmax.f32 %v3337_v18, 0.0  ;;  %v3466_v41 = vmax.f32 %v3338_v44, 0.0  ;;  %3194 = vperm.xlu1 %9571, %v15145_v5   ;;  %v11535_v46 = vpop.permute.xlu0 %2469  ;;  %v2764_v18 = vmax.f32 %v2636_v29, 0.0 }
 0x3f3   :  { %15148 = vst [vmem:[#allocation95_spill] sm:$0xff] %v11535_v46  ;;  %15151 = vst [vmem:[#allocation97_spill] sm:$0xff] %v11539_v27 }
 0x3f4   :  { %15153 = vst [vmem:[#allocation14_spill] sm:$0xff] %v11543_v60  ;;  %v8743_v51 = vpack.c.bf16 %v3467_v33, %v3465_v32  ;;  %v2395_v58 = vpop.permute.xlu1 %2394  ;;  %v8741_v0 = vpack.c.bf16 %v3468_v12, %v3466_v41  ;;  %v15155_v12 = vld [vmem:[#allocation181_spill] sm:$0xff] }
 0x3f5   :  { %v2637_v44 = vadd.f32 %v2395_v58, %v11539_v27  ;;  %v2638_v28 = vadd.f32 %v2395_v58, %v11543_v60  ;;  %3740 = vperm.xlu0 %9660, %v15154_v23   ;;  %v3341_v25 = vadd.f32 %v15155_v12, %v11513_v16  ;;  %v3342_v41 = vadd.f32 %v15155_v12, %v11517_v3  ;;  %v15162_v16 = vld [vmem:[#allocation22_spill] sm:$0xff]  ;;  %v15173_v3 = vld [vmem:[#allocation25_spill] sm:$0xff] }
 0x3f6   :  { %9572 = vset.pattern.permute.xlu1 %v14858_v57  ;;  %v11549_v46 = vpop.permute.xlu0 %768  ;;  %8742 = vmatprep.subr.bf16.mxu0 %v8741_v0 }
 0x3f7   :  { %v2765_v13 = vmax.f32 %v2637_v44, 0.0  ;;  %v2766_v45 = vmax.f32 %v2638_v28, 0.0  ;;  %3888 = vperm.xlu1 %9572, %v15145_v5   ;;  %8744 = vmatpush1.bf16.msra.mxu0 %v8743_v51  ;;  %v3469_v51 = vmax.f32 %v3341_v25, 0.0 }
 0x3f9   :  { %v8619_v29 = vpack.c.bf16 %v2765_v13, %v2763_v48  ;;  %v3139_v58 = vpop.permute.xlu1 %3138  ;;  %v8617_v33 = vpack.c.bf16 %v2766_v45, %v2764_v18  ;;  %3752 = vperm.xlu0 %9660, %v15156_v14   ;;  %v3470_v48 = vmax.f32 %v3342_v41, 0.0  ;;  %v15158_v45 = vld [vmem:[#allocation104_spill] sm:$0xff]  ;;  %v15160_v13 = vld [vmem:[#allocation106_spill] sm:$0xff]  ;;  %v15165_v41 = vld [vmem:[#allocation83_spill] sm:$0xff] }
 0x3fa   :  { %v3343_v32 = vadd.f32 %v3139_v58, %v11539_v27  ;;  %v3344_v17 = vadd.f32 %v3139_v58, %v11543_v60  ;;  %v11559_v28 = vpop.permute.xlu0 %2479  ;;  %v11565_v18 = vadd.f32 %v15158_v45, %v11358_v52  ;;  %v11569_v12 = vadd.f32 %v15160_v13, %v11358_v52  ;;  %v15169_v52 = vld [vmem:[#allocation111_spill] sm:$0xff] }
 0x3fb   :  { %15157 = vst [vmem:[#allocation100_spill] sm:$0xff] %v11559_v28  ;;  %9573 = vset.pattern.permute.xlu1 %v14822_v20  ;;  %8618 = vmatprep.subr.bf16.mxu1 %v8617_v33 }
 0x3fc   :  { %v3471_v0 = vmax.f32 %v3343_v32, 0.0  ;;  %v3472_v44 = vmax.f32 %v3344_v17, 0.0  ;;  %3190 = vperm.xlu1 %9573, %v15038_v36   ;;  %8620 = vmatpush1.bf16.msra.mxu1 %v8619_v29  ;;  %15159 = vst [vmem:[#allocation102_spill] sm:$0xff] %v11565_v18  ;;  %15161 = vst [vmem:[#allocation19_spill] sm:$0xff] %v11569_v12  ;;  %v15166_v29 = vld [vmem:[#allocation15_spill] sm:$0xff]  ;;  %v15167_v32 = vld [vmem:[#allocation109_spill] sm:$0xff] }
 0x3fd   :  { %3756 = vperm.xlu0 %9660, %v15162_v16   ;;  %v11580_v17 = vadd.f32 %v15167_v32, %v15166_v29 }
 0x3fe   :  { %v8747_v58 = vpack.c.bf16 %v3471_v0, %v3469_v51  ;;  %v11572_v27 = vpop.permute.xlu1 %3828  ;;  %v11574_v25 = vpop.permute.xlu0 %778  ;;  %v8745_v33 = vpack.c.bf16 %v3472_v44, %v3470_v48  ;;  %v11584_v51 = vadd.f32 %v15169_v52, %v15166_v29  ;;  %v2639_v0 = vadd.f32 %v11367_v43, %v11565_v18  ;;  %v15171_v48 = vld [vmem:[#allocation24_spill] sm:$0xff] }
 0x3ff   :  { %15163 = vst [vmem:[#allocation181_spill] sm:$0xff] %v11572_v27  ;;  %15164 = vst [vmem:[#allocation21_spill] sm:$0xff] %v11574_v25  ;;  %v2640_v44 = vadd.f32 %v11367_v43, %v11569_v12  ;;  %v15175_v25 = vld [vmem:[#allocation27_spill] sm:$0xff] }
 0x400   :  { %9574 = vset.pattern.permute.xlu1 %v14840_v9  ;;  %8746 = vmatprep.subr.bf16.mxu0 %v8745_v33  ;;  %15168 = vst [vmem:[#allocation104_spill] sm:$0xff] %v11580_v17  ;;  %15170 = vst [vmem:[#allocation106_spill] sm:$0xff] %v11584_v51  ;;  %v2767_v32 = vmax.f32 %v2639_v0, 0.0 }
 0x401   :  { %2474 = vperm.xlu1 %9574, %v15165_v41   ;;  %8748 = vmatpush1.bf16.msra.mxu0 %v8747_v58  ;;  %v2768_v29 = vmax.f32 %v2640_v44, 0.0  ;;  %v15178_v44 = vld [vmem:[#allocation31_spill] sm:$0xff] }
 0x402   :  { %3768 = vperm.xlu0 %9660, %v15171_v48   ;;  %v11591_v45 = vpop.permute.xlu0 %2489 }
 0x403   :  { %15172 = vst [vmem:[#allocation22_spill] sm:$0xff] %v11591_v45  ;;  %v2405_v13 = vpop.permute.xlu1 %2404 }
 0x404   :  { %v2641_v58 = vadd.f32 %v2405_v13, %v11580_v17  ;;  %v2642_v33 = vadd.f32 %v2405_v13, %v11584_v51 }
 0x405   :  { %9575 = vset.pattern.permute.xlu1 %v14822_v20 }
 0x406   :  { %v2769_v52 = vmax.f32 %v2641_v58, 0.0  ;;  %v2770_v27 = vmax.f32 %v2642_v33, 0.0  ;;  %3772 = vperm.xlu0 %9660, %v15173_v3   ;;  %3202 = vperm.xlu1 %9575, %v15165_v41   ;;  %v11598_v43 = vpop.permute.xlu0 %788  ;;  %v15180_v33 = vld [vmem:[#allocation87_spill] sm:$0xff] }
 0x407   :  { %15174 = vst [vmem:[#allocation15_spill] sm:$0xff] %v11598_v43 }
 0x408   :  { %v8623_v60 = vpack.c.bf16 %v2769_v52, %v2767_v32  ;;  %v3147_v5 = vpop.permute.xlu1 %3146  ;;  %v8621_v45 = vpack.c.bf16 %v2770_v27, %v2768_v29  ;;  %v15181_v29 = vld [vmem:[#allocation113_spill] sm:$0xff] }
 0x409   :  { %v3347_v27 = vadd.f32 %v3147_v5, %v11580_v17  ;;  %v3348_v32 = vadd.f32 %v3147_v5, %v11584_v51 }
 0x40a   :  { %3784 = vperm.xlu0 %9660, %v15175_v25   ;;  %9576 = vset.pattern.permute.xlu1 %v14858_v57  ;;  %v11602_v13 = vpop.permute.xlu0 %2499 }
 0x40b   :  { %15176 = vst [vmem:[#allocation109_spill] sm:$0xff] %v11602_v13  ;;  %8622 = vmatprep.subr.bf16.mxu1 %v8621_v45  ;;  %3892 = vperm.xlu1 %9576, %v15045_v7   ;;  %v11616_v45 = vadd.f32 %v15181_v29, %v11388_v56  ;;  %v3475_v5 = vmax.f32 %v3347_v27, 0.0  ;;  %v3476_v17 = vmax.f32 %v3348_v32, 0.0  ;;  %v15192_v27 = vld [vmem:[#allocation39_spill] sm:$0xff] }
 0x40c   :  { %8624 = vmatpush1.bf16.msra.mxu1 %v8623_v60  ;;  %v15183_v60 = vld [vmem:[#allocation115_spill] sm:$0xff] }
 0x40d   :  { %v11605_v0 = vpop.permute.xlu1 %3840  ;;  %15182 = vst [vmem:[#allocation113_spill] sm:$0xff] %v11616_v45  ;;  %v11620_v52 = vadd.f32 %v15183_v60, %v11388_v56  ;;  %v15188_v56 = vld [vmem:[#allocation118_spill] sm:$0xff] }
 0x40e   :  { %15177 = vst [vmem:[#allocation111_spill] sm:$0xff] %v11605_v0  ;;  %3788 = vperm.xlu0 %9660, %v15178_v44   ;;  %v11608_v58 = vpop.permute.xlu0 %798  ;;  %v15185_v0 = vld [vmem:[#allocation33_spill] sm:$0xff]  ;;  %v15187_v44 = vld [vmem:[#allocation16_spill] sm:$0xff] }
 0x40f   :  { %15179 = vst [vmem:[#allocation24_spill] sm:$0xff] %v11608_v58  ;;  %9577 = vset.pattern.permute.xlu1 %v14840_v9  ;;  %15184 = vst [vmem:[#allocation115_spill] sm:$0xff] %v11620_v52  ;;  %v11631_v60 = vadd.f32 %v15188_v56, %v15187_v44 }
 0x410   :  { %2484 = vperm.xlu1 %9577, %v15180_v33  }
 0x411   :  { %15189 = vst [vmem:[#allocation16_spill] sm:$0xff] %v11631_v60 }
 0x412   :  { %3800 = vperm.xlu0 %9660, %v15185_v0   ;;  %v3143_v7 = vpop.permute.xlu1 %3142  ;;  %v11623_v58 = vpop.permute.xlu0 %2509  ;;  %v15190_v0 = vld [vmem:[#allocation120_spill] sm:$0xff] }
 0x413   :  { %15186 = vst [vmem:[#allocation254_spill] sm:$0xff] %v11623_v58  ;;  %v3345_v13 = vadd.f32 %v3143_v7, %v11565_v18  ;;  %v3346_v43 = vadd.f32 %v3143_v7, %v11569_v12  ;;  %v11635_v25 = vadd.f32 %v15190_v0, %v15187_v44  ;;  %v2643_v18 = vadd.f32 %v11399_v26, %v11616_v45 }
 0x414   :  { %9578 = vset.pattern.permute.xlu1 %v14822_v20  ;;  %v2644_v7 = vadd.f32 %v11399_v26, %v11620_v52 }
 0x415   :  { %v3473_v51 = vmax.f32 %v3345_v13, 0.0  ;;  %v3474_v29 = vmax.f32 %v3346_v43, 0.0  ;;  %3210 = vperm.xlu1 %9578, %v15180_v33   ;;  %15191 = vst [vmem:[#allocation118_spill] sm:$0xff] %v11635_v25  ;;  %v2771_v0 = vmax.f32 %v2643_v18, 0.0 }
 0x416   :  { %3804 = vperm.xlu0 %9660, %v15192_v27   ;;  %v11642_v13 = vpop.permute.xlu0 %808  ;;  %v2772_v44 = vmax.f32 %v2644_v7, 0.0 }
 0x417   :  { %v8751_v43 = vpack.c.bf16 %v3475_v5, %v3473_v51  ;;  %v2415_v32 = vpop.permute.xlu1 %2414  ;;  %v8749_v12 = vpack.c.bf16 %v3476_v17, %v3474_v29  ;;  %v15193_v17 = vld [vmem:[#allocation186_spill] sm:$0xff] }
 0x418   :  { %v2645_v56 = vadd.f32 %v2415_v32, %v11631_v60  ;;  %v2646_v58 = vadd.f32 %v2415_v32, %v11635_v25  ;;  %v3349_v51 = vadd.f32 %v15193_v17, %v11616_v45  ;;  %v3350_v5 = vadd.f32 %v15193_v17, %v11620_v52  ;;  %v15214_v52 = vld [vmem:[#allocation20_spill] sm:$0xff] }
 0x419   :  { %9579 = vset.pattern.permute.xlu1 %v14858_v57  ;;  %8750 = vmatprep.subr.bf16.mxu0 %v8749_v12 }
 0x41a   :  { %v2773_v28 = vmax.f32 %v2645_v56, 0.0  ;;  %v2774_v3 = vmax.f32 %v2646_v58, 0.0  ;;  %3816 = vperm.xlu0 %9660, %v10437_v47   ;;  %3904 = vperm.xlu1 %9579, %v15180_v33   ;;  %v11649_v26 = vpop.permute.xlu0 %2519  ;;  %v3478_v17 = vmax.f32 %v3350_v5, 0.0  ;;  %v15199_v5 = vld [vmem:[#allocation92_spill] sm:$0xff] }
 0x41b   :  { %8752 = vmatpush1.bf16.msra.mxu0 %v8751_v43  ;;  %v3477_v43 = vmax.f32 %v3349_v51, 0.0 }
 0x41c   :  { %v8627_v29 = vpack.c.bf16 %v2773_v28, %v2771_v0  ;;  %v3155_v32 = vpop.permute.xlu1 %3154  ;;  %v8625_v12 = vpack.c.bf16 %v2774_v3, %v2772_v44  ;;  %v15194_v3 = vld [vmem:[#allocation122_spill] sm:$0xff]  ;;  %v15196_v0 = vld [vmem:[#allocation124_spill] sm:$0xff] }
 0x41d   :  { %v3351_v18 = vadd.f32 %v3155_v32, %v11631_v60  ;;  %v3352_v58 = vadd.f32 %v3155_v32, %v11635_v25  ;;  %v11664_v28 = vadd.f32 %v15194_v3, %v11406_v34  ;;  %v11668_v44 = vadd.f32 %v15196_v0, %v11406_v34  ;;  %v15203_v34 = vld [vmem:[#allocation129_spill] sm:$0xff]  ;;  %v15217_v25 = vld [vmem:[#allocation135_spill] sm:$0xff] }
 0x41e   :  { %3820 = vperm.xlu0 %9660, %v10453_v22   ;;  %9580 = vset.pattern.permute.xlu1 %v14822_v20  ;;  %v11659_v7 = vpop.permute.xlu0 %818 }
 0x41f   :  { %v3479_v56 = vmax.f32 %v3351_v18, 0.0  ;;  %v3480_v33 = vmax.f32 %v3352_v58, 0.0  ;;  %8626 = vmatprep.subr.bf16.mxu1 %v8625_v12  ;;  %3206 = vperm.xlu1 %9580, %v15056_v49   ;;  %15195 = vst [vmem:[#allocation120_spill] sm:$0xff] %v11664_v28  ;;  %15197 = vst [vmem:[#allocation39_spill] sm:$0xff] %v11668_v44  ;;  %v15201_v12 = vld [vmem:[#allocation127_spill] sm:$0xff] }
 0x420   :  { %8628 = vmatpush1.bf16.msra.mxu1 %v8627_v29  ;;  %v15200_v29 = vld [vmem:[#allocation17_spill] sm:$0xff] }
 0x421   :  { %v8755_v32 = vpack.c.bf16 %v3479_v56, %v3477_v43  ;;  %v11670_v45 = vpop.permute.xlu1 %3844  ;;  %v8753_v60 = vpack.c.bf16 %v3480_v33, %v3478_v17  ;;  %v11679_v18 = vadd.f32 %v15201_v12, %v15200_v29  ;;  %v11683_v58 = vadd.f32 %v15203_v34, %v15200_v29 }
 0x422   :  { %15198 = vst [vmem:[#allocation186_spill] sm:$0xff] %v11670_v45  ;;  %3832 = vperm.xlu0 %9660, %v15051_v11   ;;  %v11674_v51 = vpop.permute.xlu0 %2529  ;;  %v2647_v33 = vadd.f32 %v11420_v21, %v11664_v28  ;;  %v2648_v43 = vadd.f32 %v11420_v21, %v11668_v44 }
 0x423   :  { %9581 = vset.pattern.permute.xlu1 %v14840_v9  ;;  %8754 = vmatprep.subr.bf16.mxu0 %v8753_v60  ;;  %15202 = vst [vmem:[#allocation122_spill] sm:$0xff] %v11679_v18  ;;  %15204 = vst [vmem:[#allocation124_spill] sm:$0xff] %v11683_v58 }
 0x424   :  { %2494 = vperm.xlu1 %9581, %v15199_v5   ;;  %8756 = vmatpush1.bf16.msra.mxu0 %v8755_v32  ;;  %v2775_v3 = vmax.f32 %v2647_v33, 0.0  ;;  %v2776_v0 = vmax.f32 %v2648_v43, 0.0 }
 0x426   :  { %3836 = vperm.xlu0 %9660, %v10480_v62   ;;  %v2425_v60 = vpop.permute.xlu1 %2424  ;;  %v11694_v12 = vpop.permute.xlu0 %828 }
 0x427   :  { %v2649_v56 = vadd.f32 %v2425_v60, %v11679_v18  ;;  %v2650_v17 = vadd.f32 %v2425_v60, %v11683_v58  ;;  %15205 = vst [vmem:[#allocation92_spill] sm:$0xff] %v11694_v12  ;;  %v15208_v60 = vld [vmem:[#allocation96_spill] sm:$0xff] }
 0x428   :  { %9582 = vset.pattern.permute.xlu1 %v14822_v20 }
 0x429   :  { %v2777_v32 = vmax.f32 %v2649_v56, 0.0  ;;  %v2778_v29 = vmax.f32 %v2650_v17, 0.0  ;;  %3218 = vperm.xlu1 %9582, %v15199_v5   ;;  %v15209_v17 = vld [vmem:[#allocation132_spill] sm:$0xff] }
 0x42a   :  { %3848 = vperm.xlu0 %9660, %v15082_v63   ;;  %v11700_v33 = vpop.permute.xlu0 %2539 }
 0x42b   :  { %v8631_v21 = vpack.c.bf16 %v2777_v32, %v2775_v3  ;;  %v3163_v34 = vpop.permute.xlu1 %3162  ;;  %v8629_v45 = vpack.c.bf16 %v2778_v29, %v2776_v0  ;;  %15206 = vst [vmem:[#allocation17_spill] sm:$0xff] %v11700_v33  ;;  %v11712_v3 = vadd.f32 %v15209_v17, %v11432_v15  ;;  %v15211_v0 = vld [vmem:[#allocation133_spill] sm:$0xff] }
 0x42c   :  { %v3355_v56 = vadd.f32 %v3163_v34, %v11679_v18  ;;  %v11716_v32 = vadd.f32 %v15211_v0, %v11432_v15  ;;  %v15215_v15 = vld [vmem:[#allocation134_spill] sm:$0xff] }
 0x42d   :  { %9583 = vset.pattern.permute.xlu1 %v14858_v57  ;;  %8630 = vmatprep.subr.bf16.mxu1 %v8629_v45  ;;  %v3356_v45 = vadd.f32 %v3163_v34, %v11683_v58  ;;  %15210 = vst [vmem:[#allocation129_spill] sm:$0xff] %v11712_v3  ;;  %v11727_v0 = vadd.f32 %v15215_v15, %v15214_v52 }
 0x42e   :  { %3852 = vperm.xlu0 %9660, %v15104_v38   ;;  %3908 = vperm.xlu1 %9583, %v15067_v24   ;;  %15212 = vst [vmem:[#allocation132_spill] sm:$0xff] %v11716_v32  ;;  %v3483_v34 = vmax.f32 %v3355_v56, 0.0 }
 0x42f   :  { %8632 = vmatpush1.bf16.msra.mxu1 %v8631_v21  ;;  %v11718_v21 = vpop.permute.xlu0 %838  ;;  %v3484_v18 = vmax.f32 %v3356_v45, 0.0  ;;  %15216 = vst [vmem:[#allocation20_spill] sm:$0xff] %v11727_v0 }
 0x430   :  { %v11702_v43 = vpop.permute.xlu1 %3856  ;;  %15213 = vst [vmem:[#allocation133_spill] sm:$0xff] %v11718_v21  ;;  %v11731_v21 = vadd.f32 %v15217_v25, %v15214_v52 }
 0x431   :  { %15207 = vst [vmem:[#allocation127_spill] sm:$0xff] %v11702_v43 }
 0x432   :  { %3864 = vperm.xlu0 %9660, %v15111_v6   ;;  %9584 = vset.pattern.permute.xlu1 %v14840_v9  ;;  %15218 = vst [vmem:[#allocation134_spill] sm:$0xff] %v11731_v21 }
 0x433   :  { %2504 = vperm.xlu1 %9584, %v15208_v60   ;;  %2919 = vmatmul.mubr.f32.vlgmr.msra.gmra.mrb[128].mxu1 %v11392_v40 }
 0x435   :  { %v3159_v29 = vpop.permute.xlu1 %3158 }
 0x436   :  { %v3353_v24 = vadd.f32 %v3159_v29, %v11664_v28  ;;  %v3354_v43 = vadd.f32 %v3159_v29, %v11668_v44  ;;  %3868 = vperm.xlu0 %9660, %v10524_v2   ;;  %v2651_v29 = vadd.f32 %v11448_v61, %v11712_v3  ;;  %v2652_v28 = vadd.f32 %v11448_v61, %v11716_v32  ;;  %v11740_v44 = vpop.permute.xlu0 %2549  ;;  %v15219_v61 = vld [vmem:[#allocation191_spill] sm:$0xff] }
 0x437   :  { %9585 = vset.pattern.permute.xlu1 %v14822_v20 }
 0x438   :  { %v3481_v58 = vmax.f32 %v3353_v24, 0.0  ;;  %v3482_v17 = vmax.f32 %v3354_v43, 0.0  ;;  %3226 = vperm.xlu1 %9585, %v15208_v60   ;;  %v2779_v25 = vmax.f32 %v2651_v29, 0.0  ;;  %v2780_v52 = vmax.f32 %v2652_v28, 0.0 }
 0x43a   :  { %v8759_v56 = vpack.c.bf16 %v3483_v34, %v3481_v58  ;;  %3880 = vperm.xlu0 %9660, %v15134_v59   ;;  %v2435_v24 = vpop.permute.xlu1 %2434  ;;  %v8757_v43 = vpack.c.bf16 %v3484_v18, %v3482_v17  ;;  %v3357_v18 = vadd.f32 %v15219_v61, %v11712_v3  ;;  %v3358_v58 = vadd.f32 %v15219_v61, %v11716_v32  ;;  %v11753_v29 = vpop.permute.xlu0 %848 }
 0x43b   :  { %v2653_v45 = vadd.f32 %v2435_v24, %v11727_v0  ;;  %v2654_v15 = vadd.f32 %v2435_v24, %v11731_v21 }
 0x43c   :  { %9586 = vset.pattern.permute.xlu1 %v14858_v57  ;;  %8758 = vmatprep.subr.bf16.mxu0 %v8757_v43 }
 0x43d   :  { %v2781_v33 = vmax.f32 %v2653_v45, 0.0  ;;  %v2782_v12 = vmax.f32 %v2654_v15, 0.0  ;;  %3920 = vperm.xlu1 %9586, %v15208_v60   ;;  %8760 = vmatpush1.bf16.msra.mxu0 %v8759_v56  ;;  %v3485_v56 = vmax.f32 %v3357_v18, 0.0 }
 0x43e   :  { %3884 = vperm.xlu0 %9660, %v15038_v36  }
 0x43f   :  { %v8635_v34 = vpack.c.bf16 %v2781_v33, %v2779_v25  ;;  %v3171_v17 = vpop.permute.xlu1 %3170  ;;  %v8633_v24 = vpack.c.bf16 %v2782_v12, %v2780_v52  ;;  %v3486_v33 = vmax.f32 %v3358_v58, 0.0  ;;  %v15220_v12 = vld [vmem:[#allocation136_spill] sm:$0xff]  ;;  %v15226_v58 = vld [vmem:[#allocation23_spill] sm:$0xff] }
 0x440   :  { %v3359_v43 = vadd.f32 %v3171_v17, %v11727_v0  ;;  %v3360_v28 = vadd.f32 %v3171_v17, %v11731_v21  ;;  %3614 = vmatmul.mubr.f32.vlgmr.msra.gmra.mrb[70].mxu0 %v11392_v40  ;;  %v11759_v25 = vadd.f32 %v15220_v12, %v11457_v42  ;;  %v15222_v40 = vld [vmem:[#allocation137_spill] sm:$0xff]  ;;  %v15239_v0 = vld [vmem:[#allocation110_spill] sm:$0xff] }
 0x441   :  { %9587 = vset.pattern.permute.xlu1 %v14822_v20  ;;  %8634 = vmatprep.subr.bf16.mxu1 %v8633_v24  ;;  %v11763_v52 = vadd.f32 %v15222_v40, %v11457_v42  ;;  %v15225_v24 = vld [vmem:[#allocation101_spill] sm:$0xff] }
 0x442   :  { %v3487_v45 = vmax.f32 %v3359_v43, 0.0  ;;  %v3488_v15 = vmax.f32 %v3360_v28, 0.0  ;;  %3896 = vperm.xlu0 %9660, %v15165_v41   ;;  %3222 = vperm.xlu1 %9587, %v15075_v30   ;;  %15221 = vst [vmem:[#allocation135_spill] sm:$0xff] %v11759_v25  ;;  %v15229_v28 = vld [vmem:[#allocation139_spill] sm:$0xff]  ;;  %v2655_v42 = vadd.f32 %v11472_v31, %v11759_v25 }
 0x443   :  { %8636 = vmatpush1.bf16.msra.mxu1 %v8635_v34  ;;  %15223 = vst [vmem:[#allocation191_spill] sm:$0xff] %v11763_v52  ;;  %v15227_v34 = vld [vmem:[#allocation138_spill] sm:$0xff]  ;;  %v11776_v12 = vadd.f32 %v15229_v28, %v15226_v58 }
 0x444   :  { %v8763_v61 = vpack.c.bf16 %v3487_v45, %v3485_v56  ;;  %v11765_v17 = vpop.permute.xlu1 %3860  ;;  %v8761_v18 = vpack.c.bf16 %v3488_v15, %v3486_v33  ;;  %v11772_v43 = vadd.f32 %v15227_v34, %v15226_v58  ;;  %v2656_v56 = vadd.f32 %v11472_v31, %v11763_v52  ;;  %v11782_v45 = vpop.permute.xlu0 %2559 }
 0x445   :  { %15224 = vst [vmem:[#allocation136_spill] sm:$0xff] %v11765_v17  ;;  %15230 = vst [vmem:[#allocation23_spill] sm:$0xff] %v11776_v12  ;;  %v15240_v17 = vld [vmem:[#allocation26_spill] sm:$0xff] }
 0x446   :  { %3900 = vperm.xlu0 %9660, %v15056_v49   ;;  %9588 = vset.pattern.permute.xlu1 %v14840_v9  ;;  %15228 = vst [vmem:[#allocation137_spill] sm:$0xff] %v11772_v43  ;;  %v2784_v58 = vmax.f32 %v2656_v56, 0.0 }
 0x447   :  { %8762 = vmatprep.subr.bf16.mxu0 %v8761_v18  ;;  %2514 = vperm.xlu1 %9588, %v15225_v24   ;;  %v2783_v18 = vmax.f32 %v2655_v42, 0.0 }
 0x448   :  { %8764 = vmatpush1.bf16.msra.mxu0 %v8763_v61  ;;  %v11789_v60 = vpop.permute.xlu0 %858 }
 0x449   :  { %v2445_v15 = vpop.permute.xlu1 %2444 }
 0x44a   :  { %v2657_v33 = vadd.f32 %v2445_v15, %v11772_v43  ;;  %v2658_v40 = vadd.f32 %v2445_v15, %v11776_v12  ;;  %3912 = vperm.xlu0 %9660, %v15199_v5   ;;  %v15233_v15 = vld [vmem:[#allocation105_spill] sm:$0xff] }
 0x44b   :  { %9589 = vset.pattern.permute.xlu1 %v14822_v20 }
 0x44c   :  { %v2785_v34 = vmax.f32 %v2657_v33, 0.0  ;;  %v2786_v28 = vmax.f32 %v2658_v40, 0.0  ;;  %3234 = vperm.xlu1 %9589, %v15225_v24   ;;  %v11797_v56 = vpop.permute.xlu0 %2569 }
 0x44d   :  { %15232 = vst [vmem:[#allocation139_spill] sm:$0xff] %v11797_v56 }
 0x44e   :  { %v8639_v31 = vpack.c.bf16 %v2785_v34, %v2783_v18  ;;  %3916 = vperm.xlu0 %9660, %v15075_v30   ;;  %v3179_v61 = vpop.permute.xlu1 %3178  ;;  %v8637_v3 = vpack.c.bf16 %v2786_v28, %v2784_v58  ;;  %v15236_v58 = vld [vmem:[#allocation143_spill] sm:$0xff] }
 0x44f   :  { %v3363_v33 = vadd.f32 %v3179_v61, %v11772_v43  ;;  %v3364_v40 = vadd.f32 %v3179_v61, %v11776_v12  ;;  %v11810_v34 = vadd.f32 %v15236_v58, %v11483_v10 }
 0x450   :  { %9590 = vset.pattern.permute.xlu1 %v14858_v57  ;;  %8638 = vmatprep.subr.bf16.mxu1 %v8637_v3  ;;  %v15234_v3 = vld [vmem:[#allocation141_spill] sm:$0xff] }
 0x451   :  { %3924 = vperm.xlu1 %9590, %v15081_v1   ;;  %8640 = vmatpush1.bf16.msra.mxu1 %v8639_v31  ;;  %v11806_v18 = vadd.f32 %v15234_v3, %v11483_v10  ;;  %15237 = vst [vmem:[#allocation143_spill] sm:$0xff] %v11810_v34  ;;  %v3491_v61 = vmax.f32 %v3363_v33, 0.0  ;;  %v3492_v43 = vmax.f32 %v3364_v40, 0.0  ;;  %v15241_v10 = vld [vmem:[#allocation145_spill] sm:$0xff] }
 0x452   :  { %3928 = vperm.xlu0 %9660, %v15225_v24   ;;  %v11821_v58 = vadd.f32 %v15241_v10, %v15240_v17 }
 0x453   :  { %v11795_v42 = vpop.permute.xlu1 %3872  ;;  %15235 = vst [vmem:[#allocation141_spill] sm:$0xff] %v11806_v18 }
 0x454   :  { %15231 = vst [vmem:[#allocation138_spill] sm:$0xff] %v11795_v42  ;;  %v11814_v42 = vpop.permute.xlu0 %868  ;;  %15242 = vst [vmem:[#allocation26_spill] sm:$0xff] %v11821_v58 }
 0x455   :  { %9591 = vset.pattern.permute.xlu1 %v14840_v9  ;;  %15238 = vst [vmem:[#allocation255_spill] sm:$0xff] %v11814_v42 }
 0x456   :  { %3932 = vperm.xlu0 %9660, %v15084_v54   ;;  %2524 = vperm.xlu1 %9591, %v15233_v15  }
 0x458   :  { %v3175_v28 = vpop.permute.xlu1 %3174  ;;  %v11835_v10 = vpop.permute.xlu0 %2579 }
 0x459   :  { %v3361_v31 = vadd.f32 %v3175_v28, %v11759_v25  ;;  %v3362_v1 = vadd.f32 %v3175_v28, %v11763_v52  ;;  %v15243_v25 = vld [vmem:[#allocation146_spill] sm:$0xff]  ;;  %v2659_v28 = vadd.f32 %v11497_v35, %v11806_v18  ;;  %v2660_v52 = vadd.f32 %v11497_v35, %v11810_v34  ;;  %v15245_v35 = vld [vmem:[#allocation196_spill] sm:$0xff] }
 0x45a   :  { %3944 = vperm.xlu0 %9660, %v15239_v0   ;;  %9592 = vset.pattern.permute.xlu1 %v14822_v20  ;;  %v11825_v32 = vadd.f32 %v15243_v25, %v15240_v17 }
 0x45b   :  { %v3489_v12 = vmax.f32 %v3361_v31, 0.0  ;;  %v3490_v3 = vmax.f32 %v3362_v1, 0.0  ;;  %3242 = vperm.xlu1 %9592, %v15233_v15   ;;  %v2787_v25 = vmax.f32 %v2659_v28, 0.0  ;;  %v2788_v17 = vmax.f32 %v2660_v52, 0.0 }
 0x45c   :  { %15244 = vst [vmem:[#allocation145_spill] sm:$0xff] %v11825_v32 }
 0x45d   :  { %v8767_v33 = vpack.c.bf16 %v3491_v61, %v3489_v12  ;;  %v2455_v40 = vpop.permute.xlu1 %2454  ;;  %v8765_v31 = vpack.c.bf16 %v3492_v43, %v3490_v3  ;;  %v3365_v43 = vadd.f32 %v15245_v35, %v11806_v18  ;;  %v3366_v12 = vadd.f32 %v15245_v35, %v11810_v34  ;;  %v15246_v3 = vld [vmem:[#allocation119_spill] sm:$0xff]  ;;  %v11847_v35 = vpop.permute.xlu0 %4538 }
 0x45e   :  { %v2661_v1 = vadd.f32 %v2455_v40, %v11821_v58  ;;  %v2662_v21 = vadd.f32 %v2455_v40, %v11825_v32  ;;  %3948 = vperm.xlu0 %9660, %v15093_v8   ;;  %15247 = vst [vmem:[#allocation146_spill] sm:$0xff] %v11847_v35 }
 0x45f   :  { %9593 = vset.pattern.permute.xlu1 %v14858_v57  ;;  %8766 = vmatprep.subr.bf16.mxu0 %v8765_v31 }
 0x460   :  { %v2789_v42 = vmax.f32 %v2661_v1, 0.0  ;;  %v2790_v56 = vmax.f32 %v2662_v21, 0.0  ;;  %3936 = vperm.xlu1 %9593, %v15233_v15   ;;  %8768 = vmatpush1.bf16.msra.mxu0 %v8767_v33  ;;  %v3493_v21 = vmax.f32 %v3365_v43, 0.0  ;;  %v3494_v15 = vmax.f32 %v3366_v12, 0.0  ;;  %v15253_v12 = vld [vmem:[#allocation128_spill] sm:$0xff] }
 0x462   :  { %v8643_v61 = vpack.c.bf16 %v2789_v42, %v2787_v25  ;;  %3960 = vperm.xlu0 %9660, %v15246_v3   ;;  %v3187_v40 = vpop.permute.xlu1 %3186  ;;  %v8641_v31 = vpack.c.bf16 %v2790_v56, %v2788_v17  ;;  %v15248_v42 = vld [vmem:[#allocation148_spill] sm:$0xff]  ;;  %v15250_v25 = vld [vmem:[#allocation149_spill] sm:$0xff] }
 0x463   :  { %v3367_v52 = vadd.f32 %v3187_v40, %v11821_v58  ;;  %v3368_v28 = vadd.f32 %v3187_v40, %v11825_v32  ;;  %v11852_v56 = vadd.f32 %v15248_v42, %v11501_v39  ;;  %v11856_v17 = vadd.f32 %v15250_v25, %v11501_v39  ;;  %v15257_v42 = vld [vmem:[#allocation152_spill] sm:$0xff] }
 0x464   :  { %9594 = vset.pattern.permute.xlu1 %v14822_v20  ;;  %8642 = vmatprep.subr.bf16.mxu1 %v8641_v31 }
 0x465   :  { %v3495_v33 = vmax.f32 %v3367_v52, 0.0  ;;  %v3496_v1 = vmax.f32 %v3368_v28, 0.0  ;;  %3238 = vperm.xlu1 %9594, %v15084_v54   ;;  %8644 = vmatpush1.bf16.msra.mxu1 %v8643_v61  ;;  %15249 = vst [vmem:[#allocation196_spill] sm:$0xff] %v11852_v56  ;;  %15251 = vst [vmem:[#allocation148_spill] sm:$0xff] %v11856_v17  ;;  %v15254_v61 = vld [vmem:[#allocation32_spill] sm:$0xff]  ;;  %v15255_v52 = vld [vmem:[#allocation151_spill] sm:$0xff]  ;;  %v2663_v39 = vadd.f32 %v11508_v4, %v11852_v56 }
 0x466   :  { %3964 = vperm.xlu0 %9660, %v15112_v37   ;;  %v11865_v28 = vadd.f32 %v15255_v52, %v15254_v61  ;;  %v11869_v35 = vadd.f32 %v15257_v42, %v15254_v61 }
 0x467   :  { %v8771_v40 = vpack.c.bf16 %v3495_v33, %v3493_v21  ;;  %v11858_v43 = vpop.permute.xlu1 %3876  ;;  %v8769_v31 = vpack.c.bf16 %v3496_v1, %v3494_v15  ;;  %v2664_v15 = vadd.f32 %v11508_v4, %v11856_v17  ;;  %v11875_v21 = vpop.permute.xlu0 %4554 }
 0x468   :  { %15252 = vst [vmem:[#allocation149_spill] sm:$0xff] %v11858_v43  ;;  %15256 = vst [vmem:[#allocation32_spill] sm:$0xff] %v11865_v28 }
 0x469   :  { %9595 = vset.pattern.permute.xlu1 %v14840_v9  ;;  %8770 = vmatprep.subr.bf16.mxu0 %v8769_v31  ;;  %15258 = vst [vmem:[#allocation151_spill] sm:$0xff] %v11869_v35  ;;  %15259 = vst [vmem:[#allocation152_spill] sm:$0xff] %v11875_v21  ;;  %v2791_v31 = vmax.f32 %v2663_v39, 0.0  ;;  %v2792_v61 = vmax.f32 %v2664_v15, 0.0  ;;  %v15262_v15 = vmov 4  }
 0x46a   :  { %3976 = vperm.xlu0 %9660, %v15253_v12   ;;  %2534 = vperm.xlu1 %9595, %v15239_v0  }
 0x46b   :  { %8772 = vmatpush1.bf16.msra.mxu0 %v8771_v40  ;;  %v11882_v58 = vpop.permute.xlu0 %4570 }
 0x46c   :  { %v2465_v33 = vpop.permute.xlu1 %2464  ;;  %15260 = vst [vmem:[#allocation256_spill] sm:$0xff] %v11882_v58  ;;  %v15267_v58 = vld [vmem:[#allocation153_spill] sm:$0xff] }
 0x46d   :  { %v2665_v1 = vadd.f32 %v2465_v33, %v11865_v28  ;;  %v2666_v25 = vadd.f32 %v2465_v33, %v11869_v35 }
 0x46e   :  { %3980 = vperm.xlu0 %9660, %v15121_v53   ;;  %9596 = vset.pattern.permute.xlu1 %v14822_v20 }
 0x46f   :  { %v2793_v52 = vmax.f32 %v2665_v1, 0.0  ;;  %v2794_v42 = vmax.f32 %v2666_v25, 0.0  ;;  %3250 = vperm.xlu1 %9596, %v15239_v0   ;;  %v11891_v33 = vpop.permute.xlu0 %4586  ;;  %v15264_v1 = vld [vmem:[#allocation18_spill] sm:$0xff] }
 0x470   :  { %15263 = vst [vmem:[#allocation258_spill] sm:$0xff] %v11891_v33  ;;  %v15265_v25 = vld [vmem:[#allocation114_spill] sm:$0xff] }
 0x471   :  { %v8647_v18 = vpack.c.bf16 %v2793_v52, %v2791_v31  ;;  %v3195_v4 = vpop.permute.xlu1 %3194  ;;  %v8645_v40 = vpack.c.bf16 %v2794_v42, %v2792_v61 }
 0x472   :  { %9665 = vset.pattern.permute.xlu0 %v15127_v50  ;;  %v3371_v31 = vadd.f32 %v3195_v4, %v11865_v28  ;;  %v3372_v61 = vadd.f32 %v3195_v4, %v11869_v35 }
 0x473   :  { %4666 = vperm.xlu0 %9665, %v15114_v55   ;;  %9597 = vset.pattern.permute.xlu1 %v14858_v57 }
 0x474   :  { %8646 = vmatprep.subr.bf16.mxu1 %v8645_v40  ;;  %3940 = vperm.xlu1 %9597, %v15086_v19   ;;  %v15266_v40 = vld [vmem:[#allocation93_spill] sm:$0xff]  ;;  %v11910_v19 = vpop.permute.xlu0 %4602  ;;  %v3499_v4 = vmax.f32 %v3371_v31, 0.0  ;;  %v3500_v28 = vmax.f32 %v3372_v61, 0.0 }
 0x475   :  { %8648 = vmatpush1.bf16.msra.mxu1 %v8647_v18  ;;  %v11903_v33 = vadd.f32 %v15267_v58, %v15266_v40  ;;  %15271 = vst [vmem:[#allocation153_spill] sm:$0xff] %v11910_v19  ;;  %v15275_v58 = vld [vmem:[#allocation157_spill] sm:$0xff] }
 0x476   :  { %v11888_v39 = vpop.permute.xlu1 %3888 }
 0x477   :  { %15261 = vst [vmem:[#allocation257_spill] sm:$0xff] %v11888_v39  ;;  %9666 = vset.pattern.permute.xlu0 %v15262_v15  ;;  %15268 = vst [vmem:[#allocation18_spill] sm:$0xff] %v11903_v33 }
 0x478   :  { %5124 = vperm.xlu0 %9666, %v15264_v1   ;;  %9598 = vset.pattern.permute.xlu1 %v14840_v9  ;;  %v15269_v1 = vld [vmem:[#allocation154_spill] sm:$0xff] }
 0x479   :  { %2544 = vperm.xlu1 %9598, %v15265_v25   ;;  %v11907_v21 = vadd.f32 %v15269_v1, %v15266_v40  ;;  %v15277_v40 = vld [vmem:[#allocation95_spill] sm:$0xff] }
 0x47a   :  { %v2667_v1 = vadd.f32 %v15277_v40, %v11903_v33 }
 0x47b   :  { %v3191_v52 = vpop.permute.xlu1 %3190  ;;  %15270 = vst [vmem:[#allocation93_spill] sm:$0xff] %v11907_v21  ;;  %v2668_v19 = vadd.f32 %v15277_v40, %v11907_v21  ;;  %v11930_v40 = vpop.permute.xlu0 %4618 }
 0x47c   :  { %v3369_v42 = vadd.f32 %v3191_v52, %v11852_v56  ;;  %v3370_v18 = vadd.f32 %v3191_v52, %v11856_v17  ;;  %5128 = vperm.xlu0 %9666, %v15154_v23   ;;  %v15272_v52 = vld [vmem:[#allocation40_spill] sm:$0xff] }
 0x47d   :  { %9599 = vset.pattern.permute.xlu1 %v14822_v20  ;;  %v15273_v23 = vld [vmem:[#allocation156_spill] sm:$0xff]  ;;  %v11919_v17 = vadd.f32 %v15275_v58, %v15272_v52  ;;  %v2796_v58 = vmax.f32 %v2668_v19, 0.0 }
 0x47e   :  { %v3497_v39 = vmax.f32 %v3369_v42, 0.0  ;;  %v3498_v56 = vmax.f32 %v3370_v18, 0.0  ;;  %3258 = vperm.xlu1 %9599, %v15265_v25   ;;  %v11915_v35 = vadd.f32 %v15273_v23, %v15272_v52  ;;  %v2795_v52 = vmax.f32 %v2667_v1, 0.0  ;;  %15278 = vst [vmem:[#allocation156_spill] sm:$0xff] %v11930_v40 }
 0x47f   :  { %15276 = vst [vmem:[#allocation40_spill] sm:$0xff] %v11919_v17 }
 0x480   :  { %15274 = vst [vmem:[#allocation154_spill] sm:$0xff] %v11915_v35  ;;  %v8775_v31 = vpack.c.bf16 %v3499_v4, %v3497_v39  ;;  %5140 = vperm.xlu0 %9666, %v15156_v14   ;;  %v2475_v61 = vpop.permute.xlu1 %2474  ;;  %v8773_v42 = vpack.c.bf16 %v3500_v28, %v3498_v56  ;;  %v15279_v14 = vld [vmem:[#allocation200_spill] sm:$0xff] }
 0x481   :  { %v2669_v18 = vadd.f32 %v2475_v61, %v11915_v35  ;;  %v2670_v23 = vadd.f32 %v2475_v61, %v11919_v17  ;;  %v3373_v56 = vadd.f32 %v15279_v14, %v11903_v33  ;;  %v3374_v61 = vadd.f32 %v15279_v14, %v11907_v21 }
 0x482   :  { %9600 = vset.pattern.permute.xlu1 %v14858_v57  ;;  %8774 = vmatprep.subr.bf16.mxu0 %v8773_v42 }
 0x483   :  { %v2797_v43 = vmax.f32 %v2669_v18, 0.0  ;;  %v2798_v34 = vmax.f32 %v2670_v23, 0.0  ;;  %3952 = vperm.xlu1 %9600, %v15265_v25   ;;  %8776 = vmatpush1.bf16.msra.mxu0 %v8775_v31  ;;  %v3501_v31 = vmax.f32 %v3373_v56, 0.0  ;;  %v15282_v23 = vld [vmem:[#allocation161_spill] sm:$0xff] }
 0x484   :  { %5144 = vperm.xlu0 %9666, %v15162_v16  }
 0x485   :  { %v8651_v28 = vpack.c.bf16 %v2797_v43, %v2795_v52  ;;  %v3203_v39 = vpop.permute.xlu1 %3202  ;;  %v8649_v4 = vpack.c.bf16 %v2798_v34, %v2796_v58  ;;  %v3502_v43 = vmax.f32 %v3374_v61, 0.0  ;;  %v15280_v34 = vld [vmem:[#allocation160_spill] sm:$0xff]  ;;  %v11948_v52 = vadd.f32 %v15282_v23, %v11549_v46  ;;  %v11950_v58 = vpop.permute.xlu0 %4634 }
 0x486   :  { %v3375_v19 = vadd.f32 %v3203_v39, %v11915_v35  ;;  %v3376_v1 = vadd.f32 %v3203_v39, %v11919_v17  ;;  %v11944_v18 = vadd.f32 %v15280_v34, %v11549_v46  ;;  %15284 = vst [vmem:[#allocation200_spill] sm:$0xff] %v11950_v58  ;;  %v15290_v46 = vld [vmem:[#allocation164_spill] sm:$0xff] }
 0x487   :  { %9601 = vset.pattern.permute.xlu1 %v14822_v20  ;;  %8650 = vmatprep.subr.bf16.mxu1 %v8649_v4  ;;  %15283 = vst [vmem:[#allocation95_spill] sm:$0xff] %v11948_v52  ;;  %v15288_v4 = vld [vmem:[#allocation162_spill] sm:$0xff] }
 0x488   :  { %v3503_v42 = vmax.f32 %v3375_v19, 0.0  ;;  %5156 = vperm.xlu0 %9666, %v15171_v48   ;;  %3254 = vperm.xlu1 %9601, %v15093_v8   ;;  %v3504_v16 = vmax.f32 %v3376_v1, 0.0  ;;  %15281 = vst [vmem:[#allocation157_spill] sm:$0xff] %v11944_v18  ;;  %v15286_v48 = vld [vmem:[#allocation25_spill] sm:$0xff]  ;;  %v15292_v1 = vld [vmem:[#allocation100_spill] sm:$0xff] }
 0x489   :  { %8652 = vmatpush1.bf16.msra.mxu1 %v8651_v28  ;;  %v15287_v28 = vld [vmem:[#allocation47_spill] sm:$0xff] }
 0x48a   :  { %v8779_v14 = vpack.c.bf16 %v3503_v42, %v3501_v31  ;;  %v11952_v56 = vpop.permute.xlu1 %3892  ;;  %v8777_v39 = vpack.c.bf16 %v3504_v16, %v3502_v43  ;;  %v11959_v61 = vadd.f32 %v15288_v4, %v15287_v28  ;;  %v11963_v19 = vadd.f32 %v15290_v46, %v15287_v28  ;;  %v11969_v43 = vpop.permute.xlu0 %4650 }
 0x48b   :  { %15285 = vst [vmem:[#allocation160_spill] sm:$0xff] %v11952_v56  ;;  %v2671_v31 = vadd.f32 %v15292_v1, %v11944_v18  ;;  %v2672_v42 = vadd.f32 %v15292_v1, %v11948_v52  ;;  %15293 = vst [vmem:[#allocation47_spill] sm:$0xff] %v11969_v43  ;;  %v15295_v1 = vld [vmem:[#allocation31_spill] sm:$0xff] }
 0x48c   :  { %5160 = vperm.xlu0 %9666, %v15286_v48   ;;  %9602 = vset.pattern.permute.xlu1 %v14840_v9  ;;  %15289 = vst [vmem:[#allocation161_spill] sm:$0xff] %v11959_v61  ;;  %15291 = vst [vmem:[#allocation25_spill] sm:$0xff] %v11963_v19 }
 0x48d   :  { %8778 = vmatprep.subr.bf16.mxu0 %v8777_v39  ;;  %2554 = vperm.xlu1 %9602, %v15246_v3   ;;  %v15294_v39 = vld [vmem:[#allocation27_spill] sm:$0xff]  ;;  %v2799_v48 = vmax.f32 %v2671_v31, 0.0  ;;  %v2800_v28 = vmax.f32 %v2672_v42, 0.0 }
 0x48e   :  { %8780 = vmatpush1.bf16.msra.mxu0 %v8779_v14  ;;  %v11977_v43 = vpop.permute.xlu0 %3736 }
 0x48f   :  { %v2485_v16 = vpop.permute.xlu1 %2484 }
 0x490   :  { %v2673_v34 = vadd.f32 %v2485_v16, %v11959_v61  ;;  %v2674_v23 = vadd.f32 %v2485_v16, %v11963_v19  ;;  %5172 = vperm.xlu0 %9666, %v15294_v39   ;;  %v15296_v16 = vld [vmem:[#allocation121_spill] sm:$0xff] }
 0x491   :  { %9603 = vset.pattern.permute.xlu1 %v14822_v20  ;;  %v15297_v39 = vld [vmem:[#allocation33_spill] sm:$0xff] }
 0x492   :  { %v2801_v4 = vmax.f32 %v2673_v34, 0.0  ;;  %v2802_v46 = vmax.f32 %v2674_v23, 0.0  ;;  %3266 = vperm.xlu1 %9603, %v15246_v3   ;;  %v11985_v42 = vpop.permute.xlu0 %3740  ;;  %v15299_v34 = vld [vmem:[#allocation123_spill] sm:$0xff] }
 0x494   :  { %v8655_v58 = vpack.c.bf16 %v2801_v4, %v2799_v48  ;;  %5176 = vperm.xlu0 %9666, %v15295_v1   ;;  %v3211_v14 = vpop.permute.xlu1 %3210  ;;  %v8653_v40 = vpack.c.bf16 %v2802_v46, %v2800_v28  ;;  %v15300_v4 = vld [vmem:[#allocation21_spill] sm:$0xff] }
 0x495   :  { %v3379_v23 = vadd.f32 %v3211_v14, %v11959_v61  ;;  %v3380_v48 = vadd.f32 %v3211_v14, %v11963_v19  ;;  %v15301_v46 = vld [vmem:[#allocation165_spill] sm:$0xff] }
 0x496   :  { %9604 = vset.pattern.permute.xlu1 %v14858_v57  ;;  %8654 = vmatprep.subr.bf16.mxu1 %v8653_v40  ;;  %v11995_v1 = vadd.f32 %v15301_v46, %v15300_v4  ;;  %v15308_v46 = vld [vmem:[#allocation170_spill] sm:$0xff] }
 0x497   :  { %3956 = vperm.xlu1 %9604, %v15296_v16   ;;  %8656 = vmatpush1.bf16.msra.mxu1 %v8655_v58  ;;  %v15303_v16 = vld [vmem:[#allocation167_spill] sm:$0xff]  ;;  %v3507_v61 = vmax.f32 %v3379_v23, 0.0  ;;  %v12016_v23 = vpop.permute.xlu0 %3752 }
 0x498   :  { %5188 = vperm.xlu0 %9666, %v15297_v39   ;;  %15302 = vst [vmem:[#allocation164_spill] sm:$0xff] %v11995_v1  ;;  %v11999_v25 = vadd.f32 %v15303_v16, %v15300_v4  ;;  %v15310_v16 = vld [vmem:[#allocation22_spill] sm:$0xff] }
 0x499   :  { %v11982_v31 = vpop.permute.xlu1 %3904  ;;  %v2675_v4 = vadd.f32 %v15310_v16, %v11995_v1 }
 0x49a   :  { %15298 = vst [vmem:[#allocation162_spill] sm:$0xff] %v11982_v31  ;;  %15304 = vst [vmem:[#allocation100_spill] sm:$0xff] %v11999_v25  ;;  %v3508_v31 = vmax.f32 %v3380_v48, 0.0  ;;  %v2676_v35 = vadd.f32 %v15310_v16, %v11999_v25 }
 0x49b   :  { %9605 = vset.pattern.permute.xlu1 %v14840_v9 }
 0x49c   :  { %5192 = vperm.xlu0 %9666, %v15192_v27   ;;  %2564 = vperm.xlu1 %9605, %v15299_v34  }
 0x49e   :  { %v3207_v40 = vpop.permute.xlu1 %3206 }
 0x49f   :  { %v3377_v28 = vadd.f32 %v3207_v40, %v11944_v18  ;;  %v3378_v58 = vadd.f32 %v3207_v40, %v11948_v52  ;;  %v15305_v18 = vld [vmem:[#allocation55_spill] sm:$0xff]  ;;  %v15306_v40 = vld [vmem:[#allocation169_spill] sm:$0xff] }
 0x4a0   :  { %5204 = vperm.xlu0 %9666, %v10437_v47   ;;  %9606 = vset.pattern.permute.xlu1 %v14822_v20  ;;  %v12006_v33 = vadd.f32 %v15306_v40, %v15305_v18  ;;  %v12010_v52 = vadd.f32 %v15308_v46, %v15305_v18  ;;  %v2803_v18 = vmax.f32 %v2675_v4, 0.0  ;;  %v2804_v46 = vmax.f32 %v2676_v35, 0.0 }
 0x4a1   :  { %v3505_v14 = vmax.f32 %v3377_v28, 0.0  ;;  %v3506_v19 = vmax.f32 %v3378_v58, 0.0  ;;  %3274 = vperm.xlu1 %9606, %v15299_v34  }
 0x4a2   :  { %15307 = vst [vmem:[#allocation27_spill] sm:$0xff] %v12006_v33  ;;  %15309 = vst [vmem:[#allocation31_spill] sm:$0xff] %v12010_v52 }
 0x4a3   :  { %v8783_v48 = vpack.c.bf16 %v3507_v61, %v3505_v14  ;;  %v2495_v28 = vpop.permute.xlu1 %2494  ;;  %v8781_v58 = vpack.c.bf16 %v3508_v31, %v3506_v19  ;;  %v15311_v61 = vld [vmem:[#allocation206_spill] sm:$0xff]  ;;  %v12027_v31 = vpop.permute.xlu0 %3756 }
 0x4a4   :  { %v2677_v56 = vadd.f32 %v2495_v28, %v12006_v33  ;;  %v2678_v40 = vadd.f32 %v2495_v28, %v12010_v52  ;;  %5208 = vperm.xlu0 %9666, %v10453_v22   ;;  %v3381_v14 = vadd.f32 %v15311_v61, %v11995_v1  ;;  %v3382_v19 = vadd.f32 %v15311_v61, %v11999_v25 }
 0x4a5   :  { %9607 = vset.pattern.permute.xlu1 %v14858_v57  ;;  %8782 = vmatprep.subr.bf16.mxu0 %v8781_v58 }
 0x4a6   :  { %v2805_v21 = vmax.f32 %v2677_v56, 0.0  ;;  %v2806_v17 = vmax.f32 %v2678_v40, 0.0  ;;  %3968 = vperm.xlu1 %9607, %v15299_v34   ;;  %8784 = vmatpush1.bf16.msra.mxu0 %v8783_v48  ;;  %v3509_v4 = vmax.f32 %v3381_v14, 0.0  ;;  %v3510_v61 = vmax.f32 %v3382_v19, 0.0  ;;  %v15318_v19 = vld [vmem:[#allocation64_spill] sm:$0xff] }
 0x4a8   :  { %v8659_v16 = vpack.c.bf16 %v2805_v21, %v2803_v18  ;;  %5220 = vperm.xlu0 %9666, %v15051_v11   ;;  %v3219_v28 = vpop.permute.xlu1 %3218  ;;  %v8657_v58 = vpack.c.bf16 %v2806_v17, %v2804_v46  ;;  %v15312_v21 = vld [vmem:[#allocation15_spill] sm:$0xff]  ;;  %v15315_v17 = vld [vmem:[#allocation172_spill] sm:$0xff] }
 0x4a9   :  { %v3383_v35 = vadd.f32 %v3219_v28, %v12006_v33  ;;  %v3384_v56 = vadd.f32 %v3219_v28, %v12010_v52  ;;  %v15313_v18 = vld [vmem:[#allocation171_spill] sm:$0xff]  ;;  %v12041_v46 = vadd.f32 %v15315_v17, %v15312_v21 }
 0x4aa   :  { %9608 = vset.pattern.permute.xlu1 %v14822_v20  ;;  %8658 = vmatprep.subr.bf16.mxu1 %v8657_v58  ;;  %v12037_v34 = vadd.f32 %v15313_v18, %v15312_v21  ;;  %v12045_v58 = vpop.permute.xlu0 %3768  ;;  %v15335_v52 = vld [vmem:[#allocation179_spill] sm:$0xff] }
 0x4ab   :  { %v3511_v48 = vmax.f32 %v3383_v35, 0.0  ;;  %v3512_v40 = vmax.f32 %v3384_v56, 0.0  ;;  %3270 = vperm.xlu1 %9608, %v15112_v37   ;;  %8660 = vmatpush1.bf16.msra.mxu1 %v8659_v16  ;;  %15316 = vst [vmem:[#allocation21_spill] sm:$0xff] %v12041_v46  ;;  %v15319_v16 = vld [vmem:[#allocation174_spill] sm:$0xff]  ;;  %v15321_v56 = vld [vmem:[#allocation175_spill] sm:$0xff] }
 0x4ac   :  { %5224 = vperm.xlu0 %9666, %v10480_v62   ;;  %15314 = vst [vmem:[#allocation33_spill] sm:$0xff] %v12037_v34  ;;  %v12052_v35 = vadd.f32 %v15319_v16, %v15318_v19  ;;  %v12056_v21 = vadd.f32 %v15321_v56, %v15318_v19 }
 0x4ad   :  { %v8787_v28 = vpack.c.bf16 %v3511_v48, %v3509_v4  ;;  %v12043_v1 = vpop.permute.xlu1 %3908  ;;  %v8785_v14 = vpack.c.bf16 %v3512_v40, %v3510_v61  ;;  %v15323_v4 = vld [vmem:[#allocation109_spill] sm:$0xff] }
 0x4ae   :  { %15317 = vst [vmem:[#allocation165_spill] sm:$0xff] %v12043_v1  ;;  %15320 = vst [vmem:[#allocation167_spill] sm:$0xff] %v12052_v35  ;;  %v2679_v48 = vadd.f32 %v15323_v4, %v12037_v34  ;;  %v2680_v40 = vadd.f32 %v15323_v4, %v12041_v46 }
 0x4af   :  { %9609 = vset.pattern.permute.xlu1 %v14840_v9  ;;  %8786 = vmatprep.subr.bf16.mxu0 %v8785_v14  ;;  %15322 = vst [vmem:[#allocation55_spill] sm:$0xff] %v12056_v21  ;;  %v12064_v14 = vpop.permute.xlu0 %3772 }
 0x4b0   :  { %5236 = vperm.xlu0 %9666, %v15082_v63   ;;  %2574 = vperm.xlu1 %9609, %v15253_v12   ;;  %15324 = vst [vmem:[#allocation169_spill] sm:$0xff] %v12064_v14  ;;  %v2807_v19 = vmax.f32 %v2679_v48, 0.0  ;;  %v2808_v16 = vmax.f32 %v2680_v40, 0.0  ;;  %v15327_v40 = vld [vmem:[#allocation231_spill] sm:$0xff] }
 0x4b1   :  { %8788 = vmatpush1.bf16.msra.mxu0 %v8787_v28 }
 0x4b2   :  { %v2505_v61 = vpop.permute.xlu1 %2504 }
 0x4b3   :  { %v2681_v18 = vadd.f32 %v2505_v61, %v12052_v35  ;;  %v2682_v17 = vadd.f32 %v2505_v61, %v12056_v21  ;;  %v12071_v61 = vpop.permute.xlu0 %3784 }
 0x4b4   :  { %5240 = vperm.xlu0 %9666, %v15104_v38   ;;  %9610 = vset.pattern.permute.xlu1 %v14822_v20  ;;  %15325 = vst [vmem:[#allocation170_spill] sm:$0xff] %v12071_v61 }
 0x4b5   :  { %v2809_v56 = vmax.f32 %v2681_v18, 0.0  ;;  %v2810_v33 = vmax.f32 %v2682_v17, 0.0  ;;  %3282 = vperm.xlu1 %9610, %v15253_v12  }
 0x4b7   :  { %v8663_v1 = vpack.c.bf16 %v2809_v56, %v2807_v19  ;;  %v3227_v4 = vpop.permute.xlu1 %3226  ;;  %v8661_v28 = vpack.c.bf16 %v2810_v33, %v2808_v16  ;;  %v12079_v18 = vpop.permute.xlu0 %3788  ;;  %v15330_v56 = vld [vmem:[#allocation177_spill] sm:$0xff] }
 0x4b8   :  { %5252 = vperm.xlu0 %9666, %v15111_v6   ;;  %15328 = vst [vmem:[#allocation206_spill] sm:$0xff] %v12079_v18  ;;  %v3387_v33 = vadd.f32 %v3227_v4, %v12052_v35  ;;  %v3388_v17 = vadd.f32 %v3227_v4, %v12056_v21  ;;  %v15334_v35 = vld [vmem:[#allocation72_spill] sm:$0xff]  ;;  %v15339_v18 = vld [vmem:[#allocation29_spill] sm:$0xff] }
 0x4b9   :  { %9611 = vset.pattern.permute.xlu1 %v14858_v57  ;;  %8662 = vmatprep.subr.bf16.mxu1 %v8661_v28  ;;  %v12097_v32 = vadd.f32 %v15335_v52, %v15334_v35  ;;  %v15337_v4 = vld [vmem:[#allocation180_spill] sm:$0xff] }
 0x4ba   :  { %3972 = vperm.xlu1 %9611, %v15114_v55   ;;  %8664 = vmatpush1.bf16.msra.mxu1 %v8663_v1  ;;  %v15329_v1 = vld [vmem:[#allocation24_spill] sm:$0xff]  ;;  %v15332_v55 = vld [vmem:[#allocation178_spill] sm:$0xff]  ;;  %v3515_v21 = vmax.f32 %v3387_v33, 0.0 }
 0x4bb   :  { %v12087_v28 = vadd.f32 %v15330_v56, %v15329_v1  ;;  %15336 = vst [vmem:[#allocation172_spill] sm:$0xff] %v12097_v32  ;;  %v12109_v61 = vpop.permute.xlu0 %3800 }
 0x4bc   :  { %5256 = vperm.xlu0 %9666, %v10524_v2   ;;  %v12075_v48 = vpop.permute.xlu1 %3920  ;;  %15341 = vst [vmem:[#allocation174_spill] sm:$0xff] %v12109_v61 }
 0x4bd   :  { %15326 = vst [vmem:[#allocation22_spill] sm:$0xff] %v12075_v48  ;;  %15331 = vst [vmem:[#allocation15_spill] sm:$0xff] %v12087_v28  ;;  %v12091_v48 = vadd.f32 %v15332_v55, %v15329_v1  ;;  %v15340_v55 = vld [vmem:[#allocation254_spill] sm:$0xff] }
 0x4be   :  { %9612 = vset.pattern.permute.xlu1 %v14840_v9 }
 0x4bf   :  { %2584 = vperm.xlu1 %9612, %v15327_v40   ;;  %15333 = vst [vmem:[#allocation171_spill] sm:$0xff] %v12091_v48  ;;  %v2684_v1 = vadd.f32 %v15340_v55, %v12091_v48 }
 0x4c0   :  { %5268 = vperm.xlu0 %9666, %v15134_v59  }
 0x4c1   :  { %v3223_v19 = vpop.permute.xlu1 %3222 }
 0x4c2   :  { %v3385_v16 = vadd.f32 %v3223_v19, %v12037_v34  ;;  %v3386_v25 = vadd.f32 %v3223_v19, %v12041_v46  ;;  %v12101_v34 = vadd.f32 %v15337_v4, %v15334_v35  ;;  %v2683_v19 = vadd.f32 %v15340_v55, %v12087_v28  ;;  %v12114_v4 = vld [vmem:[%s11372_s12 + $0x8] sm:$0x77] }
 0x4c3   :  { %9613 = vset.pattern.permute.xlu1 %v15262_v15  ;;  %v3516_v46 = vmax.f32 %v3388_v17, 0.0  ;;  %v2812_v17 = vmax.f32 %v2684_v1, 0.0 }
 0x4c4   :  { %15338 = vst [vmem:[#allocation64_spill] sm:$0xff] %v12101_v34  ;;  %v3513_v56 = vmax.f32 %v3385_v16, 0.0  ;;  %5272 = vperm.xlu0 %9666, %v15038_v36   ;;  %5180 = vperm.xlu1 %9613, %v15339_v18   ;;  %v3514_v52 = vmax.f32 %v3386_v25, 0.0  ;;  %v12120_v18 = vcombine.high %v12114_v4, %v12114_v4  ;;  %v2811_v25 = vmax.f32 %v2683_v19, 0.0  ;;  %v12129_v19 = vpop.permute.xlu0 %3804 }
 0x4c6   :  { %v8791_v14 = vpack.c.bf16 %v3515_v21, %v3513_v56  ;;  %v2515_v59 = vpop.permute.xlu1 %2514  ;;  %v8789_v16 = vpack.c.bf16 %v3516_v46, %v3514_v52  ;;  %15342 = vst [vmem:[#allocation175_spill] sm:$0xff] %v12120_v18  ;;  %2989 = vmatprep.mubr.f32.mxu1 %v12120_v18  ;;  %3684 = vmatprep.mubr.f32.mxu0 %v12120_v18 }
 0x4c7   :  { %v2685_v35 = vadd.f32 %v2515_v59, %v12097_v32  ;;  %v2686_v33 = vadd.f32 %v2515_v59, %v12101_v34  ;;  %v15343_v59 = vld [vmem:[#allocation210_spill] sm:$0xff] }
 0x4c8   :  { %5284 = vperm.xlu0 %9666, %v15165_v41   ;;  %9615 = vset.pattern.permute.xlu1 %v15127_v50  ;;  %v3389_v46 = vadd.f32 %v15343_v59, %v12087_v28  ;;  %v3390_v56 = vadd.f32 %v15343_v59, %v12091_v48 }
 0x4c9   :  { %v2813_v55 = vmax.f32 %v2685_v35, 0.0  ;;  %v2814_v21 = vmax.f32 %v2686_v33, 0.0  ;;  %8790 = vmatprep.subr.bf16.mxu0 %v8789_v16  ;;  %4494 = vperm.xlu1 %9615, %v15297_v39   ;;  %v15344_v16 = vld [vmem:[#allocation35_spill] sm:$0xff] }
 0x4ca   :  { %8792 = vmatpush1.bf16.msra.mxu0 %v8791_v14  ;;  %v3517_v14 = vmax.f32 %v3389_v46, 0.0  ;;  %v12147_v46 = vpop.permute.xlu0 %3816 }
 0x4cb   :  { %v8667_v52 = vpack.c.bf16 %v2813_v55, %v2811_v25  ;;  %v3235_v41 = vpop.permute.xlu1 %3234  ;;  %v8665_v61 = vpack.c.bf16 %v2814_v21, %v2812_v17  ;;  %v3518_v25 = vmax.f32 %v3390_v56, 0.0  ;;  %v15345_v17 = vld [vmem:[#allocation182_spill] sm:$0xff]  ;;  %v15350_v56 = vld [vmem:[#allocation81_spill] sm:$0xff] }
 0x4cc   :  { %v3391_v1 = vadd.f32 %v3235_v41, %v12097_v32  ;;  %v3392_v39 = vadd.f32 %v3235_v41, %v12101_v34  ;;  %5288 = vperm.xlu0 %9666, %v15056_v49   ;;  %v12138_v55 = vadd.f32 %v15345_v17, %v11642_v13  ;;  %v15453_v34 = vld [vmem:[#allocation238_spill] sm:$0xff] }
 0x4cd   :  { %8666 = vmatprep.subr.bf16.mxu1 %v8665_v61  ;;  %9616 = vset.pattern.permute.xlu1 %v15262_v15  ;;  %v15348_v61 = vld [vmem:[#allocation183_spill] sm:$0xff] }
 0x4ce   :  { %v3519_v35 = vmax.f32 %v3391_v1, 0.0  ;;  %v3520_v33 = vmax.f32 %v3392_v39, 0.0  ;;  %8668 = vmatpush1.bf16.msra.mxu1 %v8667_v52  ;;  %5184 = vperm.xlu1 %9616, %v15344_v16   ;;  %15346 = vst [vmem:[#allocation109_spill] sm:$0xff] %v12138_v55  ;;  %v12145_v32 = vadd.f32 %v15348_v61, %v11642_v13  ;;  %v15351_v52 = vld [vmem:[#allocation185_spill] sm:$0xff]  ;;  %v2687_v39 = vadd.f32 %v11649_v26, %v12138_v55  ;;  %v15353_v13 = vld [vmem:[#allocation187_spill] sm:$0xff] }
 0x4cf   :  { %v12153_v1 = vadd.f32 %v15351_v52, %v15350_v56 }
 0x4d0   :  { %v8795_v21 = vpack.c.bf16 %v3519_v35, %v3517_v14  ;;  %5300 = vperm.xlu0 %9666, %v15199_v5   ;;  %v12141_v41 = vpop.permute.xlu1 %3924  ;;  %v8793_v59 = vpack.c.bf16 %v3520_v33, %v3518_v25  ;;  %15349 = vst [vmem:[#allocation177_spill] sm:$0xff] %v12145_v32  ;;  %v12160_v14 = vadd.f32 %v15353_v13, %v15350_v56  ;;  %v15355_v25 = vld [vmem:[#allocation37_spill] sm:$0xff]  ;;  %v2815_v17 = vmax.f32 %v2687_v39, 0.0 }
 0x4d1   :  { %15347 = vst [vmem:[#allocation24_spill] sm:$0xff] %v12141_v41  ;;  %15352 = vst [vmem:[#allocation178_spill] sm:$0xff] %v12153_v1  ;;  %v2688_v35 = vadd.f32 %v11649_v26, %v12145_v32 }
 0x4d2   :  { %8794 = vmatprep.subr.bf16.mxu0 %v8793_v59  ;;  %9617 = vset.pattern.permute.xlu1 %v15127_v50  ;;  %15354 = vst [vmem:[#allocation72_spill] sm:$0xff] %v12160_v14 }
 0x4d3   :  { %8796 = vmatpush1.bf16.msra.mxu0 %v8795_v21  ;;  %4498 = vperm.xlu1 %9617, %v15192_v27   ;;  %v12167_v21 = vpop.permute.xlu0 %3820  ;;  %v2816_v61 = vmax.f32 %v2688_v35, 0.0 }
 0x4d4   :  { %5304 = vperm.xlu0 %9666, %v15075_v30  }
 0x4d5   :  { %v2525_v33 = vpop.permute.xlu1 %2524 }
 0x4d6   :  { %v2689_v16 = vadd.f32 %v2525_v33, %v12153_v1  ;;  %v2690_v27 = vadd.f32 %v2525_v33, %v12160_v14 }
 0x4d7   :  { %4502 = vperm.xlu1 %9617, %v15355_v25   ;;  %v12173_v33 = vpop.permute.xlu0 %3832 }
 0x4d8   :  { %v2817_v59 = vmax.f32 %v2689_v16, 0.0  ;;  %5316 = vperm.xlu0 %9666, %v15225_v24   ;;  %v2818_v52 = vmax.f32 %v2690_v27, 0.0  ;;  %v15468_v24 = vld [vmem:[#allocation248_spill] sm:$0xff] }
 0x4da   :  { %v8671_v56 = vpack.c.bf16 %v2817_v59, %v2815_v17  ;;  %v3243_v13 = vpop.permute.xlu1 %3242  ;;  %v8669_v26 = vpack.c.bf16 %v2818_v52, %v2816_v61  ;;  %v15357_v61 = vld [vmem:[#allocation189_spill] sm:$0xff] }
 0x4db   :  { %9618 = vset.pattern.permute.xlu1 %v15262_v15  ;;  %v3395_v35 = vadd.f32 %v3243_v13, %v12153_v1  ;;  %v3396_v16 = vadd.f32 %v3243_v13, %v12160_v14  ;;  %v12182_v27 = vpop.permute.xlu0 %3836  ;;  %v12190_v52 = vadd.f32 %v15357_v61, %v11659_v7  ;;  %v15361_v13 = vld [vmem:[#allocation43_spill] sm:$0xff]  ;;  %v15450_v14 = vld [vmem:[#allocation240_spill] sm:$0xff] }
 0x4dc   :  { %5320 = vperm.xlu0 %9666, %v15084_v54   ;;  %5196 = vperm.xlu1 %9618, %v15355_v25   ;;  %v15362_v54 = vld [vmem:[#allocation90_spill] sm:$0xff] }
 0x4dd   :  { %8670 = vmatprep.subr.bf16.mxu1 %v8669_v26  ;;  %15358 = vst [vmem:[#allocation180_spill] sm:$0xff] %v12190_v52  ;;  %v3523_v26 = vmax.f32 %v3395_v35, 0.0  ;;  %v2691_v61 = vadd.f32 %v11674_v51, %v12190_v52 }
 0x4de   :  { %8672 = vmatpush1.bf16.msra.mxu1 %v8671_v56 }
 0x4df   :  { %v12175_v39 = vpop.permute.xlu1 %3936 }
 0x4e0   :  { %15356 = vst [vmem:[#allocation179_spill] sm:$0xff] %v12175_v39  ;;  %5332 = vperm.xlu0 %9666, %v15239_v0   ;;  %9619 = vset.pattern.permute.xlu1 %v15127_v50  ;;  %v3524_v0 = vmax.f32 %v3396_v16, 0.0 }
 0x4e1   :  { %4510 = vperm.xlu1 %9619, %v10437_v47   ;;  %v15359_v47 = vld [vmem:[#allocation190_spill] sm:$0xff] }
 0x4e2   :  { %v12194_v56 = vadd.f32 %v15359_v47, %v11659_v7 }
 0x4e4   :  { %5336 = vperm.xlu0 %9666, %v15093_v8   ;;  %v3239_v25 = vpop.permute.xlu1 %3238  ;;  %15360 = vst [vmem:[#allocation29_spill] sm:$0xff] %v12194_v56  ;;  %v2692_v7 = vadd.f32 %v11674_v51, %v12194_v56 }
 0x4e5   :  { %v3393_v17 = vadd.f32 %v3239_v25, %v12138_v55  ;;  %v3394_v59 = vadd.f32 %v3239_v25, %v12145_v32  ;;  %9620 = vset.pattern.permute.xlu1 %v15262_v15  ;;  %v15363_v55 = vld [vmem:[#allocation192_spill] sm:$0xff]  ;;  %v15365_v25 = vld [vmem:[#allocation194_spill] sm:$0xff] }
 0x4e6   :  { %5200 = vperm.xlu1 %9620, %v15361_v13   ;;  %v12199_v39 = vadd.f32 %v15363_v55, %v15362_v54  ;;  %v12203_v32 = vadd.f32 %v15365_v25, %v15362_v54  ;;  %v2819_v54 = vmax.f32 %v2691_v61, 0.0  ;;  %v2820_v13 = vmax.f32 %v2692_v7, 0.0  ;;  %v15368_v61 = vld [vmem:[#allocation45_spill] sm:$0xff] }
 0x4e7   :  { %v3521_v8 = vmax.f32 %v3393_v17, 0.0  ;;  %v3522_v1 = vmax.f32 %v3394_v59, 0.0  ;;  %v12210_v59 = vpop.permute.xlu0 %3848 }
 0x4e8   :  { %15364 = vst [vmem:[#allocation254_spill] sm:$0xff] %v12199_v39  ;;  %15366 = vst [vmem:[#allocation210_spill] sm:$0xff] %v12203_v32  ;;  %5348 = vperm.xlu0 %9666, %v15246_v3  }
 0x4e9   :  { %v8799_v35 = vpack.c.bf16 %v3523_v26, %v3521_v8  ;;  %v2535_v16 = vpop.permute.xlu1 %2534  ;;  %v8797_v17 = vpack.c.bf16 %v3524_v0, %v3522_v1  ;;  %v15367_v8 = vld [vmem:[#allocation216_spill] sm:$0xff] }
 0x4ea   :  { %v2693_v55 = vadd.f32 %v2535_v16, %v12199_v39  ;;  %v2694_v47 = vadd.f32 %v2535_v16, %v12203_v32  ;;  %9621 = vset.pattern.permute.xlu1 %v15127_v50  ;;  %v3397_v0 = vadd.f32 %v15367_v8, %v12190_v52  ;;  %v3398_v1 = vadd.f32 %v15367_v8, %v12194_v56  ;;  %v15369_v8 = vld [vmem:[#allocation92_spill] sm:$0xff] }
 0x4eb   :  { %8798 = vmatprep.subr.bf16.mxu0 %v8797_v17  ;;  %4514 = vperm.xlu1 %9621, %v10453_v22   ;;  %v12224_v7 = vpop.permute.xlu0 %3852 }
 0x4ec   :  { %v2821_v25 = vmax.f32 %v2693_v55, 0.0  ;;  %v2822_v51 = vmax.f32 %v2694_v47, 0.0  ;;  %5352 = vperm.xlu0 %9666, %v15112_v37   ;;  %8800 = vmatpush1.bf16.msra.mxu0 %v8799_v35  ;;  %v3525_v35 = vmax.f32 %v3397_v0, 0.0  ;;  %v3526_v37 = vmax.f32 %v3398_v1, 0.0  ;;  %v15375_v0 = vld [vmem:[#allocation99_spill] sm:$0xff]  ;;  %v15376_v1 = vld [vmem:[#allocation198_spill] sm:$0xff] }
 0x4ee   :  { %v8675_v26 = vpack.c.bf16 %v2821_v25, %v2819_v54  ;;  %v3251_v16 = vpop.permute.xlu1 %3250  ;;  %v8673_v3 = vpack.c.bf16 %v2822_v51, %v2820_v13  ;;  %v15370_v54 = vld [vmem:[#allocation195_spill] sm:$0xff]  ;;  %v15372_v13 = vld [vmem:[#allocation197_spill] sm:$0xff] }
 0x4ef   :  { %v3399_v17 = vadd.f32 %v3251_v16, %v12199_v39  ;;  %v3400_v22 = vadd.f32 %v3251_v16, %v12203_v32  ;;  %4518 = vperm.xlu1 %9621, %v15368_v61   ;;  %v12229_v25 = vadd.f32 %v15370_v54, %v15369_v8  ;;  %v12233_v51 = vadd.f32 %v15372_v13, %v15369_v8 }
 0x4f0   :  { %5364 = vperm.xlu0 %9666, %v15253_v12   ;;  %8674 = vmatprep.subr.bf16.mxu1 %v8673_v3  ;;  %v12240_v3 = vpop.permute.xlu0 %3864 }
 0x4f1   :  { %v3527_v55 = vmax.f32 %v3399_v17, 0.0  ;;  %v3528_v47 = vmax.f32 %v3400_v22, 0.0  ;;  %8676 = vmatpush1.bf16.msra.mxu1 %v8675_v26  ;;  %15371 = vst [vmem:[#allocation35_spill] sm:$0xff] %v12229_v25  ;;  %15373 = vst [vmem:[#allocation182_spill] sm:$0xff] %v12233_v51  ;;  %v12244_v26 = vadd.f32 %v15376_v1, %v15375_v0  ;;  %v15378_v17 = vld [vmem:[#allocation199_spill] sm:$0xff] }
 0x4f2   :  { %v12248_v22 = vadd.f32 %v15378_v17, %v15375_v0 }
 0x4f3   :  { %v8803_v16 = vpack.c.bf16 %v3527_v55, %v3525_v35  ;;  %v12235_v52 = vpop.permute.xlu1 %3940  ;;  %9622 = vset.pattern.permute.xlu1 %v15262_v15  ;;  %v8801_v12 = vpack.c.bf16 %v3528_v47, %v3526_v37  ;;  %15377 = vst [vmem:[#allocation81_spill] sm:$0xff] %v12244_v26  ;;  %v15380_v35 = vld [vmem:[#allocation17_spill] sm:$0xff] }
 0x4f4   :  { %15374 = vst [vmem:[#allocation183_spill] sm:$0xff] %v12235_v52  ;;  %5368 = vperm.xlu0 %9666, %v15121_v53   ;;  %5212 = vperm.xlu1 %9622, %v15368_v61   ;;  %15379 = vst [vmem:[#allocation185_spill] sm:$0xff] %v12248_v22  ;;  %v2695_v55 = vadd.f32 %v15380_v35, %v12229_v25  ;;  %v2696_v37 = vadd.f32 %v15380_v35, %v12233_v51  ;;  %v12259_v0 = vpop.permute.xlu0 %3868 }
 0x4f5   :  { %8802 = vmatprep.subr.bf16.mxu0 %v8801_v12 }
 0x4f6   :  { %8804 = vmatpush1.bf16.msra.mxu0 %v8803_v16  ;;  %v2823_v8 = vmax.f32 %v2695_v55, 0.0  ;;  %v2824_v54 = vmax.f32 %v2696_v37, 0.0 }
 0x4f8   :  { %v2545_v47 = vpop.permute.xlu1 %2544  ;;  %9624 = vset.pattern.permute.xlu1 %v15127_v50  ;;  %9671 = vset.pattern.permute.xlu0 %v14840_v9  ;;  %v12263_v9 = vpop.permute.xlu0 %3880 }
 0x4f9   :  { %v2697_v12 = vadd.f32 %v2545_v47, %v12244_v26  ;;  %v2698_v61 = vadd.f32 %v2545_v47, %v12248_v22  ;;  %4526 = vperm.xlu1 %9624, %v15051_v11  }
 0x4fb   :  { %v2825_v13 = vmax.f32 %v2697_v12, 0.0  ;;  %v2826_v16 = vmax.f32 %v2698_v61, 0.0 }
 0x4fc   :  { %v12272_v12 = vpop.permute.xlu0 %3884 }
 0x4fd   :  { %v8679_v1 = vpack.c.bf16 %v2825_v13, %v2823_v8  ;;  %v3259_v17 = vpop.permute.xlu1 %3258  ;;  %9625 = vset.pattern.permute.xlu1 %v14822_v20  ;;  %v8677_v35 = vpack.c.bf16 %v2826_v16, %v2824_v54  ;;  %15382 = vst [vmem:[#allocation37_spill] sm:$0xff] %v12272_v12  ;;  %v15383_v8 = vld [vmem:[#allocation133_spill] sm:$0xff] }
 0x4fe   :  { %3290 = vperm.xlu1 %9625, %v15327_v40   ;;  %v3403_v11 = vadd.f32 %v3259_v17, %v12244_v26  ;;  %v3404_v55 = vadd.f32 %v3259_v17, %v12248_v22  ;;  %v15384_v54 = vld [vmem:[#allocation201_spill] sm:$0xff]  ;;  %v15388_v17 = vld [vmem:[#allocation108_spill] sm:$0xff] }
 0x4ff   :  { %8678 = vmatprep.subr.bf16.mxu1 %v8677_v35  ;;  %v12278_v13 = vadd.f32 %v15384_v54, %v15383_v8  ;;  %v15389_v35 = vld [vmem:[#allocation204_spill] sm:$0xff]  ;;  %v15481_v12 = vld [vmem:[#allocation41_spill] sm:$0xff] }
 0x500   :  { %8680 = vmatpush1.bf16.msra.mxu1 %v8679_v1 }
 0x501   :  { %15385 = vst [vmem:[#allocation189_spill] sm:$0xff] %v12278_v13  ;;  %v2699_v54 = vadd.f32 %v11740_v44, %v12278_v13 }
 0x502   :  { %v12265_v47 = vpop.permute.xlu1 %3952  ;;  %9626 = vset.pattern.permute.xlu1 %v14858_v57  ;;  %v15386_v57 = vld [vmem:[#allocation202_spill] sm:$0xff] }
 0x503   :  { %15381 = vst [vmem:[#allocation187_spill] sm:$0xff] %v12265_v47  ;;  %3984 = vperm.xlu1 %9626, %v15327_v40   ;;  %v12282_v16 = vadd.f32 %v15386_v57, %v15383_v8  ;;  %v12287_v40 = vadd.f32 %v15389_v35, %v15388_v17  ;;  %v3531_v47 = vmax.f32 %v3403_v11, 0.0  ;;  %v3532_v8 = vmax.f32 %v3404_v55, 0.0 }
 0x505   :  { %15387 = vst [vmem:[#allocation190_spill] sm:$0xff] %v12282_v16  ;;  %15390 = vst [vmem:[#allocation43_spill] sm:$0xff] %v12287_v40  ;;  %v2700_v22 = vadd.f32 %v11740_v44, %v12282_v16 }
 0x507   :  { %v3255_v37 = vpop.permute.xlu1 %3254  ;;  %9627 = vset.pattern.permute.xlu1 %v14822_v20  ;;  %v15391_v20 = vld [vmem:[#allocation205_spill] sm:$0xff]  ;;  %v2828_v32 = vmax.f32 %v2700_v22, 0.0 }
 0x508   :  { %v3401_v61 = vadd.f32 %v3255_v37, %v12229_v25  ;;  %3286 = vperm.xlu1 %9627, %v15121_v53   ;;  %v3402_v1 = vadd.f32 %v3255_v37, %v12233_v51  ;;  %v12291_v26 = vadd.f32 %v15391_v20, %v15388_v17  ;;  %v15393_v17 = vld [vmem:[#allocation51_spill] sm:$0xff]  ;;  %v2827_v20 = vmax.f32 %v2699_v54, 0.0 }
 0x50a   :  { %15392 = vst [vmem:[#allocation90_spill] sm:$0xff] %v12291_v26  ;;  %v3529_v53 = vmax.f32 %v3401_v61, 0.0  ;;  %v3530_v57 = vmax.f32 %v3402_v1, 0.0  ;;  %v12301_v61 = vpop.permute.xlu0 %3896 }
 0x50b   :  { %15394 = vst [vmem:[#allocation192_spill] sm:$0xff] %v12301_v61  ;;  %v15476_v61 = vld [vmem:[#allocation80_spill] sm:$0xff] }
 0x50c   :  { %v8807_v25 = vpack.c.bf16 %v3531_v47, %v3529_v53  ;;  %v2555_v37 = vpop.permute.xlu1 %2554  ;;  %9628 = vset.pattern.permute.xlu1 %v15262_v15  ;;  %v8805_v11 = vpack.c.bf16 %v3532_v8, %v3530_v57  ;;  %v15395_v53 = vld [vmem:[#allocation220_spill] sm:$0xff] }
 0x50d   :  { %v2701_v35 = vadd.f32 %v2555_v37, %v12287_v40  ;;  %v2702_v51 = vadd.f32 %v2555_v37, %v12291_v26  ;;  %5216 = vperm.xlu1 %9628, %v15393_v17   ;;  %v3405_v44 = vadd.f32 %v15395_v53, %v12278_v13  ;;  %v3406_v47 = vadd.f32 %v15395_v53, %v12282_v16 }
 0x50e   :  { %8806 = vmatprep.subr.bf16.mxu0 %v8805_v11 }
 0x50f   :  { %v2829_v52 = vmax.f32 %v2701_v35, 0.0  ;;  %v2830_v56 = vmax.f32 %v2702_v51, 0.0  ;;  %8808 = vmatpush1.bf16.msra.mxu0 %v8807_v25  ;;  %v12311_v51 = vpop.permute.xlu0 %3900  ;;  %v3533_v25 = vmax.f32 %v3405_v44, 0.0  ;;  %v3534_v35 = vmax.f32 %v3406_v47, 0.0  ;;  %v15403_v44 = vld [vmem:[#allocation117_spill] sm:$0xff]  ;;  %v15406_v47 = vld [vmem:[#allocation212_spill] sm:$0xff] }
 0x510   :  { %15396 = vst [vmem:[#allocation194_spill] sm:$0xff] %v12311_v51 }
 0x511   :  { %v8683_v55 = vpack.c.bf16 %v2829_v52, %v2827_v20  ;;  %v3267_v1 = vpop.permute.xlu1 %3266  ;;  %9629 = vset.pattern.permute.xlu1 %v15127_v50  ;;  %v8681_v37 = vpack.c.bf16 %v2830_v56, %v2828_v32  ;;  %v15397_v52 = vld [vmem:[#allocation208_spill] sm:$0xff]  ;;  %v15399_v32 = vld [vmem:[#allocation209_spill] sm:$0xff] }
 0x512   :  { %v3407_v8 = vadd.f32 %v3267_v1, %v12287_v40  ;;  %v3408_v54 = vadd.f32 %v3267_v1, %v12291_v26  ;;  %4530 = vperm.xlu1 %9629, %v10480_v62   ;;  %v12315_v17 = vadd.f32 %v15397_v52, %v11753_v29  ;;  %v12319_v56 = vadd.f32 %v15399_v32, %v11753_v29  ;;  %v15402_v62 = vld [vmem:[#allocation53_spill] sm:$0xff]  ;;  %v15404_v1 = vld [vmem:[#allocation211_spill] sm:$0xff] }
 0x513   :  { %8682 = vmatprep.subr.bf16.mxu1 %v8681_v37  ;;  %v12330_v37 = vadd.f32 %v15406_v47, %v15403_v44 }
 0x514   :  { %v3535_v22 = vmax.f32 %v3407_v8, 0.0  ;;  %v3536_v57 = vmax.f32 %v3408_v54, 0.0  ;;  %8684 = vmatpush1.bf16.msra.mxu1 %v8683_v55  ;;  %15398 = vst [vmem:[#allocation216_spill] sm:$0xff] %v12315_v17  ;;  %15400 = vst [vmem:[#allocation45_spill] sm:$0xff] %v12319_v56  ;;  %v12326_v55 = vadd.f32 %v15404_v1, %v15403_v44  ;;  %v2703_v29 = vadd.f32 %v11782_v45, %v12315_v17  ;;  %v12336_v54 = vpop.permute.xlu0 %3912  ;;  %v2266_v1 = vld [vmem:[%s7646_s16] sm:$0x7] }
 0x515   :  { %15407 = vst [vmem:[#allocation197_spill] sm:$0xff] %v12330_v37  ;;  %v2704_v8 = vadd.f32 %v11782_v45, %v12319_v56  ;;  %15408 = vst [vmem:[#allocation99_spill] sm:$0xff] %v12336_v54  ;;  %2845 = vperm.xlu0 %9671, %v2266_v1   ;;  %s9740_s16 = smov 28  }
 0x516   :  { %v8811_v11 = vpack.c.bf16 %v3535_v22, %v3533_v25  ;;  %v12321_v20 = vpop.permute.xlu1 %3956  ;;  %4534 = vperm.xlu1 %9629, %v15402_v62   ;;  %v8809_v53 = vpack.c.bf16 %v3536_v57, %v3534_v35  ;;  %15405 = vst [vmem:[#allocation195_spill] sm:$0xff] %v12326_v55  ;;  %v2831_v35 = vmax.f32 %v2703_v29, 0.0  ;;  %v15411_v29 = vld [vmem:[#allocation59_spill] sm:$0xff]  ;;  %s7660_s19 = sld [smem:[%s14206_s0 + %s9740_s16]]  }
 0x517   :  { %15401 = vst [vmem:[#allocation92_spill] sm:$0xff] %v12321_v20  ;;  %v2832_v52 = vmax.f32 %v2704_v8, 0.0 }
 0x518   :  { %8810 = vmatprep.subr.bf16.mxu0 %v8809_v53 }
 0x519   :  { %8812 = vmatpush1.bf16.msra.mxu0 %v8811_v11  ;;  %v12346_v11 = vpop.permute.xlu0 %3916 }
 0x51a   :  { %9630 = vset.pattern.permute.xlu1 %v15262_v15  ;;  %15409 = vst [vmem:[#allocation198_spill] sm:$0xff] %v12346_v11 }
 0x51b   :  { %v2565_v25 = vpop.permute.xlu1 %2564  ;;  %5228 = vperm.xlu1 %9630, %v15402_v62  }
 0x51c   :  { %v2705_v22 = vadd.f32 %v2565_v25, %v12326_v55  ;;  %v2706_v57 = vadd.f32 %v2565_v25, %v12330_v37 }
 0x51d   :  { %v12353_v8 = vpop.permute.xlu0 %3928 }
 0x51e   :  { %v2833_v32 = vmax.f32 %v2705_v22, 0.0  ;;  %v2834_v45 = vmax.f32 %v2706_v57, 0.0  ;;  %15412 = vst [vmem:[#allocation17_spill] sm:$0xff] %v12353_v8  ;;  %v15452_v8 = vld [vmem:[#allocation243_spill] sm:$0xff] }
 0x51f   :  { %9632 = vset.pattern.permute.xlu1 %v15127_v50 }
 0x520   :  { %v8687_v53 = vpack.c.bf16 %v2833_v32, %v2831_v35  ;;  %v3275_v44 = vpop.permute.xlu1 %3274  ;;  %4542 = vperm.xlu1 %9632, %v15082_v63   ;;  %v8685_v62 = vpack.c.bf16 %v2834_v45, %v2832_v52  ;;  %v15413_v52 = vld [vmem:[#allocation214_spill] sm:$0xff]  ;;  %v15415_v45 = vld [vmem:[#allocation215_spill] sm:$0xff] }
 0x521   :  { %v3411_v25 = vadd.f32 %v3275_v44, %v12326_v55  ;;  %v3412_v22 = vadd.f32 %v3275_v44, %v12330_v37  ;;  %v12363_v32 = vadd.f32 %v15413_v52, %v11789_v60  ;;  %v15423_v52 = vld [vmem:[#allocation139_spill] sm:$0xff] }
 0x522   :  { %8686 = vmatprep.subr.bf16.mxu1 %v8685_v62  ;;  %v12369_v62 = vpop.permute.xlu0 %3932 }
 0x523   :  { %8688 = vmatpush1.bf16.msra.mxu1 %v8687_v53  ;;  %15414 = vst [vmem:[#allocation133_spill] sm:$0xff] %v12363_v32  ;;  %v12367_v53 = vadd.f32 %v15415_v45, %v11789_v60  ;;  %15417 = vst [vmem:[#allocation202_spill] sm:$0xff] %v12369_v62  ;;  %v3539_v44 = vmax.f32 %v3411_v25, 0.0  ;;  %v3540_v1 = vmax.f32 %v3412_v22, 0.0  ;;  %v15424_v45 = vld [vmem:[#allocation61_spill] sm:$0xff] }
 0x524   :  { %9633 = vset.pattern.permute.xlu1 %v15262_v15 }
 0x525   :  { %v12350_v47 = vpop.permute.xlu1 %3968  ;;  %5232 = vperm.xlu1 %9633, %v15411_v29   ;;  %15416 = vst [vmem:[#allocation201_spill] sm:$0xff] %v12367_v53  ;;  %v2708_v60 = vadd.f32 %v15423_v52, %v12367_v53 }
 0x526   :  { %15410 = vst [vmem:[#allocation199_spill] sm:$0xff] %v12350_v47  ;;  %v15418_v47 = vld [vmem:[#allocation126_spill] sm:$0xff] }
 0x527   :  { %v2836_v16 = vmax.f32 %v2708_v60, 0.0 }
 0x529   :  { %9634 = vset.pattern.permute.xlu1 %v15127_v50 }
 0x52a   :  { %v3271_v63 = vpop.permute.xlu1 %3270  ;;  %4546 = vperm.xlu1 %9634, %v15104_v38   ;;  %v15419_v38 = vld [vmem:[#allocation217_spill] sm:$0xff] }
 0x52b   :  { %v3409_v57 = vadd.f32 %v3271_v63, %v12315_v17  ;;  %v3410_v35 = vadd.f32 %v3271_v63, %v12319_v56  ;;  %v12373_v37 = vadd.f32 %v15419_v38, %v15418_v47  ;;  %v15421_v63 = vld [vmem:[#allocation218_spill] sm:$0xff]  ;;  %v2707_v56 = vadd.f32 %v15423_v52, %v12363_v32 }
 0x52c   :  { %v12377_v13 = vadd.f32 %v15421_v63, %v15418_v47  ;;  %v12386_v47 = vpop.permute.xlu0 %3944 }
 0x52d   :  { %v3537_v29 = vmax.f32 %v3409_v57, 0.0  ;;  %v3538_v55 = vmax.f32 %v3410_v35, 0.0  ;;  %15420 = vst [vmem:[#allocation108_spill] sm:$0xff] %v12373_v37  ;;  %v2835_v20 = vmax.f32 %v2707_v56, 0.0  ;;  %15425 = vst [vmem:[#allocation205_spill] sm:$0xff] %v12386_v47  ;;  %v15448_v47 = vld [vmem:[#allocation158_spill] sm:$0xff] }
 0x52e   :  { %15422 = vst [vmem:[#allocation204_spill] sm:$0xff] %v12377_v13  ;;  %4550 = vperm.xlu1 %9634, %v15424_v45   ;;  %v3993_v41 = vadd.f32 %v15448_v47, %v15453_v34 }
 0x52f   :  { %v8815_v25 = vpack.c.bf16 %v3539_v44, %v3537_v29  ;;  %v2575_v22 = vpop.permute.xlu1 %2574  ;;  %v8813_v57 = vpack.c.bf16 %v3540_v1, %v3538_v55  ;;  %v15426_v44 = vld [vmem:[#allocation225_spill] sm:$0xff] }
 0x530   :  { %v2709_v35 = vadd.f32 %v2575_v22, %v12373_v37  ;;  %v2710_v38 = vadd.f32 %v2575_v22, %v12377_v13  ;;  %v3413_v29 = vadd.f32 %v15426_v44, %v12363_v32  ;;  %v3414_v55 = vadd.f32 %v15426_v44, %v12367_v53  ;;  %v15428_v32 = vld [vmem:[#allocation221_spill] sm:$0xff] }
 0x531   :  { %8814 = vmatprep.subr.bf16.mxu0 %v8813_v57  ;;  %v15445_v53 = vld [vmem:[#allocation241_spill] sm:$0xff] }
 0x532   :  { %v2837_v63 = vmax.f32 %v2709_v35, 0.0  ;;  %v2838_v17 = vmax.f32 %v2710_v38, 0.0  ;;  %8816 = vmatpush1.bf16.msra.mxu0 %v8815_v25  ;;  %9635 = vset.pattern.permute.xlu1 %v15262_v15  ;;  %v3541_v57 = vmax.f32 %v3413_v29, 0.0  ;;  %v15427_v38 = vld [vmem:[#allocation255_spill] sm:$0xff] }
 0x533   :  { %5244 = vperm.xlu1 %9635, %v15424_v45   ;;  %v3542_v45 = vmax.f32 %v3414_v55, 0.0  ;;  %v12399_v26 = vadd.f32 %v15428_v32, %v15427_v38 }
 0x534   :  { %v8691_v1 = vpack.c.bf16 %v2837_v63, %v2835_v20  ;;  %v3283_v52 = vpop.permute.xlu1 %3282  ;;  %v8689_v22 = vpack.c.bf16 %v2838_v17, %v2836_v16  ;;  %v15430_v20 = vld [vmem:[#allocation222_spill] sm:$0xff]  ;;  %v12405_v16 = vpop.permute.xlu0 %3948 }
 0x535   :  { %v3415_v56 = vadd.f32 %v3283_v52, %v12373_v37  ;;  %v3416_v60 = vadd.f32 %v3283_v52, %v12377_v13  ;;  %15429 = vst [vmem:[#allocation51_spill] sm:$0xff] %v12399_v26  ;;  %v12403_v63 = vadd.f32 %v15430_v20, %v15427_v38  ;;  %15432 = vst [vmem:[#allocation208_spill] sm:$0xff] %v12405_v16  ;;  %v15435_v52 = vld [vmem:[#allocation223_spill] sm:$0xff]  ;;  %v15442_v20 = vld [vmem:[#allocation236_spill] sm:$0xff] }
 0x536   :  { %8690 = vmatprep.subr.bf16.mxu1 %v8689_v22  ;;  %v2711_v55 = vadd.f32 %v11835_v10, %v12399_v26  ;;  %v3992_v37 = vadd.f32 %v11985_v42, %v15445_v53 }
 0x537   :  { %v3543_v25 = vmax.f32 %v3415_v56, 0.0  ;;  %v3544_v35 = vmax.f32 %v3416_v60, 0.0  ;;  %8692 = vmatpush1.bf16.msra.mxu1 %v8691_v1  ;;  %9636 = vset.pattern.permute.xlu1 %v15127_v50  ;;  %15431 = vst [vmem:[#allocation220_spill] sm:$0xff] %v12403_v63  ;;  %v2712_v32 = vadd.f32 %v11835_v10, %v12403_v63  ;;  %v15434_v1 = vld [vmem:[#allocation131_spill] sm:$0xff]  ;;  %v15439_v60 = vld [vmem:[#allocation234_spill] sm:$0xff] }
 0x538   :  { %4558 = vperm.xlu1 %9636, %v15111_v6   ;;  %v12417_v22 = vadd.f32 %v15435_v52, %v15434_v1  ;;  %v15437_v6 = vld [vmem:[#allocation224_spill] sm:$0xff]  ;;  %v2839_v52 = vmax.f32 %v2711_v55, 0.0  ;;  %v4120_v28 = vmax.f32 %v3992_v37, 0.0  ;;  %v15457_v37 = vld [vmem:[#allocation242_spill] sm:$0xff]  ;;  %v15488_v63 = vld [vmem:[#allocation163_spill] sm:$0xff] }
 0x539   :  { %v8819_v17 = vpack.c.bf16 %v3543_v25, %v3541_v57  ;;  %v12408_v44 = vpop.permute.xlu1 %3972  ;;  %v8817_v29 = vpack.c.bf16 %v3544_v35, %v3542_v45  ;;  %v12421_v56 = vadd.f32 %v15437_v6, %v15434_v1  ;;  %v3990_v57 = vadd.f32 %v11977_v43, %v15439_v60  ;;  %v15440_v25 = vld [vmem:[#allocation68_spill] sm:$0xff]  ;;  %v12426_v35 = vpop.permute.xlu0 %3960 }
 0x53a   :  { %15433 = vst [vmem:[#allocation209_spill] sm:$0xff] %v12408_v44  ;;  %15436 = vst [vmem:[#allocation53_spill] sm:$0xff] %v12417_v22  ;;  %v2840_v13 = vmax.f32 %v2712_v32, 0.0  ;;  %v15444_v44 = vld [vmem:[#allocation233_spill] sm:$0xff] }
 0x53b   :  { %8818 = vmatprep.subr.bf16.mxu0 %v8817_v29  ;;  %15438 = vst [vmem:[#allocation117_spill] sm:$0xff] %v12421_v56  ;;  %15441 = vst [vmem:[#allocation211_spill] sm:$0xff] %v12426_v35  ;;  %v3989_v1 = vadd.f32 %v11977_v43, %v15444_v44  ;;  %v4118_v6 = vmax.f32 %v3990_v57, 0.0  ;;  %v15446_v35 = vld [vmem:[#allocation235_spill] sm:$0xff] }
 0x53c   :  { %8820 = vmatpush1.bf16.msra.mxu0 %v8819_v17  ;;  %9637 = vset.pattern.permute.xlu1 %v15262_v15  ;;  %v15443_v17 = vld [vmem:[#allocation144_spill] sm:$0xff] }
 0x53d   :  { %5248 = vperm.xlu1 %9637, %v15440_v25   ;;  %v3988_v29 = vadd.f32 %v15443_v17, %v15442_v20  ;;  %v3987_v16 = vadd.f32 %v15443_v17, %v15446_v35  ;;  %v4117_v62 = vmax.f32 %v3989_v1, 0.0  ;;  %v3998_v17 = vadd.f32 %v12016_v23, %v15452_v8 }
 0x53e   :  { %v2585_v45 = vpop.permute.xlu1 %2584 }
 0x53f   :  { %v2713_v10 = vadd.f32 %v2585_v45, %v12417_v22  ;;  %v2714_v38 = vadd.f32 %v2585_v45, %v12421_v56  ;;  %v15447_v45 = vld [vmem:[#allocation239_spill] sm:$0xff]  ;;  %v4116_v57 = vmax.f32 %v3988_v29, 0.0  ;;  %v15456_v29 = vld [vmem:[#allocation188_spill] sm:$0xff] }
 0x540   :  { %v3994_v55 = vadd.f32 %v15448_v47, %v15447_v45 }
 0x541   :  { %v2841_v25 = vmax.f32 %v2713_v10, 0.0  ;;  %v2842_v40 = vmax.f32 %v2714_v38, 0.0  ;;  %9638 = vset.pattern.permute.xlu1 %v15127_v50  ;;  %v3991_v10 = vadd.f32 %v11985_v42, %v15450_v14  ;;  %v12446_v38 = vpop.permute.xlu0 %3964 }
 0x542   :  { %4562 = vperm.xlu1 %9638, %v10524_v2   ;;  %15451 = vst [vmem:[#allocation59_spill] sm:$0xff] %v12446_v38  ;;  %v8825_v2 = vpack.c.bf16 %v4118_v6, %v4116_v57  ;;  %v3997_v38 = vadd.f32 %v12016_v23, %v15457_v37  ;;  %v4126_v6 = vmax.f32 %v3998_v17, 0.0  ;;  %v15463_v23 = vld [vmem:[#allocation203_spill] sm:$0xff] }
 0x543   :  { %v8695_v32 = vpack.c.bf16 %v2841_v25, %v2839_v52  ;;  %v12442_v39 = vpop.permute.xlu1 %5180  ;;  %v8693_v43 = vpack.c.bf16 %v2842_v40, %v2840_v13  ;;  %v4115_v52 = vmax.f32 %v3987_v16, 0.0  ;;  %v15454_v25 = vld [vmem:[#allocation70_spill] sm:$0xff]  ;;  %v4122_v40 = vmax.f32 %v3994_v55, 0.0  ;;  %v15460_v55 = vld [vmem:[#allocation245_spill] sm:$0xff] }
 0x544   :  { %15449 = vst [vmem:[#allocation212_spill] sm:$0xff] %v12442_v39  ;;  %v15455_v13 = vld [vmem:[#allocation246_spill] sm:$0xff]  ;;  %v4119_v39 = vmax.f32 %v3991_v10, 0.0  ;;  %v3995_v57 = vadd.f32 %v15456_v29, %v15460_v55  ;;  %v4001_v54 = vadd.f32 %v15463_v23, %v15468_v24 }
 0x545   :  { %8694 = vmatprep.subr.bf16.mxu1 %v8693_v43  ;;  %v3996_v42 = vadd.f32 %v15456_v29, %v15455_v13  ;;  %v8827_v1 = vpack.c.bf16 %v4117_v62, %v4115_v52  ;;  %v15459_v43 = vld [vmem:[#allocation251_spill] sm:$0xff]  ;;  %v8829_v16 = vpack.c.bf16 %v4122_v40, %v4120_v28  ;;  %v15462_v62 = vld [vmem:[#allocation249_spill] sm:$0xff]  ;;  %v15466_v29 = vld [vmem:[#allocation34_spill] sm:$0xff] }
 0x546   :  { %4566 = vperm.xlu1 %9638, %v15454_v25   ;;  %8696 = vmatpush1.bf16.msra.mxu1 %v8695_v32  ;;  %v4000_v47 = vadd.f32 %v12027_v31, %v15459_v43  ;;  %v4121_v32 = vmax.f32 %v3993_v41, 0.0  ;;  %v4002_v10 = vadd.f32 %v15463_v23, %v15462_v62  ;;  %v15465_v41 = vld [vmem:[#allocation11_spill] sm:$0xff]  ;;  %v15474_v23 = vld [vmem:[#allocation42_spill] sm:$0xff] }
 0x547   :  { %8826 = vmatprep.subr.bf16.mxu1 %v8825_v2  ;;  %v12464_v2 = vpop.permute.xlu0 %3976  ;;  %v4124_v17 = vmax.f32 %v3996_v42, 0.0 }
 0x548   :  { %v12457_v48 = vpop.permute.xlu1 %4494  ;;  %15461 = vst [vmem:[#allocation215_spill] sm:$0xff] %v12464_v2  ;;  %v8831_v52 = vpack.c.bf16 %v4121_v32, %v4119_v39  ;;  %v4128_v40 = vmax.f32 %v4000_v47, 0.0  ;;  %v4006_v2 = vadd.f32 %v12045_v58, %v15466_v29  ;;  %v4130_v42 = vmax.f32 %v4002_v10, 0.0  ;;  %v15469_v39 = vld [vmem:[#allocation28_spill] sm:$0xff]  ;;  %v15471_v32 = vld [vmem:[#allocation253_spill] sm:$0xff] }
 0x549   :  { %15458 = vst [vmem:[#allocation214_spill] sm:$0xff] %v12457_v48  ;;  %2990 = vmatmul.mubr.f32.vlgmr.msra.gmra.mrb[128].mxu1 %v12114_v4  ;;  %v4125_v48 = vmax.f32 %v3997_v38, 0.0  ;;  %v15464_v4 = vld [vmem:[#allocation250_spill] sm:$0xff] }
 0x54a   :  { %9639 = vset.pattern.permute.xlu1 %v15262_v15  ;;  %8828 = vmatpush1.bf16.msra.mxu1 %v8827_v1  ;;  %v3999_v28 = vadd.f32 %v12027_v31, %v15464_v4  ;;  %v8833_v1 = vpack.c.bf16 %v4126_v6, %v4124_v17  ;;  %v15470_v31 = vld [vmem:[#allocation230_spill] sm:$0xff]  ;;  %v4134_v17 = vmax.f32 %v4006_v2, 0.0  ;;  %v8837_v10 = vpack.c.bf16 %v4130_v42, %v4128_v40 }
 0x54b   :  { %5260 = vperm.xlu1 %9639, %v15454_v25   ;;  %8830 = vmatprep.subr.bf16.mxu1 %v8829_v16  ;;  %v4123_v25 = vmax.f32 %v3995_v57, 0.0  ;;  %v4004_v38 = vadd.f32 %v15470_v31, %v15469_v39  ;;  %v12484_v51 = vpop.permute.xlu0 %3980  ;;  %v15473_v6 = vld [vmem:[#allocation74_spill] sm:$0xff]  ;;  %v15475_v57 = vld [vmem:[#allocation169_spill] sm:$0xff] }
 0x54c   :  { %4307 = vmatprep.mubr.f32.mxu1 %v15465_v41  ;;  %v4127_v47 = vmax.f32 %v3999_v28, 0.0  ;;  %v4005_v41 = vadd.f32 %v12045_v58, %v15471_v32  ;;  %15472 = vst [vmem:[#allocation217_spill] sm:$0xff] %v12484_v51  ;;  %v15479_v28 = vld [vmem:[#allocation244_spill] sm:$0xff] }
 0x54d   :  { %v12475_v11 = vpop.permute.xlu1 %5184  ;;  %v8835_v16 = vpack.c.bf16 %v4125_v48, %v4123_v25  ;;  %v15478_v48 = vld [vmem:[#allocation7_spill] sm:$0xff]  ;;  %v4132_v58 = vmax.f32 %v4004_v38, 0.0  ;;  %v15480_v51 = vld [vmem:[#allocation140_spill] sm:$0xff] }
 0x54e   :  { %15467 = vst [vmem:[#allocation126_spill] sm:$0xff] %v12475_v11  ;;  %8832 = vmatpush1.bf16.msra.mxu1 %v8831_v52  ;;  %v4008_v52 = vadd.f32 %v15475_v57, %v15474_v23  ;;  %v4129_v11 = vmax.f32 %v4001_v54, 0.0  ;;  %v4010_v25 = vadd.f32 %v15479_v28, %v15478_v48  ;;  %v4133_v30 = vmax.f32 %v4005_v41, 0.0  ;;  %v15484_v38 = vld [vmem:[#allocation76_spill] sm:$0xff]  ;;  %v15493_v23 = vld [vmem:[#allocation206_spill] sm:$0xff] }
 0x54f   :  { %9640 = vset.pattern.permute.xlu1 %v15127_v50  ;;  %8834 = vmatprep.subr.bf16.mxu1 %v8833_v1  ;;  %v4003_v1 = vadd.f32 %v15470_v31, %v15476_v61  ;;  %v4007_v54 = vadd.f32 %v15475_v57, %v15481_v12  ;;  %v12504_v40 = vadd.f32 %v15480_v51, %v15439_v60  ;;  %v15482_v31 = vld [vmem:[#allocation36_spill] sm:$0xff] }
 0x550   :  { %4574 = vperm.xlu1 %9640, %v15473_v6   ;;  %v12497_v6 = vadd.f32 %v15480_v51, %v15444_v44  ;;  %v8839_v2 = vpack.c.bf16 %v4129_v11, %v4127_v47  ;;  %v4136_v42 = vmax.f32 %v4008_v52, 0.0  ;;  %v15485_v44 = vld [vmem:[#allocation155_spill] sm:$0xff]  ;;  %v12511_v47 = vpop.permute.xlu0 %4666  ;;  %v12517_v51 = vadd.f32 %v15488_v63, %v15453_v34  ;;  %v15492_v12 = vld [vmem:[#allocation44_spill] sm:$0xff] }
 0x551   :  { %v4009_v11 = vadd.f32 %v15479_v28, %v15485_v44  ;;  %v4131_v41 = vmax.f32 %v4003_v1, 0.0  ;;  %15486 = vst [vmem:[#allocation139_spill] sm:$0xff] %v12511_v47  ;;  %v12521_v52 = vadd.f32 %v15488_v63, %v15447_v45  ;;  %v4138_v60 = vmax.f32 %v4010_v25, 0.0  ;;  %v15494_v25 = vld [vmem:[#allocation166_spill] sm:$0xff]  ;;  %v15499_v1 = vld [vmem:[#allocation9_spill] sm:$0xff] }
 0x552   :  { %v12491_v18 = vpop.permute.xlu1 %4498  ;;  %8836 = vmatpush1.bf16.msra.mxu1 %v8835_v16  ;;  %v15483_v16 = vld [vmem:[#allocation170_spill] sm:$0xff]  ;;  %v4135_v47 = vmax.f32 %v4007_v54, 0.0  ;;  %v4016_v56 = vadd.f32 %v15493_v23, %v15492_v12 }
 0x553   :  { %15477 = vst [vmem:[#allocation218_spill] sm:$0xff] %v12491_v18  ;;  %8838 = vmatprep.subr.bf16.mxu1 %v8837_v10  ;;  %v4014_v10 = vadd.f32 %v15483_v16, %v15482_v31  ;;  %v8841_v18 = vpack.c.bf16 %v4134_v17, %v4132_v58  ;;  %v15490_v17 = vld [vmem:[#allocation48_spill] sm:$0xff]  ;;  %v8843_v28 = vpack.c.bf16 %v4133_v30, %v4131_v41  ;;  %v15491_v31 = vld [vmem:[#allocation49_spill] sm:$0xff]  ;;  %v15497_v54 = vld [vmem:[#allocation38_spill] sm:$0xff] }
 0x554   :  { %9641 = vset.pattern.permute.xlu1 %v15262_v15  ;;  %v8845_v63 = vpack.c.bf16 %v4138_v60, %v4136_v42  ;;  %v12538_v30 = vadd.f32 %v15494_v25, %v15447_v45  ;;  %v15498_v42 = vld [vmem:[#allocation54_spill] sm:$0xff]  ;;  %v15501_v45 = vld [vmem:[#allocation184_spill] sm:$0xff]  ;;  %v4144_v41 = vmax.f32 %v4016_v56, 0.0 }
 0x555   :  { %5264 = vperm.xlu1 %9641, %v15484_v38   ;;  %v15489_v38 = vld [vmem:[#allocation89_spill] sm:$0xff]  ;;  %v4142_v26 = vmax.f32 %v4014_v10, 0.0  ;;  %v15502_v12 = vld [vmem:[#allocation50_spill] sm:$0xff] }
 0x556   :  { %v12513_v57 = vpop.permute.xlu1 %4502  ;;  %8840 = vmatpush1.bf16.msra.mxu1 %v8839_v2  ;;  %v4012_v58 = vadd.f32 %v15490_v17, %v15489_v38  ;;  %v4013_v2 = vadd.f32 %v15483_v16, %v15491_v31  ;;  %v12534_v38 = vadd.f32 %v15494_v25, %v15453_v34  ;;  %15496 = vst [vmem:[#allocation255_spill] sm:$0xff] %v12538_v30  ;;  %v15504_v10 = vld [vmem:[#allocation10_spill] sm:$0xff]  ;;  %v15510_v31 = vld [vmem:[#allocation69_spill] sm:$0xff] }
 0x557   :  { %15487 = vst [vmem:[#allocation61_spill] sm:$0xff] %v12513_v57  ;;  %8842 = vmatprep.subr.bf16.mxu1 %v8841_v18  ;;  %v4137_v18 = vmax.f32 %v4009_v11, 0.0  ;;  %v4011_v16 = vadd.f32 %v15490_v17, %v15497_v54  ;;  %v4018_v34 = vadd.f32 %v15499_v1, %v15498_v42  ;;  %v12551_v11 = vadd.f32 %v15501_v45, %v15457_v37  ;;  %v15505_v42 = vld [vmem:[#allocation174_spill] sm:$0xff]  ;;  %v15514_v54 = vld [vmem:[#allocation213_spill] sm:$0xff] }
 0x558   :  { %15495 = vst [vmem:[#allocation225_spill] sm:$0xff] %v12534_v38  ;;  %v4140_v60 = vmax.f32 %v4012_v58, 0.0  ;;  %v4141_v17 = vmax.f32 %v4013_v2, 0.0  ;;  %v12559_v58 = vadd.f32 %v15501_v45, %v15452_v8  ;;  %v15506_v2 = vld [vmem:[#allocation52_spill] sm:$0xff]  ;;  %v15511_v30 = vld [vmem:[#allocation62_spill] sm:$0xff] }
 0x559   :  { %9642 = vset.pattern.permute.xlu1 %v15127_v50  ;;  %v8847_v25 = vpack.c.bf16 %v4137_v18, %v4135_v47  ;;  %v4139_v47 = vmax.f32 %v4011_v16, 0.0  ;;  %v4017_v18 = vadd.f32 %v15499_v1, %v15506_v2  ;;  %v15513_v2 = vld [vmem:[#allocation67_spill] sm:$0xff]  ;;  %v15520_v16 = vld [vmem:[#allocation73_spill] sm:$0xff] }
 0x55a   :  { %4578 = vperm.xlu1 %9642, %v15038_v36   ;;  %8844 = vmatpush1.bf16.msra.mxu1 %v8843_v28  ;;  %v4015_v36 = vadd.f32 %v15493_v23, %v15502_v12  ;;  %v12555_v28 = vpop.permute.xlu0 %5124  ;;  %v15507_v23 = vld [vmem:[#allocation78_spill] sm:$0xff] }
 0x55b   :  { %v12547_v57 = vpop.permute.xlu1 %5196  ;;  %8846 = vmatprep.subr.bf16.mxu1 %v8845_v63  ;;  %15503 = vst [vmem:[#allocation222_spill] sm:$0xff] %v12555_v28  ;;  %v8849_v63 = vpack.c.bf16 %v4142_v26, %v4140_v60  ;;  %v15508_v28 = vld [vmem:[#allocation207_spill] sm:$0xff]  ;;  %v4146_v26 = vmax.f32 %v4018_v34, 0.0  ;;  %v15509_v60 = vld [vmem:[#allocation57_spill] sm:$0xff]  ;;  %v8851_v37 = vpack.c.bf16 %v4141_v17, %v4139_v47  ;;  %v12592_v17 = vadd.f32 %v15514_v54, %v15462_v62 }
 0x55c   :  { %15500 = vst [vmem:[#allocation221_spill] sm:$0xff] %v12547_v57  ;;  %v4022_v57 = vadd.f32 %v15505_v42, %v15504_v10  ;;  %v12570_v45 = vadd.f32 %v15508_v28, %v15468_v24  ;;  %v12574_v56 = vadd.f32 %v15508_v28, %v15462_v62  ;;  %v4020_v38 = vadd.f32 %v15510_v31, %v15509_v60  ;;  %v15521_v62 = vld [vmem:[#allocation227_spill] sm:$0xff] }
 0x55d   :  { %v4143_v1 = vmax.f32 %v4015_v36, 0.0  ;;  %v4024_v28 = vadd.f32 %v12129_v19, %v15513_v2  ;;  %v8853_v34 = vpack.c.bf16 %v4146_v26, %v4144_v41  ;;  %v12588_v60 = vadd.f32 %v15514_v54, %v15468_v24  ;;  %15516 = vst [vmem:[#allocation224_spill] sm:$0xff] %v12592_v17  ;;  %v15519_v24 = vld [vmem:[#allocation63_spill] sm:$0xff]  ;;  %v15532_v17 = vld [vmem:[#allocation82_spill] sm:$0xff] }
 0x55e   :  { %4582 = vperm.xlu1 %9642, %v15507_v23   ;;  %8848 = vmatpush1.bf16.msra.mxu1 %v8847_v25  ;;  %v4021_v25 = vadd.f32 %v15505_v42, %v15511_v30  ;;  %v4150_v12 = vmax.f32 %v4022_v57, 0.0  ;;  %v4145_v36 = vmax.f32 %v4017_v18, 0.0  ;;  %v12596_v47 = vpop.permute.xlu0 %5128  ;;  %v4148_v26 = vmax.f32 %v4020_v38, 0.0  ;;  %v15523_v41 = vld [vmem:[#allocation79_spill] sm:$0xff] }
 0x55f   :  { %8850 = vmatprep.subr.bf16.mxu1 %v8849_v63  ;;  %15515 = vst [vmem:[#allocation223_spill] sm:$0xff] %v12588_v60  ;;  %v15517_v63 = vld [vmem:[#allocation58_spill] sm:$0xff]  ;;  %15518 = vst [vmem:[#allocation68_spill] sm:$0xff] %v12596_v47  ;;  %v4026_v10 = vadd.f32 %v15520_v16, %v15519_v24  ;;  %v12606_v54 = vadd.f32 %v15521_v62, %v15471_v32  ;;  %v15522_v47 = vld [vmem:[#allocation65_spill] sm:$0xff]  ;;  %v12612_v57 = vadd.f32 %v15521_v62, %v15466_v29 }
 0x560   :  { %v12581_v8 = vpop.permute.xlu1 %4510  ;;  %v4019_v42 = vadd.f32 %v15510_v31, %v15517_v63  ;;  %v8855_v31 = vpack.c.bf16 %v4145_v36, %v4143_v1  ;;  %v4149_v18 = vmax.f32 %v4021_v25, 0.0  ;;  %v4152_v38 = vmax.f32 %v4024_v28, 0.0  ;;  %v15525_v25 = vld [vmem:[#allocation71_spill] sm:$0xff]  ;;  %v15527_v62 = vld [vmem:[#allocation84_spill] sm:$0xff]  ;;  %v15528_v28 = vld [vmem:[#allocation142_spill] sm:$0xff] }
 0x561   :  { %15512 = vst [vmem:[#allocation131_spill] sm:$0xff] %v12581_v8  ;;  %v4030_v8 = vadd.f32 %v12147_v46, %v15523_v41  ;;  %v4025_v36 = vadd.f32 %v15520_v16, %v15525_v25  ;;  %v15529_v32 = vld [vmem:[#allocation77_spill] sm:$0xff]  ;;  %v4032_v41 = vadd.f32 %v12167_v21, %v15532_v17 }
 0x562   :  { %9643 = vset.pattern.permute.xlu1 %v15262_v15  ;;  %8852 = vmatpush1.bf16.msra.mxu1 %v8851_v37  ;;  %v4023_v37 = vadd.f32 %v12129_v19, %v15522_v47  ;;  %v4147_v1 = vmax.f32 %v4019_v42, 0.0  ;;  %v4154_v19 = vmax.f32 %v4026_v10, 0.0  ;;  %v15526_v47 = vld [vmem:[#allocation66_spill] sm:$0xff]  ;;  %v4029_v16 = vadd.f32 %v12147_v46, %v15529_v32  ;;  %v12632_v10 = vpop.permute.xlu0 %5140 }
 0x563   :  { %5276 = vperm.xlu1 %9643, %v15507_v23   ;;  %8854 = vmatprep.subr.bf16.mxu1 %v8853_v34  ;;  %v8857_v23 = vpack.c.bf16 %v4150_v12, %v4148_v26  ;;  %v4028_v29 = vadd.f32 %v15527_v62, %v15526_v47  ;;  %v4681_v12 = vadd.f32 %v15528_v28, %v15446_v35  ;;  %v4153_v24 = vmax.f32 %v4025_v36, 0.0 }
 0x564   :  { %v8859_v42 = vpack.c.bf16 %v4149_v18, %v4147_v1  ;;  %v4151_v34 = vmax.f32 %v4023_v37, 0.0  ;;  %15530 = vst [vmem:[#allocation144_spill] sm:$0xff] %v12632_v10  ;;  %v8861_v25 = vpack.c.bf16 %v4154_v19, %v4152_v38  ;;  %v15534_v18 = vld [vmem:[#allocation147_spill] sm:$0xff]  ;;  %v15537_v1 = vld [vmem:[#allocation173_spill] sm:$0xff]  ;;  %v15539_v10 = vld [vmem:[#allocation88_spill] sm:$0xff]  ;;  %v4157_v17 = vmax.f32 %v4029_v16, 0.0 }
 0x565   :  { %v12616_v2 = vpop.permute.xlu1 %5200  ;;  %v12642_v37 = vadd.f32 %v15534_v18, %v15446_v35  ;;  %v4156_v60 = vmax.f32 %v4028_v29, 0.0  ;;  %v4809_v36 = vmax.f32 %v4681_v12, 0.0  ;;  %v12655_v35 = vadd.f32 %v15534_v18, %v15442_v20 }
 0x566   :  { %15524 = vst [vmem:[#allocation236_spill] sm:$0xff] %v12616_v2  ;;  %8856 = vmatpush1.bf16.msra.mxu1 %v8855_v31  ;;  %v4682_v2 = vadd.f32 %v15528_v28, %v15442_v20  ;;  %v15531_v31 = vld [vmem:[#allocation83_spill] sm:$0xff]  ;;  %v8863_v19 = vpack.c.bf16 %v4153_v24, %v4151_v34  ;;  %v15544_v34 = vld [vmem:[#allocation176_spill] sm:$0xff]  ;;  %v12665_v16 = vpop.permute.xlu0 %5144 }
 0x567   :  { %9644 = vset.pattern.permute.xlu1 %v15127_v50  ;;  %8858 = vmatprep.subr.bf16.mxu1 %v8857_v23  ;;  %v4158_v23 = vmax.f32 %v4030_v8, 0.0  ;;  %v15533_v28 = vld [vmem:[#allocation75_spill] sm:$0xff]  ;;  %15535 = vst [vmem:[#allocation235_spill] sm:$0xff] %v12642_v37  ;;  %v15538_v8 = vld [vmem:[#allocation86_spill] sm:$0xff]  ;;  %15541 = vst [vmem:[#allocation158_spill] sm:$0xff] %v12655_v35 }
 0x568   :  { %4590 = vperm.xlu1 %9644, %v15531_v31   ;;  %v4027_v26 = vadd.f32 %v15527_v62, %v15533_v28  ;;  %v4685_v31 = vadd.f32 %v15537_v1, %v15450_v14  ;;  %v4034_v32 = vadd.f32 %v15539_v10, %v15538_v8  ;;  %v4810_v38 = vmax.f32 %v4682_v2, 0.0  ;;  %v15540_v62 = vld [vmem:[#allocation12_spill] sm:$0xff]  ;;  %v15542_v14 = vld [vmem:[#allocation14_spill] sm:$0xff]  ;;  %15545 = vst [vmem:[#allocation238_spill] sm:$0xff] %v12665_v16  ;;  %v15550_v16 = vld [vmem:[#allocation97_spill] sm:$0xff] }
 0x569   :  { %v4031_v30 = vadd.f32 %v12167_v21, %v15540_v62  ;;  %v4038_v29 = vadd.f32 %v12173_v33, %v15542_v14  ;;  %v4686_v2 = vadd.f32 %v15537_v1, %v15445_v53  ;;  %v4033_v21 = vadd.f32 %v15539_v10, %v15544_v34  ;;  %v15546_v62 = vld [vmem:[#allocation91_spill] sm:$0xff]  ;;  %v15547_v14 = vld [vmem:[#allocation181_spill] sm:$0xff] }
 0x56a   :  { %v12644_v46 = vpop.permute.xlu1 %4514  ;;  %8860 = vmatpush1.bf16.msra.mxu1 %v8859_v42  ;;  %v4160_v42 = vmax.f32 %v4032_v41, 0.0  ;;  %v4155_v24 = vmax.f32 %v4027_v26, 0.0  ;;  %v4813_v41 = vmax.f32 %v4685_v31, 0.0  ;;  %v4162_v18 = vmax.f32 %v4034_v32, 0.0  ;;  %v15562_v31 = vld [vmem:[#allocation150_spill] sm:$0xff] }
 0x56b   :  { %15536 = vst [vmem:[#allocation239_spill] sm:$0xff] %v12644_v46  ;;  %8862 = vmatprep.subr.bf16.mxu1 %v8861_v25  ;;  %v15543_v46 = vld [vmem:[#allocation85_spill] sm:$0xff]  ;;  %v8865_v25 = vpack.c.bf16 %v4158_v23, %v4156_v60  ;;  %v15548_v60 = vmax.f32 %v12504_v40, 0.0  ;;  %v15549_v26 = vmax.f32 %v12497_v6, 0.0  ;;  %v4159_v12 = vmax.f32 %v4031_v30, 0.0 }
 0x56c   :  { %9645 = vset.pattern.permute.xlu1 %v15262_v15  ;;  %v8867_v1 = vpack.c.bf16 %v4157_v17, %v4155_v24  ;;  %v4037_v37 = vadd.f32 %v12173_v33, %v15550_v16  ;;  %v4166_v32 = vmax.f32 %v4038_v29, 0.0  ;;  %v8869_v40 = vpack.c.bf16 %v4162_v18, %v4160_v42  ;;  %v15553_v17 = vld [vmem:[#allocation193_spill] sm:$0xff]  ;;  %v15556_v29 = vld [vmem:[#allocation247_spill] sm:$0xff] }
 0x56d   :  { %5280 = vperm.xlu1 %9645, %v15543_v46   ;;  %v4036_v46 = vadd.f32 %v15547_v14, %v15546_v62  ;;  %v12673_v23 = vpack.c.bf16 %v15548_v60, %v4810_v38  ;;  %v12677_v10 = vpack.c.bf16 %v15549_v26, %v4809_v36  ;;  %v4814_v38 = vmax.f32 %v4686_v2, 0.0  ;;  %v15552_v60 = vld [vmem:[#allocation13_spill] sm:$0xff]  ;;  %v15557_v2 = vld [vmem:[#allocation106_spill] sm:$0xff] }
 0x56e   :  { %v12667_v20 = vpop.permute.xlu1 %4518  ;;  %8864 = vmatpush1.bf16.msra.mxu1 %v8863_v19  ;;  %v15551_v19 = vld [vmem:[#allocation19_spill] sm:$0xff]  ;;  %v4035_v6 = vadd.f32 %v15547_v14, %v15552_v60  ;;  %v12689_v30 = vadd.f32 %v15553_v17, %v15460_v55  ;;  %v15555_v33 = vmax.f32 %v12517_v51, 0.0  ;;  %v12698_v24 = vadd.f32 %v15556_v29, %v15485_v44  ;;  %v15560_v51 = vld [vmem:[#allocation102_spill] sm:$0xff] }
 0x56f   :  { %8866 = vmatprep.subr.bf16.mxu1 %v8865_v25  ;;  %v4040_v53 = vadd.f32 %v12182_v27, %v15551_v19  ;;  %v4161_v25 = vmax.f32 %v4033_v21, 0.0  ;;  %v12702_v42 = vadd.f32 %v15556_v29, %v15478_v48  ;;  %v4164_v14 = vmax.f32 %v4036_v46, 0.0  ;;  %v15558_v21 = vld [vmem:[#allocation111_spill] sm:$0xff]  ;;  %v15563_v29 = vld [vmem:[#allocation118_spill] sm:$0xff] }
 0x570   :  { %15554 = vst [vmem:[#allocation70_spill] sm:$0xff] %v12689_v30  ;;  %v12694_v36 = vpack.c.bf16 %v15555_v33, %v4813_v41  ;;  %v4042_v18 = vadd.f32 %v15558_v21, %v15557_v2  ;;  %v4039_v41 = vadd.f32 %v12182_v27, %v15560_v51  ;;  %v12710_v33 = vpop.permute.xlu0 %5156  ;;  %v4690_v44 = vadd.f32 %v15562_v31, %v15455_v13 }
 0x571   :  { %9646 = vset.pattern.permute.xlu1 %v15127_v50  ;;  %15561 = vst [vmem:[#allocation188_spill] sm:$0xff] %v12710_v33  ;;  %v4168_v35 = vmax.f32 %v4040_v53, 0.0  ;;  %v4046_v46 = vadd.f32 %v12210_v59, %v15563_v29  ;;  %v8873_v19 = vpack.c.bf16 %v4166_v32, %v4164_v14  ;;  %v15564_v2 = vmax.f32 %v12521_v52, 0.0  ;;  %v15567_v52 = vld [vmem:[#allocation115_spill] sm:$0xff]  ;;  %v15572_v32 = vld [vmem:[#allocation113_spill] sm:$0xff] }
 0x572   :  { %4594 = vperm.xlu1 %9646, %v15056_v49   ;;  %8868 = vmatpush1.bf16.msra.mxu1 %v8867_v1  ;;  %v8871_v49 = vpack.c.bf16 %v4161_v25, %v4159_v12  ;;  %v4165_v1 = vmax.f32 %v4037_v37, 0.0  ;;  %v15565_v12 = vld [vmem:[#allocation104_spill] sm:$0xff]  ;;  %v15566_v25 = vld [vmem:[#allocation87_spill] sm:$0xff]  ;;  %v4689_v53 = vadd.f32 %v15562_v31, %v15460_v55  ;;  %v4170_v14 = vmax.f32 %v4042_v18, 0.0 }
 0x573   :  { %v12706_v26 = vpop.permute.xlu1 %5212  ;;  %8870 = vmatprep.subr.bf16.mxu1 %v8869_v40  ;;  %v12718_v16 = vpack.c.bf16 %v15564_v2, %v4814_v38  ;;  %v4163_v40 = vmax.f32 %v4035_v6, 0.0  ;;  %v4041_v37 = vadd.f32 %v15558_v21, %v15565_v12  ;;  %v15568_v38 = vld [vmem:[#allocation186_spill] sm:$0xff]  ;;  %v4167_v33 = vmax.f32 %v4039_v41, 0.0  ;;  %v15569_v21 = vld [vmem:[#allocation16_spill] sm:$0xff]  ;;  %v15570_v29 = vld [vmem:[#allocation39_spill] sm:$0xff] }
 0x574   :  { %15559 = vst [vmem:[#allocation246_spill] sm:$0xff] %v12706_v26  ;;  %v4044_v2 = vadd.f32 %v15568_v38, %v15567_v52  ;;  %v4045_v27 = vadd.f32 %v12210_v59, %v15569_v21  ;;  %v4174_v51 = vmax.f32 %v4046_v46, 0.0  ;;  %v4048_v55 = vadd.f32 %v12224_v7, %v15570_v29  ;;  %v15575_v46 = vld [vmem:[#allocation252_spill] sm:$0xff] }
 0x575   :  { %v8875_v6 = vpack.c.bf16 %v4165_v1, %v4163_v40  ;;  %v8877_v31 = vpack.c.bf16 %v4170_v14, %v4168_v35  ;;  %v12738_v18 = vadd.f32 %v15553_v17, %v15455_v13  ;;  %v4169_v26 = vmax.f32 %v4041_v37, 0.0  ;;  %v12742_v1 = vpop.permute.xlu0 %5160  ;;  %v15577_v13 = vld [vmem:[#allocation124_spill] sm:$0xff]  ;;  %v15578_v17 = vld [vmem:[#allocation127_spill] sm:$0xff] }
 0x576   :  { %4598 = vperm.xlu1 %9646, %v15566_v25   ;;  %8872 = vmatpush1.bf16.msra.mxu1 %v8871_v49  ;;  %v4818_v49 = vmax.f32 %v4690_v44, 0.0  ;;  %15573 = vst [vmem:[#allocation249_spill] sm:$0xff] %v12742_v1  ;;  %v4817_v59 = vmax.f32 %v4689_v53, 0.0  ;;  %v15574_v44 = vld [vmem:[#allocation219_spill] sm:$0xff]  ;;  %v12749_v35 = vadd.f32 %v15575_v46, %v15478_v48  ;;  %v4172_v40 = vmax.f32 %v4044_v2, 0.0  ;;  %v15579_v53 = vld [vmem:[#allocation120_spill] sm:$0xff] }
 0x577   :  { %8874 = vmatprep.subr.bf16.mxu1 %v8873_v19  ;;  %15571 = vst [vmem:[#allocation245_spill] sm:$0xff] %v12738_v18  ;;  %v4043_v19 = vadd.f32 %v15568_v38, %v15572_v32  ;;  %v4694_v41 = vadd.f32 %v15574_v44, %v15459_v43  ;;  %v4050_v37 = vadd.f32 %v15578_v17, %v15577_v13  ;;  %v15580_v43 = vld [vmem:[#allocation159_spill] sm:$0xff]  ;;  %v4176_v48 = vmax.f32 %v4048_v55, 0.0  ;;  %v15611_v18 = vld [vmem:[#allocation220_spill] sm:$0xff] }
 0x578   :  { %v12732_v30 = vpop.permute.xlu1 %4526  ;;  %15576 = vst [vmem:[#allocation203_spill] sm:$0xff] %v12749_v35  ;;  %v4693_v14 = vadd.f32 %v15574_v44, %v15464_v4  ;;  %v8879_v38 = vpack.c.bf16 %v4169_v26, %v4167_v33  ;;  %v4047_v1 = vadd.f32 %v12224_v7, %v15579_v53  ;;  %v4698_v29 = vadd.f32 %v15580_v43, %v15469_v39  ;;  %v15581_v35 = vld [vmem:[#allocation134_spill] sm:$0xff]  ;;  %v15585_v4 = vld [vmem:[#allocation132_spill] sm:$0xff] }
 0x579   :  { %v4054_v2 = vadd.f32 %v12240_v3, %v15581_v35  ;;  %v8881_v13 = vpack.c.bf16 %v4174_v51, %v4172_v40  ;;  %v4171_v21 = vmax.f32 %v4043_v19, 0.0  ;;  %v15583_v44 = vld [vmem:[#allocation122_spill] sm:$0xff]  ;;  %v15584_v7 = vmax.f32 %v12551_v11, 0.0  ;;  %v15586_v53 = vld [vmem:[#allocation136_spill] sm:$0xff] }
 0x57a   :  { %9647 = vset.pattern.permute.xlu1 %v15262_v15  ;;  %8876 = vmatpush1.bf16.msra.mxu1 %v8875_v6  ;;  %v4173_v6 = vmax.f32 %v4045_v27, 0.0  ;;  %v4049_v26 = vadd.f32 %v15578_v17, %v15583_v44  ;;  %v4822_v27 = vmax.f32 %v4694_v41, 0.0  ;;  %v4178_v55 = vmax.f32 %v4050_v37, 0.0  ;;  %v15587_v40 = vld [vmem:[#allocation20_spill] sm:$0xff]  ;;  %v15589_v41 = vld [vmem:[#allocation191_spill] sm:$0xff] }
 0x57b   :  { %5292 = vperm.xlu1 %9647, %v15566_v25   ;;  %8878 = vmatprep.subr.bf16.mxu1 %v8877_v31  ;;  %v15582_v25 = vmax.f32 %v12559_v58, 0.0  ;;  %v12770_v33 = vpack.c.bf16 %v15584_v7, %v4817_v59  ;;  %v4052_v35 = vadd.f32 %v15586_v53, %v15585_v4  ;;  %v4821_v58 = vmax.f32 %v4693_v14, 0.0  ;;  %v15590_v7 = vld [vmem:[#allocation129_spill] sm:$0xff]  ;;  %v15627_v44 = vld [vmem:[#allocation8_spill] sm:$0xff] }
 0x57c   :  { %v4175_v19 = vmax.f32 %v4047_v1, 0.0  ;;  %v4053_v17 = vadd.f32 %v12240_v3, %v15587_v40  ;;  %v4826_v11 = vmax.f32 %v4698_v29, 0.0  ;;  %v4182_v59 = vmax.f32 %v4054_v2, 0.0  ;;  %v15591_v1 = vld [vmem:[#allocation237_spill] sm:$0xff]  ;;  %v15630_v12 = vld [vmem:[#allocation40_spill] sm:$0xff] }
 0x57d   :  { %v3291_v46 = vpop.permute.xlu1 %3290  ;;  %v12764_v31 = vpack.c.bf16 %v15582_v25, %v4818_v49  ;;  %v8883_v49 = vpack.c.bf16 %v4173_v6, %v4171_v21  ;;  %v4056_v37 = vadd.f32 %v12259_v0, %v15589_v41  ;;  %v8885_v25 = vpack.c.bf16 %v4178_v55, %v4176_v48  ;;  %v15594_v48 = vld [vmem:[#allocation23_spill] sm:$0xff]  ;;  %v15595_v55 = vld [vmem:[#allocation138_spill] sm:$0xff] }
 0x57e   :  { %8880 = vmatpush1.bf16.msra.mxu1 %v8879_v38  ;;  %v12778_v38 = vpop.permute.xlu0 %5172  ;;  %v4177_v14 = vmax.f32 %v4049_v26, 0.0  ;;  %v4051_v21 = vadd.f32 %v15586_v53, %v15590_v7  ;;  %v12789_v3 = vadd.f32 %v15591_v1, %v15476_v61  ;;  %v4180_v2 = vmax.f32 %v4052_v35, 0.0  ;;  %v15612_v41 = vld [vmem:[#allocation26_spill] sm:$0xff] }
 0x57f   :  { %9648 = vset.pattern.permute.xlu1 %v15127_v50  ;;  %8882 = vmatprep.subr.bf16.mxu1 %v8881_v13  ;;  %15588 = vst [vmem:[#allocation248_spill] sm:$0xff] %v12778_v38  ;;  %v4697_v13 = vadd.f32 %v15580_v43, %v15476_v61  ;;  %v4058_v51 = vadd.f32 %v15595_v55, %v15594_v48  ;;  %v15596_v43 = vmax.f32 %v12570_v45, 0.0  ;;  %v15599_v35 = vmax.f32 %v12612_v57, 0.0  ;;  %v15604_v38 = vld [vmem:[#allocation42_spill] sm:$0xff] }
 0x580   :  { %4606 = vperm.xlu1 %9648, %v15199_v5   ;;  %15592 = vst [vmem:[#allocation28_spill] sm:$0xff] %v12789_v3  ;;  %v15593_v5 = vmax.f32 %v12574_v56, 0.0  ;;  %v12805_v61 = vadd.f32 %v15591_v1, %v15469_v39  ;;  %v8887_v53 = vpack.c.bf16 %v4177_v14, %v4175_v19  ;;  %v4181_v3 = vmax.f32 %v4053_v17, 0.0  ;;  %v15605_v57 = vld [vmem:[#allocation30_spill] sm:$0xff] }
 0x581   :  { %v12801_v26 = vpack.c.bf16 %v15596_v43, %v4821_v58  ;;  %v15601_v58 = vld [vmem:[#allocation94_spill] sm:$0xff]  ;;  %v8889_v43 = vpack.c.bf16 %v4182_v59, %v4180_v2  ;;  %v4825_v39 = vmax.f32 %v4697_v13, 0.0  ;;  %v4179_v1 = vmax.f32 %v4051_v21, 0.0  ;;  %v15608_v59 = vld [vmem:[#allocation149_spill] sm:$0xff] }
 0x582   :  { %v12791_v6 = vpop.permute.xlu1 %3984  ;;  %8884 = vmatpush1.bf16.msra.mxu1 %v8883_v49  ;;  %v12795_v29 = vpack.c.bf16 %v15593_v5, %v4822_v27  ;;  %15597 = vst [vmem:[#allocation230_spill] sm:$0xff] %v12805_v61  ;;  %v15598_v49 = vld [vmem:[#allocation135_spill] sm:$0xff]  ;;  %v12812_v27 = vpack.c.bf16 %v15599_v35, %v4826_v11  ;;  %v15600_v5 = vld [vmem:[#allocation145_spill] sm:$0xff]  ;;  %v12817_v19 = vpop.permute.xlu0 %5176  ;;  %v3419_v17 = vadd.f32 %v3291_v46, %v12417_v22  ;;  %v4186_v61 = vmax.f32 %v4058_v51, 0.0  ;;  %v15613_v51 = vld [vmem:[#allocation148_spill] sm:$0xff] }
 0x583   :  { %8886 = vmatprep.subr.bf16.mxu1 %v8885_v25  ;;  %v4055_v56 = vadd.f32 %v12259_v0, %v15598_v49  ;;  %v4184_v25 = vmax.f32 %v4056_v37, 0.0  ;;  %v4062_v45 = vadd.f32 %v12263_v9, %v15600_v5  ;;  %15602 = vst [vmem:[#allocation74_spill] sm:$0xff] %v12817_v19  ;;  %v15603_v0 = vld [vmem:[#allocation117_spill] sm:$0xff]  ;;  %v12823_v11 = vadd.f32 %v15605_v57, %v15604_v38  ;;  %v15610_v49 = vld [vmem:[#allocation51_spill] sm:$0xff] }
 0x584   :  { %9649 = vset.pattern.permute.xlu1 %v15262_v15  ;;  %v3420_v14 = vadd.f32 %v3291_v46, %v15603_v0  ;;  %v15606_v37 = vld [vmem:[#allocation137_spill] sm:$0xff]  ;;  %v8891_v46 = vpack.c.bf16 %v4181_v3, %v4179_v1  ;;  %v4061_v48 = vadd.f32 %v12263_v9, %v15612_v41  ;;  %v3547_v3 = vmax.f32 %v3419_v17, 0.0  ;;  %v15618_v9 = vld [vmem:[#allocation168_spill] sm:$0xff] }
 0x585   :  { %5296 = vperm.xlu1 %9649, %v15601_v58   ;;  %v4057_v35 = vadd.f32 %v15595_v55, %v15606_v37  ;;  %v15607_v58 = vld [vmem:[#allocation143_spill] sm:$0xff]  ;;  %v15609_v2 = vld [vmem:[#allocation41_spill] sm:$0xff]  ;;  %v4190_v55 = vmax.f32 %v4062_v45, 0.0  ;;  %v15620_v4 = vmax.f32 %v12606_v54, 0.0  ;;  %v15628_v54 = vld [vmem:[#allocation196_spill] sm:$0xff] }
 0x586   :  { %8888 = vmatpush1.bf16.msra.mxu1 %v8887_v53  ;;  %v4060_v13 = vadd.f32 %v15608_v59, %v15607_v58  ;;  %v12831_v19 = vadd.f32 %v15605_v57, %v15609_v2  ;;  %v4183_v53 = vmax.f32 %v4055_v56, 0.0  ;;  %v15614_v37 = vld [vmem:[#allocation37_spill] sm:$0xff]  ;;  %v8893_v57 = vpack.c.bf16 %v4186_v61, %v4184_v25  ;;  %v15616_v58 = vld [vmem:[#allocation98_spill] sm:$0xff]  ;;  %v15621_v61 = vld [vmem:[#allocation175_spill] sm:$0xff] }
 0x587   :  { %v3287_v21 = vpop.permute.xlu1 %3286  ;;  %8890 = vmatprep.subr.bf16.mxu1 %v8889_v43  ;;  %v4064_v40 = vadd.f32 %v15614_v37, %v15613_v51  ;;  %v12841_v43 = vld [vmem:[%s11372_s12] sm:$0x77]  ;;  %v3548_v56 = vmax.f32 %v3420_v14, 0.0  ;;  %v4185_v41 = vmax.f32 %v4057_v35, 0.0  ;;  %v12858_v14 = vpop.permute.xlu0 %5188 }
 0x588   :  { %v3417_v5 = vadd.f32 %v3287_v21, %v15610_v49  ;;  %v3418_v38 = vadd.f32 %v3287_v21, %v15611_v18  ;;  %15615 = vst [vmem:[#allocation169_spill] sm:$0xff] %v12841_v43  ;;  %v15617_v21 = vld [vmem:[#allocation38_spill] sm:$0xff]  ;;  %v15619_v51 = vld [vmem:[#allocation141_spill] sm:$0xff]  ;;  %v4188_v25 = vmax.f32 %v4060_v13, 0.0  ;;  %15624 = vst [vmem:[#allocation80_spill] sm:$0xff] %v12858_v14 }
 0x589   :  { %9650 = vset.pattern.permute.xlu1 %v15127_v50  ;;  %4308 = vmatmul.mubr.f32.vlgmr.msra.gmra.mrb[130].mxu1 %v12841_v43  ;;  %v12847_v45 = vadd.f32 %v15618_v9, %v15617_v21  ;;  %v4059_v7 = vadd.f32 %v15608_v59, %v15619_v51  ;;  %v12853_v43 = vpack.c.bf16 %v15620_v4, %v4825_v39  ;;  %v15626_v21 = vld [vmem:[#allocation49_spill] sm:$0xff]  ;;  %v4189_v51 = vmax.f32 %v4061_v48, 0.0  ;;  %v15629_v39 = vld [vmem:[#allocation36_spill] sm:$0xff] }
 0x58a   :  { %v3545_v1 = vmax.f32 %v3417_v5, 0.0  ;;  %v3546_v2 = vmax.f32 %v3418_v38, 0.0  ;;  %4610 = vperm.xlu1 %9650, %v15616_v58   ;;  %8892 = vmatpush1.bf16.msra.mxu1 %v8891_v46  ;;  %v15622_v38 = vld [vmem:[#allocation151_spill] sm:$0xff]  ;;  %v15623_v5 = vld [vmem:[#allocation257_spill] sm:$0xff]  ;;  %v4707_v59 = vadd.f32 %v15627_v44, %v15626_v21  ;;  %v4063_v4 = vadd.f32 %v15614_v37, %v15628_v54  ;;  %v15632_v14 = vld [vmem:[#allocation96_spill] sm:$0xff] }
 0x58b   :  { %8894 = vmatprep.subr.bf16.mxu1 %v8893_v57  ;;  %4378 = vmatprep.mubr.f32.mxu1 %v15621_v61  ;;  %v4066_v17 = vadd.f32 %v15623_v5, %v15622_v38  ;;  %v8895_v57 = vpack.c.bf16 %v4185_v41, %v4183_v53  ;;  %v4708_v13 = vadd.f32 %v15627_v44, %v15629_v39  ;;  %v4192_v61 = vmax.f32 %v4064_v40, 0.0  ;;  %v15631_v38 = vld [vmem:[#allocation192_spill] sm:$0xff]  ;;  %v15634_v48 = vld [vmem:[#allocation89_spill] sm:$0xff]  ;;  %v12887_v54 = vpop.permute.xlu0 %5192 }
 0x58c   :  { %v8823_v58 = vpack.c.bf16 %v3547_v3, %v3545_v1  ;;  %v12860_v46 = vpop.permute.xlu1 %5216  ;;  %v8821_v35 = vpack.c.bf16 %v3548_v56, %v3546_v2  ;;  %v4070_v49 = vadd.f32 %v15631_v38, %v15630_v12  ;;  %v8897_v3 = vpack.c.bf16 %v4190_v55, %v4188_v25  ;;  %v15633_v56 = vld [vmem:[#allocation32_spill] sm:$0xff]  ;;  %v15635_v53 = vld [vmem:[#allocation93_spill] sm:$0xff]  ;;  %15640 = vst [vmem:[#allocation244_spill] sm:$0xff] %v12887_v54 }
 0x58d   :  { %15625 = vst [vmem:[#allocation7_spill] sm:$0xff] %v12860_v46  ;;  %v4187_v2 = vmax.f32 %v4059_v7, 0.0  ;;  %v4065_v1 = vadd.f32 %v15623_v5, %v15633_v56  ;;  %v4830_v41 = vmax.f32 %v12823_v11, 0.0  ;;  %v4706_v37 = vadd.f32 %v15618_v9, %v15634_v48  ;;  %v15636_v46 = vld [vmem:[#allocation160_spill] sm:$0xff]  ;;  %v15647_v54 = vld [vmem:[#allocation157_spill] sm:$0xff] }
 0x58e   :  { %4614 = vperm.xlu1 %9650, %v15632_v14   ;;  %8822 = vmatprep.subr.bf16.mxu0 %v8821_v35  ;;  %v4833_v44 = vmax.f32 %v12847_v45, 0.0  ;;  %v4194_v40 = vmax.f32 %v4066_v17, 0.0  ;;  %v4068_v12 = vadd.f32 %v15636_v46, %v15635_v53  ;;  %v4829_v7 = vmax.f32 %v12831_v19, 0.0  ;;  %v15639_v17 = vld [vmem:[#allocation194_spill] sm:$0xff] }
 0x58f   :  { %8896 = vmatpush1.bf16.msra.mxu1 %v8895_v57  ;;  %8824 = vmatpush1.bf16.msra.mxu0 %v8823_v58  ;;  %v4835_v55 = vmax.f32 %v4707_v59, 0.0  ;;  %v8899_v25 = vpack.c.bf16 %v4189_v51, %v4187_v2  ;;  %v4191_v5 = vmax.f32 %v4063_v4, 0.0  ;;  %v15637_v58 = vld [vmem:[#allocation154_spill] sm:$0xff]  ;;  %v4836_v9 = vmax.f32 %v4708_v13, 0.0  ;;  %v15638_v57 = vld [vmem:[#allocation95_spill] sm:$0xff]  ;;  %v15643_v2 = vld [vmem:[#allocation25_spill] sm:$0xff] }
 0x590   :  { %8898 = vmatprep.subr.bf16.mxu1 %v8897_v3  ;;  %8954 = vmatprep.subr.bf16.mxu0 %v12673_v23  ;;  %v4069_v11 = vadd.f32 %v15631_v38, %v15637_v58  ;;  %v4198_v45 = vmax.f32 %v4070_v49, 0.0  ;;  %v4072_v56 = vadd.f32 %v15639_v17, %v15638_v57  ;;  %v12891_v23 = vld [vmem:[%s11372_s12 + $0x8] sm:$0x77]  ;;  %v8901_v19 = vpack.c.bf16 %v4194_v40, %v4192_v61 }
 0x591   :  { %v12883_v35 = vpop.permute.xlu1 %4530  ;;  %v4193_v51 = vmax.f32 %v4065_v1, 0.0  ;;  %v15641_v59 = vld [vmem:[#allocation18_spill] sm:$0xff]  ;;  %v4834_v49 = vmax.f32 %v4706_v37, 0.0  ;;  %v4196_v3 = vmax.f32 %v4068_v12, 0.0  ;;  %v15645_v61 = vmax.f32 %v12702_v42, 0.0  ;;  %v15649_v42 = vld [vmem:[#allocation11_spill] sm:$0xff] }
 0x592   :  { %9651 = vset.pattern.permute.xlu1 %v15262_v15  ;;  %3685 = vmatmul.mubr.f32.vlgmr.msra.gmra.mrb[70].mxu0 %v12891_v23  ;;  %v4067_v38 = vadd.f32 %v15636_v46, %v15641_v59  ;;  %v15642_v4 = vld [vmem:[#allocation226_spill] sm:$0xff]  ;;  %v15646_v46 = vld [vmem:[#allocation57_spill] sm:$0xff]  ;;  %v15648_v37 = vmax.f32 %v12698_v24, 0.0 }
 0x593   :  { %v12898_v13 = vadd.f32 %v15642_v4, %v15517_v63  ;;  %8900 = vmatpush1.bf16.msra.mxu1 %v8899_v25  ;;  %5308 = vperm.xlu1 %9651, %v15632_v14   ;;  %v15644_v57 = vld [vmem:[#allocation162_spill] sm:$0xff]  ;;  %v12906_v1 = vpack.c.bf16 %v15645_v61, %v4830_v41  ;;  %v12910_v40 = vadd.f32 %v15642_v4, %v15646_v46  ;;  %v4197_v25 = vmax.f32 %v4069_v11, 0.0  ;;  %v15650_v4 = vld [vmem:[#allocation31_spill] sm:$0xff]  ;;  %v15667_v63 = vld [vmem:[#allocation44_spill] sm:$0xff] }
 0x594   :  { %v4074_v58 = vadd.f32 %v15644_v57, %v15643_v2  ;;  %8902 = vmatprep.subr.bf16.mxu1 %v8901_v19  ;;  %8956 = vmatpush1.bf16.msra.mxu0 %v12677_v10  ;;  %v8903_v53 = vpack.c.bf16 %v4193_v51, %v4191_v5  ;;  %v4071_v14 = vadd.f32 %v15639_v17, %v15647_v54  ;;  %v4200_v19 = vmax.f32 %v4072_v56, 0.0  ;;  %v15651_v61 = vld [vmem:[#allocation99_spill] sm:$0xff]  ;;  %v15652_v2 = vld [vmem:[#allocation161_spill] sm:$0xff] }
 0x595   :  { %8958 = vmatprep.subr.bf16.mxu0 %v12718_v16  ;;  %v12915_v12 = vpop.permute.xlu1 %4534  ;;  %v12919_v10 = vpack.c.bf16 %v15648_v37, %v4829_v7  ;;  %5001 = vmatprep.mubr.f32.mxu0 %v15649_v42  ;;  %v12922_v41 = vpack.c.bf16 %v4835_v55, %v4833_v44  ;;  %v4078_v5 = vadd.f32 %v15651_v61, %v15650_v4  ;;  %v4195_v51 = vmax.f32 %v4067_v38, 0.0  ;;  %v15653_v7 = vld [vmem:[#allocation52_spill] sm:$0xff]  ;;  %v15656_v54 = vld [vmem:[#allocation165_spill] sm:$0xff]  ;;  %v15669_v46 = vld [vmem:[#allocation55_spill] sm:$0xff] }
 0x596   :  { %v8905_v11 = vpack.c.bf16 %v4198_v45, %v4196_v3  ;;  %v4073_v17 = vadd.f32 %v15644_v57, %v15652_v2  ;;  %v12930_v24 = vpack.c.bf16 %v4836_v9, %v4834_v49  ;;  %v15654_v37 = vld [vmem:[#allocation56_spill] sm:$0xff]  ;;  %v4202_v56 = vmax.f32 %v4074_v58, 0.0  ;;  %v12938_v45 = vpop.permute.xlu0 %5204  ;;  %v15659_v3 = vld [vmem:[#allocation27_spill] sm:$0xff]  ;;  %v15660_v2 = vld [vmem:[#allocation101_spill] sm:$0xff] }
 0x597   :  { %8904 = vmatpush1.bf16.msra.mxu1 %v8903_v53  ;;  %9652 = vset.pattern.permute.xlu1 %v15127_v50  ;;  %v12934_v44 = vadd.f32 %v15654_v37, %v15653_v7  ;;  %v15655_v55 = vld [vmem:[#allocation100_spill] sm:$0xff]  ;;  %15657 = vst [vmem:[#allocation140_spill] sm:$0xff] %v12938_v45  ;;  %v15658_v53 = vld [vmem:[#allocation54_spill] sm:$0xff]  ;;  %v8907_v9 = vpack.c.bf16 %v4197_v25, %v4195_v51  ;;  %v4199_v49 = vmax.f32 %v4071_v14, 0.0  ;;  %v4206_v58 = vmax.f32 %v4078_v5, 0.0 }
 0x598   :  { %v4076_v4 = vadd.f32 %v15656_v54, %v15655_v55  ;;  %8906 = vmatprep.subr.bf16.mxu1 %v8905_v11  ;;  %8960 = vmatpush1.bf16.msra.mxu0 %v12694_v36  ;;  %v4712_v38 = vadd.f32 %v15654_v37, %v15658_v53  ;;  %v4077_v16 = vadd.f32 %v15651_v61, %v15659_v3  ;;  %v15661_v55 = vld [vmem:[#allocation21_spill] sm:$0xff]  ;;  %v15662_v45 = vld [vmem:[#allocation198_spill] sm:$0xff]  ;;  %v15663_v36 = vld [vmem:[#allocation228_spill] sm:$0xff] }
 0x599   :  { %4622 = vperm.xlu1 %9652, %v15660_v2   ;;  %8962 = vmatprep.subr.bf16.mxu0 %v12764_v31  ;;  %v4080_v11 = vadd.f32 %v15662_v45, %v15661_v55  ;;  %v12952_v59 = vadd.f32 %v15663_v36, %v15533_v28  ;;  %v8909_v37 = vpack.c.bf16 %v4202_v56, %v4200_v19  ;;  %v15665_v25 = vld [vmem:[#allocation50_spill] sm:$0xff]  ;;  %v15666_v14 = vld [vmem:[#allocation60_spill] sm:$0xff]  ;;  %v4201_v2 = vmax.f32 %v4073_v17, 0.0 }
 0x59a   :  { %v12954_v57 = vpop.permute.xlu1 %5228  ;;  %v4709_v51 = vadd.f32 %v15666_v14, %v15665_v25  ;;  %v4710_v61 = vadd.f32 %v15666_v14, %v15667_v63  ;;  %v15668_v3 = vld [vmem:[#allocation164_spill] sm:$0xff]  ;;  %v4839_v5 = vmax.f32 %v12934_v44, 0.0  ;;  %v4204_v55 = vmax.f32 %v4076_v4, 0.0  ;;  %v15670_v28 = vld [vmem:[#allocation22_spill] sm:$0xff]  ;;  %v15672_v44 = vld [vmem:[#allocation171_spill] sm:$0xff]  ;;  %v12978_v25 = vpop.permute.xlu0 %5208 }
 0x59b   :  { %15664 = vst [vmem:[#allocation170_spill] sm:$0xff] %v12954_v57  ;;  %v4075_v31 = vadd.f32 %v15656_v54, %v15668_v3  ;;  %8908 = vmatpush1.bf16.msra.mxu1 %v8907_v9  ;;  %v4082_v7 = vadd.f32 %v15670_v28, %v15669_v46  ;;  %v12968_v19 = vadd.f32 %v15663_v36, %v15526_v47  ;;  %v4840_v56 = vmax.f32 %v4712_v38, 0.0  ;;  %v15671_v57 = vld [vmem:[#allocation33_spill] sm:$0xff]  ;;  %v15673_v9 = vld [vmem:[#allocation24_spill] sm:$0xff]  ;;  %v15677_v36 = vld [vmem:[#allocation103_spill] sm:$0xff] }
 0x59c   :  { %8910 = vmatprep.subr.bf16.mxu1 %v8909_v37  ;;  %8964 = vmatpush1.bf16.msra.mxu0 %v12770_v33  ;;  %v8911_v14 = vpack.c.bf16 %v4201_v2, %v4199_v49  ;;  %v4205_v17 = vmax.f32 %v4077_v16, 0.0  ;;  %v4079_v54 = vadd.f32 %v15662_v45, %v15671_v57  ;;  %v4208_v4 = vmax.f32 %v4080_v11, 0.0  ;;  %v15674_v46 = vld [vmem:[#allocation64_spill] sm:$0xff]  ;;  %v15675_v33 = vld [vmem:[#allocation17_spill] sm:$0xff]  ;;  %15676 = vst [vmem:[#allocation76_spill] sm:$0xff] %v12978_v25  ;;  %v15678_v45 = vld [vmem:[#allocation167_spill] sm:$0xff] }
 0x59d   :  { %9653 = vset.pattern.permute.xlu1 %v15262_v15  ;;  %8966 = vmatprep.subr.bf16.mxu0 %v12795_v29  ;;  %v4084_v37 = vadd.f32 %v15673_v9, %v15672_v44  ;;  %v4086_v3 = vadd.f32 %v15675_v33, %v15674_v46  ;;  %v8913_v38 = vpack.c.bf16 %v4206_v58, %v4204_v55  ;;  %v4837_v16 = vmax.f32 %v4709_v51, 0.0  ;;  %v15679_v47 = vld [vmem:[#allocation15_spill] sm:$0xff]  ;;  %v15680_v63 = vld [vmem:[#allocation172_spill] sm:$0xff]  ;;  %v15681_v25 = vld [vmem:[#allocation229_spill] sm:$0xff] }
 0x59e   :  { %5312 = vperm.xlu1 %9653, %v15677_v36   ;;  %v4838_v49 = vmax.f32 %v4710_v61, 0.0  ;;  %v4203_v2 = vmax.f32 %v4075_v31, 0.0  ;;  %v4081_v57 = vadd.f32 %v15670_v28, %v15678_v45  ;;  %v4210_v11 = vmax.f32 %v4082_v7, 0.0  ;;  %v15682_v31 = vld [vmem:[#allocation72_spill] sm:$0xff]  ;;  %v13011_v7 = vpop.permute.xlu0 %5220 }
 0x59f   :  { %8912 = vmatpush1.bf16.msra.mxu1 %v8911_v14  ;;  %v12983_v29 = vpop.permute.xlu1 %4542  ;;  %v4083_v44 = vadd.f32 %v15673_v9, %v15679_v47  ;;  %v4085_v46 = vadd.f32 %v15675_v33, %v15680_v63  ;;  %v12991_v36 = vadd.f32 %v15681_v25, %v15552_v60  ;;  %v4207_v58 = vmax.f32 %v4079_v54, 0.0  ;;  %v15683_v14 = vld [vmem:[#allocation179_spill] sm:$0xff]  ;;  %15687 = vst [vmem:[#allocation163_spill] sm:$0xff] %v13011_v7 }
 0x5a0   :  { %8968 = vmatpush1.bf16.msra.mxu0 %v12801_v26  ;;  %8914 = vmatprep.subr.bf16.mxu1 %v8913_v38  ;;  %v8915_v55 = vpack.c.bf16 %v4205_v17, %v4203_v2  ;;  %v4212_v51 = vmax.f32 %v4084_v37, 0.0  ;;  %v4214_v61 = vmax.f32 %v4086_v3, 0.0  ;;  %v4090_v9 = vadd.f32 %v15683_v14, %v15682_v31  ;;  %v15684_v38 = vld [vmem:[#allocation107_spill] sm:$0xff]  ;;  %v15685_v37 = vld [vmem:[#allocation177_spill] sm:$0xff]  ;;  %v15686_v2 = vld [vmem:[#allocation202_spill] sm:$0xff] }
 0x5a1   :  { %8970 = vmatprep.subr.bf16.mxu0 %v12812_v27  ;;  %v8917_v33 = vpack.c.bf16 %v4210_v11, %v4208_v4  ;;  %v13000_v63 = vpack.c.bf16 %v4839_v5, %v4837_v16  ;;  %v4209_v26 = vmax.f32 %v4081_v57, 0.0  ;;  %v13003_v17 = vpack.c.bf16 %v4840_v56, %v4838_v49  ;;  %v15689_v56 = vld [vmem:[#allocation146_spill] sm:$0xff]  ;;  %v15690_v16 = vld [vmem:[#allocation109_spill] sm:$0xff]  ;;  %v15695_v5 = vld [vmem:[#allocation183_spill] sm:$0xff] }
 0x5a2   :  { %9654 = vset.pattern.permute.xlu1 %v15127_v50  ;;  %v13007_v27 = vadd.f32 %v15681_v25, %v15546_v62  ;;  %v4211_v54 = vmax.f32 %v4083_v44, 0.0  ;;  %v4213_v3 = vmax.f32 %v4085_v46, 0.0  ;;  %v4088_v28 = vadd.f32 %v15686_v2, %v15685_v37  ;;  %v15691_v44 = vld [vmem:[#allocation178_spill] sm:$0xff] }
 0x5a3   :  { %4626 = vperm.xlu1 %9654, %v15684_v38   ;;  %8916 = vmatpush1.bf16.msra.mxu1 %v8915_v55  ;;  %v13019_v4 = vadd.f32 %v15689_v56, %v15572_v32  ;;  %v8919_v25 = vpack.c.bf16 %v4209_v26, %v4207_v58  ;;  %v4087_v46 = vadd.f32 %v15686_v2, %v15690_v16  ;;  %v15692_v11 = vld [vmem:[#allocation254_spill] sm:$0xff]  ;;  %v15693_v55 = vld [vmem:[#allocation205_spill] sm:$0xff]  ;;  %v15697_v16 = vld [vmem:[#allocation35_spill] sm:$0xff] }
 0x5a4   :  { %8918 = vmatprep.subr.bf16.mxu1 %v8917_v33  ;;  %8972 = vmatpush1.bf16.msra.mxu0 %v12853_v43  ;;  %v13015_v57 = vpop.permute.xlu1 %5232  ;;  %v4089_v49 = vadd.f32 %v15683_v14, %v15691_v44  ;;  %v13028_v33 = vadd.f32 %v15693_v55, %v15692_v11  ;;  %v4218_v43 = vmax.f32 %v4090_v9, 0.0  ;;  %v15694_v38 = vld [vmem:[#allocation29_spill] sm:$0xff]  ;;  %v8921_v37 = vpack.c.bf16 %v4214_v61, %v4212_v51  ;;  %v15696_v26 = vld [vmem:[#allocation210_spill] sm:$0xff]  ;;  %v15698_v14 = vld [vmem:[#allocation208_spill] sm:$0xff] }
 0x5a5   :  { %15688 = vst [vmem:[#allocation48_spill] sm:$0xff] %v13015_v57  ;;  %8974 = vmatprep.subr.bf16.mxu0 %v12906_v1  ;;  %v4092_v31 = vadd.f32 %v15695_v5, %v15694_v38  ;;  %v13034_v58 = vadd.f32 %v15689_v56, %v15567_v52  ;;  %v4094_v2 = vadd.f32 %v15693_v55, %v15696_v26  ;;  %v15699_v1 = vld [vmem:[#allocation105_spill] sm:$0xff]  ;;  %v4216_v45 = vmax.f32 %v4088_v28, 0.0  ;;  %v15700_v38 = vld [vmem:[#allocation182_spill] sm:$0xff]  ;;  %v15704_v32 = vld [vmem:[#allocation211_spill] sm:$0xff] }
 0x5a6   :  { %v13040_v44 = vadd.f32 %v15698_v14, %v15697_v16  ;;  %v8923_v11 = vpack.c.bf16 %v4213_v3, %v4211_v54  ;;  %v4096_v51 = vadd.f32 %v15698_v14, %v15700_v38  ;;  %v15701_v61 = vld [vmem:[#allocation10_spill] sm:$0xff]  ;;  %v4215_v55 = vmax.f32 %v4087_v46, 0.0  ;;  %v15703_v16 = vld [vmem:[#allocation43_spill] sm:$0xff]  ;;  %v15706_v14 = vld [vmem:[#allocation185_spill] sm:$0xff] }
 0x5a7   :  { %4630 = vperm.xlu1 %9654, %v15699_v1   ;;  %8920 = vmatpush1.bf16.msra.mxu1 %v8919_v25  ;;  %v15702_v56 = vld [vmem:[#allocation214_spill] sm:$0xff]  ;;  %v4217_v26 = vmax.f32 %v4089_v49, 0.0  ;;  %v13051_v57 = vadd.f32 %v15704_v32, %v15703_v16  ;;  %v15705_v25 = vld [vmem:[#allocation180_spill] sm:$0xff]  ;;  %v4221_v54 = vmax.f32 %v13028_v33, 0.0  ;;  %v4220_v3 = vmax.f32 %v4092_v31, 0.0 }
 0x5a8   :  { %v4716_v47 = vadd.f32 %v15702_v56, %v15701_v61  ;;  %8922 = vmatprep.subr.bf16.mxu1 %v8921_v37  ;;  %8976 = vmatpush1.bf16.msra.mxu0 %v12919_v10  ;;  %v4091_v9 = vadd.f32 %v15695_v5, %v15705_v25  ;;  %v15707_v37 = vld [vmem:[#allocation187_spill] sm:$0xff]  ;;  %v13061_v10 = vpop.permute.xlu0 %5224  ;;  %v8925_v46 = vpack.c.bf16 %v4218_v43, %v4216_v45  ;;  %v4222_v49 = vmax.f32 %v4094_v2, 0.0  ;;  %v15709_v52 = vld [vmem:[#allocation90_spill] sm:$0xff]  ;;  %v15711_v33 = vld [vmem:[#allocation216_spill] sm:$0xff] }
 0x5a9   :  { %8978 = vmatprep.subr.bf16.mxu0 %v12930_v24  ;;  %v13056_v28 = vpop.permute.xlu1 %4546  ;;  %v4098_v38 = vadd.f32 %v15707_v37, %v15706_v14  ;;  %15708 = vst [vmem:[#allocation206_spill] sm:$0xff] %v13061_v10  ;;  %v4223_v16 = vmax.f32 %v13040_v44, 0.0  ;;  %v13066_v60 = vadd.f32 %v15704_v32, %v15709_v52  ;;  %v15710_v5 = vld [vmem:[#allocation62_spill] sm:$0xff]  ;;  %v4224_v31 = vmax.f32 %v4096_v51, 0.0  ;;  %v15712_v25 = vld [vmem:[#allocation59_spill] sm:$0xff]  ;;  %v15714_v43 = vld [vmem:[#allocation61_spill] sm:$0xff] }
 0x5aa   :  { %v4715_v24 = vadd.f32 %v15702_v56, %v15710_v5  ;;  %v13073_v14 = vadd.f32 %v15712_v25, %v15711_v33  ;;  %v4844_v10 = vmax.f32 %v4716_v47, 0.0  ;;  %v15713_v45 = vld [vmem:[#allocation63_spill] sm:$0xff]  ;;  %v8927_v32 = vpack.c.bf16 %v4217_v26, %v4215_v55  ;;  %v15715_v56 = vld [vmem:[#allocation81_spill] sm:$0xff]  ;;  %v15716_v33 = vld [vmem:[#allocation190_spill] sm:$0xff] }
 0x5ab   :  { %9655 = vset.pattern.permute.xlu1 %v15262_v15  ;;  %8924 = vmatpush1.bf16.msra.mxu1 %v8923_v11  ;;  %v4720_v2 = vadd.f32 %v15714_v43, %v15713_v45  ;;  %v4219_v52 = vmax.f32 %v4091_v9, 0.0  ;;  %v4097_v7 = vadd.f32 %v15707_v37, %v15715_v56  ;;  %v4226_v51 = vmax.f32 %v4098_v38, 0.0  ;;  %v15717_v47 = vld [vmem:[#allocation92_spill] sm:$0xff]  ;;  %v15718_v5 = vld [vmem:[#allocation67_spill] sm:$0xff]  ;;  %v15719_v45 = vld [vmem:[#allocation218_spill] sm:$0xff] }
 0x5ac   :  { %5324 = vperm.xlu1 %9655, %v15699_v1   ;;  %8926 = vmatprep.subr.bf16.mxu1 %v8925_v46  ;;  %v4100_v62 = vadd.f32 %v15717_v47, %v15716_v33  ;;  %v4718_v61 = vadd.f32 %v15719_v45, %v15718_v5  ;;  %v8929_v26 = vpack.c.bf16 %v4222_v49, %v4220_v3  ;;  %v4230_v1 = vmax.f32 %v13066_v60, 0.0  ;;  %v15720_v9 = vld [vmem:[#allocation45_spill] sm:$0xff]  ;;  %v13097_v44 = vpop.permute.xlu0 %5236  ;;  %v15723_v56 = vld [vmem:[#allocation79_spill] sm:$0xff] }
 0x5ad   :  { %8980 = vmatpush1.bf16.msra.mxu0 %v12922_v41  ;;  %v13082_v11 = vpop.permute.xlu1 %4550  ;;  %v13092_v55 = vadd.f32 %v15712_v25, %v15720_v9  ;;  %v4843_v37 = vmax.f32 %v4715_v24, 0.0  ;;  %v15721_v41 = vld [vmem:[#allocation71_spill] sm:$0xff]  ;;  %15722 = vst [vmem:[#allocation166_spill] sm:$0xff] %v13097_v44  ;;  %v4848_v33 = vmax.f32 %v4720_v2, 0.0  ;;  %v15725_v60 = vmax.f32 %v12910_v40, 0.0  ;;  %v15726_v24 = vld [vmem:[#allocation189_spill] sm:$0xff] }
 0x5ae   :  { %8982 = vmatprep.subr.bf16.mxu0 %v13003_v17  ;;  %v4719_v46 = vadd.f32 %v15714_v43, %v15721_v41  ;;  %v15724_v5 = vld [vmem:[#allocation131_spill] sm:$0xff]  ;;  %v8931_v3 = vpack.c.bf16 %v4221_v54, %v4219_v52  ;;  %v4225_v49 = vmax.f32 %v4097_v7, 0.0  ;;  %v4099_v43 = vadd.f32 %v15717_v47, %v15726_v24  ;;  %v15728_v2 = vld [vmem:[#allocation110_spill] sm:$0xff]  ;;  %v15729_v44 = vld [vmem:[#allocation197_spill] sm:$0xff] }
 0x5af   :  { %8928 = vmatpush1.bf16.msra.mxu1 %v8927_v32  ;;  %v4724_v17 = vadd.f32 %v15724_v5, %v15723_v56  ;;  %v8985_v25 = vpack.c.bf16 %v4844_v10, %v15725_v60  ;;  %v15727_v32 = vld [vmem:[#allocation65_spill] sm:$0xff]  ;;  %v4228_v9 = vmax.f32 %v4100_v62, 0.0  ;;  %v15730_v56 = vld [vmem:[#allocation199_spill] sm:$0xff]  ;;  %v8933_v52 = vpack.c.bf16 %v4226_v51, %v4224_v31  ;;  %v15734_v60 = vld [vmem:[#allocation108_spill] sm:$0xff] }
 0x5b0   :  { %9656 = vset.pattern.permute.xlu1 %v15127_v50  ;;  %8930 = vmatprep.subr.bf16.mxu1 %v8929_v26  ;;  %v4717_v38 = vadd.f32 %v15719_v45, %v15727_v32  ;;  %v4106_v41 = vadd.f32 %v15730_v56, %v15729_v44  ;;  %v4846_v26 = vmax.f32 %v4718_v61, 0.0  ;;  %v4232_v7 = vmax.f32 %v13092_v55, 0.0  ;;  %v15733_v45 = vld [vmem:[#allocation77_spill] sm:$0xff]  ;;  %v15735_v62 = vld [vmem:[#allocation215_spill] sm:$0xff] }
 0x5b1   :  { %8984 = vmatpush1.bf16.msra.mxu0 %v13000_v63  ;;  %4638 = vperm.xlu1 %9656, %v15728_v2   ;;  %v15732_v54 = vmax.f32 %v12898_v13, 0.0  ;;  %v4847_v47 = vmax.f32 %v4719_v46, 0.0  ;;  %v4723_v63 = vadd.f32 %v15724_v5, %v15733_v45  ;;  %v13121_v2 = vadd.f32 %v15735_v62, %v15734_v60  ;;  %v13128_v46 = vpop.permute.xlu0 %5240  ;;  %v15739_v60 = vld [vmem:[#allocation82_spill] sm:$0xff]  ;;  %v15740_v24 = vld [vmem:[#allocation239_spill] sm:$0xff] }
 0x5b2   :  { %8986 = vmatprep.subr.bf16.mxu0 %v8985_v25  ;;  %v13112_v40 = vpop.permute.xlu1 %5244  ;;  %v4852_v44 = vmax.f32 %v4724_v17, 0.0  ;;  %v4728_v61 = vadd.f32 %v12667_v20, %v15538_v8  ;;  %v8989_v31 = vpack.c.bf16 %v4848_v33, %v4846_v26  ;;  %v8935_v51 = vpack.c.bf16 %v4225_v49, %v4223_v16  ;;  %v15736_v25 = vld [vmem:[#allocation195_spill] sm:$0xff]  ;;  %v15741_v33 = vld [vmem:[#allocation112_spill] sm:$0xff] }
 0x5b3   :  { %15731 = vst [vmem:[#allocation9_spill] sm:$0xff] %v13112_v40  ;;  %v8987_v10 = vpack.c.bf16 %v4843_v37, %v15732_v54  ;;  %8932 = vmatpush1.bf16.msra.mxu1 %v8931_v3  ;;  %v4227_v55 = vmax.f32 %v4099_v43, 0.0  ;;  %v4105_v13 = vadd.f32 %v15730_v56, %v15736_v25  ;;  %v4845_v37 = vmax.f32 %v4717_v38, 0.0  ;;  %v15737_v3 = vld [vmem:[#allocation201_spill] sm:$0xff]  ;;  %v15742_v49 = vld [vmem:[#allocation204_spill] sm:$0xff]  ;;  %v15786_v25 = vld [vmem:[#allocation119_spill] sm:$0xff] }
 0x5b4   :  { %8934 = vmatprep.subr.bf16.mxu1 %v8933_v52  ;;  %v4234_v5 = vmax.f32 %v4106_v41, 0.0  ;;  %v15738_v54 = vld [vmem:[#allocation209_spill] sm:$0xff]  ;;  %v4726_v40 = vadd.f32 %v15740_v24, %v15739_v60  ;;  %v8937_v16 = vpack.c.bf16 %v4230_v1, %v4228_v9  ;;  %v4110_v56 = vadd.f32 %v15735_v62, %v15742_v49 }
 0x5b5   :  { %8988 = vmatpush1.bf16.msra.mxu0 %v8987_v10  ;;  %9657 = vset.pattern.permute.xlu1 %v15262_v15  ;;  %v4108_v17 = vadd.f32 %v15738_v54, %v15737_v3  ;;  %v8991_v38 = vpack.c.bf16 %v4847_v47, %v4845_v37  ;;  %v4851_v43 = vmax.f32 %v4723_v63, 0.0  ;;  %v4727_v41 = vadd.f32 %v12667_v20, %v15544_v34  ;;  %v15743_v3 = vld [vmem:[#allocation14_spill] sm:$0xff]  ;;  %v15746_v37 = vld [vmem:[#allocation133_spill] sm:$0xff] }
 0x5b6   :  { %8990 = vmatprep.subr.bf16.mxu0 %v8989_v31  ;;  %5328 = vperm.xlu1 %9657, %v15741_v33   ;;  %v4237_v52 = vmax.f32 %v13121_v2, 0.0  ;;  %v4856_v10 = vmax.f32 %v4728_v61, 0.0  ;;  %v4732_v31 = vadd.f32 %v12732_v30, %v15743_v3  ;;  %v15744_v1 = vmax.f32 %v12968_v19, 0.0 }
 0x5b7   :  { %8936 = vmatpush1.bf16.msra.mxu1 %v8935_v51  ;;  %v13139_v26 = vpop.permute.xlu1 %4558  ;;  %v15745_v62 = vmax.f32 %v13051_v57, 0.0  ;;  %v4233_v63 = vmax.f32 %v4105_v13, 0.0  ;;  %v4107_v20 = vadd.f32 %v15738_v54, %v15746_v37  ;;  %v15747_v51 = vld [vmem:[#allocation12_spill] sm:$0xff]  ;;  %v4236_v2 = vmax.f32 %v4108_v17, 0.0  ;;  %v13162_v17 = vpop.permute.xlu0 %5252 }
 0x5b8   :  { %8938 = vmatprep.subr.bf16.mxu1 %v8937_v16  ;;  %v8993_v9 = vpack.c.bf16 %v4852_v44, %v15744_v1  ;;  %v4725_v33 = vadd.f32 %v15740_v24, %v15747_v51  ;;  %v4854_v61 = vmax.f32 %v4726_v40, 0.0  ;;  %v4114_v49 = vadd.f32 %v12791_v6, %v15603_v0  ;;  %v15749_v16 = vld [vmem:[#allocation97_spill] sm:$0xff]  ;;  %v15750_v1 = vld [vmem:[#allocation116_spill] sm:$0xff]  ;;  %15752 = vst [vmem:[#allocation184_spill] sm:$0xff] %v13162_v17  ;;  %v15757_v0 = vld [vmem:[#allocation19_spill] sm:$0xff] }
 0x5b9   :  { %v8939_v47 = vpack.c.bf16 %v15745_v62, %v4227_v55  ;;  %8992 = vmatpush1.bf16.msra.mxu0 %v8991_v38  ;;  %v8941_v19 = vpack.c.bf16 %v4234_v5, %v4232_v7  ;;  %v4238_v44 = vmax.f32 %v4110_v56, 0.0  ;;  %v15748_v57 = vmax.f32 %v12952_v59, 0.0  ;;  %v15751_v24 = vld [vmem:[#allocation217_spill] sm:$0xff] }
 0x5ba   :  { %8994 = vmatprep.subr.bf16.mxu0 %v8993_v9  ;;  %9658 = vset.pattern.permute.xlu1 %v15127_v50  ;;  %v4855_v13 = vmax.f32 %v4727_v41, 0.0  ;;  %v4731_v54 = vadd.f32 %v12732_v30, %v15749_v16  ;;  %v4112_v40 = vadd.f32 %v15751_v24, %v15611_v18  ;;  %v4860_v38 = vmax.f32 %v4732_v31, 0.0  ;;  %v15753_v9 = vld [vmem:[#allocation106_spill] sm:$0xff] }
 0x5bb   :  { %v8995_v55 = vpack.c.bf16 %v4851_v43, %v15748_v57  ;;  %4642 = vperm.xlu1 %9658, %v15750_v1   ;;  %8940 = vmatpush1.bf16.msra.mxu1 %v8939_v47  ;;  %v4736_v7 = vadd.f32 %v12915_v12, %v15753_v9  ;;  %v8997_v5 = vpack.c.bf16 %v4856_v10, %v4854_v61  ;;  %v15754_v56 = vmax.f32 %v13073_v14, 0.0  ;;  %v15755_v47 = vld [vmem:[#allocation234_spill] sm:$0xff]  ;;  %v15758_v61 = vld [vmem:[#allocation51_spill] sm:$0xff]  ;;  %v13193_v37 = vpop.permute.xlu0 %5256 }
 0x5bc   :  { %8942 = vmatprep.subr.bf16.mxu1 %v8941_v19  ;;  %v13166_v59 = vpop.permute.xlu1 %5248  ;;  %v4235_v30 = vmax.f32 %v4107_v20, 0.0  ;;  %v4853_v41 = vmax.f32 %v4725_v33, 0.0  ;;  %v4113_v62 = vadd.f32 %v12791_v6, %v12417_v22  ;;  %v15756_v57 = vld [vmem:[#allocation222_spill] sm:$0xff]  ;;  %v4242_v31 = vmax.f32 %v4114_v49, 0.0  ;;  %v15759_v20 = vld [vmem:[#allocation104_spill] sm:$0xff]  ;;  %15767 = vst [vmem:[#allocation174_spill] sm:$0xff] %v13193_v37 }
 0x5bd   :  { %v8943_v43 = vpack.c.bf16 %v4233_v63, %v15754_v56  ;;  %8996 = vmatpush1.bf16.msra.mxu0 %v8995_v55  ;;  %v5378_v1 = vadd.f32 %v15756_v57, %v15755_v47  ;;  %v4734_v18 = vadd.f32 %v12883_v35, %v15757_v0  ;;  %v8945_v10 = vpack.c.bf16 %v4238_v44, %v4236_v2  ;;  %v15760_v56 = vld [vmem:[#allocation114_spill] sm:$0xff]  ;;  %v15763_v44 = vld [vmem:[#allocation233_spill] sm:$0xff] }
 0x5be   :  { %8998 = vmatprep.subr.bf16.mxu0 %v8997_v5  ;;  %v4111_v19 = vadd.f32 %v15751_v24, %v15758_v61  ;;  %v8999_v14 = vpack.c.bf16 %v4855_v13, %v4853_v41  ;;  %v4859_v63 = vmax.f32 %v4731_v54, 0.0  ;;  %v4735_v33 = vadd.f32 %v12915_v12, %v15759_v20  ;;  %v15761_v47 = vld [vmem:[#allocation118_spill] sm:$0xff] }
 0x5bf   :  { %4646 = vperm.xlu1 %9658, %v15760_v56   ;;  %8944 = vmatpush1.bf16.msra.mxu1 %v8943_v43  ;;  %v4240_v6 = vmax.f32 %v4112_v40, 0.0  ;;  %v4864_v55 = vmax.f32 %v4736_v7, 0.0  ;;  %v4740_v49 = vadd.f32 %v12983_v29, %v15761_v47  ;;  %v15762_v5 = vmax.f32 %v13007_v27, 0.0  ;;  %v15764_v41 = vld [vmem:[#allocation102_spill] sm:$0xff]  ;;  %v15765_v7 = vld [vmem:[#allocation241_spill] sm:$0xff]  ;;  %v15766_v43 = vld [vmem:[#allocation68_spill] sm:$0xff] }
 0x5c0   :  { %8946 = vmatprep.subr.bf16.mxu1 %v8945_v10  ;;  %v5377_v24 = vadd.f32 %v15756_v57, %v15763_v44  ;;  %v8947_v13 = vpack.c.bf16 %v4237_v52, %v4235_v30  ;;  %v4241_v54 = vmax.f32 %v4113_v62, 0.0  ;;  %v4733_v12 = vadd.f32 %v12883_v35, %v15764_v41  ;;  %v15769_v62 = vld [vmem:[#allocation16_spill] sm:$0xff]  ;;  %v15788_v37 = vld [vmem:[#allocation238_spill] sm:$0xff] }
 0x5c1   :  { %v9001_v2 = vpack.c.bf16 %v4860_v38, %v15762_v5  ;;  %9000 = vmatpush1.bf16.msra.mxu0 %v8999_v14  ;;  %v13189_v22 = vpop.permute.xlu1 %4562  ;;  %v5506_v40 = vmax.f32 %v5378_v1, 0.0  ;;  %v5380_v61 = vadd.f32 %v15766_v43, %v15765_v7  ;;  %v4862_v10 = vmax.f32 %v4734_v18, 0.0  ;;  %v15770_v5 = vld [vmem:[#allocation124_spill] sm:$0xff] }
 0x5c2   :  { %v8949_v27 = vpack.c.bf16 %v4242_v31, %v4240_v6  ;;  %v4239_v38 = vmax.f32 %v4111_v19, 0.0  ;;  %v15768_v57 = vmax.f32 %v12991_v36, 0.0  ;;  %v4863_v30 = vmax.f32 %v4735_v33, 0.0  ;;  %v15771_v36 = vld [vmem:[#allocation240_spill] sm:$0xff] }
 0x5c3   :  { %9002 = vmatprep.subr.bf16.mxu0 %v9001_v2  ;;  %v4739_v35 = vadd.f32 %v12983_v29, %v15769_v62  ;;  %9659 = vset.pattern.permute.xlu1 %v15262_v15  ;;  %v4866_v1 = vmax.f32 %v13034_v58, 0.0  ;;  %v4868_v14 = vmax.f32 %v4740_v49, 0.0  ;;  %v4744_v44 = vadd.f32 %v13082_v11, %v15770_v5  ;;  %v15772_v2 = vld [vmem:[#allocation243_spill] sm:$0xff] }
 0x5c4   :  { %v9003_v52 = vpack.c.bf16 %v4859_v63, %v15768_v57  ;;  %8948 = vmatpush1.bf16.msra.mxu1 %v8947_v13  ;;  %5340 = vperm.xlu1 %9659, %v15760_v56   ;;  %v9005_v18 = vpack.c.bf16 %v4864_v55, %v4862_v10  ;;  %v5505_v31 = vmax.f32 %v5377_v24, 0.0  ;;  %v5379_v19 = vadd.f32 %v15766_v43, %v15771_v36  ;;  %v15773_v13 = vld [vmem:[#allocation144_spill] sm:$0xff]  ;;  %v15774_v49 = vld [vmem:[#allocation39_spill] sm:$0xff]  ;;  %v15775_v57 = vld [vmem:[#allocation158_spill] sm:$0xff] }
 0x5c5   :  { %8950 = vmatprep.subr.bf16.mxu1 %v8949_v27  ;;  %v8951_v63 = vpack.c.bf16 %v4241_v54, %v4239_v38  ;;  %v4861_v33 = vmax.f32 %v4733_v12, 0.0  ;;  %v4567_v29 = vpop.permute.xlu1 %4566  ;;  %v5508_v6 = vmax.f32 %v5380_v61, 0.0  ;;  %v5386_v58 = vadd.f32 %v15773_v13, %v15772_v2  ;;  %v15777_v43 = vld [vmem:[#allocation122_spill] sm:$0xff]  ;;  %v15778_v12 = vld [vmem:[#allocation132_spill] sm:$0xff] }
 0x5c6   :  { %9004 = vmatpush1.bf16.msra.mxu0 %v9003_v52  ;;  %v4742_v7 = vadd.f32 %v13056_v28, %v15774_v49  ;;  %v15776_v56 = vmax.f32 %v15775_v57, 0.0  ;;  %v4865_v55 = vmax.f32 %v13019_v4, 0.0  ;;  %v4867_v10 = vmax.f32 %v4739_v35, 0.0  ;;  %v15779_v61 = vld [vmem:[#allocation152_spill] sm:$0xff]  ;;  %v13217_v52 = vpop.permute.xlu0 %5268  ;;  %v15781_v2 = vld [vmem:[#allocation134_spill] sm:$0xff]  ;;  %v15782_v4 = vld [vmem:[#allocation235_spill] sm:$0xff] }
 0x5c7   :  { %9006 = vmatprep.subr.bf16.mxu0 %v9005_v18  ;;  %v9007_v24 = vpack.c.bf16 %v4863_v30, %v4861_v33  ;;  %v4743_v54 = vadd.f32 %v13082_v11, %v15777_v43  ;;  %v4746_v38 = vadd.f32 %v15779_v61, %v15778_v12  ;;  %15780 = vst [vmem:[#allocation78_spill] sm:$0xff] %v13217_v52  ;;  %v4872_v36 = vmax.f32 %v4744_v44, 0.0  ;;  %v15784_v57 = vld [vmem:[#allocation242_spill] sm:$0xff]  ;;  %v15787_v52 = vld [vmem:[#allocation251_spill] sm:$0xff] }
 0x5c8   :  { %v9081_v27 = vpack.c.bf16 %v5506_v40, %v15776_v56  ;;  %8952 = vmatpush1.bf16.msra.mxu1 %v8951_v63  ;;  %v4748_v18 = vadd.f32 %v13139_v26, %v15781_v2  ;;  %9661 = vset.pattern.permute.xlu1 %v15127_v50  ;;  %v9009_v40 = vpack.c.bf16 %v4868_v14, %v4866_v1  ;;  %v15783_v30 = vmax.f32 %v15782_v4, 0.0  ;;  %v15785_v63 = vld [vmem:[#allocation120_spill] sm:$0xff]  ;;  %v15790_v14 = vld [vmem:[#allocation255_spill] sm:$0xff] }
 0x5c9   :  { %v5507_v33 = vmax.f32 %v5379_v19, 0.0  ;;  %v5385_v11 = vadd.f32 %v15773_v13, %v15784_v57  ;;  %v4741_v56 = vadd.f32 %v13056_v28, %v15785_v63  ;;  %4654 = vperm.xlu1 %9661, %v15786_v25   ;;  %v5514_v44 = vmax.f32 %v5386_v58, 0.0  ;;  %v15792_v13 = vld [vmem:[#allocation129_spill] sm:$0xff]  ;;  %v15793_v4 = vld [vmem:[#allocation20_spill] sm:$0xff]  ;;  %v15794_v58 = vld [vmem:[#allocation250_spill] sm:$0xff] }
 0x5ca   :  { %9082 = vmatprep.subr.bf16.mxu1 %v9081_v27  ;;  %v9083_v35 = vpack.c.bf16 %v5505_v31, %v15783_v30  ;;  %9008 = vmatpush1.bf16.msra.mxu0 %v9007_v24  ;;  %v5388_v17 = vadd.f32 %v15788_v37, %v15787_v52  ;;  %v4870_v2 = vmax.f32 %v4742_v7, 0.0  ;;  %v13232_v1 = vpop.permute.xlu1 %5260  ;;  %v15791_v31 = vmax.f32 %v15790_v14, 0.0  ;;  %v15795_v52 = vld [vmem:[#allocation23_spill] sm:$0xff]  ;;  %v15796_v57 = vld [vmem:[#allocation225_spill] sm:$0xff] }
 0x5cb   :  { %9010 = vmatprep.subr.bf16.mxu0 %v9009_v40  ;;  %4379 = vmatmul.mubr.f32.vlgmr.msra.gmra.mrb[130].mxu1 %v12891_v23  ;;  %15789 = vst [vmem:[#allocation207_spill] sm:$0xff] %v13232_v1  ;;  %v4745_v27 = vadd.f32 %v15779_v61, %v15792_v13  ;;  %v9011_v28 = vpack.c.bf16 %v4867_v10, %v4865_v55  ;;  %v4871_v24 = vmax.f32 %v4743_v54, 0.0  ;;  %v4876_v23 = vmax.f32 %v4748_v18, 0.0  ;;  %v15798_v54 = vld [vmem:[#allocation34_spill] sm:$0xff] }
 0x5cc   :  { %v9085_v19 = vpack.c.bf16 %v15791_v31, %v5508_v6  ;;  %v4747_v25 = vadd.f32 %v13139_v26, %v15793_v4  ;;  %9084 = vmatpush1.bf16.msra.mxu1 %v9083_v35  ;;  %5695 = vmatprep.mubr.f32.mxu1 %v15649_v42  ;;  %v5387_v7 = vadd.f32 %v15788_v37, %v15794_v58  ;;  %v4874_v6 = vmax.f32 %v4746_v38, 0.0  ;;  %v15799_v42 = vld [vmem:[#allocation188_spill] sm:$0xff]  ;;  %v13249_v31 = vpop.permute.xlu0 %5272  ;;  %v15801_v37 = vld [vmem:[#allocation191_spill] sm:$0xff]  ;;  %v15803_v38 = vld [vmem:[#allocation245_spill] sm:$0xff] }
 0x5cd   :  { %v4752_v40 = vadd.f32 %v4567_v29, %v15795_v52  ;;  %v9013_v30 = vpack.c.bf16 %v4872_v36, %v4870_v2  ;;  %v15797_v14 = vmax.f32 %v15796_v57, 0.0  ;;  %v5513_v55 = vmax.f32 %v5385_v11, 0.0  ;;  %9662 = vset.pattern.permute.xlu1 %v15262_v15  ;;  %15800 = vst [vmem:[#allocation69_spill] sm:$0xff] %v13249_v31  ;;  %v15802_v36 = vld [vmem:[#allocation121_spill] sm:$0xff] }
 0x5ce   :  { %9086 = vmatprep.subr.bf16.mxu1 %v9085_v19  ;;  %v4869_v10 = vmax.f32 %v4741_v56, 0.0  ;;  %9012 = vmatpush1.bf16.msra.mxu0 %v9011_v28  ;;  %v5516_v26 = vmax.f32 %v5388_v17, 0.0  ;;  %v5394_v35 = vadd.f32 %v15799_v42, %v15798_v54  ;;  %v4750_v18 = vadd.f32 %v13189_v22, %v15801_v37  ;;  %v15805_v28 = vld [vmem:[#allocation137_spill] sm:$0xff]  ;;  %v15807_v37 = vld [vmem:[#allocation143_spill] sm:$0xff] }
 0x5cf   :  { %v9087_v61 = vpack.c.bf16 %v15797_v14, %v5507_v33  ;;  %9014 = vmatprep.subr.bf16.mxu0 %v9013_v30  ;;  %5344 = vperm.xlu1 %9662, %v15802_v36   ;;  %v15804_v2 = vmax.f32 %v15803_v38, 0.0  ;;  %v4873_v11 = vmax.f32 %v4745_v27, 0.0  ;;  %v4875_v19 = vmax.f32 %v4747_v25, 0.0  ;;  %v4575_v17 = vpop.permute.xlu1 %4574  ;;  %v15806_v54 = vld [vmem:[#allocation145_spill] sm:$0xff]  ;;  %v15808_v30 = vld [vmem:[#allocation256_spill] sm:$0xff]  ;;  %v15809_v36 = vld [vmem:[#allocation70_spill] sm:$0xff] }
 0x5d0   :  { %v9015_v56 = vpack.c.bf16 %v4871_v24, %v4869_v10  ;;  %v4751_v58 = vadd.f32 %v4567_v29, %v15805_v28  ;;  %v5515_v57 = vmax.f32 %v5387_v7, 0.0  ;;  %v4880_v14 = vmax.f32 %v4752_v40, 0.0  ;;  %v15812_v24 = vld [vmem:[#allocation135_spill] sm:$0xff]  ;;  %v15813_v7 = vld [vmem:[#allocation42_spill] sm:$0xff]  ;;  %v15814_v40 = vld [vmem:[#allocation249_spill] sm:$0xff] }
 0x5d1   :  { %v9089_v33 = vpack.c.bf16 %v5514_v44, %v15804_v2  ;;  %9088 = vmatpush1.bf16.msra.mxu1 %v9087_v61  ;;  %v4756_v31 = vadd.f32 %v4575_v17, %v15806_v54  ;;  %v9017_v4 = vpack.c.bf16 %v4876_v23, %v4874_v6  ;;  %v4754_v1 = vadd.f32 %v15808_v30, %v15807_v37  ;;  %v15811_v44 = vld [vmem:[#allocation253_spill] sm:$0xff]  ;;  %v15815_v23 = vld [vmem:[#allocation224_spill] sm:$0xff]  ;;  %v13278_v54 = vpop.permute.xlu0 %5284 }
 0x5d2   :  { %v15810_v52 = vmax.f32 %v15809_v36, 0.0  ;;  %v5393_v27 = vadd.f32 %v15799_v42, %v15811_v44  ;;  %v4749_v29 = vadd.f32 %v13189_v22, %v15812_v24  ;;  %9016 = vmatpush1.bf16.msra.mxu0 %v9015_v56  ;;  %v5522_v25 = vmax.f32 %v5394_v35, 0.0  ;;  %v15818_v42 = vld [vmem:[#allocation125_spill] sm:$0xff]  ;;  %v15819_v22 = vld [vmem:[#allocation230_spill] sm:$0xff]  ;;  %15823 = vst [vmem:[#allocation213_spill] sm:$0xff] %v13278_v54  ;;  %v15832_v54 = vld [vmem:[#allocation123_spill] sm:$0xff] }
 0x5d3   :  { %9090 = vmatprep.subr.bf16.mxu1 %v9089_v33  ;;  %v5396_v61 = vadd.f32 %v15814_v40, %v15813_v7  ;;  %v4878_v10 = vmax.f32 %v4750_v18, 0.0  ;;  %9018 = vmatprep.subr.bf16.mxu0 %v9017_v4  ;;  %v15816_v6 = vmax.f32 %v15815_v23, 0.0  ;;  %v9019_v33 = vpack.c.bf16 %v4875_v19, %v4873_v11  ;;  %v15820_v35 = vld [vmem:[#allocation141_spill] sm:$0xff]  ;;  %v15821_v7 = vld [vmem:[#allocation223_spill] sm:$0xff] }
 0x5d4   :  { %v9091_v38 = vpack.c.bf16 %v5513_v55, %v15810_v52  ;;  %9663 = vset.pattern.permute.xlu1 %v15127_v50  ;;  %v4879_v52 = vmax.f32 %v4751_v58, 0.0  ;;  %v15817_v55 = vld [vmem:[#allocation26_spill] sm:$0xff]  ;;  %v5520_v56 = vmax.f32 %v15819_v22, 0.0  ;;  %v4753_v44 = vadd.f32 %v15808_v30, %v15820_v35  ;;  %v15824_v23 = vld [vmem:[#allocation169_spill] sm:$0xff]  ;;  %v15829_v22 = vld [vmem:[#allocation252_spill] sm:$0xff] }
 0x5d5   :  { %v9093_v2 = vpack.c.bf16 %v15816_v6, %v5516_v26  ;;  %v4755_v36 = vadd.f32 %v4575_v17, %v15817_v55  ;;  %4658 = vperm.xlu1 %9663, %v15818_v42   ;;  %v15822_v18 = vmax.f32 %v15821_v7, 0.0  ;;  %v4884_v24 = vmax.f32 %v4756_v31, 0.0  ;;  %5002 = vmatmul.mubr.f32.vlgmr.msra.gmra.mrb[72].mxu0 %v15824_v23  ;;  %v13281_v26 = vpop.permute.xlu1 %5264  ;;  %v15825_v58 = vld [vmem:[#allocation41_spill] sm:$0xff]  ;;  %v15827_v42 = vld [vmem:[#allocation175_spill] sm:$0xff] }
 0x5d6   :  { %9092 = vmatpush1.bf16.msra.mxu1 %v9091_v38  ;;  %v9021_v11 = vpack.c.bf16 %v4880_v14, %v4878_v10  ;;  %v5521_v19 = vmax.f32 %v5393_v27, 0.0  ;;  %v5395_v17 = vadd.f32 %v15814_v40, %v15825_v58  ;;  %v15826_v38 = vld [vmem:[#allocation248_spill] sm:$0xff]  ;;  %v4877_v30 = vmax.f32 %v4749_v29, 0.0  ;;  %9020 = vmatpush1.bf16.msra.mxu0 %v9019_v33  ;;  %v15830_v14 = vld [vmem:[#allocation46_spill] sm:$0xff] }
 0x5d7   :  { %v9095_v4 = vpack.c.bf16 %v15822_v18, %v5515_v57  ;;  %9094 = vmatprep.subr.bf16.mxu1 %v9093_v2  ;;  %v5402_v6 = vadd.f32 %v15826_v38, %v15629_v39  ;;  %5072 = vmatprep.mubr.f32.mxu0 %v15827_v42  ;;  %v15828_v57 = vld [vmem:[#allocation155_spill] sm:$0xff]  ;;  %v4882_v7 = vmax.f32 %v4754_v1, 0.0  ;;  %v5524_v18 = vmax.f32 %v5396_v61, 0.0  ;;  %v15831_v10 = vld [vmem:[#allocation28_spill] sm:$0xff] }
 0x5d8   :  { %v5397_v31 = vadd.f32 %v15829_v22, %v15828_v57  ;;  %9022 = vmatprep.subr.bf16.mxu0 %v9021_v11  ;;  %v9097_v2 = vpack.c.bf16 %v5522_v25, %v5520_v56  ;;  %v5400_v27 = vadd.f32 %v15830_v14, %v15634_v48  ;;  %v5519_v23 = vmax.f32 %v15831_v10, 0.0  ;;  %v15833_v39 = vld [vmem:[#allocation203_spill] sm:$0xff]  ;;  %v13299_v11 = vpop.permute.xlu0 %5288 }
 0x5d9   :  { %v9023_v40 = vpack.c.bf16 %v4879_v52, %v4877_v30  ;;  %v4883_v58 = vmax.f32 %v4755_v36, 0.0  ;;  %4662 = vperm.xlu1 %9663, %v15832_v54   ;;  %v5526_v29 = vmax.f32 %v15833_v39, 0.0  ;;  %v4881_v33 = vmax.f32 %v4753_v44, 0.0  ;;  %v4579_v48 = vpop.permute.xlu1 %4578  ;;  %v15834_v52 = vld [vmem:[#allocation212_spill] sm:$0xff]  ;;  %15835 = vst [vmem:[#allocation73_spill] sm:$0xff] %v13299_v11  ;;  %v15836_v30 = vld [vmem:[#allocation38_spill] sm:$0xff] }
 0x5da   :  { %9096 = vmatpush1.bf16.msra.mxu1 %v9095_v4  ;;  %v9025_v42 = vpack.c.bf16 %v4884_v24, %v4882_v7  ;;  %v9099_v57 = vpack.c.bf16 %v5521_v19, %v5519_v23  ;;  %v5523_v1 = vmax.f32 %v5395_v17, 0.0  ;;  %v5401_v25 = vadd.f32 %v15826_v38, %v15626_v21  ;;  %v15837_v19 = vld [vmem:[#allocation44_spill] sm:$0xff]  ;;  %v15838_v17 = vld [vmem:[#allocation74_spill] sm:$0xff]  ;;  %v15842_v23 = vld [vmem:[#allocation57_spill] sm:$0xff] }
 0x5db   :  { %9098 = vmatprep.subr.bf16.mxu1 %v9097_v2  ;;  %v5530_v61 = vmax.f32 %v5402_v6, 0.0  ;;  %9024 = vmatpush1.bf16.msra.mxu0 %v9023_v40  ;;  %v5525_v56 = vmax.f32 %v5397_v31, 0.0  ;;  %v5406_v36 = vadd.f32 %v15834_v52, %v15658_v53  ;;  %v9101_v4 = vpack.c.bf16 %v5526_v29, %v5524_v18  ;;  %v15839_v21 = vld [vmem:[#allocation196_spill] sm:$0xff]  ;;  %v15843_v40 = vld [vmem:[#allocation126_spill] sm:$0xff] }
 0x5dc   :  { %9026 = vmatprep.subr.bf16.mxu0 %v9025_v42  ;;  %v5399_v44 = vadd.f32 %v15830_v14, %v15836_v30  ;;  %v5528_v24 = vmax.f32 %v5400_v27, 0.0  ;;  %v5404_v22 = vadd.f32 %v15838_v17, %v15837_v19  ;;  %v9027_v7 = vpack.c.bf16 %v4883_v58, %v4881_v33  ;;  %v15840_v6 = vld [vmem:[#allocation148_spill] sm:$0xff]  ;;  %v15845_v33 = vld [vmem:[#allocation151_spill] sm:$0xff]  ;;  %v15846_v30 = vld [vmem:[#allocation50_spill] sm:$0xff] }
 0x5dd   :  { %9664 = vset.pattern.permute.xlu1 %v15262_v15  ;;  %v4757_v38 = vadd.f32 %v4579_v48, %v15839_v21  ;;  %v4758_v31 = vadd.f32 %v4579_v48, %v15840_v6  ;;  %v9103_v53 = vpack.c.bf16 %v5525_v56, %v5523_v1  ;;  %v5529_v42 = vmax.f32 %v5401_v25, 0.0  ;;  %v15841_v18 = vld [vmem:[#allocation52_spill] sm:$0xff]  ;;  %v4583_v14 = vpop.permute.xlu1 %4582  ;;  %v15847_v25 = vld [vmem:[#allocation10_spill] sm:$0xff] }
 0x5de   :  { %9100 = vmatpush1.bf16.msra.mxu1 %v9099_v57  ;;  %5356 = vperm.xlu1 %9664, %v15832_v54   ;;  %v5405_v2 = vadd.f32 %v15834_v52, %v15841_v18  ;;  %v9105_v27 = vpack.c.bf16 %v5530_v61, %v5528_v24  ;;  %v5534_v10 = vmax.f32 %v5406_v36, 0.0  ;;  %v5408_v58 = vadd.f32 %v15843_v40, %v15842_v23  ;;  %v15844_v39 = vld [vmem:[#allocation32_spill] sm:$0xff]  ;;  %v13319_v52 = vpop.permute.xlu0 %5300 }
 0x5df   :  { %9102 = vmatprep.subr.bf16.mxu1 %v9101_v4  ;;  %9028 = vmatpush1.bf16.msra.mxu0 %v9027_v7  ;;  %v4759_v29 = vadd.f32 %v4583_v14, %v15844_v39  ;;  %v4760_v57 = vadd.f32 %v4583_v14, %v15845_v33  ;;  %v5527_v48 = vmax.f32 %v5399_v44, 0.0  ;;  %v5403_v54 = vadd.f32 %v15838_v17, %v15846_v30  ;;  %v15848_v56 = vld [vmem:[#allocation80_spill] sm:$0xff]  ;;  %v15850_v44 = vld [vmem:[#allocation58_spill] sm:$0xff]  ;;  %v15851_v17 = vld [vmem:[#allocation63_spill] sm:$0xff] }
 0x5e0   :  { %v5532_v1 = vmax.f32 %v5404_v22, 0.0  ;;  %v5410_v4 = vadd.f32 %v15848_v56, %v15847_v25  ;;  %15849 = vst [vmem:[#allocation227_spill] sm:$0xff] %v13319_v52  ;;  %v4885_v61 = vmax.f32 %v4757_v38, 0.0  ;;  %v4886_v36 = vmax.f32 %v4758_v31, 0.0  ;;  %v15852_v22 = vld [vmem:[#allocation221_spill] sm:$0xff]  ;;  %v15853_v30 = vld [vmem:[#allocation128_spill] sm:$0xff] }
 0x5e1   :  { %v4887_v24 = vmax.f32 %v4759_v29, 0.0  ;;  %v4888_v19 = vmax.f32 %v4760_v57, 0.0  ;;  %v9107_v7 = vpack.c.bf16 %v5529_v42, %v5527_v48  ;;  %v5533_v18 = vmax.f32 %v5405_v2, 0.0  ;;  %v15854_v29 = vld [vmem:[#allocation18_spill] sm:$0xff]  ;;  %v15857_v48 = vld [vmem:[#allocation67_spill] sm:$0xff] }
 0x5e2   :  { %9104 = vmatpush1.bf16.msra.mxu1 %v9103_v53  ;;  %9667 = vset.pattern.permute.xlu1 %v15127_v50  ;;  %v5407_v14 = vadd.f32 %v15843_v40, %v15850_v44  ;;  %v5414_v23 = vadd.f32 %v15852_v22, %v15851_v17  ;;  %v5536_v53 = vmax.f32 %v5408_v58, 0.0  ;;  %v13327_v52 = vpop.permute.xlu1 %5276  ;;  %v9109_v38 = vpack.c.bf16 %v5534_v10, %v5532_v1  ;;  %v15855_v57 = vld [vmem:[#allocation258_spill] sm:$0xff]  ;;  %v15858_v40 = vld [vmem:[#allocation244_spill] sm:$0xff]  ;;  %v15859_v17 = vld [vmem:[#allocation93_spill] sm:$0xff] }
 0x5e3   :  { %9106 = vmatprep.subr.bf16.mxu1 %v9105_v27  ;;  %4670 = vperm.xlu1 %9667, %v15853_v30   ;;  %v9031_v25 = vpack.c.bf16 %v4887_v24, %v4885_v61  ;;  %v9029_v31 = vpack.c.bf16 %v4888_v19, %v4886_v36  ;;  %v4761_v11 = vadd.f32 %v15855_v57, %v15854_v29  ;;  %v5531_v27 = vmax.f32 %v5403_v54, 0.0  ;;  %v15856_v42 = vld [vmem:[#allocation62_spill] sm:$0xff]  ;;  %v15860_v1 = vld [vmem:[#allocation71_spill] sm:$0xff]  ;;  %v13340_v54 = vpop.permute.xlu0 %5304  ;;  %v15863_v19 = vld [vmem:[#allocation236_spill] sm:$0xff] }
 0x5e4   :  { %v5409_v2 = vadd.f32 %v15848_v56, %v15856_v42  ;;  %v5412_v44 = vadd.f32 %v15858_v40, %v15857_v48  ;;  %v4762_v30 = vadd.f32 %v15855_v57, %v15859_v17  ;;  %v5538_v58 = vmax.f32 %v5410_v4, 0.0  ;;  %15861 = vst [vmem:[#allocation84_spill] sm:$0xff] %v13340_v54  ;;  %v15862_v56 = vld [vmem:[#allocation66_spill] sm:$0xff]  ;;  %v15868_v54 = vld [vmem:[#allocation40_spill] sm:$0xff] }
 0x5e5   :  { %9030 = vmatprep.subr.bf16.mxu0 %v9029_v31  ;;  %v9111_v61 = vpack.c.bf16 %v5533_v18, %v5531_v27  ;;  %v5535_v10 = vmax.f32 %v5407_v14, 0.0  ;;  %v5413_v36 = vadd.f32 %v15852_v22, %v15860_v1  ;;  %v5542_v24 = vmax.f32 %v5414_v23, 0.0  ;;  %v15864_v42 = vld [vmem:[#allocation130_spill] sm:$0xff]  ;;  %v15865_v31 = vld [vmem:[#allocation79_spill] sm:$0xff]  ;;  %v15866_v27 = vld [vmem:[#allocation140_spill] sm:$0xff] }
 0x5e6   :  { %9108 = vmatpush1.bf16.msra.mxu1 %v9107_v7  ;;  %9032 = vmatpush1.bf16.msra.mxu0 %v9031_v25  ;;  %v5416_v7 = vadd.f32 %v15863_v19, %v15862_v56  ;;  %v9113_v57 = vpack.c.bf16 %v5538_v58, %v5536_v53  ;;  %v4889_v4 = vmax.f32 %v4761_v11, 0.0  ;;  %v5411_v18 = vadd.f32 %v15858_v40, %v15727_v32  ;;  %v15867_v48 = vld [vmem:[#allocation154_spill] sm:$0xff]  ;;  %v15869_v53 = vld [vmem:[#allocation75_spill] sm:$0xff] }
 0x5e7   :  { %9110 = vmatprep.subr.bf16.mxu1 %v9109_v38  ;;  %9668 = vset.pattern.permute.xlu1 %v15262_v15  ;;  %v5537_v38 = vmax.f32 %v5409_v2, 0.0  ;;  %v5540_v14 = vmax.f32 %v5412_v44, 0.0  ;;  %v4591_v22 = vpop.permute.xlu1 %4590  ;;  %v4890_v23 = vmax.f32 %v4762_v30, 0.0  ;;  %v5418_v25 = vadd.f32 %v15866_v27, %v15865_v31  ;;  %v15870_v32 = vld [vmem:[#allocation246_spill] sm:$0xff] }
 0x5e8   :  { %5360 = vperm.xlu1 %9668, %v15864_v42   ;;  %v4763_v1 = vadd.f32 %v4591_v22, %v15867_v48  ;;  %v4764_v29 = vadd.f32 %v4591_v22, %v15868_v54  ;;  %v5541_v42 = vmax.f32 %v5413_v36, 0.0  ;;  %v5415_v11 = vadd.f32 %v15863_v19, %v15869_v53  ;;  %v15871_v22 = vld [vmem:[#allocation232_spill] sm:$0xff]  ;;  %v15876_v53 = vld [vmem:[#allocation231_spill] sm:$0xff] }
 0x5e9   :  { %v9115_v56 = vpack.c.bf16 %v5537_v38, %v5535_v10  ;;  %v9117_v2 = vpack.c.bf16 %v5542_v24, %v5540_v14  ;;  %v5544_v58 = vmax.f32 %v5416_v7, 0.0  ;;  %v5422_v40 = vadd.f32 %v15870_v32, %v15538_v8  ;;  %v15872_v36 = vld [vmem:[#allocation76_spill] sm:$0xff]  ;;  %v13361_v24 = vpop.permute.xlu0 %5316 }
 0x5ea   :  { %9112 = vmatpush1.bf16.msra.mxu1 %v9111_v61  ;;  %v4891_v44 = vmax.f32 %v4763_v1, 0.0  ;;  %v4892_v30 = vmax.f32 %v4764_v29, 0.0  ;;  %v5539_v61 = vmax.f32 %v5411_v18, 0.0  ;;  %v5417_v31 = vadd.f32 %v15866_v27, %v15733_v45  ;;  %v15873_v45 = vld [vmem:[#allocation91_spill] sm:$0xff] }
 0x5eb   :  { %9114 = vmatprep.subr.bf16.mxu1 %v9113_v57  ;;  %v5546_v10 = vmax.f32 %v5418_v25, 0.0  ;;  %v5420_v19 = vadd.f32 %v15872_v36, %v15739_v60  ;;  %v5421_v38 = vadd.f32 %v15870_v32, %v15544_v34  ;;  %v15874_v18 = vld [vmem:[#allocation7_spill] sm:$0xff]  ;;  %v5550_v27 = vmax.f32 %v5422_v40, 0.0 }
 0x5ec   :  { %9669 = vset.pattern.permute.xlu1 %v15127_v50  ;;  %v9035_v7 = vpack.c.bf16 %v4891_v44, %v4889_v4  ;;  %v13363_v8 = vpop.permute.xlu1 %5280  ;;  %v9033_v29 = vpack.c.bf16 %v4892_v30, %v4890_v23  ;;  %v9119_v57 = vpack.c.bf16 %v5541_v42, %v5539_v61  ;;  %v5543_v50 = vmax.f32 %v5415_v11, 0.0  ;;  %v15875_v4 = vld [vmem:[#allocation163_spill] sm:$0xff]  ;;  %v15877_v11 = vld [vmem:[#allocation13_spill] sm:$0xff] }
 0x5ed   :  { %4674 = vperm.xlu1 %9669, %v15871_v22   ;;  %v5424_v14 = vadd.f32 %v15874_v18, %v15873_v45  ;;  %v9121_v25 = vpack.c.bf16 %v5546_v10, %v5544_v58  ;;  %v5545_v1 = vmax.f32 %v5417_v31, 0.0  ;;  %v5419_v60 = vadd.f32 %v15872_v36, %v15747_v51  ;;  %v13376_v40 = vpop.permute.xlu0 %5320  ;;  %v15878_v51 = vld [vmem:[#allocation170_spill] sm:$0xff]  ;;  %v15880_v36 = vld [vmem:[#allocation157_spill] sm:$0xff] }
 0x5ee   :  { %9116 = vmatpush1.bf16.msra.mxu1 %v9115_v56  ;;  %9034 = vmatprep.subr.bf16.mxu0 %v9033_v29  ;;  %v5426_v56 = vadd.f32 %v15875_v4, %v15743_v3  ;;  %v5548_v23 = vmax.f32 %v5420_v19, 0.0  ;;  %v5549_v42 = vmax.f32 %v5421_v38, 0.0  ;;  %v5430_v44 = vadd.f32 %v15878_v51, %v15753_v9  ;;  %v15879_v22 = vld [vmem:[#allocation206_spill] sm:$0xff] }
 0x5ef   :  { %9118 = vmatprep.subr.bf16.mxu1 %v9117_v2  ;;  %9036 = vmatpush1.bf16.msra.mxu0 %v9035_v7  ;;  %v9123_v34 = vpack.c.bf16 %v5545_v1, %v5543_v50  ;;  %v5423_v2 = vadd.f32 %v15874_v18, %v15877_v11  ;;  %v5552_v32 = vmax.f32 %v5424_v14, 0.0  ;;  %v5547_v3 = vmax.f32 %v5419_v60, 0.0  ;;  %v15881_v7 = vld [vmem:[#allocation95_spill] sm:$0xff] }
 0x5f0   :  { %v9125_v30 = vpack.c.bf16 %v5550_v27, %v5548_v23  ;;  %v5425_v61 = vadd.f32 %v15875_v4, %v15749_v16  ;;  %v5554_v31 = vmax.f32 %v5426_v56, 0.0  ;;  %v5428_v10 = vadd.f32 %v15879_v22, %v15757_v0  ;;  %v15882_v18 = vld [vmem:[#allocation115_spill] sm:$0xff]  ;;  %v15883_v0 = vld [vmem:[#allocation48_spill] sm:$0xff] }
 0x5f1   :  { %4678 = vperm.xlu1 %9669, %v15876_v53   ;;  %v4595_v58 = vpop.permute.xlu1 %4594  ;;  %v9127_v9 = vpack.c.bf16 %v5549_v42, %v5547_v3  ;;  %v5429_v50 = vadd.f32 %v15878_v51, %v15759_v20  ;;  %v5558_v45 = vmax.f32 %v5430_v44, 0.0  ;;  %v5432_v14 = vadd.f32 %v15883_v0, %v15882_v18  ;;  %v13398_v20 = vpop.permute.xlu0 %5332  ;;  %v15888_v44 = vld [vmem:[#allocation113_spill] sm:$0xff] }
 0x5f2   :  { %9120 = vmatpush1.bf16.msra.mxu1 %v9119_v57  ;;  %v4765_v19 = vadd.f32 %v4595_v58, %v15880_v36  ;;  %v4766_v29 = vadd.f32 %v4595_v58, %v15881_v7  ;;  %v5551_v57 = vmax.f32 %v5423_v2, 0.0  ;;  %v9129_v38 = vpack.c.bf16 %v5554_v31, %v5552_v32 }
 0x5f3   :  { %9122 = vmatprep.subr.bf16.mxu1 %v9121_v25  ;;  %v15885_v25 = vld [vmem:[#allocation25_spill] sm:$0xff]  ;;  %v5553_v60 = vmax.f32 %v5425_v61, 0.0  ;;  %v5427_v4 = vadd.f32 %v15879_v22, %v15764_v41  ;;  %v5556_v56 = vmax.f32 %v5428_v10, 0.0  ;;  %v15887_v32 = vmov 0  }
 0x5f4   :  { %v4894_v42 = vmax.f32 %v4766_v29, 0.0  ;;  %v5557_v51 = vmax.f32 %v5429_v50, 0.0  ;;  %v15889_v41 = vld [vmem:[#allocation9_spill] sm:$0xff]  ;;  %v5560_v61 = vmax.f32 %v5432_v14, 0.0  ;;  %v5436_v50 = vadd.f32 %v13128_v46, %v15774_v49 }
 0x5f5   :  { %9670 = vset.pattern.permute.xlu1 %v15262_v15  ;;  %v4599_v16 = vpop.permute.xlu1 %4598  ;;  %v15884_v15 = vld [vmem:[#allocation161_spill] sm:$0xff]  ;;  %v9131_v58 = vpack.c.bf16 %v5553_v60, %v5551_v57  ;;  %v5438_v3 = vadd.f32 %v15889_v41, %v15770_v5  ;;  %v9133_v22 = vpack.c.bf16 %v5558_v45, %v5556_v56  ;;  %v5437_v14 = vadd.f32 %v15889_v41, %v15777_v43 }
 0x5f6   :  { %9124 = vmatpush1.bf16.msra.mxu1 %v9123_v34  ;;  %5372 = vperm.xlu1 %9670, %v15876_v53   ;;  %v4767_v27 = vadd.f32 %v4599_v16, %v15884_v15  ;;  %v4768_v1 = vadd.f32 %v4599_v16, %v15885_v25  ;;  %v15886_v53 = vld [vmem:[#allocation166_spill] sm:$0xff]  ;;  %v4893_v34 = vmax.f32 %v4765_v19, 0.0  ;;  %v15890_v19 = vld [vmem:[#allocation164_spill] sm:$0xff]  ;;  %v15891_v29 = vld [vmem:[#allocation153_spill] sm:$0xff]  ;;  %v5555_v16 = vmax.f32 %v5427_v4, 0.0 }
 0x5f7   :  { %9126 = vmatprep.subr.bf16.mxu1 %v9125_v30  ;;  %v5434_v23 = vadd.f32 %v15886_v53, %v15761_v47  ;;  %v5431_v30 = vadd.f32 %v15883_v0, %v15888_v44  ;;  %v5433_v57 = vadd.f32 %v15886_v53, %v15769_v62  ;;  %v5440_v62 = vadd.f32 %v13166_v59, %v15778_v12 }
 0x5f8   :  { %v4895_v11 = vmax.f32 %v4767_v27, 0.0  ;;  %v4896_v2 = vmax.f32 %v4768_v1, 0.0  ;;  %v9135_v0 = vpack.c.bf16 %v5557_v51, %v5555_v16  ;;  %v5566_v27 = vmax.f32 %v5438_v3, 0.0  ;;  %v13417_v1 = vpop.permute.xlu0 %5336 }
 0x5f9   :  { %v5562_v18 = vmax.f32 %v5434_v23, 0.0  ;;  %v5559_v45 = vmax.f32 %v5431_v30, 0.0  ;;  %v5561_v4 = vmax.f32 %v5433_v57, 0.0  ;;  %v5435_v56 = vadd.f32 %v13128_v46, %v15785_v63  ;;  %v15897_v46 = vld [vmem:[#allocation23_spill] sm:$0xff] }
 0x5fa   :  { %9128 = vmatpush1.bf16.msra.mxu1 %v9127_v9  ;;  %9672 = vset.pattern.permute.xlu1 %v15887_v32  ;;  %v9039_v47 = vpack.c.bf16 %v4895_v11, %v4893_v34  ;;  %v13405_v31 = vpop.permute.xlu1 %5292  ;;  %v9037_v10 = vpack.c.bf16 %v4896_v2, %v4894_v42  ;;  %v4769_v9 = vadd.f32 %v15891_v29, %v15890_v19  ;;  %v5564_v53 = vmax.f32 %v5436_v50, 0.0  ;;  %v15893_v42 = vld [vmem:[#allocation134_spill] sm:$0xff]  ;;  %v15894_v11 = vld [vmem:[#allocation184_spill] sm:$0xff]  ;;  %v15895_v2 = vld [vmem:[#allocation27_spill] sm:$0xff] }
 0x5fb   :  { %9130 = vmatprep.subr.bf16.mxu1 %v9129_v38  ;;  %v15892_v38 = vld [vmem:[#allocation100_spill] sm:$0xff]  ;;  %v9137_v49 = vpack.c.bf16 %v5562_v18, %v5560_v61  ;;  %v5442_v43 = vadd.f32 %v15894_v11, %v15893_v42  ;;  %v9139_v44 = vpack.c.bf16 %v5561_v4, %v5559_v45  ;;  %v5565_v12 = vmax.f32 %v5437_v14, 0.0  ;;  %v15898_v63 = vld [vmem:[#allocation207_spill] sm:$0xff]  ;;  %v15901_v50 = vld [vmem:[#allocation174_spill] sm:$0xff] }
 0x5fc   :  { %v4770_v5 = vadd.f32 %v15891_v29, %v15892_v38  ;;  %9038 = vmatprep.subr.bf16.mxu0 %v9037_v10  ;;  %v4897_v60 = vmax.f32 %v4769_v9, 0.0  ;;  %v5439_v30 = vadd.f32 %v13166_v59, %v15792_v13  ;;  %v9141_v41 = vpack.c.bf16 %v5566_v27, %v5564_v53  ;;  %v15899_v29 = vld [vmem:[#allocation20_spill] sm:$0xff]  ;;  %v15900_v57 = vld [vmem:[#allocation191_spill] sm:$0xff]  ;;  %v13435_v18 = vpop.permute.xlu0 %5348  ;;  %v15904_v42 = vld [vmem:[#allocation78_spill] sm:$0xff] }
 0x5fd   :  { %9040 = vmatpush1.bf16.msra.mxu0 %v9039_v47  ;;  %v5568_v3 = vmax.f32 %v5440_v62, 0.0  ;;  %v5446_v61 = vadd.f32 %v15898_v63, %v15897_v46  ;;  %v5563_v10 = vmax.f32 %v5435_v56, 0.0  ;;  %v5441_v9 = vadd.f32 %v15894_v11, %v15899_v29  ;;  %v15902_v53 = vld [vmem:[#allocation135_spill] sm:$0xff] }
 0x5fe   :  { %9132 = vmatpush1.bf16.msra.mxu1 %v9131_v58  ;;  %v4898_v34 = vmax.f32 %v4770_v5, 0.0  ;;  %v15896_v58 = vld [vmem:[#allocation31_spill] sm:$0xff]  ;;  %v5570_v16 = vmax.f32 %v5442_v43, 0.0  ;;  %v5444_v5 = vadd.f32 %v15901_v50, %v15900_v57  ;;  %v5567_v14 = vmax.f32 %v5439_v30, 0.0  ;;  %v9703_v30 = vld [vmem:[%s11372_s12] sm:$0x77] }
 0x5ff   :  { %9134 = vmatprep.subr.bf16.mxu1 %v9133_v22  ;;  %v4607_v23 = vpop.permute.xlu1 %4606  ;;  %v9143_v45 = vpack.c.bf16 %v5565_v12, %v5563_v10  ;;  %v5445_v27 = vadd.f32 %v15898_v63, %v15805_v28  ;;  %v5574_v62 = vmax.f32 %v5446_v61, 0.0  ;;  %v5569_v56 = vmax.f32 %v5441_v9, 0.0  ;;  %v15905_v63 = vld [vmem:[#allocation69_spill] sm:$0xff] }
 0x600   :  { %v4771_v32 = vadd.f32 %v4607_v23, %v15895_v2  ;;  %v4772_v51 = vadd.f32 %v4607_v23, %v15896_v58  ;;  %v9145_v4 = vpack.c.bf16 %v5570_v16, %v5568_v3  ;;  %v5572_v23 = vmax.f32 %v5444_v5, 0.0  ;;  %v15909_v10 = vld [vmem:[#allocation33_spill] sm:$0xff] }
 0x601   :  { %v9147_v43 = vpack.c.bf16 %v5569_v56, %v5567_v14  ;;  %v5573_v28 = vmax.f32 %v5445_v27, 0.0  ;;  %v5449_v46 = vadd.f32 %v15904_v42, %v15817_v55  ;;  %v5452_v61 = vadd.f32 %v15905_v63, %v15840_v6  ;;  %v15910_v9 = vld [vmem:[#allocation21_spill] sm:$0xff]  ;;  %v15912_v14 = vld [vmem:[#allocation55_spill] sm:$0xff] }
 0x602   :  { %9136 = vmatpush1.bf16.msra.mxu1 %v9135_v0  ;;  %v4899_v47 = vmax.f32 %v4771_v32, 0.0  ;;  %v4900_v22 = vmax.f32 %v4772_v51, 0.0  ;;  %v5447_v32 = vadd.f32 %v13281_v26, %v15820_v35  ;;  %v15907_v35 = vld [vmem:[#allocation15_spill] sm:$0xff]  ;;  %v5453_v55 = vadd.f32 %v13327_v52, %v15844_v39 }
 0x603   :  { %9138 = vmatprep.subr.bf16.mxu1 %v9137_v49  ;;  %v5448_v49 = vadd.f32 %v13281_v26, %v15807_v37  ;;  %v5454_v37 = vadd.f32 %v13327_v52, %v15845_v33  ;;  %v15908_v26 = vld [vmem:[#allocation156_spill] sm:$0xff]  ;;  %v5580_v56 = vmax.f32 %v5452_v61, 0.0 }
 0x604   :  { %v9043_v0 = vpack.c.bf16 %v4899_v47, %v4897_v60  ;;  %v13437_v59 = vpop.permute.xlu1 %5296  ;;  %v9041_v13 = vpack.c.bf16 %v4900_v22, %v4898_v34  ;;  %v5443_v60 = vadd.f32 %v15901_v50, %v15902_v53  ;;  %v15903_v34 = vld [vmem:[#allocation145_spill] sm:$0xff]  ;;  %v15906_v47 = vld [vmem:[#allocation175_spill] sm:$0xff]  ;;  %v13461_v33 = vadd.f32 %v15908_v26, %v15907_v35 }
 0x605   :  { %v5450_v11 = vadd.f32 %v15904_v42, %v15903_v34  ;;  %v5576_v12 = vmax.f32 %v5448_v49, 0.0  ;;  %v5575_v50 = vmax.f32 %v5447_v32, 0.0  ;;  %v5582_v5 = vmax.f32 %v5454_v37, 0.0  ;;  %v15913_v53 = vld [vmem:[#allocation213_spill] sm:$0xff] }
 0x606   :  { %9140 = vmatpush1.bf16.msra.mxu1 %v9139_v44  ;;  %9042 = vmatprep.subr.bf16.mxu0 %v9041_v13  ;;  %v13451_v44 = vpop.permute.xlu0 %5352  ;;  %v5571_v3 = vmax.f32 %v5443_v60, 0.0  ;;  %v15911_v13 = vld [vmem:[#allocation167_spill] sm:$0xff]  ;;  %v5577_v49 = vmax.f32 %v5449_v46, 0.0  ;;  %v5458_v60 = vadd.f32 %v15913_v53, %v15868_v54  ;;  %v5457_v46 = vadd.f32 %v15913_v53, %v15867_v48 }
 0x607   :  { %9142 = vmatprep.subr.bf16.mxu1 %v9141_v41  ;;  %9044 = vmatpush1.bf16.msra.mxu0 %v9043_v0  ;;  %v9149_v41 = vpack.c.bf16 %v5574_v62, %v5572_v23  ;;  %v5578_v22 = vmax.f32 %v5450_v11, 0.0  ;;  %v5456_v0 = vadd.f32 %v13363_v8, %v15859_v17  ;;  %v5581_v11 = vmax.f32 %v5453_v55, 0.0 }
 0x608   :  { %v9151_v57 = vpack.c.bf16 %v5573_v28, %v5571_v3  ;;  %v9155_v42 = vpack.c.bf16 %v5577_v49, %v5575_v50  ;;  %v9157_v32 = vpack.c.bf16 %v5582_v5, %v5580_v56  ;;  %v5585_v55 = vmax.f32 %v5457_v46, 0.0  ;;  %v15919_v56 = vld [vmem:[#allocation64_spill] sm:$0xff] }
 0x609   :  { %v4611_v51 = vpop.permute.xlu1 %4610  ;;  %v9153_v62 = vpack.c.bf16 %v5578_v22, %v5576_v12  ;;  %v5584_v37 = vmax.f32 %v5456_v0, 0.0 }
 0x60a   :  { %9144 = vmatpush1.bf16.msra.mxu1 %v9143_v45  ;;  %v4773_v29 = vadd.f32 %v4611_v51, %v15909_v10  ;;  %v4774_v16 = vadd.f32 %v4611_v51, %v15910_v9  ;;  %v13475_v39 = vpop.permute.xlu0 %5364 }
 0x60b   :  { %9146 = vmatprep.subr.bf16.mxu1 %v9145_v4  ;;  %v5451_v4 = vadd.f32 %v15905_v63, %v15839_v21  ;;  %v5462_v21 = vadd.f32 %v13405_v31, %v15885_v25  ;;  %v15916_v63 = vld [vmem:[#allocation73_spill] sm:$0xff] }
 0x60c   :  { %v4901_v52 = vmax.f32 %v4773_v29, 0.0  ;;  %v4902_v23 = vmax.f32 %v4774_v16, 0.0  ;;  %v5460_v61 = vadd.f32 %v15916_v63, %v15881_v7  ;;  %v5459_v25 = vadd.f32 %v15916_v63, %v15880_v36 }
 0x60d   :  { %5696 = vmatmul.mubr.f32.vlgmr.msra.gmra.mrb[132].mxu1 %v9703_v30  ;;  %v4615_v6 = vpop.permute.xlu1 %4614  ;;  %v15915_v30 = vld [vmem:[#allocation171_spill] sm:$0xff]  ;;  %v5579_v3 = vmax.f32 %v5451_v4, 0.0  ;;  %v5590_v48 = vmax.f32 %v5462_v21, 0.0  ;;  %v5464_v7 = vadd.f32 %v13437_v59, %v15892_v38  ;;  %v15918_v38 = vld [vmem:[#allocation172_spill] sm:$0xff] }
 0x60e   :  { %9148 = vmatpush1.bf16.msra.mxu1 %v9147_v43  ;;  %5766 = vmatprep.mubr.f32.mxu1 %v15906_v47  ;;  %v4775_v45 = vadd.f32 %v4615_v6, %v15911_v13  ;;  %v4776_v27 = vadd.f32 %v4615_v6, %v15912_v14  ;;  %v15914_v43 = vld [vmem:[#allocation18_spill] sm:$0xff]  ;;  %v5461_v47 = vadd.f32 %v13405_v31, %v15884_v15  ;;  %v13492_v16 = vpop.permute.xlu0 %5368  ;;  %v5588_v15 = vmax.f32 %v5460_v61, 0.0  ;;  %v15917_v31 = vld [vmem:[#allocation227_spill] sm:$0xff] }
 0x60f   :  { %9150 = vmatprep.subr.bf16.mxu1 %v9149_v41  ;;  %v5455_v28 = vadd.f32 %v13363_v8, %v15914_v43  ;;  %v4778_v41 = vadd.f32 %v15908_v26, %v15915_v30  ;;  %v5586_v8 = vmax.f32 %v5458_v60, 0.0  ;;  %v9159_v22 = vpack.c.bf16 %v5581_v11, %v5579_v3 }
 0x610   :  { %v4903_v34 = vmax.f32 %v4775_v45, 0.0  ;;  %v4904_v17 = vmax.f32 %v4776_v27, 0.0  ;;  %v4905_v26 = vmax.f32 %v13461_v33, 0.0  ;;  %v5466_v5 = vadd.f32 %v15917_v31, %v15896_v58 }
 0x611   :  { %v5583_v29 = vmax.f32 %v5455_v28, 0.0  ;;  %v4906_v50 = vmax.f32 %v4778_v41, 0.0  ;;  %v5589_v36 = vmax.f32 %v5461_v47, 0.0  ;;  %v5463_v6 = vadd.f32 %v13437_v59, %v15890_v19  ;;  %v15920_v59 = vld [vmem:[#allocation84_spill] sm:$0xff] }
 0x612   :  { %9152 = vmatpush1.bf16.msra.mxu1 %v9151_v57  ;;  %v9047_v51 = vpack.c.bf16 %v4903_v34, %v4901_v52  ;;  %v5309_v54 = vpop.permute.xlu1 %5308  ;;  %v9045_v12 = vpack.c.bf16 %v4904_v17, %v4902_v23  ;;  %v9161_v57 = vpack.c.bf16 %v5586_v8, %v5584_v37  ;;  %v9723_v33 = vmov 1966171168   ;;  %v13505_v34 = vpop.permute.xlu0 %2845 }
 0x613   :  { %9154 = vmatprep.subr.bf16.mxu1 %v9153_v62  ;;  %v3002_v45 = vunpack.c.l.s4 %v9723_v33  ;;  %v3004_v27 = vlaneseq  ;;  %v5587_v62 = vmax.f32 %v5459_v25, 0.0  ;;  %v9163_v49 = vpack.c.bf16 %v5585_v55, %v5583_v29 }
 0x614   :  { %9046 = vmatprep.subr.bf16.mxu0 %v9045_v12  ;;  %v5465_v60 = vadd.f32 %v15917_v31, %v15895_v2  ;;  %v5592_v58 = vmax.f32 %v5464_v7, 0.0  ;;  %v5470_v52 = vadd.f32 %v5309_v54, %v15912_v14  ;;  %v9165_v23 = vpack.c.bf16 %v5590_v48, %v5588_v15 }
 0x615   :  { %9048 = vmatpush1.bf16.msra.mxu0 %v9047_v51  ;;  %v5594_v19 = vmax.f32 %v5466_v5, 0.0  ;;  %v5468_v17 = vadd.f32 %v15920_v59, %v15910_v9  ;;  %v9167_v43 = vpack.c.bf16 %v5589_v36, %v5587_v62  ;;  %v5591_v28 = vmax.f32 %v5463_v6, 0.0  ;;  %v7806_v6 = vld [vmem:[%s13609_s20 + $0x1d8] sm:$0xff] }
 0x616   :  { %9156 = vmatpush1.bf16.msra.mxu1 %v9155_v42  ;;  %v3003_v37 = vunpack.c.0.s8 %v3002_v45  ;;  %v13509_v21 = vshrl.u32 %v3004_v27, 7  ;;  %v5469_v2 = vadd.f32 %v5309_v54, %v15911_v13  ;;  %v5598_v46 = vmax.f32 %v5470_v52, 0.0  ;;  %v15924_v45 = vld [vmem:[#allocation177_spill] sm:$0xff] }
 0x617   :  { %9158 = vmatprep.subr.bf16.mxu1 %v9157_v32  ;;  %v9169_v61 = vpack.c.bf16 %v5594_v19, %v5592_v58  ;;  %v5593_v8 = vmax.f32 %v5465_v60, 0.0  ;;  %v5467_v47 = vadd.f32 %v15920_v59, %v15909_v10  ;;  %v5596_v25 = vmax.f32 %v5468_v17, 0.0  ;;  %v15926_v58 = vld [vmem:[#allocation72_spill] sm:$0xff] }
 0x618   :  { %v4623_v0 = vpop.permute.xlu1 %4622  ;;  %v5474_v13 = vadd.f32 %v13361_v24, %v15919_v56  ;;  %v5597_v48 = vmax.f32 %v5469_v2, 0.0  ;;  %v5473_v10 = vadd.f32 %v13361_v24, %v15918_v38  ;;  %vm13526_vm6 = vcmp.lt.s32.totalorder %v3004_v27, 196 }
 0x619   :  { %v4779_v4 = vadd.f32 %v4623_v0, %v15918_v38  ;;  %v4780_v53 = vadd.f32 %v4623_v0, %v15919_v56  ;;  %v9173_v55 = vpack.c.bf16 %v5598_v46, %v5596_v25  ;;  %v5595_v15 = vmax.f32 %v5467_v47, 0.0  ;;  %v15923_v0 = vld [vmem:[#allocation109_spill] sm:$0xff] }
 0x61a   :  { %9160 = vmatpush1.bf16.msra.mxu1 %v9159_v22  ;;  %v5602_v31 = vmax.f32 %v5474_v13, 0.0  ;;  %v5601_v62 = vmax.f32 %v5473_v10, 0.0  ;;  %v15930_v13 = vld [vmem:[#allocation254_spill] sm:$0xff] }
 0x61b   :  { %9162 = vmatprep.subr.bf16.mxu1 %v9161_v57  ;;  %v4907_v42 = vmax.f32 %v4779_v4, 0.0  ;;  %v4908_v11 = vmax.f32 %v4780_v53, 0.0  ;;  %v9175_v36 = vpack.c.bf16 %v5597_v48, %v5595_v15  ;;  %v15925_v53 = vld [vmem:[#allocation178_spill] sm:$0xff] }
 0x61c   :  { %v2991_v32 = vpop.f32.mrb[128].mxu1 }
 0x61d   :  { %v9051_v14 = vpack.c.bf16 %v4907_v42, %v4905_v26  ;;  %v5313_v51 = vpop.permute.xlu1 %5312  ;;  %v9381_v12 = vadd.f32 %v2991_v32, %v13505_v34  ;;  %v2993_v41 = vpop.f32.mrb[129].mxu1  ;;  %v9049_v3 = vpack.c.bf16 %v4908_v11, %v4906_v50  ;;  %v13521_v26 = vsub.s32 %v3003_v37, %v13509_v21 }
 0x61e   :  { %9164 = vmatpush1.bf16.msra.mxu1 %v9163_v49  ;;  %v5472_v9 = vadd.f32 %v5313_v51, %v15915_v30  ;;  %v9382_v63 = vadd.f32 %v2993_v41, %v13505_v34  ;;  %v5471_v54 = vadd.f32 %v5313_v51, %v15907_v35  ;;  %v9171_v30 = vpack.c.bf16 %v5593_v8, %v5591_v28 }
 0x61f   :  { %9166 = vmatprep.subr.bf16.mxu1 %v9165_v23  ;;  %v2996_v22 = vmax.f32 %v9381_v12, 0.0  ;;  %9050 = vmatprep.subr.bf16.mxu0 %v9049_v3  ;;  %v5476_v28 = vadd.f32 %v13376_v40, %v15924_v45 }
 0x620   :  { %v2997_v29 = vmax.f32 %v9382_v63, 0.0  ;;  %9052 = vmatpush1.bf16.msra.mxu0 %v9051_v14  ;;  %v5600_v7 = vmax.f32 %v5472_v9, 0.0  ;;  %v5599_v5 = vmax.f32 %v5471_v54, 0.0  ;;  %v15928_v9 = vld [vmem:[#allocation200_spill] sm:$0xff] }
 0x621   :  { %v5604_v41 = vmax.f32 %v5476_v28, 0.0 }
 0x622   :  { %9168 = vmatpush1.bf16.msra.mxu1 %v9167_v43  ;;  %v3000_v57 = vcombine.low %v2996_v22, %v2997_v29  ;;  %v4627_v50 = vpop.permute.xlu1 %4626  ;;  %v9177_v56 = vpack.c.bf16 %v5602_v31, %v5600_v7  ;;  %v9179_v23 = vpack.c.bf16 %v5601_v62, %v5599_v5  ;;  %v5475_v43 = vadd.f32 %v13376_v40, %v15923_v0  ;;  %v15927_v40 = vld [vmem:[#allocation180_spill] sm:$0xff]  ;;  %v15931_v29 = vld [vmem:[#allocation210_spill] sm:$0xff] }
 0x623   :  { %9170 = vmatprep.subr.bf16.mxu1 %v9169_v61  ;;  %v4781_v33 = vadd.f32 %v4627_v50, %v15923_v0  ;;  %v4782_v24 = vadd.f32 %v4627_v50, %v15924_v45  ;;  %v4785_v63 = vadd.f32 %v15928_v9, %v15927_v40  ;;  %v15929_v61 = vld [vmem:[#allocation29_spill] sm:$0xff]  ;;  %v5481_v50 = vadd.f32 %v13398_v20, %v15930_v13 }
 0x624   :  { %v3007_v35 = vrot.slane %v3000_v57, %v13521_v26  ;;  %v5603_v12 = vmax.f32 %v5475_v43, 0.0  ;;  %v4786_v8 = vadd.f32 %v15928_v9, %v15929_v61 }
 0x625   :  { %v4909_v59 = vmax.f32 %v4781_v33, 0.0  ;;  %v4910_v17 = vmax.f32 %v4782_v24, 0.0  ;;  %v4913_v48 = vmax.f32 %v4785_v63, 0.0  ;;  %v5609_v0 = vmax.f32 %v5481_v50, 0.0  ;;  %v15938_v63 = vld [vmem:[#allocation190_spill] sm:$0xff] }
 0x626   :  { %9172 = vmatpush1.bf16.msra.mxu1 %v9171_v30  ;;  %v3014_v49 = vrot.slane %v3007_v35, %v13521_v26  ;;  %v3022_v38 = vcombine.high %v3007_v35, %v3007_v35  ;;  %v4631_v4 = vpop.permute.xlu1 %4630  ;;  %v4914_v10 = vmax.f32 %v4786_v8, 0.0 }
 0x627   :  { %9174 = vmatprep.subr.bf16.mxu1 %v9173_v55  ;;  %v4783_v60 = vadd.f32 %v4631_v4, %v15925_v53  ;;  %v4784_v52 = vadd.f32 %v4631_v4, %v15926_v58  ;;  %v5482_v55 = vadd.f32 %v13398_v20, %v15931_v29  ;;  %v15932_v4 = vld [vmem:[#allocation35_spill] sm:$0xff]  ;;  %v15933_v20 = vld [vmem:[#allocation182_spill] sm:$0xff] }
 0x628   :  { %3020 = vst.msk [vmem:[#allocation2] ss:$8 sm:$0x3] %vm13526_vm6, %v3014_v49  ;;  %v3029_v27 = vrot.slane %v3022_v38, %v13521_v26  ;;  %v3033_v19 = vcombine.high %v3014_v49, %v3014_v49  ;;  %v5484_v43 = vadd.f32 %v13417_v1, %v15933_v20 }
 0x629   :  { %v4911_v42 = vmax.f32 %v4783_v60, 0.0  ;;  %v4912_v11 = vmax.f32 %v4784_v52, 0.0  ;;  %v5610_v33 = vmax.f32 %v5482_v55, 0.0 }
 0x62a   :  { %9176 = vmatpush1.bf16.msra.mxu1 %v9175_v36  ;;  %3031 = vst.msk [vmem:[#allocation3] ss:$8 sm:$0x3] %vm13526_vm6, %v3029_v27  ;;  %3035 = vst.msk [vmem:[#allocation4] ss:$8 sm:$0x3] %vm13526_vm6, %v3033_v19 }
 0x62b   :  { %9178 = vmatprep.subr.bf16.mxu1 %v9177_v56  ;;  %v9055_v32 = vpack.c.bf16 %v4911_v42, %v4909_v59  ;;  %v5325_v37 = vpop.permute.xlu1 %5324  ;;  %v9053_v2 = vpack.c.bf16 %v4912_v11, %v4910_v17  ;;  %v5483_v11 = vadd.f32 %v13417_v1, %v15932_v4 }
 0x62c   :  { %v5477_v14 = vadd.f32 %v5325_v37, %v15925_v53  ;;  %v5478_v51 = vadd.f32 %v5325_v37, %v15926_v58  ;;  %v15934_v58 = vld [vmem:[#allocation81_spill] sm:$0xff] }
 0x62d   :  { %9054 = vmatprep.subr.bf16.mxu0 %v9053_v2 }
 0x62e   :  { %9180 = vmatpush1.bf16.msra.mxu1 %v9179_v23  ;;  %v5605_v3 = vmax.f32 %v5477_v14, 0.0  ;;  %v5606_v46 = vmax.f32 %v5478_v51, 0.0  ;;  %9056 = vmatpush1.bf16.msra.mxu0 %v9055_v32  ;;  %v15935_v23 = vld [vmem:[#allocation185_spill] sm:$0xff]  ;;  %v5611_v51 = vmax.f32 %v5483_v11, 0.0 }
 0x630   :  { %v9183_v47 = vpack.c.bf16 %v5605_v3, %v5603_v12  ;;  %v4639_v25 = vpop.permute.xlu1 %4638  ;;  %v9181_v22 = vpack.c.bf16 %v5606_v46, %v5604_v41  ;;  %v5612_v12 = vmax.f32 %v5484_v43, 0.0  ;;  %v15936_v46 = vld [vmem:[#allocation189_spill] sm:$0xff] }
 0x631   :  { %v4787_v54 = vadd.f32 %v4639_v25, %v15930_v13  ;;  %v4788_v30 = vadd.f32 %v4639_v25, %v15931_v29  ;;  %v15939_v25 = vld [vmem:[#allocation43_spill] sm:$0xff]  ;;  %v15940_v13 = vld [vmem:[#allocation90_spill] sm:$0xff] }
 0x632   :  { %9182 = vmatprep.subr.bf16.mxu1 %v9181_v22 }
 0x633   :  { %v4915_v7 = vmax.f32 %v4787_v54, 0.0  ;;  %v4916_v57 = vmax.f32 %v4788_v30, 0.0  ;;  %9184 = vmatpush1.bf16.msra.mxu1 %v9183_v47 }
 0x635   :  { %v9059_v15 = vpack.c.bf16 %v4915_v7, %v4913_v48  ;;  %v5329_v31 = vpop.permute.xlu1 %5328  ;;  %v9057_v5 = vpack.c.bf16 %v4916_v57, %v4914_v10  ;;  %v5489_v7 = vadd.f32 %v13435_v18, %v15939_v25  ;;  %v5490_v57 = vadd.f32 %v13435_v18, %v15940_v13  ;;  %v15942_v18 = vld [vmem:[#allocation45_spill] sm:$0xff] }
 0x636   :  { %v5479_v35 = vadd.f32 %v5329_v31, %v15927_v40  ;;  %v5480_v36 = vadd.f32 %v5329_v31, %v15929_v61  ;;  %v15937_v40 = vld [vmem:[#allocation47_spill] sm:$0xff] }
 0x637   :  { %9058 = vmatprep.subr.bf16.mxu0 %v9057_v5  ;;  %v4793_v9 = vadd.f32 %v15937_v40, %v15936_v46  ;;  %v4794_v61 = vadd.f32 %v15937_v40, %v15938_v63 }
 0x638   :  { %v5607_v45 = vmax.f32 %v5479_v35, 0.0  ;;  %v5608_v24 = vmax.f32 %v5480_v36, 0.0  ;;  %9060 = vmatpush1.bf16.msra.mxu0 %v9059_v15  ;;  %v5617_v35 = vmax.f32 %v5489_v7, 0.0  ;;  %v5618_v36 = vmax.f32 %v5490_v57, 0.0 }
 0x639   :  { %v4921_v29 = vmax.f32 %v4793_v9, 0.0  ;;  %v4922_v30 = vmax.f32 %v4794_v61, 0.0  ;;  %v15948_v61 = vld [vmem:[#allocation108_spill] sm:$0xff] }
 0x63a   :  { %v9187_v62 = vpack.c.bf16 %v5609_v0, %v5607_v45  ;;  %v4643_v49 = vpop.permute.xlu1 %4642  ;;  %v9185_v38 = vpack.c.bf16 %v5610_v33, %v5608_v24 }
 0x63b   :  { %v4789_v56 = vadd.f32 %v4643_v49, %v15932_v4  ;;  %v4790_v53 = vadd.f32 %v4643_v49, %v15933_v20  ;;  %v15941_v49 = vld [vmem:[#allocation216_spill] sm:$0xff]  ;;  %v15943_v20 = vld [vmem:[#allocation195_spill] sm:$0xff] }
 0x63c   :  { %9186 = vmatprep.subr.bf16.mxu1 %v9185_v38 }
 0x63d   :  { %9188 = vmatpush1.bf16.msra.mxu1 %v9187_v62  ;;  %v4917_v19 = vmax.f32 %v4789_v56, 0.0  ;;  %v4918_v59 = vmax.f32 %v4790_v53, 0.0 }
 0x63e   :  { %v4647_v60 = vpop.permute.xlu1 %4646 }
 0x63f   :  { %v4791_v52 = vadd.f32 %v4647_v60, %v15934_v58  ;;  %v4792_v27 = vadd.f32 %v4647_v60, %v15935_v23  ;;  %v15944_v60 = vld [vmem:[#allocation197_spill] sm:$0xff] }
 0x641   :  { %v4919_v17 = vmax.f32 %v4791_v52, 0.0  ;;  %v4920_v42 = vmax.f32 %v4792_v27, 0.0 }
 0x643   :  { %v9063_v28 = vpack.c.bf16 %v4919_v17, %v4917_v19  ;;  %v5341_v32 = vpop.permute.xlu1 %5340  ;;  %v9061_v37 = vpack.c.bf16 %v4920_v42, %v4918_v59  ;;  %v5491_v59 = vadd.f32 %v13451_v44, %v15941_v49  ;;  %v5492_v17 = vadd.f32 %v13451_v44, %v15942_v18 }
 0x644   :  { %v5485_v2 = vadd.f32 %v5341_v32, %v15934_v58  ;;  %v5486_v14 = vadd.f32 %v5341_v32, %v15935_v23 }
 0x645   :  { %9062 = vmatprep.subr.bf16.mxu0 %v9061_v37  ;;  %v15945_v37 = vld [vmem:[#allocation133_spill] sm:$0xff] }
 0x646   :  { %v5613_v41 = vmax.f32 %v5485_v2, 0.0  ;;  %v5614_v3 = vmax.f32 %v5486_v14, 0.0  ;;  %9064 = vmatpush1.bf16.msra.mxu0 %v9063_v28  ;;  %v15946_v2 = vld [vmem:[#allocation139_spill] sm:$0xff] }
 0x647   :  { %v4801_v14 = vadd.f32 %v15946_v2, %v15945_v37 }
 0x648   :  { %v9191_v1 = vpack.c.bf16 %v5613_v41, %v5611_v51  ;;  %v4655_v8 = vpop.permute.xlu1 %4654  ;;  %v9189_v47 = vpack.c.bf16 %v5614_v3, %v5612_v12  ;;  %v5619_v51 = vmax.f32 %v5491_v59, 0.0  ;;  %v5620_v12 = vmax.f32 %v5492_v17, 0.0 }
 0x649   :  { %v4795_v22 = vadd.f32 %v4655_v8, %v15939_v25  ;;  %v4796_v54 = vadd.f32 %v4655_v8, %v15940_v13  ;;  %v15949_v8 = vld [vmem:[#allocation204_spill] sm:$0xff]  ;;  %v4929_v25 = vmax.f32 %v4801_v14, 0.0  ;;  %v5497_v13 = vadd.f32 %v13475_v39, %v15948_v61 }
 0x64a   :  { %9190 = vmatprep.subr.bf16.mxu1 %v9189_v47 }
 0x64b   :  { %v4923_v48 = vmax.f32 %v4795_v22, 0.0  ;;  %v4924_v10 = vmax.f32 %v4796_v54, 0.0  ;;  %9192 = vmatpush1.bf16.msra.mxu1 %v9191_v1 }
 0x64d   :  { %v9067_v50 = vpack.c.bf16 %v4923_v48, %v4921_v29  ;;  %v9065_v15 = vpack.c.bf16 %v4924_v10, %v4922_v30  ;;  %v5498_v30 = vadd.f32 %v13475_v39, %v15949_v8 }
 0x64e   :  { %v5345_v55 = vpop.permute.xlu1 %5344 }
 0x64f   :  { %v5487_v31 = vadd.f32 %v5345_v55, %v15936_v46  ;;  %v5488_v5 = vadd.f32 %v5345_v55, %v15938_v63  ;;  %9066 = vmatprep.subr.bf16.mxu0 %v9065_v15  ;;  %v15947_v46 = vld [vmem:[#allocation201_spill] sm:$0xff] }
 0x650   :  { %9068 = vmatpush1.bf16.msra.mxu0 %v9067_v50  ;;  %v4802_v40 = vadd.f32 %v15946_v2, %v15947_v46 }
 0x651   :  { %v5615_v0 = vmax.f32 %v5487_v31, 0.0  ;;  %v5616_v33 = vmax.f32 %v5488_v5, 0.0  ;;  %v5625_v5 = vmax.f32 %v5497_v13, 0.0 }
 0x652   :  { %v4930_v22 = vmax.f32 %v4802_v40, 0.0  ;;  %v5820_v40 = vld [vmem:[%s13609_s20] sm:$0xff] }
 0x653   :  { %v9195_v45 = vpack.c.bf16 %v5617_v35, %v5615_v0  ;;  %v9193_v62 = vpack.c.bf16 %v5618_v36, %v5616_v33  ;;  %v5626_v36 = vmax.f32 %v5498_v30, 0.0 }
 0x654   :  { %v4659_v24 = vpop.permute.xlu1 %4658 }
 0x655   :  { %9194 = vmatprep.subr.bf16.mxu1 %v9193_v62  ;;  %v4797_v38 = vadd.f32 %v4659_v24, %v15941_v49  ;;  %v4798_v4 = vadd.f32 %v4659_v24, %v15942_v18  ;;  %v15950_v18 = vld [vmem:[#allocation51_spill] sm:$0xff] }
 0x656   :  { %9196 = vmatpush1.bf16.msra.mxu1 %v9195_v45  ;;  %v5499_v17 = vadd.f32 %v13492_v16, %v15950_v18 }
 0x657   :  { %v4925_v52 = vmax.f32 %v4797_v38, 0.0  ;;  %v4926_v23 = vmax.f32 %v4798_v4, 0.0 }
 0x658   :  { %v4663_v56 = vpop.permute.xlu1 %4662 }
 0x659   :  { %v4799_v53 = vadd.f32 %v4663_v56, %v15943_v20  ;;  %v4800_v58 = vadd.f32 %v4663_v56, %v15944_v60  ;;  %v15951_v56 = vld [vmem:[#allocation220_spill] sm:$0xff] }
 0x65b   :  { %v4927_v27 = vmax.f32 %v4799_v53, 0.0  ;;  %v4928_v19 = vmax.f32 %v4800_v58, 0.0  ;;  %v15952_v58 = vld [vmem:[#allocation53_spill] sm:$0xff] }
 0x65d   :  { %v9071_v42 = vpack.c.bf16 %v4927_v27, %v4925_v52  ;;  %v5357_v11 = vpop.permute.xlu1 %5356  ;;  %v9069_v43 = vpack.c.bf16 %v4928_v19, %v4926_v23  ;;  %v15953_v23 = vld [vmem:[#allocation117_spill] sm:$0xff] }
 0x65e   :  { %v5493_v28 = vadd.f32 %v5357_v11, %v15943_v20  ;;  %v5494_v32 = vadd.f32 %v5357_v11, %v15944_v60 }
 0x65f   :  { %9070 = vmatprep.subr.bf16.mxu0 %v9069_v43  ;;  %v5821_v43 = vld [vmem:[%s13609_s20 + $0x8] sm:$0xff] }
 0x660   :  { %v5621_v41 = vmax.f32 %v5493_v28, 0.0  ;;  %v5622_v3 = vmax.f32 %v5494_v32, 0.0  ;;  %9072 = vmatpush1.bf16.msra.mxu0 %v9071_v42  ;;  %v5823_v28 = vld [vmem:[%s13609_s20 + $0x18] sm:$0xff] }
 0x662   :  { %v9199_v44 = vpack.c.bf16 %v5621_v41, %v5619_v51  ;;  %v4671_v9 = vpop.permute.xlu1 %4670  ;;  %v9197_v63 = vpack.c.bf16 %v5622_v3, %v5620_v12  ;;  %v5500_v51 = vadd.f32 %v13492_v16, %v15951_v56  ;;  %v5825_v16 = vld [vmem:[%s13609_s20 + $0x28] sm:$0xff] }
 0x663   :  { %v4803_v1 = vadd.f32 %v4671_v9, %v15948_v61  ;;  %v4804_v47 = vadd.f32 %v4671_v9, %v15949_v8  ;;  %v5827_v61 = vld [vmem:[%s13609_s20 + $0x38] sm:$0xff] }
 0x664   :  { %9198 = vmatprep.subr.bf16.mxu1 %v9197_v63  ;;  %v5628_v8 = vmax.f32 %v5500_v51, 0.0  ;;  %v9213_v13 = vpack.c.bf16 %v5827_v61, %v5825_v16  ;;  %v5848_v16 = vld [vmem:[%s13609_s20 + $0xe0] sm:$0xff]  ;;  %v5850_v61 = vld [vmem:[%s13609_s20 + $0xf0] sm:$0xff] }
 0x665   :  { %v4931_v54 = vmax.f32 %v4803_v1, 0.0  ;;  %v4932_v29 = vmax.f32 %v4804_v47, 0.0  ;;  %9200 = vmatpush1.bf16.msra.mxu1 %v9199_v44  ;;  %v3686_v57 = vpop.f32.mrb[70].mxu0  ;;  %v5822_v44 = vld [vmem:[%s13609_s20 + $0x10] sm:$0xff]  ;;  %v5627_v1 = vmax.f32 %v5499_v17, 0.0 }
 0x666   :  { %v9383_v15 = vadd.f32 %v3686_v57, %v13505_v34  ;;  %v3688_v31 = vpop.f32.mrb[71].mxu0  ;;  %v9704_v57 = vld [vmem:[%s11372_s12 + $0x8] sm:$0x77]  ;;  %s9739_s12 = smov 24  }
 0x667   :  { %v9075_v48 = vpack.c.bf16 %v4931_v54, %v4929_v25  ;;  %v5361_v10 = vpop.permute.xlu1 %5360  ;;  %v9073_v7 = vpack.c.bf16 %v4932_v29, %v4930_v22  ;;  %v9384_v35 = vadd.f32 %v3688_v31, %v13505_v34  ;;  %v9211_v22 = vpack.c.bf16 %v5822_v44, %v5820_v40  ;;  %v5824_v54 = vld [vmem:[%s13609_s20 + $0x20] sm:$0xff]  ;;  %v5826_v29 = vld [vmem:[%s13609_s20 + $0x30] sm:$0xff]  ;;  %v5849_v44 = vld [vmem:[%s13609_s20 + $0xe8] sm:$0xff]  ;;  %s7656_s15 = sld [smem:[%s14206_s0 + %s9739_s12]]  }
 0x668   :  { %v5495_v50 = vadd.f32 %v5361_v10, %v15945_v37  ;;  %v5496_v55 = vadd.f32 %v5361_v10, %v15947_v46  ;;  %v3691_v39 = vmax.f32 %v9383_v15, 0.0  ;;  %v9209_v46 = vpack.c.bf16 %v5823_v28, %v5821_v43  ;;  %v5829_v10 = vld [vmem:[%s13609_s20 + $0x48] sm:$0xff]  ;;  %v5828_v15 = vld [vmem:[%s13609_s20 + $0x40] sm:$0xff]  ;;  %v5830_v31 = vld [vmem:[%s13609_s20 + $0x50] sm:$0xff] }
 0x669   :  { %9074 = vmatprep.subr.bf16.mxu0 %v9073_v7  ;;  %v3692_v45 = vmax.f32 %v9384_v35, 0.0  ;;  %v5831_v7 = vld [vmem:[%s13609_s20 + $0x58] sm:$0xff] }
 0x66a   :  { %v5623_v0 = vmax.f32 %v5495_v50, 0.0  ;;  %v5624_v33 = vmax.f32 %v5496_v55, 0.0  ;;  %9076 = vmatpush1.bf16.msra.mxu0 %v9075_v48  ;;  %v9215_v50 = vpack.c.bf16 %v5826_v29, %v5824_v54  ;;  %v9217_v55 = vpack.c.bf16 %v5831_v7, %v5829_v10  ;;  %v5835_v35 = vld [vmem:[%s13609_s20 + $0x78] sm:$0xff]  ;;  %v5857_v29 = vld [vmem:[%s13609_s20 + $0x128] sm:$0xff]  ;;  %v5856_v10 = vld [vmem:[%s13609_s20 + $0x120] sm:$0xff] }
 0x66b   :  { %v3695_v38 = vcombine.low %v3691_v39, %v3692_v45  ;;  %v5832_v39 = vld [vmem:[%s13609_s20 + $0x60] sm:$0xff]  ;;  %v5834_v45 = vld [vmem:[%s13609_s20 + $0x70] sm:$0xff] }
 0x66c   :  { %v9203_v24 = vpack.c.bf16 %v5625_v5, %v5623_v0  ;;  %v4675_v62 = vpop.permute.xlu1 %4674  ;;  %v9201_v49 = vpack.c.bf16 %v5626_v36, %v5624_v33  ;;  %v5833_v5 = vld [vmem:[%s13609_s20 + $0x68] sm:$0xff]  ;;  %v15954_v36 = vmov 0.0   ;;  %v9219_v0 = vpack.c.bf16 %v5830_v31, %v5828_v15  ;;  %v5858_v7 = vld [vmem:[%s13609_s20 + $0x130] sm:$0xff]  ;;  %v5860_v15 = vld [vmem:[%s13609_s20 + $0x140] sm:$0xff] }
 0x66d   :  { %v4805_v4 = vadd.f32 %v4675_v62, %v15950_v18  ;;  %v4806_v20 = vadd.f32 %v4675_v62, %v15951_v56  ;;  %v3702_v53 = vrot.slane %v3695_v38, %v13521_v26  ;;  %v9221_v33 = vpack.c.bf16 %v5835_v35, %v5833_v5  ;;  %v5839_v62 = vld [vmem:[%s13609_s20 + $0x98] sm:$0xff]  ;;  %v5836_v18 = vld [vmem:[%s13609_s20 + $0x80] sm:$0xff]  ;;  %v5841_v56 = vld [vmem:[%s13609_s20 + $0xa8] sm:$0xff] }
 0x66e   :  { %9202 = vmatprep.subr.bf16.mxu1 %v9201_v49  ;;  %v9223_v49 = vpack.c.bf16 %v5834_v45, %v5832_v39  ;;  %v5862_v5 = vld [vmem:[%s13609_s20 + $0x150] sm:$0xff]  ;;  %v5865_v35 = vld [vmem:[%s13609_s20 + $0x168] sm:$0xff]  ;;  %v5864_v45 = vld [vmem:[%s13609_s20 + $0x160] sm:$0xff] }
 0x66f   :  { %9204 = vmatpush1.bf16.msra.mxu1 %v9203_v24  ;;  %v3709_v19 = vrot.slane %v3702_v53, %v13521_v26  ;;  %v3714_v59 = vcombine.high %v3702_v53, %v3702_v53  ;;  %v4933_v42 = vmax.f32 %v4805_v4, 0.0  ;;  %v4934_v11 = vmax.f32 %v4806_v20, 0.0  ;;  %v5837_v24 = vld [vmem:[%s13609_s20 + $0x88] sm:$0xff]  ;;  %v5838_v4 = vld [vmem:[%s13609_s20 + $0x90] sm:$0xff]  ;;  %v5843_v20 = vld [vmem:[%s13609_s20 + $0xb8] sm:$0xff] }
 0x670   :  { %v4679_v60 = vpop.permute.xlu1 %4678  ;;  %v9225_v38 = vpack.c.bf16 %v5839_v62, %v5837_v24  ;;  %v9227_v53 = vpack.c.bf16 %v5838_v4, %v5836_v18  ;;  %v5866_v24 = vld [vmem:[%s13609_s20 + $0x170] sm:$0xff]  ;;  %v7800_v18 = vld [vmem:[%s13609_s20 + $0x1a8] sm:$0xff]  ;;  %v5868_v4 = vld [vmem:[%s13609_s20 + $0x180] sm:$0xf] }
 0x671   :  { %v4807_v52 = vadd.f32 %v4679_v60, %v15952_v58  ;;  %v4808_v27 = vadd.f32 %v4679_v60, %v15953_v23  ;;  %3712 = vst.msk [vmem:[#allocation2 + $0x1] ss:$8 sm:$0x3] %vm13526_vm6, %v3709_v19  ;;  %v3721_v2 = vrot.slane %v3714_v59, %v13521_v26  ;;  %v3726_v14 = vcombine.high %v3709_v19, %v3709_v19 }
 0x672   :  { %v9229_v60 = vpack.c.bf16 %v5843_v20, %v5841_v56  ;;  %v9255_v62 = vpack.c.bf16 %v5866_v24, %v5864_v45  ;;  %v7820_v45 = vld [vmem:[%s13609_s20 + $0x248] sm:$0xff] }
 0x673   :  { %v4935_v32 = vmax.f32 %v4807_v52, 0.0  ;;  %v4936_v37 = vmax.f32 %v4808_v27, 0.0  ;;  %3724 = vst.msk [vmem:[#allocation3 + $0x1] ss:$8 sm:$0x3] %vm13526_vm6, %v3721_v2  ;;  %v5842_v52 = vld [vmem:[%s13609_s20 + $0xb0] sm:$0xff] }
 0x674   :  { %3729 = vst.msk [vmem:[#allocation4 + $0x1] ss:$8 sm:$0x3] %vm13526_vm6, %v3726_v14  ;;  %v5847_v27 = vld [vmem:[%s13609_s20 + $0xd8] sm:$0xff] }
 0x675   :  { %v9079_v12 = vpack.c.bf16 %v4935_v32, %v4933_v42  ;;  %v5373_v41 = vpop.permute.xlu1 %5372  ;;  %v9077_v3 = vpack.c.bf16 %v4936_v37, %v4934_v11 }
 0x676   :  { %v5501_v9 = vadd.f32 %v5373_v41, %v15952_v58  ;;  %v5502_v63 = vadd.f32 %v5373_v41, %v15953_v23  ;;  %v5840_v58 = vld [vmem:[%s13609_s20 + $0xa0] sm:$0xff]  ;;  %v5845_v23 = vld [vmem:[%s13609_s20 + $0xc8] sm:$0xff] }
 0x677   :  { %9078 = vmatprep.subr.bf16.mxu0 %v9077_v3  ;;  %v9231_v19 = vpack.c.bf16 %v5842_v52, %v5840_v58  ;;  %v9233_v59 = vpack.c.bf16 %v5847_v27, %v5845_v23  ;;  %v5844_v3 = vld [vmem:[%s13609_s20 + $0xc0] sm:$0xff] }
 0x678   :  { %v5629_v47 = vmax.f32 %v5501_v9, 0.0  ;;  %v5630_v25 = vmax.f32 %v5502_v63, 0.0  ;;  %9080 = vmatpush1.bf16.msra.mxu0 %v9079_v12  ;;  %v5851_v9 = vld [vmem:[%s13609_s20 + $0xf8] sm:$0xff] }
 0x679   :  { %9210 = vmatprep.subr.bf16.mxu0 %v9209_v46  ;;  %v5846_v46 = vld [vmem:[%s13609_s20 + $0xd0] sm:$0xff]  ;;  %v9237_v63 = vpack.c.bf16 %v5851_v9, %v5849_v44  ;;  %v7799_v44 = vld [vmem:[%s13609_s20 + $0x1a0] sm:$0xff]  ;;  %v7802_v9 = vld [vmem:[%s13609_s20 + $0x1b8] sm:$0xff] }
 0x67a   :  { %v9207_v30 = vpack.c.bf16 %v5629_v47, %v5627_v1  ;;  %v9205_v48 = vpack.c.bf16 %v5630_v25, %v5628_v8  ;;  %v9235_v40 = vpack.c.bf16 %v5846_v46, %v5844_v3  ;;  %v9239_v1 = vpack.c.bf16 %v5850_v61, %v5848_v16  ;;  %v5853_v8 = vld [vmem:[%s13609_s20 + $0x108] sm:$0xff]  ;;  %v5855_v47 = vld [vmem:[%s13609_s20 + $0x118] sm:$0xff]  ;;  %v7801_v61 = vld [vmem:[%s13609_s20 + $0x1b0] sm:$0xff] }
 0x67b   :  { %5073 = vmatmul.mubr.f32.vlgmr.msra.gmra.mrb[72].mxu0 %v9704_v57  ;;  %v9241_v25 = vpack.c.bf16 %v5855_v47, %v5853_v8  ;;  %v7803_v47 = vld [vmem:[%s13609_s20 + $0x1c0] sm:$0xff] }
 0x67c   :  { %9206 = vmatprep.subr.bf16.mxu1 %v9205_v48  ;;  %9212 = vmatpush1.bf16.msra.mxu0 %v9211_v22  ;;  %v5852_v22 = vld [vmem:[%s13609_s20 + $0x100] sm:$0xff] }
 0x67d   :  { %9208 = vmatpush1.bf16.msra.mxu1 %v9207_v30  ;;  %9214 = vmatprep.subr.bf16.mxu0 %v9213_v13  ;;  %v5854_v13 = vld [vmem:[%s13609_s20 + $0x110] sm:$0xff]  ;;  %v5859_v30 = vld [vmem:[%s13609_s20 + $0x138] sm:$0xff] }
 0x67e   :  { %8229 = vmatprep.subr.mxu1 %v15954_v36  ;;  %v9243_v54 = vpack.c.bf16 %v5854_v13, %v5852_v22  ;;  %v9245_v48 = vpack.c.bf16 %v5859_v30, %v5857_v29  ;;  %v9263_v13 = vpack.c.bf16 %v7803_v47, %v7801_v61  ;;  %v7805_v29 = vld [vmem:[%s13609_s20 + $0x1d0] sm:$0xff]  ;;  %v7807_v30 = vld [vmem:[%s13609_s20 + $0x1e0] sm:$0xff] }
 0x67f   :  { %v7841_v47 = vld [vmem:[%s13609_s20 + $0x2f0] sm:$0xff] }
 0x680   :  { %5767 = vmatmul.mubr.f32.vlgmr.msra.gmra.mrb[132].mxu1 %v9704_v57  ;;  %9216 = vmatpush1.bf16.msra.mxu0 %v9215_v50  ;;  %v9247_v57 = vpack.c.bf16 %v5858_v7, %v5856_v10  ;;  %v5861_v50 = vld [vmem:[%s13609_s20 + $0x148] sm:$0xff]  ;;  %v9267_v7 = vpack.c.bf16 %v7807_v30, %v7805_v29  ;;  %v7853_v29 = vld [vmem:[%s13609_s20 + $0x338] sm:$0xff]  ;;  %v7850_v30 = vld [vmem:[%s13609_s20 + $0x320] sm:$0xff] }
 0x681   :  { %9218 = vmatprep.subr.bf16.mxu0 %v9217_v55  ;;  %v5863_v55 = vld [vmem:[%s13609_s20 + $0x158] sm:$0xff]  ;;  %v7812_v10 = vld [vmem:[%s13609_s20 + $0x208] sm:$0xff]  ;;  %8231 = vmatprep.mubr.msk.f32.mxu1 %vm9726_vm11, %v15954_v36 }
 0x682   :  { %v9249_v31 = vpack.c.bf16 %v5863_v55, %v5861_v50  ;;  %v7809_v50 = vld [vmem:[%s13609_s20 + $0x1f0] sm:$0xff]  ;;  %v7811_v55 = vld [vmem:[%s13609_s20 + $0x200] sm:$0xff] }
 0x684   :  { %9220 = vmatpush1.bf16.msra.mxu0 %v9219_v0  ;;  %v5867_v0 = vld [vmem:[%s13609_s20 + $0x178] sm:$0xff] }
 0x685   :  { %9222 = vmatprep.subr.bf16.mxu0 %v9221_v33  ;;  %v9251_v33 = vpack.c.bf16 %v5862_v5, %v5860_v15  ;;  %v9253_v39 = vpack.c.bf16 %v5867_v0, %v5865_v35  ;;  %v7814_v15 = vld [vmem:[%s13609_s20 + $0x218] sm:$0xff]  ;;  %v9271_v5 = vpack.c.bf16 %v7811_v55, %v7809_v50  ;;  %v7813_v0 = vld [vmem:[%s13609_s20 + $0x210] sm:$0xff] }
 0x688   :  { %9224 = vmatpush1.bf16.msra.mxu0 %v9223_v49  ;;  %v5869_v49 = vld [vmem:[%s13609_s20 + $0x188] sm:$0xf] }
 0x689   :  { %9226 = vmatprep.subr.bf16.mxu0 %v9225_v38  ;;  %v7798_v38 = vld [vmem:[%s13609_s20 + $0x198] sm:$0xff] }
 0x68a   :  { %v9257_v56 = vpack.c.bf16 %v7800_v18, %v7798_v38  ;;  %v7819_v38 = vld [vmem:[%s13609_s20 + $0x240] sm:$0xff]  ;;  %v7822_v18 = vld [vmem:[%s13609_s20 + $0x258] sm:$0xff] }
 0x68c   :  { %9228 = vmatpush1.bf16.msra.mxu0 %v9227_v53 }
 0x68d   :  { %9230 = vmatprep.subr.bf16.mxu0 %v9229_v60 }
 0x690   :  { %9232 = vmatpush1.bf16.msra.mxu0 %v9231_v19 }
 0x691   :  { %9234 = vmatprep.subr.bf16.mxu0 %v9233_v59 }
 0x694   :  { %9236 = vmatpush1.bf16.msra.mxu0 %v9235_v40  ;;  %v7797_v40 = vld [vmem:[%s13609_s20 + $0x190] sm:$0xff] }
 0x695   :  { %9238 = vmatprep.subr.bf16.mxu0 %v9237_v63  ;;  %v7804_v63 = vld [vmem:[%s13609_s20 + $0x1c8] sm:$0xff]  ;;  %v9259_v16 = vpack.c.bf16 %v7799_v44, %v7797_v40  ;;  %v7837_v44 = vld [vmem:[%s13609_s20 + $0x2d0] sm:$0xff] }
 0x696   :  { %v9261_v8 = vpack.c.bf16 %v7804_v63, %v7802_v9  ;;  %v7839_v9 = vld [vmem:[%s13609_s20 + $0x2e0] sm:$0xff]  ;;  %v7842_v63 = vld [vmem:[%s13609_s20 + $0x2f8] sm:$0xff] }
 0x697   :  { %v9299_v61 = vpack.c.bf16 %v7839_v9, %v7837_v44  ;;  %v7880_v44 = vld [vmem:[%s13609_s20 + $0x410] sm:$0xff]  ;;  %v7883_v9 = vld [vmem:[%s13609_s20 + $0x428] sm:$0xff] }
 0x698   :  { %9240 = vmatpush1.bf16.msra.mxu0 %v9239_v1 }
 0x699   :  { %9242 = vmatprep.subr.bf16.mxu0 %v9241_v25  ;;  %v7808_v25 = vld [vmem:[%s13609_s20 + $0x1e8] sm:$0xff] }
 0x69c   :  { %9244 = vmatpush1.bf16.msra.mxu0 %v9243_v54  ;;  %v9265_v54 = vpack.c.bf16 %v7808_v25, %v7806_v6  ;;  %v7843_v6 = vld [vmem:[%s13609_s20 + $0x300] sm:$0xff] }
 0x69d   :  { %9246 = vmatprep.subr.bf16.mxu0 %v9245_v48  ;;  %v7810_v48 = vld [vmem:[%s13609_s20 + $0x1f8] sm:$0xff]  ;;  %v9303_v25 = vpack.c.bf16 %v7843_v6, %v7841_v47  ;;  %v7884_v47 = vld [vmem:[%s13609_s20 + $0x430] sm:$0xff]  ;;  %v7887_v6 = vld [vmem:[%s13609_s20 + $0x448] sm:$0xff] }
 0x69e   :  { %v4380_v17 = vpop.f32.mrb[130].mxu1 }
 0x69f   :  { %v9385_v42 = vadd.f32 %v4380_v17, %v13505_v34  ;;  %v4382_v11 = vpop.f32.mrb[131].mxu1 }
 0x6a0   :  { %v9386_v43 = vadd.f32 %v4382_v11, %v13505_v34  ;;  %9248 = vmatpush1.bf16.msra.mxu0 %v9247_v57  ;;  %v9269_v57 = vpack.c.bf16 %v7812_v10, %v7810_v48  ;;  %v7852_v48 = vld [vmem:[%s13609_s20 + $0x330] sm:$0xff]  ;;  %v7855_v10 = vld [vmem:[%s13609_s20 + $0x348] sm:$0xff] }
 0x6a1   :  { %v4385_v28 = vmax.f32 %v9385_v42, 0.0  ;;  %9250 = vmatprep.subr.bf16.mxu0 %v9249_v31  ;;  %v7816_v31 = vld [vmem:[%s13609_s20 + $0x228] sm:$0xff]  ;;  %v9307_v55 = vpack.c.bf16 %v7852_v48, %v7850_v30  ;;  %v7888_v30 = vld [vmem:[%s13609_s20 + $0x450] sm:$0xff] }
 0x6a2   :  { %v4386_v32 = vmax.f32 %v9386_v43, 0.0  ;;  %v9273_v35 = vpack.c.bf16 %v7816_v31, %v7814_v15  ;;  %v7854_v31 = vld [vmem:[%s13609_s20 + $0x340] sm:$0xff]  ;;  %v7891_v48 = vld [vmem:[%s13609_s20 + $0x468] sm:$0xff] }
 0x6a4   :  { %v4389_v37 = vcombine.low %v4385_v28, %v4386_v32  ;;  %9252 = vmatpush1.bf16.msra.mxu0 %v9251_v33  ;;  %v7815_v33 = vld [vmem:[%s13609_s20 + $0x220] sm:$0xff] }
 0x6a5   :  { %9254 = vmatprep.subr.bf16.mxu0 %v9253_v39  ;;  %v7818_v39 = vld [vmem:[%s13609_s20 + $0x238] sm:$0xff]  ;;  %v9275_v24 = vpack.c.bf16 %v7815_v33, %v7813_v0  ;;  %v7859_v0 = vld [vmem:[%s13609_s20 + $0x368] sm:$0xff] }
 0x6a6   :  { %v4396_v2 = vrot.slane %v4389_v37, %v13521_v26  ;;  %v7861_v33 = vld [vmem:[%s13609_s20 + $0x378] sm:$0xff] }
 0x6a8   :  { %v4403_v14 = vrot.slane %v4396_v2, %v13521_v26  ;;  %v4408_v51 = vcombine.high %v4396_v2, %v4396_v2  ;;  %9256 = vmatpush1.bf16.msra.mxu0 %v9255_v62  ;;  %v9277_v62 = vpack.c.bf16 %v7820_v45, %v7818_v39 }
 0x6a9   :  { %7794 = vmatprep.subr.msk.mxu0 %vm5874_vm7, %v5869_v49  ;;  %v7817_v49 = vld [vmem:[%s13609_s20 + $0x230] sm:$0xff] }
 0x6aa   :  { %4406 = vst.msk [vmem:[#allocation2 + $0x2] ss:$8 sm:$0x3] %vm13526_vm6, %v4403_v14  ;;  %v4415_v12 = vrot.slane %v4408_v51, %v13521_v26  ;;  %v4420_v41 = vcombine.high %v4403_v14, %v4403_v14 }
 0x6ac   :  { %4418 = vst.msk [vmem:[#allocation3 + $0x2] ss:$8 sm:$0x3] %vm13526_vm6, %v4415_v12  ;;  %4423 = vst.msk [vmem:[#allocation4 + $0x2] ss:$8 sm:$0x3] %vm13526_vm6, %v4420_v41  ;;  %7795 = vmatpush1.msk.msra.mxu0 %vm5874_vm7, %v5868_v4 }
 0x6ad   :  { %9258 = vmatprep.subr.bf16.mxu0 %v9257_v56  ;;  %v7824_v4 = vld [vmem:[%s13609_s20 + $0x268] sm:$0xff]  ;;  %v9279_v56 = vpack.c.bf16 %v7819_v38, %v7817_v49  ;;  %v7860_v49 = vld [vmem:[%s13609_s20 + $0x370] sm:$0xff] }
 0x6ae   :  { %v7863_v38 = vld [vmem:[%s13609_s20 + $0x388] sm:$0xff] }
 0x74e   :  { %v5074_v20 = vpop.f32.mrb[72].mxu0 }
 0x74f   :  { %v9387_v53 = vadd.f32 %v5074_v20, %v13505_v34  ;;  %v5076_v60 = vpop.f32.mrb[73].mxu0  ;;  %v9281_v20 = vpack.c.bf16 %v7824_v4, %v7822_v18  ;;  %v7865_v18 = vld [vmem:[%s13609_s20 + $0x398] sm:$0xff] }
 0x750   :  { %v9388_v58 = vadd.f32 %v5076_v60, %v13505_v34  ;;  %v7823_v60 = vld [vmem:[%s13609_s20 + $0x260] sm:$0xff] }
 0x751   :  { %v5079_v52 = vmax.f32 %v9387_v53, 0.0  ;;  %v7821_v53 = vld [vmem:[%s13609_s20 + $0x250] sm:$0xff] }
 0x752   :  { %v5080_v23 = vmax.f32 %v9388_v58, 0.0  ;;  %v7826_v58 = vld [vmem:[%s13609_s20 + $0x278] sm:$0xff] }
 0x753   :  { %v5768_v27 = vpop.f32.mrb[132].mxu1 }
 0x754   :  { %v5083_v19 = vcombine.low %v5079_v52, %v5080_v23  ;;  %v9389_v59 = vadd.f32 %v5768_v27, %v13505_v34  ;;  %v5770_v17 = vpop.f32.mrb[133].mxu1  ;;  %v7828_v52 = vld [vmem:[%s13609_s20 + $0x288] sm:$0xff]  ;;  %v9283_v23 = vpack.c.bf16 %v7823_v60, %v7821_v53  ;;  %v7864_v53 = vld [vmem:[%s13609_s20 + $0x390] sm:$0xff] }
 0x755   :  { %v9390_v42 = vadd.f32 %v5770_v17, %v13505_v34  ;;  %v9285_v27 = vpack.c.bf16 %v7828_v52, %v7826_v58  ;;  %v7830_v17 = vld [vmem:[%s13609_s20 + $0x298] sm:$0xff]  ;;  %v7867_v60 = vld [vmem:[%s13609_s20 + $0x3a8] sm:$0xff] }
 0x756   :  { %v5090_v11 = vrot.slane %v5083_v19, %v13521_v26  ;;  %v5773_v43 = vmax.f32 %v9389_v59, 0.0  ;;  %v7825_v19 = vld [vmem:[%s13609_s20 + $0x270] sm:$0xff]  ;;  %v7827_v59 = vld [vmem:[%s13609_s20 + $0x280] sm:$0xff]  ;;  %v7869_v58 = vld [vmem:[%s13609_s20 + $0x3b8] sm:$0xff] }
 0x757   :  { %v5774_v28 = vmax.f32 %v9390_v42, 0.0  ;;  %v7832_v42 = vld [vmem:[%s13609_s20 + $0x2a8] sm:$0xff] }
 0x758   :  { %v5097_v32 = vrot.slane %v5090_v11, %v13521_v26  ;;  %v5102_v37 = vcombine.high %v5090_v11, %v5090_v11  ;;  %v9287_v11 = vpack.c.bf16 %v7827_v59, %v7825_v19  ;;  %v7868_v19 = vld [vmem:[%s13609_s20 + $0x3b0] sm:$0xff]  ;;  %v7871_v59 = vld [vmem:[%s13609_s20 + $0x3c8] sm:$0xff] }
 0x759   :  { %v5777_v2 = vcombine.low %v5773_v43, %v5774_v28  ;;  %v9289_v43 = vpack.c.bf16 %v7832_v42, %v7830_v17  ;;  %v7829_v28 = vld [vmem:[%s13609_s20 + $0x290] sm:$0xff]  ;;  %v7873_v17 = vld [vmem:[%s13609_s20 + $0x3d8] sm:$0xff] }
 0x75a   :  { %5100 = vst.msk [vmem:[#allocation2 + $0x3] ss:$8 sm:$0x3] %vm13526_vm6, %v5097_v32  ;;  %v5109_v14 = vrot.slane %v5102_v37, %v13521_v26  ;;  %v5114_v51 = vcombine.high %v5097_v32, %v5097_v32  ;;  %v7831_v32 = vld [vmem:[%s13609_s20 + $0x2a0] sm:$0xff]  ;;  %v7834_v37 = vld [vmem:[%s13609_s20 + $0x2b8] sm:$0xff] }
 0x75b   :  { %v5784_v34 = vrot.slane %v5777_v2, %v13521_v26  ;;  %v7836_v2 = vld [vmem:[%s13609_s20 + $0x2c8] sm:$0xff] }
 0x75c   :  { %5112 = vst.msk [vmem:[#allocation3 + $0x3] ss:$8 sm:$0x3] %vm13526_vm6, %v5109_v14  ;;  %5117 = vst.msk [vmem:[#allocation4 + $0x3] ss:$8 sm:$0x3] %vm13526_vm6, %v5114_v51  ;;  %v9291_v14 = vpack.c.bf16 %v7831_v32, %v7829_v28  ;;  %v9293_v51 = vpack.c.bf16 %v7836_v2, %v7834_v37 }
 0x75d   :  { %v5791_v12 = vrot.slane %v5784_v34, %v13521_v26  ;;  %v5796_v41 = vcombine.high %v5784_v34, %v5784_v34  ;;  %v7833_v34 = vld [vmem:[%s13609_s20 + $0x2b0] sm:$0xff]  ;;  %v7875_v32 = vld [vmem:[%s13609_s20 + $0x3e8] sm:$0xff]  ;;  %v7877_v37 = vld [vmem:[%s13609_s20 + $0x3f8] sm:$0xff] }
 0x75e   :  { %v7872_v28 = vld [vmem:[%s13609_s20 + $0x3d0] sm:$0xff] }
 0x75f   :  { %5794 = vst.msk [vmem:[#allocation2 + $0x4] ss:$8 sm:$0x3] %vm13526_vm6, %v5791_v12  ;;  %v5803_v3 = vrot.slane %v5796_v41, %v13521_v26  ;;  %v5808_v46 = vcombine.high %v5791_v12, %v5791_v12  ;;  %v7835_v12 = vld [vmem:[%s13609_s20 + $0x2c0] sm:$0xff]  ;;  %v7838_v41 = vld [vmem:[%s13609_s20 + $0x2d8] sm:$0xff] }
 0x761   :  { %5806 = vst.msk [vmem:[#allocation3 + $0x4] ss:$8 sm:$0x3] %vm13526_vm6, %v5803_v3  ;;  %5811 = vst.msk [vmem:[#allocation4 + $0x4] ss:$8 sm:$0x3] %vm13526_vm6, %v5808_v46  ;;  %v9295_v46 = vpack.c.bf16 %v7835_v12, %v7833_v34 }
 0x762   :  { %v7840_v3 = vld [vmem:[%s13609_s20 + $0x2e8] sm:$0xff]  ;;  %v7876_v34 = vld [vmem:[%s13609_s20 + $0x3f0] sm:$0xff] }
 0x763   :  { %v9297_v40 = vpack.c.bf16 %v7840_v3, %v7838_v41  ;;  %v7879_v12 = vld [vmem:[%s13609_s20 + $0x408] sm:$0xff]  ;;  %v7881_v41 = vld [vmem:[%s13609_s20 + $0x418] sm:$0xff] }
 0x766   :  { %v13724_v1 = vld [vmem:[#allocation2 + $0x8] sm:$0x1f]  ;;  %v13726_v26 = vld [vmem:[#allocation2] sm:$0x1f] }
 0x767   :  { %7796 = vmatprep.mubr.msk.f32.mxu0 %vm5870_vm8, %v13724_v1 }
 0x768   :  { %5946 = vmatmul.mubr.f32.vlgmr.msra.gmra.mrb[74].mxu0 %v13726_v26  ;;  %v13734_v22 = vld [vmem:[#allocation3 + $0x8] sm:$0x1f]  ;;  %v13793_v39 = vld [vmem:[#allocation4 + $0x8] sm:$0x1f] }
 0x769   :  { %9260 = vmatpush1.bf16.msra.mxu0 %v9259_v16  ;;  %7849 = vmatprep.mubr.msk.f32.mxu0 %vm5870_vm8, %v13734_v22  ;;  %v7844_v16 = vld [vmem:[%s13609_s20 + $0x308] sm:$0xff] }
 0x76a   :  { %9262 = vmatprep.subr.bf16.mxu0 %v9261_v8  ;;  %v9301_v8 = vpack.c.bf16 %v7844_v16, %v7842_v63  ;;  %v7885_v63 = vld [vmem:[%s13609_s20 + $0x438] sm:$0xff] }
 0x76d   :  { %9264 = vmatpush1.bf16.msra.mxu0 %v9263_v13  ;;  %v7846_v13 = vld [vmem:[%s13609_s20 + $0x318] sm:$0xf] }
 0x76e   :  { %9266 = vmatprep.subr.bf16.mxu0 %v9265_v54  ;;  %v7851_v54 = vld [vmem:[%s13609_s20 + $0x328] sm:$0xff] }
 0x76f   :  { %v9305_v50 = vpack.c.bf16 %v7853_v29, %v7851_v54  ;;  %v7886_v29 = vld [vmem:[%s13609_s20 + $0x440] sm:$0xff] }
 0x771   :  { %9268 = vmatpush1.bf16.msra.mxu0 %v9267_v7  ;;  %v7857_v7 = vld [vmem:[%s13609_s20 + $0x358] sm:$0xff] }
 0x772   :  { %9270 = vmatprep.subr.bf16.mxu0 %v9269_v57  ;;  %v7845_v57 = vld [vmem:[%s13609_s20 + $0x310] sm:$0xf]  ;;  %v9309_v15 = vpack.c.bf16 %v7857_v7, %v7855_v10  ;;  %v7893_v10 = vld [vmem:[%s13609_s20 + $0x478] sm:$0xff]  ;;  %v9343_v7 = vpack.c.bf16 %v7888_v30, %v7886_v29  ;;  %v6288_v29 = vsub.s32 2, %v13509_v21 }
 0x775   :  { %9272 = vmatpush1.bf16.msra.mxu0 %v9271_v5  ;;  %v7856_v5 = vld [vmem:[%s13609_s20 + $0x350] sm:$0xff] }
 0x776   :  { %9274 = vmatprep.subr.bf16.mxu0 %v9273_v35  ;;  %v13788_v35 = vld [vmem:[#allocation3] sm:$0x1f]  ;;  %v9311_v45 = vpack.c.bf16 %v7856_v5, %v7854_v31  ;;  %v7897_v31 = vld [vmem:[%s13609_s20 + $0x498] sm:$0xff] }
 0x779   :  { %9276 = vmatpush1.bf16.msra.mxu0 %v9275_v24  ;;  %v9313_v24 = vpack.c.bf16 %v7861_v33, %v7859_v0  ;;  %v7894_v33 = vld [vmem:[%s13609_s20 + $0x480] sm:$0xff] }
 0x77a   :  { %9278 = vmatprep.subr.bf16.mxu0 %v9277_v62  ;;  %v7858_v62 = vld [vmem:[%s13609_s20 + $0x360] sm:$0xff] }
 0x77b   :  { %v9315_v4 = vpack.c.bf16 %v7860_v49, %v7858_v62  ;;  %v7899_v62 = vld [vmem:[%s13609_s20 + $0x4a8] sm:$0xf]  ;;  %v7898_v49 = vld [vmem:[%s13609_s20 + $0x4a0] sm:$0xf] }
 0x77d   :  { %9280 = vmatpush1.bf16.msra.mxu0 %v9279_v56  ;;  %v9317_v56 = vpack.c.bf16 %v7865_v18, %v7863_v38  ;;  %v5817_v38 = vld [vmem:[#allocation4] sm:$0x1f]  ;;  %v5955_v18 = vsub.s32 0, %v13509_v21 }
 0x77e   :  { %9282 = vmatprep.subr.bf16.mxu0 %v9281_v20  ;;  %v7862_v20 = vld [vmem:[%s13609_s20 + $0x380] sm:$0xff] }
 0x77f   :  { %v9319_v52 = vpack.c.bf16 %v7864_v53, %v7862_v20 }
 0x781   :  { %9284 = vmatpush1.bf16.msra.mxu0 %v9283_v23  ;;  %v9321_v23 = vpack.c.bf16 %v7869_v58, %v7867_v60 }
 0x782   :  { %9286 = vmatprep.subr.bf16.mxu0 %v9285_v27  ;;  %v7866_v27 = vld [vmem:[%s13609_s20 + $0x3a0] sm:$0xff] }
 0x783   :  { %v9323_v42 = vpack.c.bf16 %v7868_v19, %v7866_v27 }
 0x785   :  { %9288 = vmatpush1.bf16.msra.mxu0 %v9287_v11  ;;  %v9325_v11 = vpack.c.bf16 %v7873_v17, %v7871_v59 }
 0x786   :  { %9290 = vmatprep.subr.bf16.mxu0 %v9289_v43  ;;  %v7870_v43 = vld [vmem:[%s13609_s20 + $0x3c0] sm:$0xff] }
 0x787   :  { %v9327_v2 = vpack.c.bf16 %v7872_v28, %v7870_v43 }
 0x789   :  { %9292 = vmatpush1.bf16.msra.mxu0 %v9291_v14  ;;  %v9329_v14 = vpack.c.bf16 %v7877_v37, %v7875_v32 }
 0x78a   :  { %9294 = vmatprep.subr.bf16.mxu0 %v9293_v51  ;;  %v7874_v51 = vld [vmem:[%s13609_s20 + $0x3e0] sm:$0xff] }
 0x78b   :  { %v9331_v3 = vpack.c.bf16 %v7876_v34, %v7874_v51 }
 0x78d   :  { %9296 = vmatpush1.bf16.msra.mxu0 %v9295_v46  ;;  %v9333_v46 = vpack.c.bf16 %v7881_v41, %v7879_v12 }
 0x78e   :  { %9298 = vmatprep.subr.bf16.mxu0 %v9297_v40  ;;  %v7878_v40 = vld [vmem:[%s13609_s20 + $0x400] sm:$0xff] }
 0x78f   :  { %v9335_v16 = vpack.c.bf16 %v7880_v44, %v7878_v40 }
 0x791   :  { %9300 = vmatpush1.bf16.msra.mxu0 %v9299_v61  ;;  %v9337_v61 = vpack.c.bf16 %v7885_v63, %v7883_v9 }
 0x792   :  { %9302 = vmatprep.subr.bf16.mxu0 %v9301_v8  ;;  %v7882_v8 = vld [vmem:[%s13609_s20 + $0x420] sm:$0xff] }
 0x795   :  { %9304 = vmatpush1.bf16.msra.mxu0 %v9303_v25  ;;  %v7889_v25 = vld [vmem:[%s13609_s20 + $0x458] sm:$0xff] }
 0x796   :  { %7847 = vmatprep.subr.msk.mxu0 %vm5874_vm7, %v7846_v13  ;;  %v9339_v13 = vpack.c.bf16 %v7884_v47, %v7882_v8  ;;  %v9341_v54 = vpack.c.bf16 %v7889_v25, %v7887_v6 }
 0x799   :  { %7848 = vmatpush1.msk.msra.mxu0 %vm5874_vm7, %v7845_v57  ;;  %v9345_v57 = vpack.c.bf16 %v7893_v10, %v7891_v48 }
 0x79a   :  { %6090 = vmatmul.mubr.f32.vlgmr.msra.gmra.mrb[74].mxu0 %v13788_v35  ;;  %9306 = vmatprep.subr.bf16.mxu0 %v9305_v50  ;;  %v7890_v50 = vld [vmem:[%s13609_s20 + $0x460] sm:$0xff] }
 0x79b   :  { %9308 = vmatpush1.bf16.msra.mxu0 %v9307_v55  ;;  %7902 = vmatprep.mubr.msk.f32.mxu0 %vm5870_vm8, %v13793_v39  ;;  %v7892_v55 = vld [vmem:[%s13609_s20 + $0x470] sm:$0xff] }
 0x79c   :  { %9310 = vmatprep.subr.bf16.mxu0 %v9309_v15  ;;  %v7895_v15 = vld [vmem:[%s13609_s20 + $0x488] sm:$0xff]  ;;  %v9347_v5 = vpack.c.bf16 %v7892_v55, %v7890_v50 }
 0x79d   :  { %v9349_v0 = vpack.c.bf16 %v7897_v31, %v7895_v15  ;;  %v6298_v31 = vld [vmem:[%s13870_s2] sm:$0xff] }
 0x79f   :  { %9312 = vmatpush1.bf16.msra.mxu0 %v9311_v45  ;;  %v7896_v45 = vld [vmem:[%s13609_s20 + $0x490] sm:$0xff]  ;;  %s9741_s20 = smov 25  }
 0x7a0   :  { %9314 = vmatprep.subr.bf16.mxu0 %v9313_v24  ;;  %v9351_v24 = vpack.c.bf16 %v7896_v45, %v7894_v33  ;;  %v6300_v33 = vld [vmem:[%s13870_s2 + $0x10] sm:$0xff]  ;;  %v6301_v45 = vld [vmem:[%s13870_s2 + $0x18] sm:$0xff]  ;;  %s7657_s23 = sld [smem:[%s14206_s0 + %s9741_s20]]  }
 0x7a3   :  { %9316 = vmatpush1.bf16.msra.mxu0 %v9315_v4  ;;  %v5819_v4 = vld [vmem:[%s7648_s24] sm:$0x3]  ;;  %s9742_s24 = smov 26  }
 0x7a4   :  { %9318 = vmatprep.subr.bf16.mxu0 %v9317_v56  ;;  %v5959_v56 = vsub.s32 1, %v13509_v21  ;;  %v5956_v20 = vrot.slane %v5819_v4, %v5955_v18  ;;  %s7658_s27 = sld [smem:[%s14206_s0 + %s9742_s24]]  }
 0x7a6   :  { %v5960_v53 = vrot.slane %v5819_v4, %v5959_v56  ;;  %v13926_v4 = vld [vmem:[%s1_s9 + $0x20] sm:$0xff] }
 0x7a7   :  { %9320 = vmatpush1.bf16.msra.mxu0 %v9319_v52 }
 0x7a8   :  { %9322 = vmatprep.subr.bf16.mxu0 %v9321_v23 }
 0x7ab   :  { %9324 = vmatpush1.bf16.msra.mxu0 %v9323_v42 }
 0x7ac   :  { %9326 = vmatprep.subr.bf16.mxu0 %v9325_v11 }
 0x7af   :  { %9328 = vmatpush1.bf16.msra.mxu0 %v9327_v2 }
 0x7b0   :  { %9330 = vmatprep.subr.bf16.mxu0 %v9329_v14 }
 0x7b3   :  { %9332 = vmatpush1.bf16.msra.mxu0 %v9331_v3 }
 0x7b4   :  { %9334 = vmatprep.subr.bf16.mxu0 %v9333_v46 }
 0x7b7   :  { %9336 = vmatpush1.bf16.msra.mxu0 %v9335_v16 }
 0x7b8   :  { %9338 = vmatprep.subr.bf16.mxu0 %v9337_v61 }
 0x7bb   :  { %9340 = vmatpush1.bf16.msra.mxu0 %v9339_v13 }
 0x7bc   :  { %9342 = vmatprep.subr.bf16.mxu0 %v9341_v54 }
 0x7bf   :  { %9344 = vmatpush1.bf16.msra.mxu0 %v9343_v7 }
 0x7c0   :  { %9346 = vmatprep.subr.bf16.mxu0 %v9345_v57 }
 0x7c3   :  { %9348 = vmatpush1.bf16.msra.mxu0 %v9347_v5  ;;  %v6297_v5 = vld [vmem:[%s7649_s6] sm:$0x3] }
 0x7c4   :  { %9350 = vmatprep.subr.bf16.mxu0 %v9349_v0  ;;  %v6299_v0 = vld [vmem:[%s13870_s2 + $0x8] sm:$0xff] }
 0x7c7   :  { %9352 = vmatpush1.bf16.msra.mxu0 %v9351_v24  ;;  %v6302_v24 = vld [vmem:[%s13870_s2 + $0x20] sm:$0xff] }
 0x7c8   :  { %7900 = vmatprep.subr.msk.mxu0 %vm5874_vm7, %v7899_v62  ;;  %v13902_v62 = vld [vmem:[%s1_s9] sm:$0xff] }
 0x7cb   :  { %7901 = vmatpush1.msk.msra.mxu0 %vm5874_vm7, %v7898_v49  ;;  %v13908_v49 = vld [vmem:[%s1_s9 + $0x8] sm:$0xff] }
 0x7cc   :  { %6223 = vmatmul.mubr.f32.vlgmr.msra.gmra.mrb[74].mxu0 %v5817_v38 }
 0x7cd   :  { %8273 = vmatprep.mubr.msk.f32.mxu0 %vm9726_vm11, %v15954_v36 }
 0x89f   :  { %v6224_v60 = vpop.f32.mrb[74].mxu0 }
 0x8a0   :  { %v9391_v58 = vadd.f32 %v6224_v60, %v5956_v20  ;;  %v6226_v52 = vpop.f32.mrb[75].mxu0 }
 0x8a1   :  { %v9392_v23 = vadd.f32 %v6226_v52, %v5960_v53 }
 0x8a2   :  { %v6232_v27 = vsel %vm6231_vm9, %v9391_v58, -inf }
 0x8a3   :  { %v6234_v19 = vsel %vm6233_vm10, %v9392_v23, -inf }
 0x8a4   :  { %v6235_v59 = vmax.f32 %v6232_v27, %v6234_v19 }
 0x8a6   :  { %6236 = vmax.xlane.f32.xlu1 %v6235_v59 }
 0x933   :  { %v6237_v17 = vpop.xlane.xlu1 %6236 }
 0x934   :  { %v6238_v42 = vsub.f32 %v9391_v58, %v6237_v17  ;;  %v6239_v11 = vsub.f32 %v9392_v23, %v6237_v17 }
 0x936   :  { %v6240_v43 = vmul.f32 1.442695, %v6238_v42  ;;  %v6242_v28 = vmul.f32 1.442695, %v6239_v11 }
 0x938   :  { %9675 = vpow2.f32 %v6240_v43 }
 0x939   :  { %9677 = vpow2.f32 %v6242_v28  ;;  %v7915_v28 = vld [vmem:[%s7651_s13] ss:$0 sm:$0xff] }
 0x942   :  { %v9676_v32 = vpop.eup %9675 }
 0x943   :  { %v9678_v37 = vpop.eup %9677  ;;  %v6244_v2 = vsel %vm6231_vm9, %v9676_v32, 0.0 }
 0x944   :  { %v6245_v14 = vsel %vm6233_vm10, %v9678_v37, 0.0 }
 0x945   :  { %v6246_v51 = vadd.f32 %v6245_v14, %v6244_v2 }
 0x947   :  { %6247 = vadd.xlane.f32.xlu0 %v6246_v51 }
 0x9d4   :  { %v6248_v34 = vpop.xlane.xlu0 %6247 }
 0x9d5   :  { %9679 = vrcp.f32 %v6248_v34 }
 0x9df   :  { %v9680_v12 = vpop.eup %9679 }
 0x9e0   :  { %v6250_v41 = vmul.f32 %v9680_v12, %v9676_v32  ;;  %v6251_v3 = vmul.f32 %v9680_v12, %v9678_v37 }
 0x9e2   :  { %v6266_v46 = vmul.f32 %v6250_v41, %v13788_v35  ;;  %v6267_v40 = vmul.f32 %v6251_v3, %v13734_v22  ;;  %v6253_v44 = vmul.f32 %v6250_v41, %v13726_v26  ;;  %v6254_v9 = vmul.f32 %v6251_v3, %v13724_v1  ;;  %v6252_v26 = vld [vmem:[%s7650_s28] sm:$0x7]  ;;  %s9743_s28 = smov 29  }
 0x9e3   :  { %v6279_v63 = vmul.f32 %v6250_v41, %v5817_v38  ;;  %v6280_v16 = vmul.f32 %v6251_v3, %v13793_v39  ;;  %v6276_v39 = vrot.slane %v6252_v26, %v5959_v56  ;;  %v6263_v54 = vrot.slane %v6252_v26, %v5955_v18  ;;  %v13914_v38 = vld [vmem:[%s1_s9 + $0x10] sm:$0xff]  ;;  %v13920_v18 = vld [vmem:[%s1_s9 + $0x18] sm:$0xff]  ;;  %s14188_s1 = sld [smem:[%s14206_s0 + %s9743_s28]]  }
 0x9e4   :  { %v6268_v61 = vsel %vm6231_vm9, %v6266_v46, 0.0  ;;  %v6269_v8 = vsel %vm6233_vm10, %v6267_v40, 0.0  ;;  %v6255_v47 = vsel %vm6231_vm9, %v6253_v44, 0.0  ;;  %v6256_v6 = vsel %vm6233_vm10, %v6254_v9, 0.0 }
 0x9e5   :  { %v6270_v25 = vadd.f32 %v6269_v8, %v6268_v61  ;;  %v6257_v13 = vadd.f32 %v6256_v6, %v6255_v47  ;;  %v6281_v35 = vsel %vm6231_vm9, %v6279_v63, 0.0  ;;  %v6282_v22 = vsel %vm6233_vm10, %v6280_v16, 0.0 }
 0x9e6   :  { %v6283_v1 = vadd.f32 %v6282_v22, %v6281_v35  ;;  %v6289_v57 = vrot.slane %v6252_v26, %v6288_v29  ;;  %v9730_v56 = vmov 0.0|0.0   ;;  %v6534_v35 = vld [vmem:[%s7635_s17 + $0x10] sm:$0xff]  ;;  %v6535_v22 = vld [vmem:[%s7635_s17 + $0x18] sm:$0xff] }
 0x9e7   :  { %6271 = vadd.xlane.f32.xlu0 %v6270_v25  ;;  %6258 = vadd.xlane.f32.xlu1 %v6257_v13  ;;  %v6532_v25 = vld [vmem:[%s7635_s17] sm:$0xff]  ;;  %v6533_v13 = vld [vmem:[%s7635_s17 + $0x8] sm:$0xff] }
 0x9e8   :  { %9353 = vmatprep.subr.bf16.mxu0 %v9730_v56 }
 0x9eb   :  { %6284 = vadd.xlane.f32.xlu1 %v6283_v1  ;;  %v6536_v1 = vld [vmem:[%s7635_s17 + $0x20] sm:$0xff] }
 0xa74   :  { %v6272_v30 = vpop.xlane.xlu0 %6271  ;;  %v6259_v48 = vpop.xlane.xlu1 %6258 }
 0xa75   :  { %v6277_v10 = vmul.f32 %v6276_v39, %v6272_v30  ;;  %v6264_v7 = vmul.f32 %v6263_v54, %v6259_v48 }
 0xa77   :  { %v6278_v21 = vadd.f32 %v6277_v10, %v6264_v7 }
 0xa78   :  { %v6285_v50 = vpop.xlane.xlu1 %6284 }
 0xa79   :  { %v6290_v55 = vmul.f32 %v6289_v57, %v6285_v50 }
 0xa7b   :  { %v6291_v15 = vadd.f32 %v6290_v55, %v6278_v21 }
 0xa7d   :  { %8230 = vmatpush3.msk.msra.mxu1 %vm6231_vm9, %v6291_v15 }
 0xa7e   :  { %8232 = vmatmul.mubr.msk.f32.vlgmr.msra.gmra.mrb[134].mxu1 %vm6303_vm12, %v6298_v31  ;;  %8246 = vmatprep.subr.mxu1 %v15954_v36 }
 0xa7f   :  { %8234 = vmatprep.mubr.msk.f32.mxu1 %vm9726_vm11, %v15954_v36  ;;  %8247 = vmatpush3.msk.msra.mxu1 %vm1540_vm0, %v6297_v5 }
 0xa80   :  { %8288 = vmatprep.subr.mxu1 %v15954_v36 }
 0xa82   :  { %8235 = vmatmul.mubr.msk.f32.gmra.mrb[136].mxu1 %vm6303_vm12, %v6299_v0  ;;  %v64_v0 = vstv %s7654_s21 }
 0xa83   :  { %8237 = vmatprep.mubr.msk.f32.mxu1 %vm9726_vm11, %v15954_v36  ;;  %65 = vst [vmem:[#allocation5] sm:$0x1] %v64_v0 }
 0xa86   :  { %8238 = vmatmul.mubr.msk.f32.gmra.mrb[138].mxu1 %vm6303_vm12, %v6300_v33 }
 0xa87   :  { %8240 = vmatprep.mubr.msk.f32.mxu1 %vm9726_vm11, %v15954_v36 }
 0xa8a   :  { %8241 = vmatmul.mubr.msk.f32.gmra.mrb[140].mxu1 %vm6303_vm12, %v6301_v45 }
 0xa8b   :  { %8243 = vmatprep.mubr.msk.f32.mxu1 %vm9726_vm11, %v15954_v36 }
 0xa8e   :  { %8244 = vmatmul.mubr.msk.f32.gmra.mrb[142].mxu1 %vm6303_vm12, %v6302_v24 }
 0xa8f   :  { %8248 = vmatprep.mubr.msk.f32.mxu1 %vm9726_vm11, %v15954_v36 }
 0xa92   :  { %8249 = vmatmul.mubr.msk.f32.vlgmr.msra.gmra.mrb[144].mxu1 %vm1533_vm1, %v13902_v62 }
 0xa93   :  { %8251 = vmatprep.mubr.msk.f32.mxu1 %vm9726_vm11, %v15954_v36 }
 0xa96   :  { %8252 = vmatmul.mubr.msk.f32.gmra.mrb[146].mxu1 %vm1533_vm1, %v13908_v49 }
 0xa97   :  { %8254 = vmatprep.mubr.msk.f32.mxu1 %vm9726_vm11, %v15954_v36 }
 0xa9a   :  { %8255 = vmatmul.mubr.msk.f32.gmra.mrb[148].mxu1 %vm1533_vm1, %v13914_v38 }
 0xa9b   :  { %8257 = vmatprep.mubr.msk.f32.mxu1 %vm9726_vm11, %v15954_v36 }
 0xa9e   :  { %8258 = vmatmul.mubr.msk.f32.gmra.mrb[150].mxu1 %vm1533_vm1, %v13920_v18 }
 0xa9f   :  { %8260 = vmatprep.mubr.msk.f32.mxu1 %vm9726_vm11, %v15954_v36 }
 0xaa2   :  { %8261 = vmatmul.mubr.msk.f32.gmra.mrb[152].mxu1 %vm1533_vm1, %v13926_v4 }
 0xaa3   :  { %8290 = vmatprep.mubr.msk.f32.mxu1 %vm9726_vm11, %v15954_v36 }
 0xb51   :  { %v6388_v20 = vpop.f32.mrb[134].mxu1 }
 0xb52   :  { %v8233_v53 = vpop.f32.mrb[135].mxu1 }
 0xb55   :  { %v6393_v60 = vpop.f32.mrb[136].mxu1 }
 0xb56   :  { %v8236_v58 = vpop.f32.mrb[137].mxu1 }
 0xb59   :  { %v6398_v52 = vpop.f32.mrb[138].mxu1 }
 0xb5a   :  { %v8239_v23 = vpop.f32.mrb[139].mxu1 }
 0xb5d   :  { %v6403_v27 = vpop.f32.mrb[140].mxu1 }
 0xb5e   :  { %v8242_v19 = vpop.f32.mrb[141].mxu1 }
 0xb61   :  { %v6408_v59 = vpop.f32.mrb[142].mxu1 }
 0xb62   :  { %v8245_v17 = vpop.f32.mrb[143].mxu1 }
 0xb65   :  { %v6496_v42 = vpop.f32.mrb[144].mxu1 }
 0xb66   :  { %v6497_v11 = vadd.f32 %v6496_v42, %v6388_v20  ;;  %v8250_v43 = vpop.f32.mrb[145].mxu1 }
 0xb68   :  { %v6527_v14 = vadd.f32 %v7915_v28, %v6497_v11 }
 0xb69   :  { %v6501_v32 = vpop.f32.mrb[146].mxu1 }
 0xb6a   :  { %v6502_v37 = vadd.f32 %v6501_v32, %v6393_v60  ;;  %v8253_v2 = vpop.f32.mrb[147].mxu1 }
 0xb6c   :  { %v6528_v51 = vadd.f32 %v7915_v28, %v6502_v37 }
 0xb6d   :  { %v6506_v34 = vpop.f32.mrb[148].mxu1 }
 0xb6e   :  { %v9354_v12 = vpack.c.bf16 %v6528_v51, %v6527_v14  ;;  %v6507_v41 = vadd.f32 %v6506_v34, %v6398_v52  ;;  %v8256_v3 = vpop.f32.mrb[149].mxu1 }
 0xb6f   :  { %v7923_v3 = vld [vmem:[#allocation5] ss:$0 sm:$0xff] }
 0xb70   :  { %9355 = vmatpush3.bf16.msra.mxu0 %v9354_v12  ;;  %v6529_v9 = vadd.f32 %v7915_v28, %v6507_v41 }
 0xb71   :  { %v6511_v46 = vpop.f32.mrb[150].mxu1  ;;  %9356 = vmatprep.subr.bf16.mxu0 %v9730_v56 }
 0xb72   :  { %v6512_v40 = vadd.f32 %v6511_v46, %v6403_v27  ;;  %v8259_v44 = vpop.f32.mrb[151].mxu1  ;;  %v6759_v46 = vld [vmem:[%s13985_s25] sm:$0x1f] }
 0xb73   :  { %8289 = vmatpush3.msk.msra.mxu1 %vm6231_vm9, %v6759_v46 }
 0xb74   :  { %v6530_v63 = vadd.f32 %v7915_v28, %v6512_v40  ;;  %8330 = vmatprep.subr.mxu1 %v15954_v36 }
 0xb75   :  { %v6516_v16 = vpop.f32.mrb[152].mxu1 }
 0xb76   :  { %v9357_v61 = vpack.c.bf16 %v6530_v63, %v6529_v9  ;;  %v6517_v8 = vadd.f32 %v6516_v16, %v6408_v59  ;;  %v8262_v47 = vpop.f32.mrb[153].mxu1 }
 0xb78   :  { %9358 = vmatpush3.bf16.msra.mxu0 %v9357_v61  ;;  %v6531_v6 = vadd.f32 %v7915_v28, %v6517_v8 }
 0xb79   :  { %8271 = vmatprep.subr.mxu0 %v15954_v36 }
 0xb7c   :  { %8272 = vmatpush3.msra.mxu0 %v6531_v6 }
 0xb7d   :  { %8274 = vmatmul.mubr.msk.f32.vlgmr.msra.gmra.mrb[76].mxu0 %vm6537_vm13, %v6532_v25  ;;  %9359 = vmatprep.subr.bf16.mxu0 %v9730_v56 }
 0xb7e   :  { %8276 = vmatprep.mubr.msk.f32.mxu0 %vm9726_vm11, %v15954_v36 }
 0xb81   :  { %8277 = vmatmul.mubr.msk.f32.gmra.mrb[78].mxu0 %vm6537_vm13, %v6533_v13 }
 0xb82   :  { %8279 = vmatprep.mubr.msk.f32.mxu0 %vm9726_vm11, %v15954_v36 }
 0xb85   :  { %8280 = vmatmul.mubr.msk.f32.gmra.mrb[80].mxu0 %vm6537_vm13, %v6534_v35 }
 0xb86   :  { %8282 = vmatprep.mubr.msk.f32.mxu0 %vm9726_vm11, %v15954_v36 }
 0xb89   :  { %8283 = vmatmul.mubr.msk.f32.gmra.mrb[82].mxu0 %vm6537_vm13, %v6535_v22  ;;  %v7921_v22 = vld [vmem:[%s7652_s29] ss:$0 sm:$0xff] }
 0xb8a   :  { %8285 = vmatprep.mubr.msk.f32.mxu0 %vm9726_vm11, %v15954_v36 }
 0xb8d   :  { %8286 = vmatmul.mubr.msk.f32.gmra.mrb[84].mxu0 %vm6537_vm13, %v6536_v1 }
 0xb8e   :  { %8315 = vmatprep.mubr.msk.f32.mxu0 %vm9726_vm11, %v15954_v36 }
 0xc50   :  { %v6619_v26 = vpop.f32.mrb[76].mxu0 }
 0xc51   :  { %v8275_v39 = vpop.f32.mrb[77].mxu0  ;;  %v6643_v54 = vsel %vm6303_vm12, %v6619_v26, 0.0 }
 0xc52   :  { %6644 = vadd.xlane.f32.xlu0 %v6643_v54 }
 0xc54   :  { %v6624_v29 = vpop.f32.mrb[78].mxu0 }
 0xc55   :  { %v8278_v30 = vpop.f32.mrb[79].mxu0  ;;  %v6646_v48 = vsel %vm6303_vm12, %v6624_v29, 0.0 }
 0xc56   :  { %6647 = vadd.xlane.f32.xlu1 %v6646_v48 }
 0xc58   :  { %v6629_v10 = vpop.f32.mrb[80].mxu0 }
 0xc59   :  { %v8281_v7 = vpop.f32.mrb[81].mxu0  ;;  %v6649_v57 = vsel %vm6303_vm12, %v6629_v10, 0.0 }
 0xc5a   :  { %6650 = vadd.xlane.f32.xlu0 %v6649_v57 }
 0xc5c   :  { %v6634_v50 = vpop.f32.mrb[82].mxu0 }
 0xc5d   :  { %v8284_v21 = vpop.f32.mrb[83].mxu0  ;;  %v6652_v55 = vsel %vm6303_vm12, %v6634_v50, 0.0 }
 0xc5e   :  { %6653 = vadd.xlane.f32.xlu1 %v6652_v55 }
 0xc60   :  { %v6639_v15 = vpop.f32.mrb[84].mxu0 }
 0xc61   :  { %v8287_v31 = vpop.f32.mrb[85].mxu0  ;;  %v6655_v5 = vsel %vm6303_vm12, %v6639_v15, 0.0 }
 0xc62   :  { %6656 = vadd.xlane.f32.xlu0 %v6655_v5  ;;  %v7936_v31 = vld [vmem:[%s13985_s25 + $0x8] sm:$0x1f] }
 0xcdf   :  { %v6645_v33 = vpop.xlane.xlu0 %6644 }
 0xce0   :  { %v6659_v45 = vmul.f32 0.2, %v6645_v33 }
 0xce2   :  { %v6664_v24 = vsub.f32 %v6619_v26, %v6659_v45 }
 0xce3   :  { %v6648_v20 = vpop.xlane.xlu1 %6647 }
 0xce4   :  { %v6660_v53 = vmul.f32 0.2, %v6648_v20  ;;  %v6669_v60 = vmul.f32 %v6664_v24, %v6664_v24 }
 0xce6   :  { %v6665_v58 = vsub.f32 %v6624_v29, %v6660_v53  ;;  %v6674_v52 = vsel %vm6303_vm12, %v6669_v60, 0.0  ;;  %v7922_v29 = vld [vmem:[%s7653_s3] ss:$0 sm:$0xff] }
 0xce7   :  { %v6651_v23 = vpop.xlane.xlu0 %6650  ;;  %6675 = vadd.xlane.f32.xlu1 %v6674_v52 }
 0xce8   :  { %v6661_v27 = vmul.f32 0.2, %v6651_v23  ;;  %v6670_v19 = vmul.f32 %v6665_v58, %v6665_v58 }
 0xcea   :  { %v13966_v59 = vsub.f32 %v6629_v10, %v6661_v27  ;;  %v6677_v17 = vsel %vm6303_vm12, %v6670_v19, 0.0 }
 0xceb   :  { %v6654_v42 = vpop.xlane.xlu1 %6653  ;;  %6678 = vadd.xlane.f32.xlu0 %v6677_v17 }
 0xcec   :  { %v6662_v11 = vmul.f32 0.2, %v6654_v42  ;;  %v6671_v43 = vmul.f32 %v13966_v59, %v13966_v59 }
 0xcee   :  { %v13971_v28 = vsub.f32 %v6634_v50, %v6662_v11  ;;  %v6680_v32 = vsel %vm6303_vm12, %v6671_v43, 0.0 }
 0xcef   :  { %6681 = vadd.xlane.f32.xlu1 %v6680_v32  ;;  %v6657_v37 = vpop.xlane.xlu0 %6656 }
 0xcf0   :  { %v6663_v2 = vmul.f32 0.2, %v6657_v37  ;;  %v6672_v14 = vmul.f32 %v13971_v28, %v13971_v28 }
 0xcf2   :  { %v13976_v51 = vsub.f32 %v6639_v15, %v6663_v2  ;;  %v6683_v34 = vsel %vm6303_vm12, %v6672_v14, 0.0  ;;  %v7953_v2 = vld [vmem:[%s13985_s25 + $0x10] sm:$0x1f] }
 0xcf3   :  { %6684 = vadd.xlane.f32.xlu0 %v6683_v34 }
 0xcf4   :  { %v6673_v12 = vmul.f32 %v13976_v51, %v13976_v51 }
 0xcf6   :  { %v6686_v41 = vsel %vm6303_vm12, %v6673_v12, 0.0 }
 0xcf7   :  { %6687 = vadd.xlane.f32.xlu1 %v6686_v41 }
 0xd09   :  { %6745 = vperm.xlu0 %9671, %v7923_v3  }
 0xd74   :  { %v6676_v40 = vpop.xlane.xlu1 %6675 }
 0xd75   :  { %v6689_v44 = vmul.f32 0.2, %v6676_v40 }
 0xd77   :  { %v6694_v9 = vadd.f32 1e-05, %v6689_v44 }
 0xd78   :  { %v6679_v63 = vpop.xlane.xlu0 %6678 }
 0xd79   :  { %9681 = vrsqrt.f32 %v6694_v9  ;;  %v6690_v16 = vmul.f32 0.2, %v6679_v63 }
 0xd7b   :  { %v6695_v61 = vadd.f32 1e-05, %v6690_v16 }
 0xd7c   :  { %v6682_v8 = vpop.xlane.xlu1 %6681 }
 0xd7d   :  { %9683 = vrsqrt.f32 %v6695_v61  ;;  %v6691_v47 = vmul.f32 0.2, %v6682_v8  ;;  %v6868_v61 = vld [vmem:[%s14054_s7] sm:$0xff] }
 0xd7f   :  { %v6696_v6 = vadd.f32 1e-05, %v6691_v47 }
 0xd80   :  { %v6685_v25 = vpop.xlane.xlu0 %6684 }
 0xd81   :  { %9685 = vrsqrt.f32 %v6696_v6  ;;  %v6692_v13 = vmul.f32 0.2, %v6685_v25  ;;  %v6869_v6 = vld [vmem:[%s14054_s7 + $0x8] sm:$0xff] }
 0xd83   :  { %v9682_v35 = vpop.eup %9681  ;;  %v6697_v1 = vadd.f32 1e-05, %v6692_v13 }
 0xd84   :  { %v6704_v26 = vmul.f32 %v9682_v35, %v6664_v24  ;;  %v6688_v39 = vpop.xlane.xlu1 %6687 }
 0xd85   :  { %9687 = vrsqrt.f32 %v6697_v1  ;;  %v6693_v54 = vmul.f32 0.2, %v6688_v39  ;;  %v6871_v39 = vld [vmem:[%s14054_s7 + $0x18] sm:$0xff] }
 0xd86   :  { %v6716_v30 = vmul.f32 %v7921_v22, %v6704_v26 }
 0xd87   :  { %v9684_v48 = vpop.eup %9683  ;;  %v6698_v10 = vadd.f32 1e-05, %v6693_v54 }
 0xd88   :  { %v6728_v7 = vadd.f32 %v7922_v29, %v6716_v30  ;;  %v6746_v57 = vpop.permute.xlu0 %6745  ;;  %v6705_v50 = vmul.f32 %v9684_v48, %v6665_v58  ;;  %v6872_v48 = vld [vmem:[%s14054_s7 + $0x20] sm:$0xff] }
 0xd89   :  { %9689 = vrsqrt.f32 %v6698_v10 }
 0xd8a   :  { %v6748_v21 = vmul.f32 %v6746_v57, %v6728_v7  ;;  %vm6733_vm14 = vcmp.ge.f32.partialorder %v6728_v7, 0.0  ;;  %v6717_v55 = vmul.f32 %v7921_v22, %v6705_v50 }
 0xd8b   :  { %v9686_v15 = vpop.eup %9685 }
 0xd8c   :  { %v6753_v5 = vsel %vm6733_vm14, %v6728_v7, %v6748_v21  ;;  %v6729_v0 = vadd.f32 %v7922_v29, %v6717_v55  ;;  %v6706_v33 = vmul.f32 %v9686_v15, %v13966_v59  ;;  %v7944_v55 = vld [vmem:[%s14054_s7 + $0x30] sm:$0xff] }
 0xd8d   :  { %8291 = vmatmul.mubr.msk.f32.vlgmr.msra.gmra.mrb[154].mxu1 %vm6303_vm12, %v6753_v5 }
 0xd8e   :  { %8293 = vmatprep.mubr.msk.f32.mxu1 %vm9726_vm11, %v15954_v36  ;;  %vm6734_vm15 = vcmp.ge.f32.partialorder %v6729_v0, 0.0  ;;  %v6749_v45 = vmul.f32 %v6746_v57, %v6729_v0  ;;  %v6718_v24 = vmul.f32 %v7921_v22, %v6706_v33  ;;  %8331 = vmatpush3.msk.msra.mxu1 %vm6231_vm9, %v7936_v31 }
 0xd8f   :  { %v9688_v20 = vpop.eup %9687  ;;  %8372 = vmatprep.subr.mxu1 %v15954_v36 }
 0xd90   :  { %v6754_v53 = vsel %vm6734_vm15, %v6729_v0, %v6749_v45  ;;  %v6730_v60 = vadd.f32 %v7922_v29, %v6718_v24  ;;  %v6707_v58 = vmul.f32 %v9688_v20, %v13971_v28  ;;  %v7945_v0 = vld [vmem:[%s14054_s7 + $0x38] sm:$0xff]  ;;  %v7946_v24 = vld [vmem:[%s14054_s7 + $0x40] sm:$0xff] }
 0xd91   :  { %8294 = vmatmul.mubr.msk.f32.gmra.mrb[156].mxu1 %vm6303_vm12, %v6754_v53 }
 0xd92   :  { %8296 = vmatprep.mubr.msk.f32.mxu1 %vm9726_vm11, %v15954_v36  ;;  %vm6735_vm2 = vcmp.ge.f32.partialorder %v6730_v60, 0.0  ;;  %v6750_v52 = vmul.f32 %v6746_v57, %v6730_v60  ;;  %v6719_v23 = vmul.f32 %v7921_v22, %v6707_v58  ;;  %v7947_v58 = vld [vmem:[%s14054_s7 + $0x48] sm:$0xff] }
 0xd93   :  { %v9690_v27 = vpop.eup %9689 }
 0xd94   :  { %v6755_v19 = vsel %vm6735_vm2, %v6730_v60, %v6750_v52  ;;  %v6731_v59 = vadd.f32 %v7922_v29, %v6719_v23  ;;  %v6708_v17 = vmul.f32 %v9690_v27, %v13976_v51  ;;  %v7960_v23 = vld [vmem:[%s14054_s7 + $0x50] sm:$0xff]  ;;  %v7961_v27 = vld [vmem:[%s14054_s7 + $0x58] sm:$0xff] }
 0xd95   :  { %8297 = vmatmul.mubr.msk.f32.gmra.mrb[158].mxu1 %vm6303_vm12, %v6755_v19 }
 0xd96   :  { %8299 = vmatprep.mubr.msk.f32.mxu1 %vm9726_vm11, %v15954_v36  ;;  %vm6736_vm3 = vcmp.ge.f32.partialorder %v6731_v59, 0.0  ;;  %v6751_v42 = vmul.f32 %v6746_v57, %v6731_v59  ;;  %v6720_v11 = vmul.f32 %v7921_v22, %v6708_v17  ;;  %v6870_v22 = vld [vmem:[%s14054_s7 + $0x10] sm:$0xff] }
 0xd97   :  { %v7964_v17 = vld [vmem:[%s14054_s7 + $0x70] sm:$0xff] }
 0xd98   :  { %v6756_v43 = vsel %vm6736_vm3, %v6731_v59, %v6751_v42  ;;  %v6732_v28 = vadd.f32 %v7922_v29, %v6720_v11  ;;  %v7963_v59 = vld [vmem:[%s14054_s7 + $0x68] sm:$0xff]  ;;  %v7500_v42 = vld [vmem:[%s7659_s11] sm:$0x3] }
 0xd99   :  { %8300 = vmatmul.mubr.msk.f32.gmra.mrb[160].mxu1 %vm6303_vm12, %v6756_v43 }
 0xd9a   :  { %8302 = vmatprep.mubr.msk.f32.mxu1 %vm9726_vm11, %v15954_v36  ;;  %vm6737_vm4 = vcmp.ge.f32.partialorder %v6732_v28, 0.0  ;;  %v6752_v32 = vmul.f32 %v6746_v57, %v6732_v28  ;;  %v7943_v57 = vld [vmem:[%s14054_s7 + $0x28] sm:$0xff] }
 0xd9c   :  { %v6757_v37 = vsel %vm6737_vm4, %v6732_v28, %v6752_v32 }
 0xd9d   :  { %8303 = vmatmul.mubr.msk.f32.gmra.mrb[162].mxu1 %vm6303_vm12, %v6757_v37 }
 0xd9e   :  { %8332 = vmatprep.mubr.msk.f32.mxu1 %vm9726_vm11, %v15954_v36 }
 0xda1   :  { %8333 = vmatmul.mubr.msk.f32.vlgmr.msra.gmra.mrb[164].mxu1 %vm6303_vm12, %v6753_v5 }
 0xda2   :  { %8335 = vmatprep.mubr.msk.f32.mxu1 %vm9726_vm11, %v15954_v36  ;;  %8373 = vmatpush3.msk.msra.mxu1 %vm6231_vm9, %v7953_v2 }
 0xda3   :  { %8414 = vmatprep.subr.mxu1 %v15954_v36 }
 0xda5   :  { %8336 = vmatmul.mubr.msk.f32.gmra.mrb[166].mxu1 %vm6303_vm12, %v6754_v53 }
 0xda6   :  { %8338 = vmatprep.mubr.msk.f32.mxu1 %vm9726_vm11, %v15954_v36 }
 0xda9   :  { %8339 = vmatmul.mubr.msk.f32.gmra.mrb[168].mxu1 %vm6303_vm12, %v6755_v19 }
 0xdaa   :  { %8341 = vmatprep.mubr.msk.f32.mxu1 %vm9726_vm11, %v15954_v36 }
 0xdad   :  { %8342 = vmatmul.mubr.msk.f32.gmra.mrb[170].mxu1 %vm6303_vm12, %v6756_v43 }
 0xdae   :  { %8344 = vmatprep.mubr.msk.f32.mxu1 %vm9726_vm11, %v15954_v36 }
 0xdb1   :  { %8345 = vmatmul.mubr.msk.f32.gmra.mrb[172].mxu1 %vm6303_vm12, %v6757_v37 }
 0xdb2   :  { %8374 = vmatprep.mubr.msk.f32.mxu1 %vm9726_vm11, %v15954_v36 }
 0xdb5   :  { %8375 = vmatmul.mubr.msk.f32.vlgmr.msra.gmra.mrb[174].mxu1 %vm6303_vm12, %v6753_v5 }
 0xdb6   :  { %8377 = vmatprep.mubr.msk.f32.mxu1 %vm9726_vm11, %v15954_v36  ;;  %8415 = vmatpush3.msk.msra.mxu1 %vm1540_vm0, %v7500_v42 }
 0xdb9   :  { %8378 = vmatmul.mubr.msk.f32.gmra.mrb[176].mxu1 %vm6303_vm12, %v6754_v53 }
 0xdba   :  { %8380 = vmatprep.mubr.msk.f32.mxu1 %vm9726_vm11, %v15954_v36 }
 0xdbd   :  { %8381 = vmatmul.mubr.msk.f32.gmra.mrb[178].mxu1 %vm6303_vm12, %v6755_v19  ;;  %v7962_v19 = vld [vmem:[%s14054_s7 + $0x60] sm:$0xff] }
 0xdbe   :  { %8383 = vmatprep.mubr.msk.f32.mxu1 %vm9726_vm11, %v15954_v36 }
 0xdc1   :  { %8384 = vmatmul.mubr.msk.f32.gmra.mrb[180].mxu1 %vm6303_vm12, %v6756_v43 }
 0xdc2   :  { %8386 = vmatprep.mubr.msk.f32.mxu1 %vm9726_vm11, %v15954_v36 }
 0xdc5   :  { %8387 = vmatmul.mubr.msk.f32.gmra.mrb[182].mxu1 %vm6303_vm12, %v6757_v37 }
 0xdc6   :  { %8416 = vmatprep.mubr.msk.f32.mxu1 %vm9726_vm11, %v15954_v36 }
 0xdc9   :  { %8417 = vmatmul.mubr.msk.f32.vlgmr.msra.gmra.mrb[184].mxu1 %vm1533_vm1, %v13902_v62  ;;  %v7935_v62 = vld [vmem:[%s7656_s15] ss:$0 sm:$0xff] }
 0xdca   :  { %8419 = vmatprep.mubr.msk.f32.mxu1 %vm9726_vm11, %v15954_v36 }
 0xdcd   :  { %8420 = vmatmul.mubr.msk.f32.gmra.mrb[186].mxu1 %vm1533_vm1, %v13908_v49 }
 0xdce   :  { %8422 = vmatprep.mubr.msk.f32.mxu1 %vm9726_vm11, %v15954_v36 }
 0xdd1   :  { %8423 = vmatmul.mubr.msk.f32.gmra.mrb[188].mxu1 %vm1533_vm1, %v13914_v38 }
 0xdd2   :  { %8425 = vmatprep.mubr.msk.f32.mxu1 %vm9726_vm11, %v15954_v36 }
 0xdd5   :  { %8426 = vmatmul.mubr.msk.f32.gmra.mrb[190].mxu1 %vm1533_vm1, %v13920_v18 }
 0xdd6   :  { %8428 = vmatprep.mubr.msk.f32.mxu1 %vm9726_vm11, %v15954_v36 }
 0xdd9   :  { %8429 = vmatmul.mubr.msk.f32.gmra.mrb[192].mxu1 %vm1533_vm1, %v13926_v4 }
 0xe60   :  { %v6844_v14 = vpop.f32.mrb[154].mxu1 }
 0xe61   :  { %v8292_v51 = vpop.f32.mrb[155].mxu1 }
 0xe64   :  { %v6849_v34 = vpop.f32.mrb[156].mxu1 }
 0xe65   :  { %v9360_v12 = vpack.c.bf16 %v6849_v34, %v6844_v14  ;;  %v8295_v41 = vpop.f32.mrb[157].mxu1 }
 0xe67   :  { %9361 = vmatpush3.bf16.msra.mxu0 %v9360_v12 }
 0xe68   :  { %v6854_v3 = vpop.f32.mrb[158].mxu1  ;;  %9362 = vmatprep.subr.bf16.mxu0 %v9730_v56 }
 0xe69   :  { %v8298_v46 = vpop.f32.mrb[159].mxu1 }
 0xe6c   :  { %v6859_v40 = vpop.f32.mrb[160].mxu1 }
 0xe6d   :  { %v9363_v44 = vpack.c.bf16 %v6859_v40, %v6854_v3  ;;  %v8301_v9 = vpop.f32.mrb[161].mxu1 }
 0xe6e   :  { %v66_v9 = vstv %s7660_s19 }
 0xe6f   :  { %9364 = vmatpush3.bf16.msra.mxu0 %v9363_v44  ;;  %67 = vst [vmem:[#allocation6] sm:$0x1] %v66_v9 }
 0xe70   :  { %v6864_v63 = vpop.f32.mrb[162].mxu1  ;;  %8313 = vmatprep.subr.mxu0 %v15954_v36 }
 0xe71   :  { %v8304_v16 = vpop.f32.mrb[163].mxu1 }
 0xe73   :  { %8314 = vmatpush3.msra.mxu0 %v6864_v63 }
 0xe74   :  { %8316 = vmatmul.mubr.msk.f32.vlgmr.msra.gmra.mrb[86].mxu0 %vm6537_vm13, %v6868_v61  ;;  %v7060_v8 = vpop.f32.mrb[164].mxu1  ;;  %9365 = vmatprep.subr.bf16.mxu0 %v9730_v56 }
 0xe75   :  { %v8334_v47 = vpop.f32.mrb[165].mxu1  ;;  %8318 = vmatprep.mubr.msk.f32.mxu0 %vm9726_vm11, %v15954_v36 }
 0xe78   :  { %8319 = vmatmul.mubr.msk.f32.gmra.mrb[88].mxu0 %vm6537_vm13, %v6869_v6  ;;  %v7065_v25 = vpop.f32.mrb[166].mxu1 }
 0xe79   :  { %v9366_v13 = vpack.c.bf16 %v7065_v25, %v7060_v8  ;;  %v8337_v35 = vpop.f32.mrb[167].mxu1  ;;  %8321 = vmatprep.mubr.msk.f32.mxu0 %vm9726_vm11, %v15954_v36 }
 0xe7b   :  { %9367 = vmatpush3.bf16.msra.mxu0 %v9366_v13 }
 0xe7c   :  { %8322 = vmatmul.mubr.msk.f32.gmra.mrb[90].mxu0 %vm6537_vm13, %v6870_v22  ;;  %v7070_v1 = vpop.f32.mrb[168].mxu1  ;;  %9368 = vmatprep.subr.bf16.mxu0 %v9730_v56 }
 0xe7d   :  { %v8340_v26 = vpop.f32.mrb[169].mxu1  ;;  %8324 = vmatprep.mubr.msk.f32.mxu0 %vm9726_vm11, %v15954_v36 }
 0xe80   :  { %8325 = vmatmul.mubr.msk.f32.gmra.mrb[92].mxu0 %vm6537_vm13, %v6871_v39  ;;  %v7075_v54 = vpop.f32.mrb[170].mxu1 }
 0xe81   :  { %v9369_v29 = vpack.c.bf16 %v7075_v54, %v7070_v1  ;;  %v8343_v30 = vpop.f32.mrb[171].mxu1  ;;  %8327 = vmatprep.mubr.msk.f32.mxu0 %vm9726_vm11, %v15954_v36 }
 0xe83   :  { %9370 = vmatpush3.bf16.msra.mxu0 %v9369_v29 }
 0xe84   :  { %8328 = vmatmul.mubr.msk.f32.gmra.mrb[94].mxu0 %vm6537_vm13, %v6872_v48  ;;  %v7080_v10 = vpop.f32.mrb[172].mxu1  ;;  %8355 = vmatprep.subr.mxu0 %v15954_v36 }
 0xe85   :  { %v8346_v7 = vpop.f32.mrb[173].mxu1  ;;  %8357 = vmatprep.mubr.msk.f32.mxu0 %vm9726_vm11, %v15954_v36 }
 0xe87   :  { %8356 = vmatpush3.msra.mxu0 %v7080_v10 }
 0xe88   :  { %8358 = vmatmul.mubr.msk.f32.vlgmr.msra.gmra.mrb[86].mxu0 %vm6537_vm13, %v7943_v57  ;;  %v7271_v50 = vpop.f32.mrb[174].mxu1  ;;  %9371 = vmatprep.subr.bf16.mxu0 %v9730_v56 }
 0xe89   :  { %v8376_v21 = vpop.f32.mrb[175].mxu1  ;;  %8360 = vmatprep.mubr.msk.f32.mxu0 %vm9726_vm11, %v15954_v36 }
 0xe8c   :  { %8361 = vmatmul.mubr.msk.f32.gmra.mrb[88].mxu0 %vm6537_vm13, %v7944_v55  ;;  %v7276_v15 = vpop.f32.mrb[176].mxu1 }
 0xe8d   :  { %v9372_v31 = vpack.c.bf16 %v7276_v15, %v7271_v50  ;;  %v8379_v5 = vpop.f32.mrb[177].mxu1  ;;  %8363 = vmatprep.mubr.msk.f32.mxu0 %vm9726_vm11, %v15954_v36 }
 0xe8e   :  { %v7978_v5 = vld [vmem:[#allocation6] ss:$0 sm:$0xff] }
 0xe8f   :  { %9373 = vmatpush3.bf16.msra.mxu0 %v9372_v31 }
 0xe90   :  { %8364 = vmatmul.mubr.msk.f32.gmra.mrb[90].mxu0 %vm6537_vm13, %v7945_v0  ;;  %v7281_v33 = vpop.f32.mrb[178].mxu1  ;;  %9374 = vmatprep.subr.bf16.mxu0 %v9730_v56 }
 0xe91   :  { %v8382_v45 = vpop.f32.mrb[179].mxu1  ;;  %8366 = vmatprep.mubr.msk.f32.mxu0 %vm9726_vm11, %v15954_v36 }
 0xe94   :  { %8367 = vmatmul.mubr.msk.f32.gmra.mrb[92].mxu0 %vm6537_vm13, %v7946_v24  ;;  %v7286_v20 = vpop.f32.mrb[180].mxu1 }
 0xe95   :  { %v9375_v53 = vpack.c.bf16 %v7286_v20, %v7281_v33  ;;  %v8385_v60 = vpop.f32.mrb[181].mxu1  ;;  %8369 = vmatprep.mubr.msk.f32.mxu0 %vm9726_vm11, %v15954_v36 }
 0xe97   :  { %9376 = vmatpush3.bf16.msra.mxu0 %v9375_v53 }
 0xe98   :  { %8370 = vmatmul.mubr.msk.f32.gmra.mrb[94].mxu0 %vm6537_vm13, %v7947_v58  ;;  %v7291_v56 = vpop.f32.mrb[182].mxu1  ;;  %8397 = vmatprep.subr.mxu0 %v15954_v36 }
 0xe99   :  { %v8388_v52 = vpop.f32.mrb[183].mxu1  ;;  %8399 = vmatprep.mubr.msk.f32.mxu0 %vm9726_vm11, %v15954_v36 }
 0xe9b   :  { %8398 = vmatpush3.msra.mxu0 %v7291_v56 }
 0xe9c   :  { %8400 = vmatmul.mubr.msk.f32.vlgmr.msra.gmra.mrb[86].mxu0 %vm6537_vm13, %v7960_v23  ;;  %v7570_v0 = vpop.f32.mrb[184].mxu1 }
 0xe9d   :  { %8402 = vmatprep.mubr.msk.f32.mxu0 %vm9726_vm11, %v15954_v36  ;;  %v8418_v33 = vpop.f32.mrb[185].mxu1 }
 0xea0   :  { %8403 = vmatmul.mubr.msk.f32.gmra.mrb[88].mxu0 %vm6537_vm13, %v7961_v27  ;;  %v7575_v45 = vpop.f32.mrb[186].mxu1 }
 0xea1   :  { %8405 = vmatprep.mubr.msk.f32.mxu0 %vm9726_vm11, %v15954_v36  ;;  %v8421_v24 = vpop.f32.mrb[187].mxu1 }
 0xea4   :  { %8406 = vmatmul.mubr.msk.f32.gmra.mrb[90].mxu0 %vm6537_vm13, %v7962_v19  ;;  %v7580_v20 = vpop.f32.mrb[188].mxu1 }
 0xea5   :  { %8408 = vmatprep.mubr.msk.f32.mxu0 %vm9726_vm11, %v15954_v36  ;;  %v8424_v53 = vpop.f32.mrb[189].mxu1 }
 0xea8   :  { %8409 = vmatmul.mubr.msk.f32.gmra.mrb[92].mxu0 %vm6537_vm13, %v7963_v59  ;;  %v14175_v60 = vpop.f32.mrb[190].mxu1 }
 0xea9   :  { %8411 = vmatprep.mubr.msk.f32.mxu0 %vm9726_vm11, %v15954_v36  ;;  %v8427_v58 = vpop.f32.mrb[191].mxu1 }
 0xeac   :  { %8412 = vmatmul.mubr.msk.f32.gmra.mrb[94].mxu0 %vm6537_vm13, %v7964_v17  ;;  %v14177_v56 = vpop.f32.mrb[192].mxu1 }
 0xead   :  { %v8430_v52 = vpop.f32.mrb[193].mxu1 }
 0xf6f   :  { %v7382_v49 = vpop.f32.mrb[86].mxu0 }
 0xf70   :  { %v9393_v38 = vadd.f32 %v7935_v62, %v7382_v49  ;;  %v8401_v11 = vpop.f32.mrb[87].mxu0 }
 0xf72   :  { %v7411_v43 = vsel %vm6303_vm12, %v9393_v38, 0.0 }
 0xf73   :  { %7412 = vadd.xlane.f32.xlu1 %v7411_v43  ;;  %v7387_v28 = vpop.f32.mrb[88].mxu0 }
 0xf74   :  { %v9394_v18 = vadd.f32 %v7935_v62, %v7387_v28  ;;  %v8404_v32 = vpop.f32.mrb[89].mxu0 }
 0xf75   :  { %v7970_v32 = vld [vmem:[%s7657_s23] ss:$0 sm:$0xff] }
 0xf76   :  { %v7414_v36 = vsel %vm6303_vm12, %v9394_v18, 0.0 }
 0xf77   :  { %7415 = vadd.xlane.f32.xlu1 %v7414_v36  ;;  %v7392_v37 = vpop.f32.mrb[90].mxu0 }
 0xf78   :  { %v9395_v4 = vadd.f32 %v7935_v62, %v7392_v37  ;;  %v8407_v2 = vpop.f32.mrb[91].mxu0 }
 0xf79   :  { %v7971_v2 = vld [vmem:[%s7658_s27] ss:$0 sm:$0xff] }
 0xf7a   :  { %v7417_v14 = vsel %vm6303_vm12, %v9395_v4, 0.0 }
 0xf7b   :  { %7418 = vadd.xlane.f32.xlu1 %v7417_v14  ;;  %v7397_v51 = vpop.f32.mrb[92].mxu0 }
 0xf7c   :  { %v9396_v34 = vadd.f32 %v7935_v62, %v7397_v51  ;;  %v8410_v12 = vpop.f32.mrb[93].mxu0 }
 0xf7e   :  { %v7420_v41 = vsel %vm6303_vm12, %v9396_v34, 0.0 }
 0xf7f   :  { %7421 = vadd.xlane.f32.xlu1 %v7420_v41  ;;  %v7402_v3 = vpop.f32.mrb[94].mxu0 }
 0xf80   :  { %v9397_v46 = vadd.f32 %v7935_v62, %v7402_v3  ;;  %v8413_v40 = vpop.f32.mrb[95].mxu0 }
 0xf82   :  { %v7423_v44 = vsel %vm6303_vm12, %v9397_v46, 0.0 }
 0xf83   :  { %7424 = vadd.xlane.f32.xlu1 %v7423_v44 }
0x1000   :  { %v7413_v63 = vpop.xlane.xlu1 %7412 }
0x1001   :  { %v7426_v16 = vmul.f32 0.2, %v7413_v63 }
0x1003   :  { %v7431_v61 = vsub.f32 %v9393_v38, %v7426_v16 }
0x1004   :  { %v7416_v8 = vpop.xlane.xlu1 %7415 }
0x1005   :  { %v7427_v47 = vmul.f32 0.2, %v7416_v8  ;;  %v7436_v6 = vmul.f32 %v7431_v61, %v7431_v61 }
0x1007   :  { %v14154_v25 = vsub.f32 %v9394_v18, %v7427_v47  ;;  %v7441_v13 = vsel %vm6303_vm12, %v7436_v6, 0.0 }
0x1008   :  { %v7419_v35 = vpop.xlane.xlu1 %7418  ;;  %7442 = vadd.xlane.f32.xlu1 %v7441_v13 }
0x1009   :  { %v7428_v22 = vmul.f32 0.2, %v7419_v35  ;;  %v7437_v1 = vmul.f32 %v14154_v25, %v14154_v25 }
0x100b   :  { %v14159_v26 = vsub.f32 %v9395_v4, %v7428_v22  ;;  %v7444_v39 = vsel %vm6303_vm12, %v7437_v1, 0.0 }
0x100c   :  { %7445 = vadd.xlane.f32.xlu0 %v7444_v39  ;;  %v7422_v54 = vpop.xlane.xlu1 %7421 }
0x100d   :  { %v7429_v29 = vmul.f32 0.2, %v7422_v54  ;;  %v7438_v30 = vmul.f32 %v14159_v26, %v14159_v26 }
0x100f   :  { %v14164_v48 = vsub.f32 %v9396_v34, %v7429_v29  ;;  %v7447_v10 = vsel %vm6303_vm12, %v7438_v30, 0.0 }
0x1010   :  { %7448 = vadd.xlane.f32.xlu1 %v7447_v10  ;;  %v7425_v7 = vpop.xlane.xlu1 %7424 }
0x1011   :  { %v7430_v57 = vmul.f32 0.2, %v7425_v7  ;;  %v7439_v50 = vmul.f32 %v14164_v48, %v14164_v48 }
0x1013   :  { %v14169_v21 = vsub.f32 %v9397_v46, %v7430_v57  ;;  %v7450_v55 = vsel %vm6303_vm12, %v7439_v50, 0.0 }
0x1014   :  { %7451 = vadd.xlane.f32.xlu1 %v7450_v55 }
0x1015   :  { %v7440_v15 = vmul.f32 %v14169_v21, %v14169_v21 }
0x1017   :  { %v7453_v31 = vsel %vm6303_vm12, %v7440_v15, 0.0 }
0x1018   :  { %7454 = vadd.xlane.f32.xlu1 %v7453_v31 }
0x1029   :  { %7611 = vperm.xlu1 %9672, %v7978_v5  }
0x1095   :  { %v7443_v23 = vpop.xlane.xlu1 %7442 }
0x1096   :  { %v7456_v27 = vmul.f32 0.2, %v7443_v23 }
0x1098   :  { %v7461_v19 = vadd.f32 1e-05, %v7456_v27 }
0x1099   :  { %v7446_v59 = vpop.xlane.xlu0 %7445 }
0x109a   :  { %9691 = vrsqrt.f32 %v7461_v19  ;;  %v7457_v17 = vmul.f32 0.2, %v7446_v59 }
0x109c   :  { %v7462_v42 = vadd.f32 1e-05, %v7457_v17 }
0x109d   :  { %v7449_v62 = vpop.xlane.xlu1 %7448 }
0x109e   :  { %9693 = vrsqrt.f32 %v7462_v42  ;;  %v7458_v49 = vmul.f32 0.2, %v7449_v62 }
0x10a0   :  { %v7463_v38 = vadd.f32 1e-05, %v7458_v49 }
0x10a1   :  { %v7452_v11 = vpop.xlane.xlu1 %7451 }
0x10a2   :  { %9695 = vrsqrt.f32 %v7463_v38  ;;  %v7459_v43 = vmul.f32 0.2, %v7452_v11 }
0x10a4   :  { %v9692_v28 = vpop.eup %9691  ;;  %v7464_v18 = vadd.f32 1e-05, %v7459_v43 }
0x10a5   :  { %v7455_v36 = vpop.xlane.xlu1 %7454  ;;  %v7471_v37 = vmul.f32 %v9692_v28, %v7431_v61 }
0x10a6   :  { %9697 = vrsqrt.f32 %v7464_v18  ;;  %v7460_v4 = vmul.f32 0.2, %v7455_v36 }
0x10a7   :  { %v7483_v14 = vmul.f32 %v7970_v32, %v7471_v37 }
0x10a8   :  { %v9694_v51 = vpop.eup %9693  ;;  %v7465_v34 = vadd.f32 1e-05, %v7460_v4 }
0x10a9   :  { %v7495_v12 = vadd.f32 %v7971_v2, %v7483_v14  ;;  %v7472_v41 = vmul.f32 %v9694_v51, %v14154_v25  ;;  %v7612_v3 = vpop.permute.xlu1 %7611 }
0x10aa   :  { %9699 = vrsqrt.f32 %v7465_v34 }
0x10ab   :  { %v7594_v46 = vadd.f32 %v7570_v0, %v7495_v12  ;;  %v7484_v40 = vmul.f32 %v7970_v32, %v7472_v41 }
0x10ac   :  { %v9696_v44 = vpop.eup %9695 }
0x10ad   :  { %vm7599_vm0 = vcmp.ge.f32.partialorder %v7594_v46, 0.0  ;;  %v7614_v9 = vmul.f32 %v7612_v3, %v7594_v46  ;;  %v7496_v63 = vadd.f32 %v7971_v2, %v7484_v40  ;;  %v7473_v16 = vmul.f32 %v9696_v44, %v14159_v26 }
0x10af   :  { %v7619_v61 = vsel %vm7599_vm0, %v7594_v46, %v7614_v9  ;;  %v7595_v8 = vadd.f32 %v7575_v45, %v7496_v63  ;;  %v7485_v47 = vmul.f32 %v7970_v32, %v7473_v16 }
0x10b0   :  { %v9698_v6 = vpop.eup %9697  ;;  %7624 = vst.msk [vmem:[%s14188_s1] sm:$0xff] %vm6303_vm12, %v7619_v61 }
0x10b1   :  { %vm7600_vm1 = vcmp.ge.f32.partialorder %v7595_v8, 0.0  ;;  %v7615_v25 = vmul.f32 %v7612_v3, %v7595_v8  ;;  %v7497_v13 = vadd.f32 %v7971_v2, %v7485_v47  ;;  %v7474_v35 = vmul.f32 %v9698_v6, %v14164_v48 }
0x10b3   :  { %v7620_v22 = vsel %vm7600_vm1, %v7595_v8, %v7615_v25  ;;  %v7596_v1 = vadd.f32 %v7580_v20, %v7497_v13  ;;  %v7486_v39 = vmul.f32 %v7970_v32, %v7474_v35 }
0x10b4   :  { %v9700_v54 = vpop.eup %9699  ;;  %7625 = vst.msk [vmem:[%s14188_s1 + $0x8] sm:$0xff] %vm6303_vm12, %v7620_v22 }
0x10b5   :  { %vm7601_vm5 = vcmp.ge.f32.partialorder %v7596_v1, 0.0  ;;  %v7616_v26 = vmul.f32 %v7612_v3, %v7596_v1  ;;  %v7498_v29 = vadd.f32 %v7971_v2, %v7486_v39  ;;  %v7475_v30 = vmul.f32 %v9700_v54, %v14169_v21 }
0x10b7   :  { %v7621_v10 = vsel %vm7601_vm5, %v7596_v1, %v7616_v26  ;;  %v7597_v7 = vadd.f32 %v14175_v60, %v7498_v29  ;;  %v7487_v57 = vmul.f32 %v7970_v32, %v7475_v30 }
0x10b8   :  { %7626 = vst.msk [vmem:[%s14188_s1 + $0x10] sm:$0xff] %vm6303_vm12, %v7621_v10 }
0x10b9   :  { %vm7602_vm6 = vcmp.ge.f32.partialorder %v7597_v7, 0.0  ;;  %v7617_v48 = vmul.f32 %v7612_v3, %v7597_v7  ;;  %v7499_v50 = vadd.f32 %v7971_v2, %v7487_v57 }
0x10bb   :  { %v7622_v55 = vsel %vm7602_vm6, %v7597_v7, %v7617_v48  ;;  %v7598_v15 = vadd.f32 %v14177_v56, %v7499_v50 }
0x10bc   :  { %7627 = vst.msk [vmem:[%s14188_s1 + $0x18] sm:$0xff] %vm6303_vm12, %v7622_v55 }
0x10bd   :  { %vm7603_vm7 = vcmp.ge.f32.partialorder %v7598_v15, 0.0  ;;  %v7618_v31 = vmul.f32 %v7612_v3, %v7598_v15 }
0x10bf   :  { %v7623_v5 = vsel %vm7603_vm7, %v7598_v15, %v7618_v31 }
0x10c0   :  { %7628 = vst.msk [vmem:[%s14188_s1 + $0x20] sm:$0xff] %vm6303_vm12, %v7623_v5 }

</bundles_post_ra>
